<compile_context>
chip_gen: v7x
topology: tpu7x:2x2x1
jax: 0.10.0
libtpu: 0.0.40
codegen_flags: <defaults>
</compile_context>

<pallas_src>
import functools
import math

import jax
import jax.numpy as jnp
from jax.experimental import pallas as pl
from jax.experimental.pallas import tpu as pltpu


# --------------------------------------------------------------------------
# Activations (numerically stable, exact division — no approx reciprocal)
# --------------------------------------------------------------------------
def _stable_act(y, act):
    if act is None:
        return y
    z = jnp.exp(-jnp.abs(y))
    sig = jnp.where(y >= 0.0, 1.0, z) / (1.0 + z)
    return y * sig if act == "silu" else sig


# --------------------------------------------------------------------------
# Pallas kernel 1: channel-major fused-tap conv  (out = W @ taps + b, act)
#   a_ref : (1, 9*cin, TP) bf16   im2col tap slab (pixels on lanes)
#   w_ref : (cout, 9*cin)  bf16
#   b_ref : (cout, 1)      f32
#   o_ref : (1, cout, TP)          lane-dense output, no scratch accumulator
# --------------------------------------------------------------------------
def _mm_bias_act_kernel(a_ref, w_ref, b_ref, o_ref, *, act):
    y = jnp.dot(w_ref[...], a_ref[0], preferred_element_type=jnp.float32)
    o_ref[0] = _stable_act(y + b_ref[...], act).astype(o_ref.dtype)


def _largest_tile(P, max_tp):
    """Largest multiple-of-128 divisor of P that is <= max_tp."""
    q = P // 128
    best = 1
    for d in range(1, min(q, max_tp // 128) + 1):
        if q % d == 0:
            best = d
    return 128 * best


def _im2col_taps(xpad, oh, ow, stride):
    """9 pre-shifted tap copies via XLA strided slices -> (B, 9*cin, oh*ow)."""
    taps = []
    for dy in range(3):
        for dx in range(3):
            taps.append(xpad[:, :, dy:dy + stride * (oh - 1) + 1:stride,
                             dx:dx + stride * (ow - 1) + 1:stride])
    a = jnp.stack(taps, axis=1)                       # (B, 9, cin, oh, ow)
    B, cin = a.shape[0], a.shape[2]
    return a.reshape(B, 9 * cin, oh * ow)


def conv3x3_chmajor(x, w, b, *, stride, act="silu",
                    out_dtype=jnp.bfloat16, max_tp=4096):
    """3x3 reflect-pad conv, channel-major.  x:(B,cin,H,W), w:(3,3,cin,cout)."""
    B, cin, H, W = x.shape
    cout = w.shape[-1]
    oh, ow = (H // 2, W // 2) if stride == 2 else (H, W)
    P = oh * ow
    xpad = jnp.pad(x, ((0, 0), (0, 0), (1, 1), (1, 1)), mode="reflect")
    a = _im2col_taps(xpad, oh, ow, stride).astype(jnp.bfloat16)
    wmat = w.reshape(9 * cin, cout).T.astype(jnp.bfloat16)      # (cout, 9cin)
    bvec = b.reshape(cout, 1).astype(jnp.float32)
    TP = _largest_tile(P, max_tp)
    out = pl.pallas_call(
        functools.partial(_mm_bias_act_kernel, act=act),
        out_shape=jax.ShapeDtypeStruct((B, cout, P), out_dtype),
        grid_spec=pltpu.PrefetchScalarGridSpec(
            num_scalar_prefetch=0,
            grid=(B, P // TP),
            in_specs=[
                pl.BlockSpec((1, 9 * cin, TP), lambda bi, pi: (bi, 0, pi)),
                pl.BlockSpec((cout, 9 * cin), lambda bi, pi: (0, 0)),
                pl.BlockSpec((cout, 1), lambda bi, pi: (0, 0)),
            ],
            out_specs=pl.BlockSpec((1, cout, TP), lambda bi, pi: (bi, 0, pi)),
        ),
        compiler_params=pltpu.CompilerParams(
            dimension_semantics=("parallel", "parallel")),
    )(a, wmat, bvec)
    return out.reshape(B, cout, oh, ow)


# --------------------------------------------------------------------------
# Pallas kernel 2: fused head — conv3x3 reflect + SiLU + conv1x1 + Sigmoid
# on the tiny 8x8 feature grid; intermediate kept in VMEM (one pallas_call).
# --------------------------------------------------------------------------
def _head_kernel(a_ref, w1_ref, b1_ref, w2_ref, b2_ref, o_ref):
    h = _stable_act(
        jnp.dot(w1_ref[...], a_ref[0], preferred_element_type=jnp.float32)
        + b1_ref[...], "silu")
    y = jnp.dot(w2_ref[...], h.astype(w2_ref.dtype),
                preferred_element_type=jnp.float32) + b2_ref[...]
    o_ref[0] = _stable_act(y, "sigmoid").astype(o_ref.dtype)


def fused_head(feat, w1, b1, w2, b2):
    """feat:(B,cf,8,8) -> low-res blend weights (B, C*K, 64), channel-major."""
    B, cf, gh, gw = feat.shape
    end = w1.shape[-1]
    ck = w2.shape[-1]
    P = gh * gw
    fpad = jnp.pad(feat, ((0, 0), (0, 0), (1, 1), (1, 1)), mode="reflect")
    a = _im2col_taps(fpad, gh, gw, 1).astype(jnp.bfloat16)      # (B, 9cf, 64)
    w1m = w1.reshape(9 * cf, end).T.astype(jnp.bfloat16)
    b1v = b1.reshape(end, 1).astype(jnp.float32)
    w2m = w2.reshape(end, ck).T.astype(jnp.bfloat16)
    b2v = b2.reshape(ck, 1).astype(jnp.float32)
    return pl.pallas_call(
        _head_kernel,
        out_shape=jax.ShapeDtypeStruct((B, ck, P), jnp.float32),
        grid_spec=pltpu.PrefetchScalarGridSpec(
            num_scalar_prefetch=0,
            grid=(B,),
            in_specs=[
                pl.BlockSpec((1, 9 * cf, P), lambda bi: (bi, 0, 0)),
                pl.BlockSpec((end, 9 * cf), lambda bi: (0, 0)),
                pl.BlockSpec((end, 1), lambda bi: (0, 0)),
                pl.BlockSpec((ck, end), lambda bi: (0, 0)),
                pl.BlockSpec((ck, 1), lambda bi: (0, 0)),
            ],
            out_specs=pl.BlockSpec((1, ck, P), lambda bi: (bi, 0, 0)),
        ),
        compiler_params=pltpu.CompilerParams(
            dimension_semantics=("parallel",)),
    )(a, w1m, b1v, w2m, b2v)


# --------------------------------------------------------------------------
# Pallas kernel 3: adaptive 1D-LUT transform, lane-dense, with the bilinear
# (align_corners) upsample of the 8x8 blend-weight field fused in.
# MXU operands in bf16 (f32 accumulate); VPU math stays f32 (v5e-safe).
# --------------------------------------------------------------------------
_LUT_VMEM_LIMIT = 32 * 1024 * 1024      # safe on v5e/v6e (128 MiB) and v7x (64)
_LUT_TEMP_BUDGET = 12 * 1024 * 1024     # budget for in-kernel temporaries


def _lut_kernel(x_ref, wl_ref, lutb_ref, o_ref, *,
                C, K, N, GL, W, TP, scale_y, scale_x):
    # x_ref   : (1, C, TP)       intensities, pixels on lanes (channel-major)
    # wl_ref  : (1, C*K, GL*GL)  low-res blend weights (bf16), col = u*GL + v
    # lutb_ref: (C*K, C*N)       block-diagonal LUT matrix (bf16)
    # o_ref   : (1, C, TP)       enhanced pixels, clamped to [0, 1]
    x = x_ref[0]                                               # (C, TP) f32

    # per-pixel (row, col); exact for H*W < 2^24 pixels (f32 mantissa)
    # TODO(synk): for >16M-pixel images switch to an index_map-supplied row base.
    p0 = (pl.program_id(1) * TP).astype(jnp.float32)
    pf = jax.lax.broadcasted_iota(jnp.int32, (1, TP), 1).astype(jnp.float32) + p0
    rowf = jnp.floor(pf * (1.0 / W))
    colf = pf - rowf * W
    rowf = rowf + jnp.where(colf >= W, 1.0, 0.0) - jnp.where(colf < 0.0, 1.0, 0.0)
    colf = pf - rowf * W

    # fused align_corners bilinear upsample of the GLxGL weight grid
    sy = rowf * scale_y                                        # (1, TP)
    sx = colf * scale_x
    g = jax.lax.broadcasted_iota(jnp.int32, (GL, TP), 0).astype(jnp.float32)
    hy = jnp.maximum(1.0 - jnp.abs(sy - g), 0.0)               # (GL, TP)
    hx = jnp.maximum(1.0 - jnp.abs(sx - g), 0.0)
    s = (hy[:, None, :] * hx[None, :, :]).reshape(GL * GL, TP)
    w_full = jnp.dot(wl_ref[0], s.astype(jnp.bfloat16),
                     preferred_element_type=jnp.float32)        # (CK, TP)

    # piecewise-linear LUT interpolation: one block-diagonal MXU matmul
    xs = jnp.clip(x * (N - 1.0), 0.0, N - 1.0)                 # (C, TP)
    nodes = jax.lax.broadcasted_iota(jnp.int32, (C, N, TP), 1).astype(jnp.float32)
    hat = jnp.maximum(1.0 - jnp.abs(xs[:, None, :] - nodes), 0.0)
    vals = jnp.dot(lutb_ref[...], hat.reshape(C * N, TP).astype(jnp.bfloat16),
                   preferred_element_type=jnp.float32)          # (CK, TP)

    blended = (w_full * vals).reshape(C, K, TP)
    o_ref[0] = jnp.clip(jnp.sum(blended, axis=1), 0.0, 1.0)


def _pick_pixel_tile(P, C, N, K, GL):
    """Largest lane-dense pixel tile whose temporaries fit the VMEM budget."""
    # f32-equivalent words/pixel of the large in-kernel temporaries
    words = 3 * C * N // 2 + 2 * GL * GL + 4 * C * K + 6 * C + 16
    max_tp = (_LUT_TEMP_BUDGET // (4 * words)) // 128 * 128
    max_tp = max(128, min(max_tp, 8192))
    Pp = ((P + 127) // 128) * 128
    q = Pp // 128
    best = 1
    for d in range(1, min(q, max_tp // 128) + 1):
        if q % d == 0:
            best = d
    return 128 * best, Pp


def pallas_adaptive_lut_transform(img_nchw, wl_lowres_cm, lut, grid_size):
    """img:(B,C,H,W) f32; wl_lowres_cm:(B,C*K,GL*GL); lut:(C,K,N)."""
    B, C, H, W = img_nchw.shape
    GL = grid_size
    CK = wl_lowres_cm.shape[1]
    K = CK // C
    N = lut.shape[-1]
    P = H * W
    TP, Pp = _pick_pixel_tile(P, C, N, K, GL)

    x_cp = img_nchw.reshape(B, C, P).astype(jnp.float32)       # free reshape
    if Pp != P:
        x_cp = jnp.pad(x_cp, ((0, 0), (0, 0), (0, Pp - P)))

    wl_b = wl_lowres_cm.astype(jnp.bfloat16)                   # tiny, VMEM-resident
    # block-diagonal LUT matrix: [c*K+k, c*N+n] = lut[c, k, n]
    lutb = (jnp.eye(C, dtype=jnp.float32)[:, None, :, None] *
            lut.astype(jnp.float32)[:, :, None, :]).reshape(C * K, C * N)
    lutb = lutb.astype(jnp.bfloat16)

    scale_y = float(GL - 1) / float(H - 1) if H > 1 else 0.0
    scale_x = float(GL - 1) / float(W - 1) if W > 1 else 0.0

    kernel = functools.partial(_lut_kernel, C=C, K=K, N=N, GL=GL, W=W, TP=TP,
                               scale_y=scale_y, scale_x=scale_x)
    out = pl.pallas_call(
        kernel,
        out_shape=jax.ShapeDtypeStruct((B, C, Pp), jnp.float32),
        grid_spec=pltpu.PrefetchScalarGridSpec(
            num_scalar_prefetch=0,
            grid=(B, Pp // TP),
            in_specs=[
                pl.BlockSpec((1, C, TP), lambda b, i: (b, 0, i)),
                pl.BlockSpec((1, CK, GL * GL), lambda b, i: (b, 0, 0)),
                pl.BlockSpec((CK, C * N), lambda b, i: (0, 0)),
            ],
            out_specs=pl.BlockSpec((1, C, TP), lambda b, i: (b, 0, i)),
        ),
        compiler_params=pltpu.CompilerParams(
            dimension_semantics=("parallel", "parallel"),
            vmem_limit_bytes=_LUT_VMEM_LIMIT),
    )(x_cp, wl_b, lutb)
    if Pp != P:
        out = out[:, :, :P]
    return out.reshape(B, C, H, W)


# --------------------------------------------------------------------------
# Plain-JAX glue: separable (MXU) bilinear resize and tiny 8x8 avg-pool
# --------------------------------------------------------------------------
def _interp_matrix(out_size, in_size):
    """Align-corners bilinear interpolation matrix (out_size, in_size)."""
    if in_size == 1:
        return jnp.ones((out_size, 1), jnp.float32)
    scale = (in_size - 1) / (out_size - 1) if out_size > 1 else 0.0
    src = jnp.arange(out_size, dtype=jnp.float32) * scale
    i0 = jnp.clip(jnp.floor(src).astype(jnp.int32), 0, in_size - 2)
    frac = src - i0.astype(jnp.float32)
    cols = jnp.arange(in_size, dtype=jnp.int32)[None, :]
    return (jnp.where(cols == i0[:, None], 1.0 - frac[:, None], 0.0) +
            jnp.where(cols == i0[:, None] + 1, frac[:, None], 0.0))


def bilinear_resize_nchw(x, oh, ow):
    """Separable align_corners resize = two matmuls (no gathers)."""
    ry = _interp_matrix(oh, x.shape[2])                        # (oh, H)
    rx = _interp_matrix(ow, x.shape[3])                        # (ow, W)
    t = jnp.einsum("bchw,xw->bchx", x, rx)                     # (B,C,H,ow)
    return jnp.einsum("yh,bchx->bcyx", ry, t)                  # (B,C,oh,ow)


def avg_pool_chmajor(x, p):
    B, C, H, W = x.shape
    return x.astype(jnp.float32).reshape(
        B, C, H // p, p, W // p, p).mean(axis=(3, 5))


# --------------------------------------------------------------------------
# Parameters (deterministic synthetic init — shapes from the torch __init__)
# --------------------------------------------------------------------------
def init_params(key, in_channels=3, base_lut_count=4, lut_nodes=16,
                begin_channels=8, end_channel=16):
    FC = [begin_channels, begin_channels * 2, begin_channels * 4,
          begin_channels * 8]
    keys = jax.random.split(key, 7)

    def conv_init(k, kh, kw, cin, cout):
        w = jax.random.normal(k, (kh, kw, cin, cout), jnp.float32)
        w = w / math.sqrt(kh * kw * cin)
        return w, jnp.zeros((cout,), jnp.float32)

    return {
        "c1": conv_init(keys[0], 3, 3, in_channels, FC[0]),
        "c2": conv_init(keys[1], 3, 3, FC[0], FC[1]),
        "c3": conv_init(keys[2], 3, 3, FC[1], FC[2]),
        "c4": conv_init(keys[3], 3, 3, FC[2], FC[3]),
        "h1": conv_init(keys[4], 3, 3, sum(FC), end_channel),
        "h2": conv_init(keys[5], 1, 1, end_channel,
                        in_channels * base_lut_count),
        # torch.randn(in_channels, base_lut_count, lut_nodes)
        "lut": jax.random.normal(
            keys[6], (in_channels, base_lut_count, lut_nodes), jnp.float32),
    }


# --------------------------------------------------------------------------
# Full forward pass of Adaptive1DLUTNet (everything channel-major / NCHW)
# --------------------------------------------------------------------------
def adaptive_1dlut_net_forward(img_nchw, params):
    img = img_nchw.astype(jnp.float32)

    # F.interpolate(img, (256, 256), bilinear, align_corners=True)
    x = bilinear_resize_nchw(img, 256, 256).astype(jnp.bfloat16)  # (B,C,256,256)

    # MultiScaleFeatureExtractor: fused-tap channel-major convs + SiLU
    f1 = conv3x3_chmajor(x, *params["c1"], stride=2)      # (B, FC0, 128, 128)
    f2 = conv3x3_chmajor(f1, *params["c2"], stride=2)     # (B, FC1,  64,  64)
    f3 = conv3x3_chmajor(f2, *params["c3"], stride=2)     # (B, FC2,  32,  32)
    f4 = conv3x3_chmajor(f3, *params["c4"], stride=2)     # (B, FC3,  16,  16)
    feat = jnp.concatenate(
        [avg_pool_chmajor(f1, 16), avg_pool_chmajor(f2, 8),
         avg_pool_chmajor(f3, 4), avg_pool_chmajor(f4, 2)], axis=1)  # (B,sumFC,8,8)

    # fused head: conv3x3 reflect + SiLU, conv1x1 + Sigmoid (one kernel)
    w1, b1 = params["h1"]
    w2, b2 = params["h2"]
    weights_lowres = fused_head(feat, w1, b1, w2, b2)      # (B, C*K, 64)

    # Adaptive 1D-LUT transform with the (H, W) bilinear weight upsample,
    # LUT interpolation, blending and clamp(0, 1) fused in one kernel.
    return pallas_adaptive_lut_transform(img, weights_lowres, params["lut"],
                                         grid_size=feat.shape[-1])


# --------------------------------------------------------------------------
if __name__ == "__main__":
    key = jax.random.PRNGKey(0)
    k_img, k_par = jax.random.split(key)

    B, C, H, W = 2, 3, 32, 32
    base_lut_count, lut_nodes = 4, 16
    begin_channels, end_channel = 8, 16

    img = jax.random.uniform(k_img, (B, C, H, W), jnp.float32)
    params = init_params(k_par, in_channels=C, base_lut_count=base_lut_count,
                         lut_nodes=lut_nodes, begin_channels=begin_channels,
                         end_channel=end_channel)

    fwd = jax.jit(adaptive_1dlut_net_forward)
    out = fwd(img, params)
    jax.block_until_ready(out)

    assert out.shape == (B, C, H, W), out.shape
    assert out.dtype == jnp.float32
    assert bool(jnp.all(jnp.isfinite(out)))
    assert bool(jnp.all(out >= 0.0)) and bool(jnp.all(out <= 1.0))
    print("KERNEL_OK")
</pallas_src>

<mosaic_0001>
module attributes {stable_mosaic.version = 11 : i64} {
  func.func @_mm_bias_act_kernel(%arg0: i32, %arg1: i32, %arg2: memref<1x27x4096xbf16, #tpu.memory_space<vmem>>, %arg3: memref<8x27xbf16, #tpu.memory_space<vmem>>, %arg4: memref<8x1xf32, #tpu.memory_space<vmem>>, %arg5: memref<1x8x4096xbf16, #tpu.memory_space<vmem>>) attributes {dimension_semantics = [#tpu.dimension_semantics<parallel>, #tpu.dimension_semantics<parallel>], iteration_bounds = array<i64: 2, 4>, scalar_prefetch = 0 : i64, scratch_operands = 0 : i64, tpu.core_type = #tpu.core_type<tc>, window_params = [{transform_indices = @transform_0, window_bounds = array<i64: 1, 27, 4096>}, {pipeline_mode = #tpu.pipeline_mode<synchronous>, transform_indices = @transform_1, window_bounds = array<i64: 8, 27>}, {pipeline_mode = #tpu.pipeline_mode<synchronous>, transform_indices = @transform_2, window_bounds = array<i64: 8, 1>}, {transform_indices = @transform_3, window_bounds = array<i64: 1, 8, 4096>}]} {
    %c0 = arith.constant 0 : index
    %c0_0 = arith.constant 0 : index
    %0 = vector.load %arg3[%c0, %c0_0] : memref<8x27xbf16, #tpu.memory_space<vmem>>, vector<8x27xbf16>
    %c0_1 = arith.constant 0 : index
    %c0_2 = arith.constant 0 : index
    %c0_3 = arith.constant 0 : index
    %1 = vector.load %arg2[%c0_1, %c0_2, %c0_3] : memref<1x27x4096xbf16, #tpu.memory_space<vmem>>, vector<1x27x4096xbf16>
    %2 = vector.shape_cast %1 : vector<1x27x4096xbf16> to vector<27x4096xbf16>
    %cst = arith.constant dense<0.000000e+00> : vector<8x4096xf32>
    %3 = tpu.matmul %0, %2, %cst {dimension_numbers = #tpu.dot_dimension_numbers<[1], [0], [0], [1], [0, 0, 1, 1], [], []>} : vector<8x27xbf16>, vector<27x4096xbf16>, vector<8x4096xf32> -> vector<8x4096xf32>
    %c0_4 = arith.constant 0 : index
    %c0_5 = arith.constant 0 : index
    %4 = vector.load %arg4[%c0_4, %c0_5] : memref<8x1xf32, #tpu.memory_space<vmem>>, vector<8x1xf32>
    %5 = vector.broadcast %4 : vector<8x1xf32> to vector<8x4096xf32>
    %6 = arith.addf %3, %5 : vector<8x4096xf32>
    %7 = math.absf %6 : vector<8x4096xf32>
    %cst_6 = arith.constant 0.000000e+00 : f32
    %8 = vector.broadcast %cst_6 : f32 to vector<8x4096xf32>
    %9 = arith.subf %8, %7 : vector<8x4096xf32>
    %10 = math.exp %9 : vector<8x4096xf32>
    %cst_7 = arith.constant 0.000000e+00 : f32
    %11 = vector.broadcast %cst_7 : f32 to vector<8x4096xf32>
    %12 = arith.cmpf oge, %6, %11 : vector<8x4096xf32>
    %cst_8 = arith.constant 1.000000e+00 : f32
    %13 = vector.broadcast %cst_8 : f32 to vector<8x4096xf32>
    %14 = arith.select %12, %13, %10 : vector<8x4096xi1>, vector<8x4096xf32>
    %cst_9 = arith.constant 1.000000e+00 : f32
    %15 = vector.broadcast %cst_9 : f32 to vector<8x4096xf32>
    %16 = arith.addf %15, %10 : vector<8x4096xf32>
    %17 = arith.divf %14, %16 : vector<8x4096xf32>
    %18 = arith.mulf %6, %17 : vector<8x4096xf32>
    %19 = arith.truncf %18 : vector<8x4096xf32> to vector<8x4096xbf16>
    %c0_10 = arith.constant 0 : index
    %c0_11 = arith.constant 0 : index
    %c0_12 = arith.constant 0 : index
    %20 = vector.load %arg5[%c0_10, %c0_11, %c0_12] : memref<1x8x4096xbf16, #tpu.memory_space<vmem>>, vector<1x8x4096xbf16>
    %21 = vector.shape_cast %20 : vector<1x8x4096xbf16> to vector<8x4096xbf16>
    %22 = vector.shape_cast %19 : vector<8x4096xbf16> to vector<1x8x4096xbf16>
    tpu.vector_store %arg5[%c0_10, %c0_11, %c0_12], %22 {strides = array<i32>} : memref<1x8x4096xbf16, #tpu.memory_space<vmem>>, vector<1x8x4096xbf16>,
    return
  }
  func.func @transform_0(%arg0: i32, %arg1: i32) -> (i32, i32, i32) {
    %c0_i32 = arith.constant 0 : i32
    %c0_i32_0 = arith.constant 0 : i32
    return %arg0, %c0_i32, %arg1 : i32, i32, i32
  }
  func.func @transform_1(%arg0: i32, %arg1: i32) -> (i32, i32) {
    %c0_i32 = arith.constant 0 : i32
    %c0_i32_0 = arith.constant 0 : i32
    %c0_i32_1 = arith.constant 0 : i32
    return %c0_i32, %c0_i32_0 : i32, i32
  }
  func.func @transform_2(%arg0: i32, %arg1: i32) -> (i32, i32) {
    %c0_i32 = arith.constant 0 : i32
    %c0_i32_0 = arith.constant 0 : i32
    %c0_i32_1 = arith.constant 0 : i32
    return %c0_i32, %c0_i32_0 : i32, i32
  }
  func.func @transform_3(%arg0: i32, %arg1: i32) -> (i32, i32, i32) {
    %c0_i32 = arith.constant 0 : i32
    %c0_i32_0 = arith.constant 0 : i32
    return %arg0, %c0_i32, %arg1 : i32, i32, i32
  }
}

module attributes {stable_mosaic.version = 11 : i64} {
  func.func @_mm_bias_act_kernel(%arg0: i32, %arg1: i32, %arg2: memref<1x72x4096xbf16, #tpu.memory_space<vmem>>, %arg3: memref<16x72xbf16, #tpu.memory_space<vmem>>, %arg4: memref<16x1xf32, #tpu.memory_space<vmem>>, %arg5: memref<1x16x4096xbf16, #tpu.memory_space<vmem>>) attributes {dimension_semantics = [#tpu.dimension_semantics<parallel>, #tpu.dimension_semantics<parallel>], iteration_bounds = array<i64: 2, 1>, scalar_prefetch = 0 : i64, scratch_operands = 0 : i64, tpu.core_type = #tpu.core_type<tc>, window_params = [{transform_indices = @transform_0, window_bounds = array<i64: 1, 72, 4096>}, {pipeline_mode = #tpu.pipeline_mode<synchronous>, transform_indices = @transform_1, window_bounds = array<i64: 16, 72>}, {pipeline_mode = #tpu.pipeline_mode<synchronous>, transform_indices = @transform_2, window_bounds = array<i64: 16, 1>}, {transform_indices = @transform_3, window_bounds = array<i64: 1, 16, 4096>}]} {
    %c0 = arith.constant 0 : index
    %c0_0 = arith.constant 0 : index
    %0 = vector.load %arg3[%c0, %c0_0] : memref<16x72xbf16, #tpu.memory_space<vmem>>, vector<16x72xbf16>
    %c0_1 = arith.constant 0 : index
    %c0_2 = arith.constant 0 : index
    %c0_3 = arith.constant 0 : index
    %1 = vector.load %arg2[%c0_1, %c0_2, %c0_3] : memref<1x72x4096xbf16, #tpu.memory_space<vmem>>, vector<1x72x4096xbf16>
    %2 = vector.shape_cast %1 : vector<1x72x4096xbf16> to vector<72x4096xbf16>
    %cst = arith.constant dense<0.000000e+00> : vector<16x4096xf32>
    %3 = tpu.matmul %0, %2, %cst {dimension_numbers = #tpu.dot_dimension_numbers<[1], [0], [0], [1], [0, 0, 1, 1], [], []>} : vector<16x72xbf16>, vector<72x4096xbf16>, vector<16x4096xf32> -> vector<16x4096xf32>
    %c0_4 = arith.constant 0 : index
    %c0_5 = arith.constant 0 : index
    %4 = vector.load %arg4[%c0_4, %c0_5] : memref<16x1xf32, #tpu.memory_space<vmem>>, vector<16x1xf32>
    %5 = vector.broadcast %4 : vector<16x1xf32> to vector<16x4096xf32>
    %6 = arith.addf %3, %5 : vector<16x4096xf32>
    %7 = math.absf %6 : vector<16x4096xf32>
    %cst_6 = arith.constant 0.000000e+00 : f32
    %8 = vector.broadcast %cst_6 : f32 to vector<16x4096xf32>
    %9 = arith.subf %8, %7 : vector<16x4096xf32>
    %10 = math.exp %9 : vector<16x4096xf32>
    %cst_7 = arith.constant 0.000000e+00 : f32
    %11 = vector.broadcast %cst_7 : f32 to vector<16x4096xf32>
    %12 = arith.cmpf oge, %6, %11 : vector<16x4096xf32>
    %cst_8 = arith.constant 1.000000e+00 : f32
    %13 = vector.broadcast %cst_8 : f32 to vector<16x4096xf32>
    %14 = arith.select %12, %13, %10 : vector<16x4096xi1>, vector<16x4096xf32>
    %cst_9 = arith.constant 1.000000e+00 : f32
    %15 = vector.broadcast %cst_9 : f32 to vector<16x4096xf32>
    %16 = arith.addf %15, %10 : vector<16x4096xf32>
    %17 = arith.divf %14, %16 : vector<16x4096xf32>
    %18 = arith.mulf %6, %17 : vector<16x4096xf32>
    %19 = arith.truncf %18 : vector<16x4096xf32> to vector<16x4096xbf16>
    %c0_10 = arith.constant 0 : index
    %c0_11 = arith.constant 0 : index
    %c0_12 = arith.constant 0 : index
    %20 = vector.load %arg5[%c0_10, %c0_11, %c0_12] : memref<1x16x4096xbf16, #tpu.memory_space<vmem>>, vector<1x16x4096xbf16>
    %21 = vector.shape_cast %20 : vector<1x16x4096xbf16> to vector<16x4096xbf16>
    %22 = vector.shape_cast %19 : vector<16x4096xbf16> to vector<1x16x4096xbf16>
    tpu.vector_store %arg5[%c0_10, %c0_11, %c0_12], %22 {strides = array<i32>} : memref<1x16x4096xbf16, #tpu.memory_space<vmem>>, vector<1x16x4096xbf16>,
    return
  }
  func.func @transform_0(%arg0: i32, %arg1: i32) -> (i32, i32, i32) {
    %c0_i32 = arith.constant 0 : i32
    %c0_i32_0 = arith.constant 0 : i32
    return %arg0, %c0_i32, %arg1 : i32, i32, i32
  }
  func.func @transform_1(%arg0: i32, %arg1: i32) -> (i32, i32) {
    %c0_i32 = arith.constant 0 : i32
    %c0_i32_0 = arith.constant 0 : i32
    %c0_i32_1 = arith.constant 0 : i32
    return %c0_i32, %c0_i32_0 : i32, i32
  }
  func.func @transform_2(%arg0: i32, %arg1: i32) -> (i32, i32) {
    %c0_i32 = arith.constant 0 : i32
    %c0_i32_0 = arith.constant 0 : i32
    %c0_i32_1 = arith.constant 0 : i32
    return %c0_i32, %c0_i32_0 : i32, i32
  }
  func.func @transform_3(%arg0: i32, %arg1: i32) -> (i32, i32, i32) {
    %c0_i32 = arith.constant 0 : i32
    %c0_i32_0 = arith.constant 0 : i32
    return %arg0, %c0_i32, %arg1 : i32, i32, i32
  }
}

module attributes {stable_mosaic.version = 11 : i64} {
  func.func @_mm_bias_act_kernel(%arg0: i32, %arg1: i32, %arg2: memref<1x144x1024xbf16, #tpu.memory_space<vmem>>, %arg3: memref<32x144xbf16, #tpu.memory_space<vmem>>, %arg4: memref<32x1xf32, #tpu.memory_space<vmem>>, %arg5: memref<1x32x1024xbf16, #tpu.memory_space<vmem>>) attributes {dimension_semantics = [#tpu.dimension_semantics<parallel>, #tpu.dimension_semantics<parallel>], iteration_bounds = array<i64: 2, 1>, scalar_prefetch = 0 : i64, scratch_operands = 0 : i64, tpu.core_type = #tpu.core_type<tc>, window_params = [{transform_indices = @transform_0, window_bounds = array<i64: 1, 144, 1024>}, {pipeline_mode = #tpu.pipeline_mode<synchronous>, transform_indices = @transform_1, window_bounds = array<i64: 32, 144>}, {pipeline_mode = #tpu.pipeline_mode<synchronous>, transform_indices = @transform_2, window_bounds = array<i64: 32, 1>}, {transform_indices = @transform_3, window_bounds = array<i64: 1, 32, 1024>}]} {
    %c0 = arith.constant 0 : index
    %c0_0 = arith.constant 0 : index
    %0 = vector.load %arg3[%c0, %c0_0] : memref<32x144xbf16, #tpu.memory_space<vmem>>, vector<32x144xbf16>
    %c0_1 = arith.constant 0 : index
    %c0_2 = arith.constant 0 : index
    %c0_3 = arith.constant 0 : index
    %1 = vector.load %arg2[%c0_1, %c0_2, %c0_3] : memref<1x144x1024xbf16, #tpu.memory_space<vmem>>, vector<1x144x1024xbf16>
    %2 = vector.shape_cast %1 : vector<1x144x1024xbf16> to vector<144x1024xbf16>
    %cst = arith.constant dense<0.000000e+00> : vector<32x1024xf32>
    %3 = tpu.matmul %0, %2, %cst {dimension_numbers = #tpu.dot_dimension_numbers<[1], [0], [0], [1], [0, 0, 1, 1], [], []>} : vector<32x144xbf16>, vector<144x1024xbf16>, vector<32x1024xf32> -> vector<32x1024xf32>
    %c0_4 = arith.constant 0 : index
    %c0_5 = arith.constant 0 : index
    %4 = vector.load %arg4[%c0_4, %c0_5] : memref<32x1xf32, #tpu.memory_space<vmem>>, vector<32x1xf32>
    %5 = vector.broadcast %4 : vector<32x1xf32> to vector<32x1024xf32>
    %6 = arith.addf %3, %5 : vector<32x1024xf32>
    %7 = math.absf %6 : vector<32x1024xf32>
    %cst_6 = arith.constant 0.000000e+00 : f32
    %8 = vector.broadcast %cst_6 : f32 to vector<32x1024xf32>
    %9 = arith.subf %8, %7 : vector<32x1024xf32>
    %10 = math.exp %9 : vector<32x1024xf32>
    %cst_7 = arith.constant 0.000000e+00 : f32
    %11 = vector.broadcast %cst_7 : f32 to vector<32x1024xf32>
    %12 = arith.cmpf oge, %6, %11 : vector<32x1024xf32>
    %cst_8 = arith.constant 1.000000e+00 : f32
    %13 = vector.broadcast %cst_8 : f32 to vector<32x1024xf32>
    %14 = arith.select %12, %13, %10 : vector<32x1024xi1>, vector<32x1024xf32>
    %cst_9 = arith.constant 1.000000e+00 : f32
    %15 = vector.broadcast %cst_9 : f32 to vector<32x1024xf32>
    %16 = arith.addf %15, %10 : vector<32x1024xf32>
    %17 = arith.divf %14, %16 : vector<32x1024xf32>
    %18 = arith.mulf %6, %17 : vector<32x1024xf32>
    %19 = arith.truncf %18 : vector<32x1024xf32> to vector<32x1024xbf16>
    %c0_10 = arith.constant 0 : index
    %c0_11 = arith.constant 0 : index
    %c0_12 = arith.constant 0 : index
    %20 = vector.load %arg5[%c0_10, %c0_11, %c0_12] : memref<1x32x1024xbf16, #tpu.memory_space<vmem>>, vector<1x32x1024xbf16>
    %21 = vector.shape_cast %20 : vector<1x32x1024xbf16> to vector<32x1024xbf16>
    %22 = vector.shape_cast %19 : vector<32x1024xbf16> to vector<1x32x1024xbf16>
    tpu.vector_store %arg5[%c0_10, %c0_11, %c0_12], %22 {strides = array<i32>} : memref<1x32x1024xbf16, #tpu.memory_space<vmem>>, vector<1x32x1024xbf16>,
    return
  }
  func.func @transform_0(%arg0: i32, %arg1: i32) -> (i32, i32, i32) {
    %c0_i32 = arith.constant 0 : i32
    %c0_i32_0 = arith.constant 0 : i32
    return %arg0, %c0_i32, %arg1 : i32, i32, i32
  }
  func.func @transform_1(%arg0: i32, %arg1: i32) -> (i32, i32) {
    %c0_i32 = arith.constant 0 : i32
    %c0_i32_0 = arith.constant 0 : i32
    %c0_i32_1 = arith.constant 0 : i32
    return %c0_i32, %c0_i32_0 : i32, i32
  }
  func.func @transform_2(%arg0: i32, %arg1: i32) -> (i32, i32) {
    %c0_i32 = arith.constant 0 : i32
    %c0_i32_0 = arith.constant 0 : i32
    %c0_i32_1 = arith.constant 0 : i32
    return %c0_i32, %c0_i32_0 : i32, i32
  }
  func.func @transform_3(%arg0: i32, %arg1: i32) -> (i32, i32, i32) {
    %c0_i32 = arith.constant 0 : i32
    %c0_i32_0 = arith.constant 0 : i32
    return %arg0, %c0_i32, %arg1 : i32, i32, i32
  }
}

module attributes {stable_mosaic.version = 11 : i64} {
  func.func @_mm_bias_act_kernel(%arg0: i32, %arg1: i32, %arg2: memref<1x288x256xbf16, #tpu.memory_space<vmem>>, %arg3: memref<64x288xbf16, #tpu.memory_space<vmem>>, %arg4: memref<64x1xf32, #tpu.memory_space<vmem>>, %arg5: memref<1x64x256xbf16, #tpu.memory_space<vmem>>) attributes {dimension_semantics = [#tpu.dimension_semantics<parallel>, #tpu.dimension_semantics<parallel>], iteration_bounds = array<i64: 2, 1>, scalar_prefetch = 0 : i64, scratch_operands = 0 : i64, tpu.core_type = #tpu.core_type<tc>, window_params = [{transform_indices = @transform_0, window_bounds = array<i64: 1, 288, 256>}, {pipeline_mode = #tpu.pipeline_mode<synchronous>, transform_indices = @transform_1, window_bounds = array<i64: 64, 288>}, {pipeline_mode = #tpu.pipeline_mode<synchronous>, transform_indices = @transform_2, window_bounds = array<i64: 64, 1>}, {transform_indices = @transform_3, window_bounds = array<i64: 1, 64, 256>}]} {
    %c0 = arith.constant 0 : index
    %c0_0 = arith.constant 0 : index
    %0 = vector.load %arg3[%c0, %c0_0] : memref<64x288xbf16, #tpu.memory_space<vmem>>, vector<64x288xbf16>
    %c0_1 = arith.constant 0 : index
    %c0_2 = arith.constant 0 : index
    %c0_3 = arith.constant 0 : index
    %1 = vector.load %arg2[%c0_1, %c0_2, %c0_3] : memref<1x288x256xbf16, #tpu.memory_space<vmem>>, vector<1x288x256xbf16>
    %2 = vector.shape_cast %1 : vector<1x288x256xbf16> to vector<288x256xbf16>
    %cst = arith.constant dense<0.000000e+00> : vector<64x256xf32>
    %3 = tpu.matmul %0, %2, %cst {dimension_numbers = #tpu.dot_dimension_numbers<[1], [0], [0], [1], [0, 0, 1, 1], [], []>} : vector<64x288xbf16>, vector<288x256xbf16>, vector<64x256xf32> -> vector<64x256xf32>
    %c0_4 = arith.constant 0 : index
    %c0_5 = arith.constant 0 : index
    %4 = vector.load %arg4[%c0_4, %c0_5] : memref<64x1xf32, #tpu.memory_space<vmem>>, vector<64x1xf32>
    %5 = vector.broadcast %4 : vector<64x1xf32> to vector<64x256xf32>
    %6 = arith.addf %3, %5 : vector<64x256xf32>
    %7 = math.absf %6 : vector<64x256xf32>
    %cst_6 = arith.constant 0.000000e+00 : f32
    %8 = vector.broadcast %cst_6 : f32 to vector<64x256xf32>
    %9 = arith.subf %8, %7 : vector<64x256xf32>
    %10 = math.exp %9 : vector<64x256xf32>
    %cst_7 = arith.constant 0.000000e+00 : f32
    %11 = vector.broadcast %cst_7 : f32 to vector<64x256xf32>
    %12 = arith.cmpf oge, %6, %11 : vector<64x256xf32>
    %cst_8 = arith.constant 1.000000e+00 : f32
    %13 = vector.broadcast %cst_8 : f32 to vector<64x256xf32>
    %14 = arith.select %12, %13, %10 : vector<64x256xi1>, vector<64x256xf32>
    %cst_9 = arith.constant 1.000000e+00 : f32
    %15 = vector.broadcast %cst_9 : f32 to vector<64x256xf32>
    %16 = arith.addf %15, %10 : vector<64x256xf32>
    %17 = arith.divf %14, %16 : vector<64x256xf32>
    %18 = arith.mulf %6, %17 : vector<64x256xf32>
    %19 = arith.truncf %18 : vector<64x256xf32> to vector<64x256xbf16>
    %c0_10 = arith.constant 0 : index
    %c0_11 = arith.constant 0 : index
    %c0_12 = arith.constant 0 : index
    %20 = vector.load %arg5[%c0_10, %c0_11, %c0_12] : memref<1x64x256xbf16, #tpu.memory_space<vmem>>, vector<1x64x256xbf16>
    %21 = vector.shape_cast %20 : vector<1x64x256xbf16> to vector<64x256xbf16>
    %22 = vector.shape_cast %19 : vector<64x256xbf16> to vector<1x64x256xbf16>
    tpu.vector_store %arg5[%c0_10, %c0_11, %c0_12], %22 {strides = array<i32>} : memref<1x64x256xbf16, #tpu.memory_space<vmem>>, vector<1x64x256xbf16>,
    return
  }
  func.func @transform_0(%arg0: i32, %arg1: i32) -> (i32, i32, i32) {
    %c0_i32 = arith.constant 0 : i32
    %c0_i32_0 = arith.constant 0 : i32
    return %arg0, %c0_i32, %arg1 : i32, i32, i32
  }
  func.func @transform_1(%arg0: i32, %arg1: i32) -> (i32, i32) {
    %c0_i32 = arith.constant 0 : i32
    %c0_i32_0 = arith.constant 0 : i32
    %c0_i32_1 = arith.constant 0 : i32
    return %c0_i32, %c0_i32_0 : i32, i32
  }
  func.func @transform_2(%arg0: i32, %arg1: i32) -> (i32, i32) {
    %c0_i32 = arith.constant 0 : i32
    %c0_i32_0 = arith.constant 0 : i32
    %c0_i32_1 = arith.constant 0 : i32
    return %c0_i32, %c0_i32_0 : i32, i32
  }
  func.func @transform_3(%arg0: i32, %arg1: i32) -> (i32, i32, i32) {
    %c0_i32 = arith.constant 0 : i32
    %c0_i32_0 = arith.constant 0 : i32
    return %arg0, %c0_i32, %arg1 : i32, i32, i32
  }
}

module attributes {stable_mosaic.version = 11 : i64} {
  func.func @_head_kernel(%arg0: i32, %arg1: memref<1x1080x64xbf16, #tpu.memory_space<vmem>>, %arg2: memref<16x1080xbf16, #tpu.memory_space<vmem>>, %arg3: memref<16x1xf32, #tpu.memory_space<vmem>>, %arg4: memref<12x16xbf16, #tpu.memory_space<vmem>>, %arg5: memref<12x1xf32, #tpu.memory_space<vmem>>, %arg6: memref<1x12x64xf32, #tpu.memory_space<vmem>>) attributes {dimension_semantics = [#tpu.dimension_semantics<parallel>], iteration_bounds = array<i64: 2>, scalar_prefetch = 0 : i64, scratch_operands = 0 : i64, tpu.core_type = #tpu.core_type<tc>, window_params = [{transform_indices = @transform_0, window_bounds = array<i64: 1, 1080, 64>}, {pipeline_mode = #tpu.pipeline_mode<synchronous>, transform_indices = @transform_1, window_bounds = array<i64: 16, 1080>}, {pipeline_mode = #tpu.pipeline_mode<synchronous>, transform_indices = @transform_2, window_bounds = array<i64: 16, 1>}, {pipeline_mode = #tpu.pipeline_mode<synchronous>, transform_indices = @transform_3, window_bounds = array<i64: 12, 16>}, {pipeline_mode = #tpu.pipeline_mode<synchronous>, transform_indices = @transform_4, window_bounds = array<i64: 12, 1>}, {transform_indices = @transform_5, window_bounds = array<i64: 1, 12, 64>}]} {
    %c0 = arith.constant 0 : index
    %c0_0 = arith.constant 0 : index
    %0 = vector.load %arg2[%c0, %c0_0] : memref<16x1080xbf16, #tpu.memory_space<vmem>>, vector<16x1080xbf16>
    %c0_1 = arith.constant 0 : index
    %c0_2 = arith.constant 0 : index
    %c0_3 = arith.constant 0 : index
    %1 = vector.load %arg1[%c0_1, %c0_2, %c0_3] : memref<1x1080x64xbf16, #tpu.memory_space<vmem>>, vector<1x1080x64xbf16>
    %2 = vector.shape_cast %1 : vector<1x1080x64xbf16> to vector<1080x64xbf16>
    %cst = arith.constant dense<0.000000e+00> : vector<16x64xf32>
    %3 = tpu.matmul %0, %2, %cst {dimension_numbers = #tpu.dot_dimension_numbers<[1], [0], [0], [1], [0, 0, 1, 1], [], []>} : vector<16x1080xbf16>, vector<1080x64xbf16>, vector<16x64xf32> -> vector<16x64xf32>
    %c0_4 = arith.constant 0 : index
    %c0_5 = arith.constant 0 : index
    %4 = vector.load %arg3[%c0_4, %c0_5] : memref<16x1xf32, #tpu.memory_space<vmem>>, vector<16x1xf32>
    %5 = vector.broadcast %4 : vector<16x1xf32> to vector<16x64xf32>
    %6 = arith.addf %3, %5 : vector<16x64xf32>
    %7 = math.absf %6 : vector<16x64xf32>
    %cst_6 = arith.constant 0.000000e+00 : f32
    %8 = vector.broadcast %cst_6 : f32 to vector<16x64xf32>
    %9 = arith.subf %8, %7 : vector<16x64xf32>
    %10 = math.exp %9 : vector<16x64xf32>
    %cst_7 = arith.constant 0.000000e+00 : f32
    %11 = vector.broadcast %cst_7 : f32 to vector<16x64xf32>
    %12 = arith.cmpf oge, %6, %11 : vector<16x64xf32>
    %cst_8 = arith.constant 1.000000e+00 : f32
    %13 = vector.broadcast %cst_8 : f32 to vector<16x64xf32>
    %14 = arith.select %12, %13, %10 : vector<16x64xi1>, vector<16x64xf32>
    %cst_9 = arith.constant 1.000000e+00 : f32
    %15 = vector.broadcast %cst_9 : f32 to vector<16x64xf32>
    %16 = arith.addf %15, %10 : vector<16x64xf32>
    %17 = arith.divf %14, %16 : vector<16x64xf32>
    %18 = arith.mulf %6, %17 : vector<16x64xf32>
    %c0_10 = arith.constant 0 : index
    %c0_11 = arith.constant 0 : index
    %19 = vector.load %arg4[%c0_10, %c0_11] : memref<12x16xbf16, #tpu.memory_space<vmem>>, vector<12x16xbf16>
    %20 = arith.truncf %18 : vector<16x64xf32> to vector<16x64xbf16>
    %cst_12 = arith.constant dense<0.000000e+00> : vector<12x64xf32>
    %21 = tpu.matmul %19, %20, %cst_12 {dimension_numbers = #tpu.dot_dimension_numbers<[1], [0], [0], [1], [0, 0, 1, 1], [], []>} : vector<12x16xbf16>, vector<16x64xbf16>, vector<12x64xf32> -> vector<12x64xf32>
    %c0_13 = arith.constant 0 : index
    %c0_14 = arith.constant 0 : index
    %22 = vector.load %arg5[%c0_13, %c0_14] : memref<12x1xf32, #tpu.memory_space<vmem>>, vector<12x1xf32>
    %23 = vector.broadcast %22 : vector<12x1xf32> to vector<12x64xf32>
    %24 = arith.addf %21, %23 : vector<12x64xf32>
    %25 = math.absf %24 : vector<12x64xf32>
    %cst_15 = arith.constant 0.000000e+00 : f32
    %26 = vector.broadcast %cst_15 : f32 to vector<12x64xf32>
    %27 = arith.subf %26, %25 : vector<12x64xf32>
    %28 = math.exp %27 : vector<12x64xf32>
    %cst_16 = arith.constant 0.000000e+00 : f32
    %29 = vector.broadcast %cst_16 : f32 to vector<12x64xf32>
    %30 = arith.cmpf oge, %24, %29 : vector<12x64xf32>
    %cst_17 = arith.constant 1.000000e+00 : f32
    %31 = vector.broadcast %cst_17 : f32 to vector<12x64xf32>
    %32 = arith.select %30, %31, %28 : vector<12x64xi1>, vector<12x64xf32>
    %cst_18 = arith.constant 1.000000e+00 : f32
    %33 = vector.broadcast %cst_18 : f32 to vector<12x64xf32>
    %34 = arith.addf %33, %28 : vector<12x64xf32>
    %35 = arith.divf %32, %34 : vector<12x64xf32>
    %c0_19 = arith.constant 0 : index
    %c0_20 = arith.constant 0 : index
    %c0_21 = arith.constant 0 : index
    %36 = vector.load %arg6[%c0_19, %c0_20, %c0_21] : memref<1x12x64xf32, #tpu.memory_space<vmem>>, vector<1x12x64xf32>
    %37 = vector.shape_cast %36 : vector<1x12x64xf32> to vector<12x64xf32>
    %38 = vector.shape_cast %35 : vector<12x64xf32> to vector<1x12x64xf32>
    tpu.vector_store %arg6[%c0_19, %c0_20, %c0_21], %38 {strides = array<i32>} : memref<1x12x64xf32, #tpu.memory_space<vmem>>, vector<1x12x64xf32>,
    return
  }
  func.func @transform_0(%arg0: i32) -> (i32, i32, i32) {
    %c0_i32 = arith.constant 0 : i32
    %c0_i32_0 = arith.constant 0 : i32
    %c0_i32_1 = arith.constant 0 : i32
    return %arg0, %c0_i32, %c0_i32_0 : i32, i32, i32
  }
  func.func @transform_1(%arg0: i32) -> (i32, i32) {
    %c0_i32 = arith.constant 0 : i32
    %c0_i32_0 = arith.constant 0 : i32
    %c0_i32_1 = arith.constant 0 : i32
    return %c0_i32, %c0_i32_0 : i32, i32
  }
  func.func @transform_2(%arg0: i32) -> (i32, i32) {
    %c0_i32 = arith.constant 0 : i32
    %c0_i32_0 = arith.constant 0 : i32
    %c0_i32_1 = arith.constant 0 : i32
    return %c0_i32, %c0_i32_0 : i32, i32
  }
  func.func @transform_3(%arg0: i32) -> (i32, i32) {
    %c0_i32 = arith.constant 0 : i32
    %c0_i32_0 = arith.constant 0 : i32
    %c0_i32_1 = arith.constant 0 : i32
    return %c0_i32, %c0_i32_0 : i32, i32
  }
  func.func @transform_4(%arg0: i32) -> (i32, i32) {
    %c0_i32 = arith.constant 0 : i32
    %c0_i32_0 = arith.constant 0 : i32
    %c0_i32_1 = arith.constant 0 : i32
    return %c0_i32, %c0_i32_0 : i32, i32
  }
  func.func @transform_5(%arg0: i32) -> (i32, i32, i32) {
    %c0_i32 = arith.constant 0 : i32
    %c0_i32_0 = arith.constant 0 : i32
    %c0_i32_1 = arith.constant 0 : i32
    return %arg0, %c0_i32, %c0_i32_0 : i32, i32, i32
  }
}

module attributes {stable_mosaic.version = 11 : i64} {
  func.func @_lut_kernel(%arg0: i32, %arg1: i32, %arg2: memref<1x3x1024xf32, #tpu.memory_space<vmem>>, %arg3: memref<1x12x64xbf16, #tpu.memory_space<vmem>>, %arg4: memref<12x48xbf16, #tpu.memory_space<vmem>>, %arg5: memref<1x3x1024xf32, #tpu.memory_space<vmem>>) attributes {dimension_semantics = [#tpu.dimension_semantics<parallel>, #tpu.dimension_semantics<parallel>], iteration_bounds = array<i64: 2, 1>, scalar_prefetch = 0 : i64, scratch_operands = 0 : i64, tpu.core_type = #tpu.core_type<tc>, window_params = [{transform_indices = @transform_0, window_bounds = array<i64: 1, 3, 1024>}, {transform_indices = @transform_1, window_bounds = array<i64: 1, 12, 64>}, {pipeline_mode = #tpu.pipeline_mode<synchronous>, transform_indices = @transform_2, window_bounds = array<i64: 12, 48>}, {transform_indices = @transform_3, window_bounds = array<i64: 1, 3, 1024>}]} {
    %c0 = arith.constant 0 : index
    %c0_0 = arith.constant 0 : index
    %c0_1 = arith.constant 0 : index
    %0 = vector.load %arg2[%c0, %c0_0, %c0_1] : memref<1x3x1024xf32, #tpu.memory_space<vmem>>, vector<1x3x1024xf32>
    %1 = vector.shape_cast %0 : vector<1x3x1024xf32> to vector<3x1024xf32>
    %c1024_i32 = arith.constant 1024 : i32
    %2 = arith.muli %arg1, %c1024_i32 : i32
    %3 = arith.sitofp %2 : i32 to f32
    %4 = tpu.iota {dimensions = array<i32: 1>} : vector<1x1024xi32>
    %5 = arith.sitofp %4 : vector<1x1024xi32> to vector<1x1024xf32>
    %6 = vector.broadcast %3 : f32 to vector<1x1024xf32>
    %7 = arith.addf %5, %6 : vector<1x1024xf32>
    %cst = arith.constant 3.125000e-02 : f32
    %8 = vector.broadcast %cst : f32 to vector<1x1024xf32>
    %9 = arith.mulf %7, %8 : vector<1x1024xf32>
    %10 = math.floor %9 : vector<1x1024xf32>
    %cst_2 = arith.constant 3.200000e+01 : f32
    %11 = vector.broadcast %cst_2 : f32 to vector<1x1024xf32>
    %12 = arith.mulf %10, %11 : vector<1x1024xf32>
    %13 = arith.subf %7, %12 : vector<1x1024xf32>
    %cst_3 = arith.constant 3.200000e+01 : f32
    %14 = vector.broadcast %cst_3 : f32 to vector<1x1024xf32>
    %15 = arith.cmpf oge, %13, %14 : vector<1x1024xf32>
    %cst_4 = arith.constant 1.000000e+00 : f32
    %cst_5 = arith.constant 0.000000e+00 : f32
    %16 = vector.broadcast %cst_4 : f32 to vector<1x1024xf32>
    %17 = vector.broadcast %cst_5 : f32 to vector<1x1024xf32>
    %18 = arith.select %15, %16, %17 : vector<1x1024xi1>, vector<1x1024xf32>
    %19 = arith.addf %10, %18 : vector<1x1024xf32>
    %cst_6 = arith.constant 0.000000e+00 : f32
    %20 = vector.broadcast %cst_6 : f32 to vector<1x1024xf32>
    %21 = arith.cmpf olt, %13, %20 : vector<1x1024xf32>
    %cst_7 = arith.constant 1.000000e+00 : f32
    %cst_8 = arith.constant 0.000000e+00 : f32
    %22 = vector.broadcast %cst_7 : f32 to vector<1x1024xf32>
    %23 = vector.broadcast %cst_8 : f32 to vector<1x1024xf32>
    %24 = arith.select %21, %22, %23 : vector<1x1024xi1>, vector<1x1024xf32>
    %25 = arith.subf %19, %24 : vector<1x1024xf32>
    %cst_9 = arith.constant 3.200000e+01 : f32
    %26 = vector.broadcast %cst_9 : f32 to vector<1x1024xf32>
    %27 = arith.mulf %25, %26 : vector<1x1024xf32>
    %28 = arith.subf %7, %27 : vector<1x1024xf32>
    %cst_10 = arith.constant 0.225806445 : f32
    %29 = vector.broadcast %cst_10 : f32 to vector<1x1024xf32>
    %30 = arith.mulf %25, %29 : vector<1x1024xf32>
    %cst_11 = arith.constant 0.225806445 : f32
    %31 = vector.broadcast %cst_11 : f32 to vector<1x1024xf32>
    %32 = arith.mulf %28, %31 : vector<1x1024xf32>
    %33 = tpu.iota {dimensions = array<i32: 0>} : vector<8x1024xi32>
    %34 = arith.sitofp %33 : vector<8x1024xi32> to vector<8x1024xf32>
    %35 = vector.broadcast %30 : vector<1x1024xf32> to vector<8x1024xf32>
    %36 = arith.subf %35, %34 : vector<8x1024xf32>
    %37 = math.absf %36 : vector<8x1024xf32>
    %cst_12 = arith.constant 1.000000e+00 : f32
    %38 = vector.broadcast %cst_12 : f32 to vector<8x1024xf32>
    %39 = arith.subf %38, %37 : vector<8x1024xf32>
    %cst_13 = arith.constant 0.000000e+00 : f32
    %40 = vector.broadcast %cst_13 : f32 to vector<8x1024xf32>
    %41 = arith.maximumf %39, %40 : vector<8x1024xf32>
    %42 = vector.broadcast %32 : vector<1x1024xf32> to vector<8x1024xf32>
    %43 = arith.subf %42, %34 : vector<8x1024xf32>
    %44 = math.absf %43 : vector<8x1024xf32>
    %cst_14 = arith.constant 1.000000e+00 : f32
    %45 = vector.broadcast %cst_14 : f32 to vector<8x1024xf32>
    %46 = arith.subf %45, %44 : vector<8x1024xf32>
    %cst_15 = arith.constant 0.000000e+00 : f32
    %47 = vector.broadcast %cst_15 : f32 to vector<8x1024xf32>
    %48 = arith.maximumf %46, %47 : vector<8x1024xf32>
    %49 = vector.shape_cast %41 : vector<8x1024xf32> to vector<8x1x1024xf32>
    %50 = vector.shape_cast %48 : vector<8x1024xf32> to vector<1x8x1024xf32>
    %51 = vector.broadcast %49 : vector<8x1x1024xf32> to vector<8x8x1024xf32>
    %52 = vector.broadcast %50 : vector<1x8x1024xf32> to vector<8x8x1024xf32>
    %53 = arith.mulf %51, %52 : vector<8x8x1024xf32>
    %54 = vector.shape_cast %53 : vector<8x8x1024xf32> to vector<64x1024xf32>
    %c0_16 = arith.constant 0 : index
    %c0_17 = arith.constant 0 : index
    %c0_18 = arith.constant 0 : index
    %55 = vector.load %arg3[%c0_16, %c0_17, %c0_18] : memref<1x12x64xbf16, #tpu.memory_space<vmem>>, vector<1x12x64xbf16>
    %56 = vector.shape_cast %55 : vector<1x12x64xbf16> to vector<12x64xbf16>
    %57 = arith.truncf %54 : vector<64x1024xf32> to vector<64x1024xbf16>
    %cst_19 = arith.constant dense<0.000000e+00> : vector<12x1024xf32>
    %58 = tpu.matmul %56, %57, %cst_19 {dimension_numbers = #tpu.dot_dimension_numbers<[1], [0], [0], [1], [0, 0, 1, 1], [], []>} : vector<12x64xbf16>, vector<64x1024xbf16>, vector<12x1024xf32> -> vector<12x1024xf32>
    %cst_20 = arith.constant 1.500000e+01 : f32
    %59 = vector.broadcast %cst_20 : f32 to vector<3x1024xf32>
    %60 = arith.mulf %1, %59 : vector<3x1024xf32>
    %cst_21 = arith.constant 0.000000e+00 : f32
    %cst_22 = arith.constant 1.500000e+01 : f32
    %61 = vector.broadcast %cst_21 : f32 to vector<3x1024xf32>
    %62 = arith.maximumf %61, %60 : vector<3x1024xf32>
    %63 = vector.broadcast %cst_22 : f32 to vector<3x1024xf32>
    %64 = arith.minimumf %63, %62 : vector<3x1024xf32>
    %65 = tpu.iota {dimensions = array<i32: 1>} : vector<3x16x1024xi32>
    %66 = arith.sitofp %65 : vector<3x16x1024xi32> to vector<3x16x1024xf32>
    %67 = vector.shape_cast %64 : vector<3x1024xf32> to vector<3x1x1024xf32>
    %68 = vector.broadcast %67 : vector<3x1x1024xf32> to vector<3x16x1024xf32>
    %69 = arith.subf %68, %66 : vector<3x16x1024xf32>
    %70 = math.absf %69 : vector<3x16x1024xf32>
    %cst_23 = arith.constant 1.000000e+00 : f32
    %71 = vector.broadcast %cst_23 : f32 to vector<3x16x1024xf32>
    %72 = arith.subf %71, %70 : vector<3x16x1024xf32>
    %cst_24 = arith.constant 0.000000e+00 : f32
    %73 = vector.broadcast %cst_24 : f32 to vector<3x16x1024xf32>
    %74 = arith.maximumf %72, %73 : vector<3x16x1024xf32>
    %c0_25 = arith.constant 0 : index
    %c0_26 = arith.constant 0 : index
    %75 = vector.load %arg4[%c0_25, %c0_26] : memref<12x48xbf16, #tpu.memory_space<vmem>>, vector<12x48xbf16>
    %76 = vector.shape_cast %74 : vector<3x16x1024xf32> to vector<48x1024xf32>
    %77 = arith.truncf %76 : vector<48x1024xf32> to vector<48x1024xbf16>
    %cst_27 = arith.constant dense<0.000000e+00> : vector<12x1024xf32>
    %78 = tpu.matmul %75, %77, %cst_27 {dimension_numbers = #tpu.dot_dimension_numbers<[1], [0], [0], [1], [0, 0, 1, 1], [], []>} : vector<12x48xbf16>, vector<48x1024xbf16>, vector<12x1024xf32> -> vector<12x1024xf32>
    %79 = arith.mulf %58, %78 : vector<12x1024xf32>
    %80 = vector.shape_cast %79 : vector<12x1024xf32> to vector<3x4x1024xf32>
    %cst_28 = arith.constant dense<0.000000e+00> : vector<3x1024xf32>
    %81 = vector.multi_reduction <add>, %80, %cst_28 [1] : vector<3x4x1024xf32> to vector<3x1024xf32>
    %cst_29 = arith.constant 0.000000e+00 : f32
    %cst_30 = arith.constant 1.000000e+00 : f32
    %82 = vector.broadcast %cst_29 : f32 to vector<3x1024xf32>
    %83 = arith.maximumf %82, %81 : vector<3x1024xf32>
    %84 = vector.broadcast %cst_30 : f32 to vector<3x1024xf32>
    %85 = arith.minimumf %84, %83 : vector<3x1024xf32>
    %c0_31 = arith.constant 0 : index
    %c0_32 = arith.constant 0 : index
    %c0_33 = arith.constant 0 : index
    %86 = vector.load %arg5[%c0_31, %c0_32, %c0_33] : memref<1x3x1024xf32, #tpu.memory_space<vmem>>, vector<1x3x1024xf32>
    %87 = vector.shape_cast %86 : vector<1x3x1024xf32> to vector<3x1024xf32>
    %88 = vector.shape_cast %85 : vector<3x1024xf32> to vector<1x3x1024xf32>
    tpu.vector_store %arg5[%c0_31, %c0_32, %c0_33], %88 {strides = array<i32>} : memref<1x3x1024xf32, #tpu.memory_space<vmem>>, vector<1x3x1024xf32>,
    return
  }
  func.func @transform_0(%arg0: i32, %arg1: i32) -> (i32, i32, i32) {
    %c0_i32 = arith.constant 0 : i32
    %c0_i32_0 = arith.constant 0 : i32
    return %arg0, %c0_i32, %arg1 : i32, i32, i32
  }
  func.func @transform_1(%arg0: i32, %arg1: i32) -> (i32, i32, i32) {
    %c0_i32 = arith.constant 0 : i32
    %c0_i32_0 = arith.constant 0 : i32
    %c0_i32_1 = arith.constant 0 : i32
    return %arg0, %c0_i32, %c0_i32_0 : i32, i32, i32
  }
  func.func @transform_2(%arg0: i32, %arg1: i32) -> (i32, i32) {
    %c0_i32 = arith.constant 0 : i32
    %c0_i32_0 = arith.constant 0 : i32
    %c0_i32_1 = arith.constant 0 : i32
    return %c0_i32, %c0_i32_0 : i32, i32
  }
  func.func @transform_3(%arg0: i32, %arg1: i32) -> (i32, i32, i32) {
    %c0_i32 = arith.constant 0 : i32
    %c0_i32_0 = arith.constant 0 : i32
    return %arg0, %c0_i32, %arg1 : i32, i32, i32
  }
}

</mosaic_0001>

<bundles_post_ra>
// kernel: adaptive_1dlut_net_forward.6
= control target key start
LH: loop header
LB: loop body
LE: loop exit
PB: predicated region body
PF: predicated region fallthrough
CT: control target
= control target key end

     0   :  { %s2414_s12 = smov 0   ;;  %s2416_s13 = smov 0   ;;  %s3155_s0 = inlined_call_operand.vmem [shape: bf16[2,27,16384], index: 0, kind: input, shape index: {}]   ;;  %s3156_s1 = inlined_call_operand.vmem [shape: bf16[8,27], index: 1, kind: input, shape index: {}]   ;;  %s3157_s2 = inlined_call_operand.vmem [shape: f32[8,1], index: 2, kind: input, shape index: {}]   ;;  %s3158_s3 = inlined_call_operand.vmem [shape: bf16[2,8,16384], index: 3, kind: output, shape index: {}]  }
   0x1   :  { %s2418_s14 = smov 0   ;;  %s2420_s15 = smov 0  }
   0x2   :  { %s2422_s16 = smov 0   ;;  %s2424_s17 = smov 0  }
   0x3   :  { %s2426_s18 = smov 0  }
   0x4 LB: > { %s22_s19 = sadd.s32 1, %s2382_s16  ;;  %s25_s20 = sadd.s32 1, %s2386_s17  ;;  %s2390_s18 = sphi %s2426_s18, %s13_s18   ;;  %s2386_s17 = sphi %s2424_s17, %s3165_s17   ;;  %s2382_s16 = sphi %s2422_s16, %s3164_s16   ;;  %s2378_s15 = sphi %s2420_s15, %s3163_s15   ;;  %s2374_s14 = sphi %s2418_s14, %s3162_s14   ;;  %s2370_s13 = sphi %s2416_s13, %s3161_s13   ;;  %s2366_s12 = sphi %s2414_s12, %s3160_s12  }
   0x5   : > { %p23_p0 = scmp.ge.s32.totalorder %s22_s19, 4  ;;  %p41_p1 = scmp.ne.s32.totalorder %s2370_s13, %s2366_s12 }
   0x6   : > { %p42_p2 = scmp.eq.s32.totalorder %s2390_s18, 0  ;;  %s34_s24 = sadd.s32 1, %s2370_s13 }
   0x7   : > { %s3167_s19 = smov (%p23_p0, %s22_s19), 0  ;;  %s3169_s20 = smov (!%p23_p0, %s25_s20), %s2386_s17 }
   0x8   : > { %p43_p3 = por %p42_p2, %p41_p1  ;;  %p27_p4 = scmp.ge.s32.totalorder %s3169_s20, 2 }
   0x9   : > { %s30_s21 = ssub.s32 %s2382_s16, %s3167_s19  ;;  %p2025_p6 = scmp.ge.s32.totalorder %s2390_s18, 8 }
   0xa   : > { %s3171_s20 = smov (%p27_p4, %s3169_s20), 0 }
   0xb   : > { %s29_s22 = ssub.s32 %s2386_s17, %s3171_s20  ;;  %143 = sbr.rel (%p2025_p6) target bundleno = 57 (0x39), region = 24 }
   0xc   : > { %s31_s23 = sor.u32 %s30_s21, %s29_s22 }
   0xd   : > { %p32_p5 = scmp.eq.s32.totalorder %s31_s23, 0 }
   0xf   : > { %s2465_s25 = scalar_select %p32_p5, %s2370_s13, %s34_s24  }
  0x12   : > { %146 = sbr.rel (!%p43_p3) target bundleno = 57 (0x39), region = 28  ;;  %s148_s26 = sand.u32 (%p43_p3), 1, %s2370_s13  }
  0x13   : > { %s2027_s27 = sshll.u32 (%p43_p3), %s2382_s16, 5  ;;  %s2026_s28 = sshll.u32 (%p43_p3), %s148_s26, 9 }
  0x14   : > { %s2028_s29 = sshll.u32 (%p43_p3), %s2386_s17, 9  ;;  %s2479_s8 = scalar_lea.vmem (%p43_p3), [#allocation2], %s2026_s28 }
  0x15   : > { %s153_s30 = sadd.s32 (%p43_p3), %s2028_s29, %s2027_s27 }
  0x16   : > { %s2029_s4 = sshll.u32 (%p43_p3), %s153_s30, 2 }
  0x17   : > { %s2474_s7 = scalar_lea.vmem (%p43_p3), %s3155_s0, %s2029_s4 }
  0x18   : > { %v168_v0 = vld [vmem:[%s2474_s7] sm:$0xff] (%p43_p3)  ;;  %v170_v1 = vld [vmem:[%s2474_s7 + $0x8] sm:$0xff] (%p43_p3)  ;;  %v172_v2 = vld [vmem:[%s2474_s7 + $0x10] sm:$0xff] (%p43_p3) }
  0x19   : > { %169 = vst [vmem:[%s2479_s8] sm:$0xff] %v168_v0  ;;  %171 = vst [vmem:[%s2479_s8 + $0x8] sm:$0xff] %v170_v1  ;;  %v174_v3 = vld [vmem:[%s2474_s7 + $0x18] sm:$0xff]  ;;  %v176_v4 = vld [vmem:[%s2474_s7 + $0x20] sm:$0xff] }
  0x1a   : > { %173 = vst [vmem:[%s2479_s8 + $0x10] sm:$0xff] %v172_v2  ;;  %v178_v5 = vld [vmem:[%s2474_s7 + $0x28] sm:$0xff]  ;;  %175 = vst [vmem:[%s2479_s8 + $0x18] sm:$0xff] %v174_v3  ;;  %v180_v6 = vld [vmem:[%s2474_s7 + $0x30] sm:$0xff] }
  0x1b   : > { %177 = vst [vmem:[%s2479_s8 + $0x20] sm:$0xff] %v176_v4  ;;  %179 = vst [vmem:[%s2479_s8 + $0x28] sm:$0xff] %v178_v5  ;;  %v182_v7 = vld [vmem:[%s2474_s7 + $0x38] sm:$0xff]  ;;  %v184_v8 = vld [vmem:[%s2474_s7 + $0x40] sm:$0xff] }
  0x1c   : > { %181 = vst [vmem:[%s2479_s8 + $0x30] sm:$0xff] %v180_v6  ;;  %183 = vst [vmem:[%s2479_s8 + $0x38] sm:$0xff] %v182_v7  ;;  %v186_v9 = vld [vmem:[%s2474_s7 + $0x48] sm:$0xff]  ;;  %v188_v10 = vld [vmem:[%s2474_s7 + $0x50] sm:$0xff] }
  0x1d   : > { %185 = vst [vmem:[%s2479_s8 + $0x40] sm:$0xff] %v184_v8  ;;  %v190_v11 = vld [vmem:[%s2474_s7 + $0x58] sm:$0xff]  ;;  %187 = vst [vmem:[%s2479_s8 + $0x48] sm:$0xff] %v186_v9  ;;  %v192_v12 = vld [vmem:[%s2474_s7 + $0x60] sm:$0xff] }
  0x1e   : > { %189 = vst [vmem:[%s2479_s8 + $0x50] sm:$0xff] %v188_v10  ;;  %191 = vst [vmem:[%s2479_s8 + $0x58] sm:$0xff] %v190_v11  ;;  %v194_v13 = vld [vmem:[%s2474_s7 + $0x68] sm:$0xff]  ;;  %v196_v14 = vld [vmem:[%s2474_s7 + $0x70] sm:$0xff] }
  0x1f   : > { %193 = vst [vmem:[%s2479_s8 + $0x60] sm:$0xff] %v192_v12  ;;  %195 = vst [vmem:[%s2479_s8 + $0x68] sm:$0xff] %v194_v13  ;;  %v198_v15 = vld [vmem:[%s2474_s7 + $0x78] sm:$0xff]  ;;  %v200_v16 = vld [vmem:[%s2474_s7 + $0x200] sm:$0xff] }
  0x20   : > { %197 = vst [vmem:[%s2479_s8 + $0x70] sm:$0xff] %v196_v14  ;;  %v202_v17 = vld [vmem:[%s2474_s7 + $0x208] sm:$0xff]  ;;  %199 = vst [vmem:[%s2479_s8 + $0x78] sm:$0xff] %v198_v15  ;;  %v204_v18 = vld [vmem:[%s2474_s7 + $0x210] sm:$0xff] }
  0x21   : > { %201 = vst [vmem:[%s2479_s8 + $0x80] sm:$0xff] %v200_v16  ;;  %203 = vst [vmem:[%s2479_s8 + $0x88] sm:$0xff] %v202_v17  ;;  %v206_v19 = vld [vmem:[%s2474_s7 + $0x218] sm:$0xff]  ;;  %v208_v20 = vld [vmem:[%s2474_s7 + $0x220] sm:$0xff] }
  0x22   : > { %205 = vst [vmem:[%s2479_s8 + $0x90] sm:$0xff] %v204_v18  ;;  %207 = vst [vmem:[%s2479_s8 + $0x98] sm:$0xff] %v206_v19  ;;  %v210_v21 = vld [vmem:[%s2474_s7 + $0x228] sm:$0xff]  ;;  %v212_v22 = vld [vmem:[%s2474_s7 + $0x230] sm:$0xff] }
  0x23   : > { %209 = vst [vmem:[%s2479_s8 + $0xa0] sm:$0xff] %v208_v20  ;;  %v214_v23 = vld [vmem:[%s2474_s7 + $0x238] sm:$0xff]  ;;  %211 = vst [vmem:[%s2479_s8 + $0xa8] sm:$0xff] %v210_v21  ;;  %v216_v24 = vld [vmem:[%s2474_s7 + $0x240] sm:$0xff] }
  0x24   : > { %213 = vst [vmem:[%s2479_s8 + $0xb0] sm:$0xff] %v212_v22  ;;  %215 = vst [vmem:[%s2479_s8 + $0xb8] sm:$0xff] %v214_v23  ;;  %v218_v25 = vld [vmem:[%s2474_s7 + $0x248] sm:$0xff]  ;;  %v220_v26 = vld [vmem:[%s2474_s7 + $0x250] sm:$0xff] }
  0x25   : > { %217 = vst [vmem:[%s2479_s8 + $0xc0] sm:$0xff] %v216_v24  ;;  %219 = vst [vmem:[%s2479_s8 + $0xc8] sm:$0xff] %v218_v25  ;;  %v222_v27 = vld [vmem:[%s2474_s7 + $0x258] sm:$0xff]  ;;  %v224_v28 = vld [vmem:[%s2474_s7 + $0x260] sm:$0xff] }
  0x26   : > { %221 = vst [vmem:[%s2479_s8 + $0xd0] sm:$0xff] %v220_v26  ;;  %v226_v29 = vld [vmem:[%s2474_s7 + $0x268] sm:$0xff]  ;;  %223 = vst [vmem:[%s2479_s8 + $0xd8] sm:$0xff] %v222_v27  ;;  %v228_v30 = vld [vmem:[%s2474_s7 + $0x270] sm:$0xff] }
  0x27   : > { %225 = vst [vmem:[%s2479_s8 + $0xe0] sm:$0xff] %v224_v28  ;;  %227 = vst [vmem:[%s2479_s8 + $0xe8] sm:$0xff] %v226_v29  ;;  %v230_v31 = vld [vmem:[%s2474_s7 + $0x278] sm:$0xff]  ;;  %v232_v32 = vld [vmem:[%s2474_s7 + $0x400] sm:$0xff] }
  0x28   : > { %229 = vst [vmem:[%s2479_s8 + $0xf0] sm:$0xff] %v228_v30  ;;  %231 = vst [vmem:[%s2479_s8 + $0xf8] sm:$0xff] %v230_v31  ;;  %v234_v33 = vld [vmem:[%s2474_s7 + $0x408] sm:$0xff]  ;;  %v236_v34 = vld [vmem:[%s2474_s7 + $0x410] sm:$0xff] }
  0x29   : > { %233 = vst [vmem:[%s2479_s8 + $0x100] sm:$0xff] %v232_v32  ;;  %v238_v35 = vld [vmem:[%s2474_s7 + $0x418] sm:$0xff]  ;;  %235 = vst [vmem:[%s2479_s8 + $0x108] sm:$0xff] %v234_v33  ;;  %v240_v36 = vld [vmem:[%s2474_s7 + $0x420] sm:$0xff] }
  0x2a   : > { %237 = vst [vmem:[%s2479_s8 + $0x110] sm:$0xff] %v236_v34  ;;  %239 = vst [vmem:[%s2479_s8 + $0x118] sm:$0xff] %v238_v35  ;;  %v242_v37 = vld [vmem:[%s2474_s7 + $0x428] sm:$0xff]  ;;  %v244_v38 = vld [vmem:[%s2474_s7 + $0x430] sm:$0xff] }
  0x2b   : > { %241 = vst [vmem:[%s2479_s8 + $0x120] sm:$0xff] %v240_v36  ;;  %243 = vst [vmem:[%s2479_s8 + $0x128] sm:$0xff] %v242_v37  ;;  %v246_v39 = vld [vmem:[%s2474_s7 + $0x438] sm:$0xff]  ;;  %v248_v40 = vld [vmem:[%s2474_s7 + $0x440] sm:$0xff] }
  0x2c   : > { %245 = vst [vmem:[%s2479_s8 + $0x130] sm:$0xff] %v244_v38  ;;  %v250_v41 = vld [vmem:[%s2474_s7 + $0x448] sm:$0xff]  ;;  %247 = vst [vmem:[%s2479_s8 + $0x138] sm:$0xff] %v246_v39  ;;  %v252_v42 = vld [vmem:[%s2474_s7 + $0x450] sm:$0xff] }
  0x2d   : > { %249 = vst [vmem:[%s2479_s8 + $0x140] sm:$0xff] %v248_v40  ;;  %251 = vst [vmem:[%s2479_s8 + $0x148] sm:$0xff] %v250_v41  ;;  %v254_v43 = vld [vmem:[%s2474_s7 + $0x458] sm:$0xff]  ;;  %v256_v44 = vld [vmem:[%s2474_s7 + $0x460] sm:$0xff] }
  0x2e   : > { %253 = vst [vmem:[%s2479_s8 + $0x150] sm:$0xff] %v252_v42  ;;  %255 = vst [vmem:[%s2479_s8 + $0x158] sm:$0xff] %v254_v43  ;;  %v258_v45 = vld [vmem:[%s2474_s7 + $0x468] sm:$0xff]  ;;  %v260_v46 = vld [vmem:[%s2474_s7 + $0x470] sm:$0xff] }
  0x2f   : > { %257 = vst [vmem:[%s2479_s8 + $0x160] sm:$0xff] %v256_v44  ;;  %v262_v47 = vld [vmem:[%s2474_s7 + $0x478] sm:$0xff]  ;;  %259 = vst [vmem:[%s2479_s8 + $0x168] sm:$0xff] %v258_v45  ;;  %v264_v48 = vld [vmem:[%s2474_s7 + $0x600] sm:$0xff] }
  0x30   : > { %261 = vst [vmem:[%s2479_s8 + $0x170] sm:$0xff] %v260_v46  ;;  %263 = vst [vmem:[%s2479_s8 + $0x178] sm:$0xff] %v262_v47  ;;  %v266_v49 = vld [vmem:[%s2474_s7 + $0x608] sm:$0xff]  ;;  %v268_v50 = vld [vmem:[%s2474_s7 + $0x610] sm:$0xff] }
  0x31   : > { %265 = vst [vmem:[%s2479_s8 + $0x180] sm:$0xff] %v264_v48  ;;  %267 = vst [vmem:[%s2479_s8 + $0x188] sm:$0xff] %v266_v49  ;;  %v270_v51 = vld [vmem:[%s2474_s7 + $0x618] sm:$0xff]  ;;  %v272_v52 = vld [vmem:[%s2474_s7 + $0x620] sm:$0xff] }
  0x32   : > { %269 = vst [vmem:[%s2479_s8 + $0x190] sm:$0xff] %v268_v50  ;;  %v274_v53 = vld [vmem:[%s2474_s7 + $0x628] sm:$0xff]  ;;  %271 = vst [vmem:[%s2479_s8 + $0x198] sm:$0xff] %v270_v51  ;;  %v276_v54 = vld [vmem:[%s2474_s7 + $0x630] sm:$0xff] }
  0x33   : > { %273 = vst [vmem:[%s2479_s8 + $0x1a0] sm:$0xff] %v272_v52  ;;  %275 = vst [vmem:[%s2479_s8 + $0x1a8] sm:$0xff] %v274_v53  ;;  %v278_v55 = vld [vmem:[%s2474_s7 + $0x638] sm:$0xff]  ;;  %v280_v56 = vld [vmem:[%s2474_s7 + $0x640] sm:$0xff] }
  0x34   : > { %277 = vst [vmem:[%s2479_s8 + $0x1b0] sm:$0xff] %v276_v54  ;;  %279 = vst [vmem:[%s2479_s8 + $0x1b8] sm:$0xff] %v278_v55  ;;  %v282_v57 = vld [vmem:[%s2474_s7 + $0x648] sm:$0xff]  ;;  %v284_v58 = vld [vmem:[%s2474_s7 + $0x650] sm:$0xff] }
  0x35   : > { %281 = vst [vmem:[%s2479_s8 + $0x1c0] sm:$0xff] %v280_v56  ;;  %v286_v59 = vld [vmem:[%s2474_s7 + $0x658] sm:$0xff]  ;;  %283 = vst [vmem:[%s2479_s8 + $0x1c8] sm:$0xff] %v282_v57  ;;  %v288_v60 = vld [vmem:[%s2474_s7 + $0x660] sm:$0xff] }
  0x36   : > { %285 = vst [vmem:[%s2479_s8 + $0x1d0] sm:$0xff] %v284_v58  ;;  %287 = vst [vmem:[%s2479_s8 + $0x1d8] sm:$0xff] %v286_v59  ;;  %v290_v61 = vld [vmem:[%s2474_s7 + $0x668] sm:$0xff]  ;;  %v292_v62 = vld [vmem:[%s2474_s7 + $0x670] sm:$0xff] }
  0x37   : > { %289 = vst [vmem:[%s2479_s8 + $0x1e0] sm:$0xff] %v288_v60  ;;  %291 = vst [vmem:[%s2479_s8 + $0x1e8] sm:$0xff] %v290_v61  ;;  %v294_v63 = vld [vmem:[%s2474_s7 + $0x678] sm:$0xff] }
  0x38   : > { %293 = vst [vmem:[%s2479_s8 + $0x1f0] sm:$0xff] %v292_v62  ;;  %295 = vst [vmem:[%s2479_s8 + $0x1f8] sm:$0xff] %v294_v63 }
  0x39 PF: > { %p2030_p7 = scmp.ge.s32.totalorder %s2390_s18, 1  ;;  %p300_p8 = scmp.lt.s32.totalorder %s2390_s18, 9 }
  0x3b   : > { %p301_p9 = pnand %p2030_p7, %p300_p8 }
  0x3c   : > { %s307_s9 = sand.u32 (!%p301_p9), 1, %s2366_s12   ;;  %vm709_vm0 = vcmask (!%p301_p9), 1044480   ;;  %v411_v0 = vld [vmem:[%s3157_s2] sm:$0xff] (!%p301_p9)  ;;  %vm710_vm1 = vcmask (!%p301_p9), 1045504   ;;  %v2392_v1 = vmov (!%p301_p9), 65535   ;;  %v2393_v3 = vmov (!%p301_p9), 0  }
  0x3d   : > { %304 = sbr.rel (%p301_p9) target bundleno = 408 (0x198), region = 51  ;;  %s2031_s21 = sshll.u32 (!%p301_p9), %s307_s9, 9  ;;  %v711_v2 = vsel (!%p301_p9), %vm709_vm0, 4294967295, %v2392_v1  ;;  %841 = vmatprep.mubr.bf16.mxu0 (!%p301_p9), %v2393_v3  ;;  %882 = vmatprep.mubr.bf16.mxu1 (!%p301_p9), %v2393_v3  ;;  %v2643_v37 = vld [vmem:[%s3156_s1] sm:$0xf] (!%p301_p9)  ;;  %vm705_vm2 = vcmask (!%p301_p9), 220160  }
  0x3e   : > { %2207 = vset.pattern.permute.xlu0 (!%p301_p9), %v2393_v3  ;;  %s2615_s22 = scalar_lea.vmem (!%p301_p9), [#allocation2], %s2031_s21  ;;  %v2624_v12 = vsel (!%p301_p9), %vm710_vm1, %v711_v2, 0  ;;  %s2032_s24 = sshll.u32 (!%p301_p9), %s2374_s14, 5 }
  0x3f   : > { %v347_v4 = vld [vmem:[%s2615_s22] sm:$0xff] (!%p301_p9)  ;;  %v348_v6 = vld [vmem:[%s2615_s22 + $0x8] sm:$0xff] (!%p301_p9)  ;;  %414 = vperm.xlu0 (!%p301_p9), %2207, %v411_v0   ;;  %v349_v19 = vld [vmem:[%s2615_s22 + $0x10] sm:$0xff] (!%p301_p9)  ;;  %p336_p10 = scmp.lt.s32.totalorder (!%p301_p9), %s2378_s15, 1  ;;  %p2819_p11 = scmp.lt.s32.totalorder (!%p301_p9), %s2032_s24, 127 }
  0x40   : > { %v363_v5 = vld [vmem:[%s2615_s22 + $0x80] sm:$0xff] (!%p301_p9)  ;;  %v364_v8 = vld [vmem:[%s2615_s22 + $0x88] sm:$0xff] (!%p301_p9)  ;;  %v365_v22 = vld [vmem:[%s2615_s22 + $0x90] sm:$0xff] (!%p301_p9) }
  0x41   : > { %v2036_v7 = vcombine.high (!%p301_p9), %v347_v4, %v363_v5  ;;  %v2035_v9 = vcombine.low (!%p301_p9), %v347_v4, %v363_v5  ;;  %v379_v10 = vld [vmem:[%s2615_s22 + $0x100] sm:$0xff] (!%p301_p9)  ;;  %v2038_v13 = vcombine.high (!%p301_p9), %v348_v6, %v364_v8  ;;  %v2037_v14 = vcombine.low (!%p301_p9), %v348_v6, %v364_v8  ;;  %v380_v16 = vld [vmem:[%s2615_s22 + $0x108] sm:$0xff] (!%p301_p9)  ;;  %v350_v23 = vld [vmem:[%s2615_s22 + $0x18] sm:$0xff] (!%p301_p9) }
  0x42   : > { %v395_v11 = vld [vmem:[%s2615_s22 + $0x180] sm:$0x33] (!%p301_p9)  ;;  %v396_v17 = vld [vmem:[%s2615_s22 + $0x188] sm:$0x33] (!%p301_p9)  ;;  %v366_v24 = vld [vmem:[%s2615_s22 + $0x98] sm:$0xff] (!%p301_p9)  ;;  %v2040_v32 = vcombine.high (!%p301_p9), %v349_v19, %v365_v22  ;;  %v2039_v38 = vcombine.low (!%p301_p9), %v349_v19, %v365_v22 }
  0x43   : > { %v2068_v15 = vcombine.high (!%p301_p9), %v379_v10, %v395_v11  ;;  %v2067_v18 = vcombine.low (!%p301_p9), %v379_v10, %v395_v11  ;;  %809 = vmatprep.subr.bf16.mxu0 (!%p301_p9), %v2036_v7  ;;  %v2070_v20 = vcombine.high (!%p301_p9), %v380_v16, %v396_v17  ;;  %v2069_v21 = vcombine.low (!%p301_p9), %v380_v16, %v396_v17  ;;  %v381_v27 = vld [vmem:[%s2615_s22 + $0x110] sm:$0xff] (!%p301_p9)  ;;  %v382_v29 = vld [vmem:[%s2615_s22 + $0x118] sm:$0xff] (!%p301_p9)  ;;  %v351_v43 = vld [vmem:[%s2615_s22 + $0x20] sm:$0xff] (!%p301_p9) }
  0x44   : > { %850 = vmatprep.subr.bf16.mxu1 %v2038_v13  ;;  %810 = vmatpush1.bf16.msra.mxu0 %v2035_v9  ;;  %v397_v28 = vld [vmem:[%s2615_s22 + $0x190] sm:$0x33]  ;;  %v398_v33 = vld [vmem:[%s2615_s22 + $0x198] sm:$0x33]  ;;  %v2042_v34 = vcombine.high %v350_v23, %v366_v24  ;;  %v2041_v40 = vcombine.low %v350_v23, %v366_v24  ;;  %v367_v44 = vld [vmem:[%s2615_s22 + $0xa0] sm:$0xff]  ;;  %s3173_s15 = smov (!%p336_p10, %s2378_s15), 1 }
  0x45   : > { %v717_v25 = vand.u32 %v2068_v15, %v2624_v12  ;;  %v714_v26 = vand.u32 %v2067_v18, %v2624_v12  ;;  %851 = vmatpush1.bf16.msra.mxu1 %v2037_v14  ;;  %v723_v30 = vand.u32 %v2070_v20, %v2624_v12  ;;  %v720_v31 = vand.u32 %v2069_v21, %v2624_v12  ;;  %v352_v46 = vld [vmem:[%s2615_s22 + $0x28] sm:$0xff]  ;;  %v383_v47 = vld [vmem:[%s2615_s22 + $0x120] sm:$0xff]  ;;  %v353_v63 = vld [vmem:[%s2615_s22 + $0x30] sm:$0xff]  ;;  %s3175_s24 = smov (!%p2819_p11, %s2032_s24), 127  ;;  %s2033_s14 = sshll.u32 %s3173_s15, 7 }
  0x46   : > { %v2072_v35 = vcombine.high %v381_v27, %v397_v28  ;;  %v2074_v36 = vcombine.high %v382_v29, %v398_v33  ;;  %v2071_v39 = vcombine.low %v381_v27, %v397_v28  ;;  %v2073_v42 = vcombine.low %v382_v29, %v398_v33  ;;  %v399_v48 = vld [vmem:[%s2615_s22 + $0x1a0] sm:$0x33]  ;;  %v368_v49 = vld [vmem:[%s2615_s22 + $0xa8] sm:$0xff]  ;;  %v369_v0 = vld [vmem:[%s2615_s22 + $0xb0] sm:$0xff]  ;;  %s2869_s15 = sadd.s32 %s2033_s14, %s3175_s24 }
  0x47   : > { %811 = vmatprep.subr.bf16.mxu0 %v717_v25  ;;  %852 = vmatprep.subr.bf16.mxu1 %v723_v30  ;;  %v384_v50 = vld [vmem:[%s2615_s22 + $0x128] sm:$0xff]  ;;  %v2044_v54 = vcombine.high %v351_v43, %v367_v44  ;;  %v2076_v55 = vcombine.high %v383_v47, %v399_v48  ;;  %v2046_v56 = vcombine.high %v352_v46, %v368_v49  ;;  %v354_v2 = vld [vmem:[%s2615_s22 + $0x38] sm:$0xff]  ;;  %v385_v4 = vld [vmem:[%s2615_s22 + $0x130] sm:$0xff]  ;;  %s2034_s27 = sshll.u32 %s2869_s15, 2 }
  0x48   : > { %812 = vmatpush1.bf16.msra.mxu0 %v714_v26  ;;  %v729_v41 = vand.u32 %v2072_v35, %v2624_v12  ;;  %v735_v45 = vand.u32 %v2074_v36, %v2624_v12  ;;  %v400_v51 = vld [vmem:[%s2615_s22 + $0x1a8] sm:$0x33]  ;;  %v726_v52 = vand.u32 %v2071_v39, %v2624_v12  ;;  %v732_v53 = vand.u32 %v2073_v42, %v2624_v12  ;;  %v401_v5 = vld [vmem:[%s2615_s22 + $0x1b0] sm:$0x33]  ;;  %v370_v6 = vld [vmem:[%s2615_s22 + $0xb8] sm:$0xff]  ;;  %s2898_s30 = scalar_lea.vmem %s3158_s3, %s2034_s27 }
  0x49   : > { %853 = vmatpush1.bf16.msra.mxu1 %v720_v31  ;;  %891 = vmatprep.subr.bf16.mxu0 %v2040_v32  ;;  %v2078_v57 = vcombine.high %v384_v50, %v400_v51  ;;  %v2043_v58 = vcombine.low %v351_v43, %v367_v44  ;;  %v2075_v59 = vcombine.low %v383_v47, %v399_v48  ;;  %v386_v7 = vld [vmem:[%s2615_s22 + $0x138] sm:$0xff]  ;;  %v355_v21 = vld [vmem:[%s2615_s22 + $0x40] sm:$0xff]  ;;  %v356_v24 = vld [vmem:[%s2615_s22 + $0x48] sm:$0xff] }
  0x4a   : > { %932 = vmatprep.subr.bf16.mxu1 %v2042_v34  ;;  %v2045_v60 = vcombine.low %v352_v46, %v368_v49  ;;  %v741_v61 = vand.u32 %v2076_v55, %v2624_v12  ;;  %v2077_v62 = vcombine.low %v384_v50, %v400_v51  ;;  %v402_v8 = vld [vmem:[%s2615_s22 + $0x1b8] sm:$0x33]  ;;  %v2048_v11 = vcombine.high %v353_v63, %v369_v0  ;;  %v371_v22 = vld [vmem:[%s2615_s22 + $0xc0] sm:$0xff]  ;;  %v372_v27 = vld [vmem:[%s2615_s22 + $0xc8] sm:$0xff] }
  0x4b   : > { %2099 = vmatmul.mubr.msk.bf16.vlgmr.msra.gmra.mrb[0].mxu0 %vm705_vm2, %v2643_v37  ;;  %v747_v1 = vand.u32 %v2078_v57, %v2624_v12  ;;  %v738_v9 = vand.u32 %v2075_v59, %v2624_v12  ;;  %v2080_v13 = vcombine.high %v385_v4, %v401_v5  ;;  %v2050_v14 = vcombine.high %v354_v2, %v370_v6  ;;  %v387_v25 = vld [vmem:[%s2615_s22 + $0x140] sm:$0xff]  ;;  %v388_v28 = vld [vmem:[%s2615_s22 + $0x148] sm:$0xff]  ;;  %v357_v42 = vld [vmem:[%s2615_s22 + $0x50] sm:$0xff] }
  0x4c   : > { %2100 = vmatmul.mubr.msk.bf16.vlgmr.msra.gmra.mrb[0].mxu1 %vm705_vm2, %v2643_v37  ;;  %892 = vmatpush1.bf16.msra.mxu0 %v2039_v38  ;;  %v744_v10 = vand.u32 %v2077_v62, %v2624_v12  ;;  %v2082_v15 = vcombine.high %v386_v7, %v402_v8  ;;  %v2047_v16 = vcombine.low %v353_v63, %v369_v0  ;;  %v403_v26 = vld [vmem:[%s2615_s22 + $0x1c0] sm:$0x33]  ;;  %v404_v29 = vld [vmem:[%s2615_s22 + $0x1c8] sm:$0x33]  ;;  %v373_v43 = vld [vmem:[%s2615_s22 + $0xd0] sm:$0xff] }
  0x4d   : > { %933 = vmatpush1.bf16.msra.mxu1 %v2041_v40  ;;  %893 = vmatprep.subr.bf16.mxu0 %v729_v41  ;;  %v2079_v17 = vcombine.low %v385_v4, %v401_v5  ;;  %v2049_v18 = vcombine.low %v354_v2, %v370_v6  ;;  %v753_v19 = vand.u32 %v2080_v13, %v2624_v12  ;;  %v389_v46 = vld [vmem:[%s2615_s22 + $0x150] sm:$0xff]  ;;  %v374_v48 = vld [vmem:[%s2615_s22 + $0xd8] sm:$0xff]  ;;  %v359_v62 = vld [vmem:[%s2615_s22 + $0x60] sm:$0xff] }
  0x4e   : > { %934 = vmatprep.subr.bf16.mxu1 %v735_v45  ;;  %923 = vmatprep.mubr.bf16.mxu0 %v2393_v3  ;;  %v2081_v20 = vcombine.low %v386_v7, %v402_v8  ;;  %v759_v23 = vand.u32 %v2082_v15, %v2624_v12  ;;  %v2052_v32 = vcombine.high %v355_v21, %v371_v22  ;;  %v358_v45 = vld [vmem:[%s2615_s22 + $0x58] sm:$0xff]  ;;  %v405_v47 = vld [vmem:[%s2615_s22 + $0x1d0] sm:$0x33]  ;;  %v375_v63 = vld [vmem:[%s2615_s22 + $0xe0] sm:$0xff] }
  0x4f   : > { %964 = vmatprep.mubr.bf16.mxu1 %v2393_v3  ;;  %v750_v30 = vand.u32 %v2079_v17, %v2624_v12  ;;  %v2084_v33 = vcombine.high %v387_v25, %v403_v26  ;;  %v2054_v34 = vcombine.high %v356_v24, %v372_v27  ;;  %v2086_v35 = vcombine.high %v388_v28, %v404_v29  ;;  %v390_v49 = vld [vmem:[%s2615_s22 + $0x158] sm:$0xff]  ;;  %v391_v2 = vld [vmem:[%s2615_s22 + $0x160] sm:$0xff]  ;;  %v376_v5 = vld [vmem:[%s2615_s22 + $0xe8] sm:$0xff] }
  0x50   : > { %894 = vmatpush1.bf16.msra.mxu0 %v726_v52  ;;  %v756_v31 = vand.u32 %v2081_v20, %v2624_v12  ;;  %v2051_v36 = vcombine.low %v355_v21, %v371_v22  ;;  %v2083_v38 = vcombine.low %v387_v25, %v403_v26  ;;  %v2053_v39 = vcombine.low %v356_v24, %v372_v27  ;;  %v406_v50 = vld [vmem:[%s2615_s22 + $0x1d8] sm:$0x33]  ;;  %v407_v4 = vld [vmem:[%s2615_s22 + $0x1e0] sm:$0x33]  ;;  %v392_v6 = vld [vmem:[%s2615_s22 + $0x168] sm:$0xff] }
  0x51   : > { %935 = vmatpush1.bf16.msra.mxu1 %v732_v53  ;;  %973 = vmatprep.subr.bf16.mxu0 %v2044_v54  ;;  %v765_v40 = vand.u32 %v2084_v33, %v2624_v12  ;;  %v2085_v41 = vcombine.low %v388_v28, %v404_v29  ;;  %v771_v44 = vand.u32 %v2086_v35, %v2624_v12  ;;  %v408_v7 = vld [vmem:[%s2615_s22 + $0x1e8] sm:$0x33]  ;;  %v361_v20 = vld [vmem:[%s2615_s22 + $0x70] sm:$0xff]  ;;  %v378_v26 = vld [vmem:[%s2615_s22 + $0xf8] sm:$0xff] }
  0x52   : > { %1014 = vmatprep.subr.bf16.mxu1 %v2046_v56  ;;  %v762_v51 = vand.u32 %v2083_v38, %v2624_v12  ;;  %v2056_v53 = vcombine.high %v357_v42, %v373_v43  ;;  %v2088_v54 = vcombine.high %v389_v46, %v405_v47  ;;  %v2058_v55 = vcombine.high %v358_v45, %v374_v48  ;;  %v377_v21 = vld [vmem:[%s2615_s22 + $0xf0] sm:$0xff]  ;;  %v394_v27 = vld [vmem:[%s2615_s22 + $0x178] sm:$0xff] }
  0x53   : > { %2101 = vmatmul.mubr.msk.bf16.vlgmr.msra.gmra.mrb[4].mxu0 %vm705_vm2, %v2643_v37  ;;  %v768_v52 = vand.u32 %v2085_v41, %v2624_v12  ;;  %v2090_v56 = vcombine.high %v390_v49, %v406_v50  ;;  %v2055_v57 = vcombine.low %v357_v42, %v373_v43  ;;  %v2057_v59 = vcombine.low %v358_v45, %v374_v48  ;;  %v393_v24 = vld [vmem:[%s2615_s22 + $0x170] sm:$0xff]  ;;  %v410_v28 = vld [vmem:[%s2615_s22 + $0x1f8] sm:$0x33] }
  0x54   : > { %2102 = vmatmul.mubr.msk.bf16.vlgmr.msra.gmra.mrb[4].mxu1 %vm705_vm2, %v2643_v37  ;;  %974 = vmatpush1.bf16.msra.mxu0 %v2043_v58  ;;  %v2087_v58 = vcombine.low %v389_v46, %v405_v47  ;;  %v2059_v15 = vcombine.low %v359_v62, %v375_v63  ;;  %v409_v25 = vld [vmem:[%s2615_s22 + $0x1f0] sm:$0x33]  ;;  %v2063_v35 = vcombine.low %v361_v20, %v377_v21 }
  0x55   : > { %1015 = vmatpush1.bf16.msra.mxu1 %v2045_v60  ;;  %975 = vmatprep.subr.bf16.mxu0 %v741_v61  ;;  %v777_v60 = vand.u32 %v2088_v54, %v2624_v12  ;;  %v2089_v61 = vcombine.low %v390_v49, %v406_v50  ;;  %v783_v0 = vand.u32 %v2090_v56, %v2624_v12 }
  0x56   : > { %1016 = vmatprep.subr.bf16.mxu1 %v747_v1  ;;  %1005 = vmatprep.mubr.bf16.mxu0 %v2393_v3  ;;  %v360_v1 = vld [vmem:[%s2615_s22 + $0x68] sm:$0xff]  ;;  %v774_v8 = vand.u32 %v2087_v58, %v2624_v12 }
  0x57   : > { %1046 = vmatprep.mubr.bf16.mxu1 %v2393_v3  ;;  %v2062_v13 = vcombine.high %v360_v1, %v376_v5  ;;  %v2061_v17 = vcombine.low %v360_v1, %v376_v5 }
  0x58   : > { %976 = vmatpush1.bf16.msra.mxu0 %v738_v9  ;;  %v780_v9 = vand.u32 %v2089_v61, %v2624_v12 }
  0x59   : > { %1017 = vmatpush1.bf16.msra.mxu1 %v744_v10  ;;  %1055 = vmatprep.subr.bf16.mxu0 %v2048_v11  ;;  %v2060_v10 = vcombine.high %v359_v62, %v375_v63  ;;  %v2092_v11 = vcombine.high %v391_v2, %v407_v4 }
  0x5a   : > { %1096 = vmatprep.subr.bf16.mxu1 %v2050_v14  ;;  %v2094_v14 = vcombine.high %v392_v6, %v408_v7 }
  0x5b   : > { %2103 = vmatmul.mubr.msk.bf16.vlgmr.msra.gmra.mrb[8].mxu0 %vm705_vm2, %v2643_v37 }
  0x5c   : > { %2104 = vmatmul.mubr.msk.bf16.vlgmr.msra.gmra.mrb[8].mxu1 %vm705_vm2, %v2643_v37  ;;  %1056 = vmatpush1.bf16.msra.mxu0 %v2047_v16  ;;  %v2091_v16 = vcombine.low %v391_v2, %v407_v4  ;;  %v795_v22 = vand.u32 %v2094_v14, %v2624_v12 }
  0x5d   : > { %1097 = vmatpush1.bf16.msra.mxu1 %v2049_v18  ;;  %1057 = vmatprep.subr.bf16.mxu0 %v753_v19  ;;  %v789_v18 = vand.u32 %v2092_v11, %v2624_v12  ;;  %v2093_v19 = vcombine.low %v392_v6, %v408_v7 }
  0x5e   : > { %1098 = vmatprep.subr.bf16.mxu1 %v759_v23  ;;  %1087 = vmatprep.mubr.bf16.mxu0 %v2393_v3  ;;  %v362_v23 = vld [vmem:[%s2615_s22 + $0x78] sm:$0xff]  ;;  %v786_v29 = vand.u32 %v2091_v16, %v2624_v12 }
  0x5f   : > { %1128 = vmatprep.mubr.bf16.mxu1 %v2393_v3  ;;  %v2066_v33 = vcombine.high %v362_v23, %v378_v26  ;;  %v2065_v38 = vcombine.low %v362_v23, %v378_v26 }
  0x60   : > { %1058 = vmatpush1.bf16.msra.mxu0 %v750_v30  ;;  %v792_v30 = vand.u32 %v2093_v19, %v2624_v12 }
  0x61   : > { %1099 = vmatpush1.bf16.msra.mxu1 %v756_v31  ;;  %1137 = vmatprep.subr.bf16.mxu0 %v2052_v32  ;;  %v2064_v31 = vcombine.high %v361_v20, %v377_v21  ;;  %v2096_v32 = vcombine.high %v393_v24, %v409_v25 }
  0x62   : > { %1178 = vmatprep.subr.bf16.mxu1 %v2054_v34  ;;  %v2098_v34 = vcombine.high %v394_v27, %v410_v28 }
  0x63   : > { %2105 = vmatmul.mubr.msk.bf16.vlgmr.msra.gmra.mrb[12].mxu0 %vm705_vm2, %v2643_v37 }
  0x64   : > { %2106 = vmatmul.mubr.msk.bf16.vlgmr.msra.gmra.mrb[12].mxu1 %vm705_vm2, %v2643_v37  ;;  %1138 = vmatpush1.bf16.msra.mxu0 %v2051_v36  ;;  %v2095_v36 = vcombine.low %v393_v24, %v409_v25  ;;  %v807_v41 = vand.u32 %v2098_v34, %v2624_v12 }
  0x65   : > { %1179 = vmatpush1.bf16.msra.mxu1 %v2053_v39  ;;  %1139 = vmatprep.subr.bf16.mxu0 %v765_v40  ;;  %v801_v39 = vand.u32 %v2096_v32, %v2624_v12  ;;  %v2097_v40 = vcombine.low %v394_v27, %v410_v28 }
  0x66   : > { %1180 = vmatprep.subr.bf16.mxu1 %v771_v44  ;;  %1169 = vmatprep.mubr.bf16.mxu0 %v2393_v3  ;;  %v798_v42 = vand.u32 %v2095_v36, %v2624_v12 }
  0x67   : > { %1210 = vmatprep.mubr.bf16.mxu1 %v2393_v3  ;;  %v804_v43 = vand.u32 %v2097_v40, %v2624_v12 }
  0x68   : > { %1140 = vmatpush1.bf16.msra.mxu0 %v762_v51 }
  0x69   : > { %1181 = vmatpush1.bf16.msra.mxu1 %v768_v52  ;;  %1219 = vmatprep.subr.bf16.mxu0 %v2056_v53 }
  0x6a   : > { %1260 = vmatprep.subr.bf16.mxu1 %v2058_v55 }
  0x6b   : > { %2107 = vmatmul.mubr.msk.bf16.vlgmr.msra.gmra.mrb[16].mxu0 %vm705_vm2, %v2643_v37 }
  0x6c   : > { %2108 = vmatmul.mubr.msk.bf16.vlgmr.msra.gmra.mrb[16].mxu1 %vm705_vm2, %v2643_v37  ;;  %1220 = vmatpush1.bf16.msra.mxu0 %v2055_v57 }
  0x6d   : > { %1261 = vmatpush1.bf16.msra.mxu1 %v2057_v59  ;;  %1221 = vmatprep.subr.bf16.mxu0 %v777_v60 }
  0x6e   : > { %1262 = vmatprep.subr.bf16.mxu1 %v783_v0  ;;  %1251 = vmatprep.mubr.bf16.mxu0 %v2393_v3 }
  0x6f   : > { %1292 = vmatprep.mubr.bf16.mxu1 %v2393_v3 }
  0x70   : > { %1222 = vmatpush1.bf16.msra.mxu0 %v774_v8 }
  0x71   : > { %1263 = vmatpush1.bf16.msra.mxu1 %v780_v9  ;;  %1301 = vmatprep.subr.bf16.mxu0 %v2060_v10 }
  0x72   : > { %1342 = vmatprep.subr.bf16.mxu1 %v2062_v13 }
  0x73   : > { %2109 = vmatmul.mubr.msk.bf16.vlgmr.msra.gmra.mrb[20].mxu0 %vm705_vm2, %v2643_v37 }
  0x74   : > { %2110 = vmatmul.mubr.msk.bf16.vlgmr.msra.gmra.mrb[20].mxu1 %vm705_vm2, %v2643_v37  ;;  %1302 = vmatpush1.bf16.msra.mxu0 %v2059_v15 }
  0x75   : > { %1343 = vmatpush1.bf16.msra.mxu1 %v2061_v17  ;;  %1303 = vmatprep.subr.bf16.mxu0 %v789_v18 }
  0x76   : > { %1344 = vmatprep.subr.bf16.mxu1 %v795_v22  ;;  %1333 = vmatprep.mubr.bf16.mxu0 %v2393_v3 }
  0x77   : > { %1374 = vmatprep.mubr.bf16.mxu1 %v2393_v3 }
  0x78   : > { %1304 = vmatpush1.bf16.msra.mxu0 %v786_v29 }
  0x79   : > { %1345 = vmatpush1.bf16.msra.mxu1 %v792_v30  ;;  %1383 = vmatprep.subr.bf16.mxu0 %v2064_v31 }
  0x7a   : > { %1424 = vmatprep.subr.bf16.mxu1 %v2066_v33 }
  0x7b   : > { %2111 = vmatmul.mubr.msk.bf16.vlgmr.msra.gmra.mrb[24].mxu0 %vm705_vm2, %v2643_v37 }
  0x7c   : > { %2112 = vmatmul.mubr.msk.bf16.vlgmr.msra.gmra.mrb[24].mxu1 %vm705_vm2, %v2643_v37  ;;  %1384 = vmatpush1.bf16.msra.mxu0 %v2063_v35 }
  0x7d   : > { %1425 = vmatpush1.bf16.msra.mxu1 %v2065_v38  ;;  %1385 = vmatprep.subr.bf16.mxu0 %v801_v39 }
  0x7e   : > { %1426 = vmatprep.subr.bf16.mxu1 %v807_v41  ;;  %1415 = vmatprep.mubr.bf16.mxu0 %v2393_v3 }
  0x7f   : > { %1456 = vmatprep.mubr.bf16.mxu1 %v2393_v3 }
  0x80   : > { %1386 = vmatpush1.bf16.msra.mxu0 %v798_v42 }
  0x81   : > { %1427 = vmatpush1.bf16.msra.mxu1 %v804_v43 }
  0x83   : > { %2113 = vmatmul.mubr.msk.bf16.vlgmr.msra.gmra.mrb[28].mxu0 %vm705_vm2, %v2643_v37 }
  0x84   : > { %2114 = vmatmul.mubr.msk.bf16.vlgmr.msra.gmra.mrb[28].mxu1 %vm705_vm2, %v2643_v37 }
  0xbe   : > { %v2767_v44 = vpop.permute.xlu0 %414 }
 0x11e   : > { %v843_v45 = vpop.f32.mrb[0].mxu0 }
 0x11f   : > { %v2770_v46 = vadd.f32 %v843_v45, %v2767_v44  ;;  %v884_v12 = vpop.f32.mrb[0].mxu1  ;;  %v845_v47 = vpop.f32.mrb[1].mxu0 }
 0x120   : > { %v2773_v48 = vadd.f32 %v884_v12, %v2767_v44  ;;  %v2776_v3 = vadd.f32 %v845_v47, %v2767_v44  ;;  %v886_v49 = vpop.f32.mrb[1].mxu1  ;;  %v847_v50 = vpop.f32.mrb[2].mxu0 }
 0x121   : > { %v1465_v51 = vand.u32 2147483647, %v2770_v46  ;;  %v2780_v37 = vadd.f32 %v886_v49, %v2767_v44  ;;  %v888_v52 = vpop.f32.mrb[2].mxu1  ;;  %v848_v53 = vpop.f32.mrb[3].mxu0  ;;  %vm1593_vm3 = vcmp.ge.f32.partialorder %v2770_v46, 0.0 }
 0x122   : > { %v1467_v54 = vand.u32 2147483647, %v2773_v48  ;;  %v1466_v55 = vand.u32 2147483647, %v2776_v3  ;;  %v889_v58 = vpop.f32.mrb[3].mxu1  ;;  %vm1595_vm4 = vcmp.ge.f32.partialorder %v2773_v48, 0.0 }
 0x123   : > { %v1497_v56 = vsub.f32 0.0, %v1465_v51  ;;  %v1468_v57 = vand.u32 2147483647, %v2780_v37  ;;  %vm1594_vm5 = vcmp.ge.f32.partialorder %v2776_v3, 0.0  ;;  %vm1596_vm6 = vcmp.ge.f32.partialorder %v2780_v37, 0.0 }
 0x124   : > { %v1499_v59 = vsub.f32 0.0, %v1467_v54  ;;  %v1498_v60 = vsub.f32 0.0, %v1466_v55 }
 0x125   : > { %v1529_v61 = vmul.f32 1.442695, %v1497_v56  ;;  %v1500_v62 = vsub.f32 0.0, %v1468_v57 }
 0x126   : > { %v1533_v63 = vmul.f32 1.442695, %v1499_v59  ;;  %v1531_v0 = vmul.f32 1.442695, %v1498_v60  ;;  %v925_v1 = vpop.f32.mrb[4].mxu0 }
 0x127   : > { %2208 = vpow2.f32 %v1529_v61  ;;  %v1535_v2 = vmul.f32 1.442695, %v1500_v62  ;;  %v2786_v4 = vadd.f32 %v925_v1, %v2767_v44  ;;  %v966_v5 = vpop.f32.mrb[4].mxu1  ;;  %v927_v6 = vpop.f32.mrb[5].mxu0 }
 0x128   : > { %2210 = vpow2.f32 %v1533_v63  ;;  %v2789_v7 = vadd.f32 %v966_v5, %v2767_v44  ;;  %v2792_v8 = vadd.f32 %v927_v6, %v2767_v44  ;;  %v968_v9 = vpop.f32.mrb[5].mxu1  ;;  %v929_v10 = vpop.f32.mrb[6].mxu0 }
 0x129   : > { %2212 = vpow2.f32 %v1531_v0  ;;  %v1469_v11 = vand.u32 2147483647, %v2786_v4  ;;  %v2796_v13 = vadd.f32 %v968_v9, %v2767_v44  ;;  %v970_v14 = vpop.f32.mrb[6].mxu1  ;;  %v930_v15 = vpop.f32.mrb[7].mxu0  ;;  %vm1597_vm7 = vcmp.ge.f32.partialorder %v2786_v4, 0.0 }
 0x12a   : > { %2214 = vpow2.f32 %v1535_v2  ;;  %v1471_v16 = vand.u32 2147483647, %v2789_v7  ;;  %v1470_v17 = vand.u32 2147483647, %v2792_v8  ;;  %v971_v18 = vpop.f32.mrb[7].mxu1  ;;  %vm1599_vm8 = vcmp.ge.f32.partialorder %v2789_v7, 0.0 }
 0x12b   : > { %v1501_v19 = vsub.f32 0.0, %v1469_v11  ;;  %v1472_v20 = vand.u32 2147483647, %v2796_v13  ;;  %vm1598_vm9 = vcmp.ge.f32.partialorder %v2792_v8, 0.0  ;;  %vm1600_vm10 = vcmp.ge.f32.partialorder %v2796_v13, 0.0 }
 0x12c   : > { %v1503_v21 = vsub.f32 0.0, %v1471_v16  ;;  %v1502_v22 = vsub.f32 0.0, %v1470_v17 }
 0x12d   : > { %v1537_v23 = vmul.f32 1.442695, %v1501_v19  ;;  %v1504_v24 = vsub.f32 0.0, %v1472_v20 }
 0x12e   : > { %v1541_v25 = vmul.f32 1.442695, %v1503_v21  ;;  %v1539_v26 = vmul.f32 1.442695, %v1502_v22  ;;  %v1007_v27 = vpop.f32.mrb[8].mxu0 }
 0x12f   : > { %2216 = vpow2.f32 %v1537_v23  ;;  %v1543_v28 = vmul.f32 1.442695, %v1504_v24  ;;  %v2802_v29 = vadd.f32 %v1007_v27, %v2767_v44  ;;  %v1048_v30 = vpop.f32.mrb[8].mxu1  ;;  %v1009_v31 = vpop.f32.mrb[9].mxu0 }
 0x130   : > { %2218 = vpow2.f32 %v1541_v25  ;;  %v2805_v32 = vadd.f32 %v1048_v30, %v2767_v44  ;;  %v1050_v33 = vpop.f32.mrb[9].mxu1  ;;  %v1011_v34 = vpop.f32.mrb[10].mxu0  ;;  %v2810_v43 = vadd.f32 %v1009_v31, %v2767_v44 }
 0x131   : > { %v2209_v35 = vpop.eup %2208  ;;  %2220 = vpow2.f32 %v1539_v26  ;;  %v1473_v36 = vand.u32 2147483647, %v2802_v29  ;;  %v1052_v38 = vpop.f32.mrb[10].mxu1  ;;  %v2815_v50 = vadd.f32 %v1050_v33, %v2767_v44  ;;  %vm1601_vm11 = vcmp.ge.f32.partialorder %v2802_v29, 0.0 }
 0x132   : > { %v1012_v39 = vpop.f32.mrb[11].mxu0  ;;  %v2211_v40 = vpop.eup %2210  ;;  %v1657_v41 = vadd.f32 1.0, %v2209_v35  ;;  %2222 = vpow2.f32 %v1543_v28  ;;  %v1475_v42 = vand.u32 2147483647, %v2805_v32  ;;  %v1474_v57 = vand.u32 2147483647, %v2810_v43 }
 0x133   : > { %v1053_v45 = vpop.f32.mrb[11].mxu1  ;;  %v2213_v12 = vpop.eup %2212  ;;  %v1659_v47 = vadd.f32 1.0, %v2211_v40  ;;  %v1505_v49 = vsub.f32 0.0, %v1473_v36  ;;  %v1476_v59 = vand.u32 2147483647, %v2815_v50  ;;  %v1625_v19 = vsel %vm1593_vm3, 1.0, %v2209_v35 }
 0x134   : > { %v2215_v51 = vpop.eup %2214  ;;  %2224 = vrcp.f32 %v1657_v41  ;;  %v1658_v52 = vadd.f32 1.0, %v2213_v12  ;;  %v1507_v53 = vsub.f32 0.0, %v1475_v42  ;;  %v1506_v63 = vsub.f32 0.0, %v1474_v57 }
 0x135   : > { %2226 = vrcp.f32 %v1659_v47  ;;  %v1660_v54 = vadd.f32 1.0, %v2215_v51  ;;  %v1545_v55 = vmul.f32 1.442695, %v1505_v49  ;;  %v1508_v6 = vsub.f32 0.0, %v1476_v59 }
 0x136   : > { %2228 = vrcp.f32 %v1658_v52  ;;  %v1549_v56 = vmul.f32 1.442695, %v1507_v53  ;;  %v1089_v58 = vpop.f32.mrb[12].mxu0  ;;  %v1627_v20 = vsel %vm1595_vm4, 1.0, %v2211_v40  ;;  %v1547_v26 = vmul.f32 1.442695, %v1506_v63 }
 0x137   : > { %2230 = vrcp.f32 %v1660_v54  ;;  %v2832_v60 = vadd.f32 %v1089_v58, %v2767_v44  ;;  %v1130_v61 = vpop.f32.mrb[12].mxu1  ;;  %v1091_v62 = vpop.f32.mrb[13].mxu0  ;;  %v1626_v28 = vsel %vm1594_vm5, 1.0, %v2213_v12  ;;  %v1551_v31 = vmul.f32 1.442695, %v1508_v6 }
 0x138   : > { %2232 = vpow2.f32 %v1545_v55  ;;  %v2836_v0 = vadd.f32 %v1130_v61, %v2767_v44  ;;  %v1132_v1 = vpop.f32.mrb[13].mxu1  ;;  %v1093_v2 = vpop.f32.mrb[14].mxu0  ;;  %v2852_v17 = vadd.f32 %v1091_v62, %v2767_v44  ;;  %v1628_v34 = vsel %vm1596_vm6, 1.0, %v2215_v51 }
 0x139   : > { %v2838_v5 = vpop.eup %2216  ;;  %2234 = vpow2.f32 %v1549_v56  ;;  %v1477_v9 = vand.u32 2147483647, %v2832_v60  ;;  %v1134_v10 = vpop.f32.mrb[14].mxu1  ;;  %v2875_v42 = vadd.f32 %v1132_v1, %v2767_v44  ;;  %vm1603_vm12 = vcmp.ge.f32.partialorder %v2805_v32, 0.0 }
 0x13a   : > { %v1094_v11 = vpop.f32.mrb[15].mxu0  ;;  %v2842_v14 = vpop.eup %2218  ;;  %v1661_v15 = vadd.f32 1.0, %v2838_v5  ;;  %v1479_v16 = vand.u32 2147483647, %v2836_v0  ;;  %v1478_v36 = vand.u32 2147483647, %v2852_v17 }
 0x13b   : > { %v2854_v18 = vpop.eup %2220  ;;  %v1663_v21 = vadd.f32 1.0, %v2842_v14  ;;  %v1509_v22 = vsub.f32 0.0, %v1477_v9  ;;  %v1135_v23 = vpop.f32.mrb[15].mxu1  ;;  %v1480_v58 = vand.u32 2147483647, %v2875_v42  ;;  %vm1602_vm13 = vcmp.ge.f32.partialorder %v2810_v43, 0.0 }
 0x13c   : > { %v2862_v24 = vpop.eup %2222  ;;  %2236 = vrcp.f32 %v1661_v15  ;;  %v1662_v25 = vadd.f32 1.0, %v2854_v18  ;;  %v1511_v27 = vsub.f32 0.0, %v1479_v16  ;;  %v1510_v51 = vsub.f32 0.0, %v1478_v36 }
 0x13d   : > { %2238 = vrcp.f32 %v1663_v21  ;;  %v1664_v30 = vadd.f32 1.0, %v2862_v24  ;;  %v1553_v35 = vmul.f32 1.442695, %v1509_v22  ;;  %v1512_v16 = vsub.f32 0.0, %v1480_v58 }
 0x13e   : > { %v2225_v33 = vpop.eup %2224  ;;  %2240 = vrcp.f32 %v1662_v25  ;;  %v1171_v38 = vpop.f32.mrb[16].mxu0  ;;  %v1557_v41 = vmul.f32 1.442695, %v1511_v27  ;;  %v1555_v2 = vmul.f32 1.442695, %v1510_v51  ;;  %v1631_v21 = vsel %vm1599_vm8, 1.0, %v2842_v14 }
 0x13f   : > { %v2227_v39 = vpop.eup %2226  ;;  %v1690_v40 = vmul.f32 %v2225_v33, %v1625_v19  ;;  %2242 = vrcp.f32 %v1664_v30  ;;  %v1212_v45 = vpop.f32.mrb[16].mxu1  ;;  %v2880_v52 = vadd.f32 %v1171_v38, %v2767_v44  ;;  %v1632_v33 = vsel %vm1600_vm10, 1.0, %v2862_v24 }
 0x140   : > { %v2877_v12 = vpop.f32.mrb[17].mxu0  ;;  %v2229_v47 = vpop.eup %2228  ;;  %v1694_v49 = vmul.f32 %v2227_v39, %v1627_v20  ;;  %2244 = vpow2.f32 %v1547_v26  ;;  %v1630_v26 = vsel %vm1598_vm9, 1.0, %v2854_v18  ;;  %v2914_v27 = vadd.f32 %v1212_v45, %v2767_v44 }
 0x141   : > { %v2882_v53 = vpop.f32.mrb[17].mxu1  ;;  %v1175_v54 = vpop.f32.mrb[18].mxu0  ;;  %v1753_v56 = vmul.f32 %v1690_v40, %v2770_v46  ;;  %v1692_v57 = vmul.f32 %v2229_v47, %v1626_v28  ;;  %2246 = vpow2.f32 %v1551_v31  ;;  %vm1604_vm14 = vcmp.ge.f32.partialorder %v2815_v50, 0.0 }
 0x142   : > { %v2231_v55 = vpop.eup %2230  ;;  %v1216_v59 = vpop.f32.mrb[18].mxu1  ;;  %v1755_v63 = vmul.f32 %v1694_v49, %v2773_v48  ;;  %2248 = vpow2.f32 %v1553_v35  ;;  %v1483_v40 = vand.u32 2147483647, %v2914_v27  ;;  %vm1605_vm15 = vcmp.ge.f32.partialorder %v2832_v60, 0.0 }
 0x143   : > { %v1176_v61 = vpop.f32.mrb[19].mxu0  ;;  %v2887_v62 = vpop.eup %2232  ;;  %v1696_v1 = vmul.f32 %v2231_v55, %v1628_v34  ;;  %v1754_v10 = vmul.f32 %v1692_v57, %v2776_v3  ;;  %2250 = vpow2.f32 %v1557_v41  ;;  %v1629_v3 = vsel %vm1597_vm7, 1.0, %v2838_v5 }
 0x144   : > { %v1217_v6 = vpop.f32.mrb[19].mxu1  ;;  %v2890_v9 = vpop.eup %2234  ;;  %v1665_v46 = vadd.f32 1.0, %v2887_v62  ;;  %2252 = vpow2.f32 %v1555_v2  ;;  %v1559_v5 = vmul.f32 1.442695, %v1512_v16  ;;  %vm1607_vm0 = vcmp.ge.f32.partialorder %v2836_v0, 0.0 }
 0x145   : > { %v1756_v48 = vmul.f32 %v1696_v1, %v2780_v37  ;;  %v1667_v11 = vadd.f32 1.0, %v2890_v9  ;;  %v2133_v15 = vpack.c.bf16 %v1754_v10, %v1753_v56  ;;  %v1481_v37 = vand.u32 2147483647, %v2880_v52 }
 0x146   : > { %v2237_v19 = vpop.eup %2236  ;;  %2254 = vrcp.f32 %v1665_v46  ;;  %v1253_v22 = vpop.f32.mrb[20].mxu0  ;;  %vm1606_vm1 = vcmp.ge.f32.partialorder %v2852_v17, 0.0  ;;  %vm1608_vm2 = vcmp.ge.f32.partialorder %v2875_v42, 0.0  ;;  %vm1609_vm3 = vcmp.ge.f32.partialorder %v2880_v52, 0.0 }
 0x147   : > { %v2134_v20 = vpack.c.bf16 %v1756_v48, %v1755_v63  ;;  %v2239_v23 = vpop.eup %2238  ;;  %1913 = vst [vmem:[%s2898_s30] sm:$0xff] %v2133_v15  ;;  %v1698_v25 = vmul.f32 %v2237_v19, %v1629_v3  ;;  %v2916_v28 = vpop.f32.mrb[20].mxu1  ;;  %2256 = vrcp.f32 %v1667_v11  ;;  %v1513_v18 = vsub.f32 0.0, %v1481_v37 }
 0x148   : > { %v2918_v30 = vpop.f32.mrb[21].mxu0  ;;  %v2241_v14 = vpop.eup %2240  ;;  %v1702_v31 = vmul.f32 %v2239_v23, %v1631_v21  ;;  %2258 = vpow2.f32 %v1559_v5  ;;  %v1633_v21 = vsel %vm1601_vm11, 1.0, %v2887_v62  ;;  %v1635_v37 = vsel %vm1603_vm12, 1.0, %v2890_v9 }
 0x149   : > { %1914 = vst [vmem:[%s2898_s30 + $0x8] sm:$0xff] %v2134_v20  ;;  %v2926_v34 = vpop.f32.mrb[21].mxu1  ;;  %v1257_v35 = vpop.f32.mrb[22].mxu0  ;;  %v1757_v38 = vmul.f32 %v1698_v25, %v2786_v4  ;;  %v1700_v39 = vmul.f32 %v2241_v14, %v1630_v26  ;;  %v1561_v51 = vmul.f32 1.442695, %v1513_v18  ;;  %v1515_v4 = vsub.f32 0.0, %v1483_v40 }
 0x14a   : > { %v2243_v36 = vpop.eup %2242  ;;  %v1298_v41 = vpop.f32.mrb[22].mxu1  ;;  %v1759_v24 = vmul.f32 %v1702_v31, %v2789_v7  ;;  %v2937_v7 = vadd.f32 %v2877_v12, %v2767_v44  ;;  %vm1611_vm4 = vcmp.ge.f32.partialorder %v2914_v27, 0.0 }
 0x14b   : > { %v1258_v45 = vpop.f32.mrb[23].mxu0  ;;  %v2245_v47 = vpop.eup %2244  ;;  %v1704_v49 = vmul.f32 %v2243_v36, %v1632_v33  ;;  %v1758_v56 = vmul.f32 %v1700_v39, %v2792_v8  ;;  %2260 = vpow2.f32 %v1561_v51  ;;  %v2941_v8 = vadd.f32 %v2882_v53, %v2767_v44 }
 0x14c   : > { %v1299_v54 = vpop.f32.mrb[23].mxu1  ;;  %v2247_v55 = vpop.eup %2246  ;;  %v1666_v57 = vadd.f32 1.0, %v2245_v47  ;;  %v1565_v11 = vmul.f32 1.442695, %v1515_v4  ;;  %v1482_v16 = vand.u32 2147483647, %v2937_v7  ;;  %v2976_v36 = vadd.f32 %v2916_v28, %v2767_v44 }
 0x14d   : > { %v2249_v58 = vpop.eup %2248  ;;  %v1760_v59 = vmul.f32 %v1704_v49, %v2796_v13  ;;  %v1668_v61 = vadd.f32 1.0, %v2247_v55  ;;  %v2135_v1 = vpack.c.bf16 %v1758_v56, %v1757_v38  ;;  %v2944_v13 = vadd.f32 %v1253_v22, %v2767_v44 }
 0x14e   : > { %v2251_v63 = vpop.eup %2250  ;;  %2262 = vrcp.f32 %v1666_v57  ;;  %v1669_v2 = vadd.f32 1.0, %v2249_v58  ;;  %v2946_v48 = vpop.f32.mrb[24].mxu0  ;;  %v1484_v22 = vand.u32 2147483647, %v2941_v8  ;;  %v1634_v5 = vsel %vm1602_vm13, 1.0, %v2245_v47 }
 0x14f   : > { %v2253_v6 = vpop.eup %2252  ;;  %v2136_v10 = vpack.c.bf16 %v1760_v59, %v1759_v24  ;;  %2264 = vrcp.f32 %v1668_v61  ;;  %v1671_v46 = vadd.f32 1.0, %v2251_v63  ;;  %1915 = vst [vmem:[%s2898_s30 + $0x10] sm:$0xff] %v2135_v1  ;;  %v2950_v15 = vpop.f32.mrb[24].mxu1  ;;  %v1514_v14 = vsub.f32 0.0, %v1482_v16 }
 0x150   : > { %2266 = vrcp.f32 %v1669_v2  ;;  %v1670_v12 = vadd.f32 1.0, %v2253_v6  ;;  %v2952_v3 = vpop.f32.mrb[25].mxu0  ;;  %v2255_v53 = vpop.eup %2254  ;;  %v1485_v31 = vand.u32 2147483647, %v2944_v13  ;;  %v1636_v9 = vsel %vm1604_vm14, 1.0, %v2247_v55 }
 0x151   : > { %1916 = vst [vmem:[%s2898_s30 + $0x18] sm:$0xff] %v2136_v10  ;;  %2268 = vrcp.f32 %v1671_v46  ;;  %v2958_v19 = vpop.f32.mrb[25].mxu1  ;;  %v1339_v20 = vpop.f32.mrb[26].mxu0  ;;  %v1706_v62 = vmul.f32 %v2255_v53, %v1633_v21  ;;  %v1516_v35 = vsub.f32 0.0, %v1484_v22  ;;  %v1637_v38 = vsel %vm1605_vm15, 1.0, %v2249_v58 }
 0x152   : > { %2270 = vrcp.f32 %v1670_v12  ;;  %v1380_v23 = vpop.f32.mrb[26].mxu1  ;;  %v1340_v25 = vpop.f32.mrb[27].mxu0  ;;  %v1563_v40 = vmul.f32 1.442695, %v1514_v14  ;;  %v1517_v41 = vsub.f32 0.0, %v1485_v31  ;;  %v2984_v49 = vadd.f32 %v2918_v30, %v2767_v44 }
 0x153   : > { %v2257_v26 = vpop.eup %2256  ;;  %2272 = vpow2.f32 %v1565_v11  ;;  %v1381_v33 = vpop.f32.mrb[27].mxu1  ;;  %v1567_v47 = vmul.f32 1.442695, %v1516_v35  ;;  %v1487_v24 = vand.u32 2147483647, %v2976_v36  ;;  %v1639_v28 = vsel %vm1607_vm0, 1.0, %v2251_v63 }
 0x154   : > { %v2970_v18 = vpop.eup %2258  ;;  %v1710_v45 = vmul.f32 %v2257_v26, %v1635_v37  ;;  %v1569_v54 = vmul.f32 1.442695, %v1517_v41  ;;  %v2992_v55 = vadd.f32 %v2926_v34, %v2767_v44  ;;  %v1761_v4 = vmul.f32 %v1706_v62, %v2802_v29 }
 0x155   : > { %v1672_v39 = vadd.f32 1.0, %v2970_v18  ;;  %v2986_v51 = vpop.eup %2260  ;;  %v1638_v30 = vsel %vm1606_vm1, 1.0, %v2253_v6  ;;  %v1519_v58 = vsub.f32 0.0, %v1487_v24  ;;  %v1486_v34 = vand.u32 2147483647, %v2984_v49 }
 0x156   : > { %v2994_v56 = vpop.f32.mrb[28].mxu0  ;;  %v1673_v2 = vadd.f32 1.0, %v2986_v51  ;;  %v1763_v12 = vmul.f32 %v1710_v45, %v2805_v32  ;;  %v1488_v53 = vand.u32 2147483647, %v2992_v55  ;;  %v3013_v14 = vadd.f32 %v2946_v48, %v2767_v44 }
 0x157   : > { %2274 = vrcp.f32 %v1672_v39  ;;  %v2999_v59 = vpop.f32.mrb[28].mxu1  ;;  %v3001_v61 = vpop.f32.mrb[29].mxu0  ;;  %v1573_v11 = vmul.f32 1.442695, %v1519_v58  ;;  %v1518_v23 = vsub.f32 0.0, %v1486_v34  ;;  %vm1610_vm5 = vcmp.ge.f32.partialorder %v2937_v7, 0.0 }
 0x158   : > { %v2263_v57 = vpop.eup %2262  ;;  %2276 = vpow2.f32 %v1563_v40  ;;  %v3005_v10 = vpop.f32.mrb[29].mxu1  ;;  %v1520_v32 = vsub.f32 0.0, %v1488_v53  ;;  %v1489_v48 = vand.u32 2147483647, %v3013_v14  ;;  %vm1612_vm6 = vcmp.ge.f32.partialorder %v2941_v8, 0.0 }
 0x159   : > { %v2265_v63 = vpop.eup %2264  ;;  %v1708_v1 = vmul.f32 %v2263_v57, %v1634_v5  ;;  %2278 = vpow2.f32 %v1567_v47  ;;  %v1421_v46 = vpop.f32.mrb[30].mxu0  ;;  %v1640_v47 = vsel %vm1608_vm2, 1.0, %v2970_v18  ;;  %vm1613_vm7 = vcmp.ge.f32.partialorder %v2944_v13, 0.0 }
 0x15a   : > { %v2267_v29 = vpop.eup %2266  ;;  %v1712_v6 = vmul.f32 %v2265_v63, %v1636_v9  ;;  %v1462_v16 = vpop.f32.mrb[30].mxu1  ;;  %2280 = vpow2.f32 %v1569_v54  ;;  %v1571_v9 = vmul.f32 1.442695, %v1518_v23  ;;  %v1575_v40 = vmul.f32 1.442695, %v1520_v32 }
 0x15b   : > { %v1422_v20 = vpop.f32.mrb[31].mxu0  ;;  %v2269_v21 = vpop.eup %2268  ;;  %v1762_v37 = vmul.f32 %v1708_v1, %v2810_v43  ;;  %v1714_v22 = vmul.f32 %v2267_v29, %v1637_v38  ;;  %2282 = vpow2.f32 %v1573_v11  ;;  %v1521_v57 = vsub.f32 0.0, %v1489_v48 }
 0x15c   : > { %v1463_v25 = vpop.f32.mrb[31].mxu1  ;;  %v2271_v26 = vpop.eup %2270  ;;  %v1764_v5 = vmul.f32 %v1712_v6, %v2815_v50  ;;  %v1718_v38 = vmul.f32 %v2269_v21, %v1639_v28  ;;  %2284 = vrcp.f32 %v1673_v2  ;;  %v3058_v20 = vadd.f32 %v2994_v56, %v2767_v44 }
 0x15d   : > { %v3015_v31 = vpop.eup %2272  ;;  %v2137_v33 = vpack.c.bf16 %v1762_v37, %v1761_v4  ;;  %v1765_v43 = vmul.f32 %v1714_v22, %v2832_v60  ;;  %v1716_v62 = vmul.f32 %v2271_v26, %v1638_v30  ;;  %2286 = vpow2.f32 %v1571_v9 }
 0x15e   : > { %v2138_v35 = vpack.c.bf16 %v1764_v5, %v1763_v12  ;;  %v1675_v39 = vadd.f32 1.0, %v3015_v31  ;;  %v3026_v60 = vadd.f32 %v2950_v15, %v2767_v44  ;;  %v1767_v28 = vmul.f32 %v1718_v38, %v2836_v0 }
 0x15f   : > { %1917 = vst [vmem:[%s2898_s30 + $0x20] sm:$0xff] %v2137_v33  ;;  %v1766_v50 = vmul.f32 %v1716_v62, %v2852_v17  ;;  %v3031_v17 = vadd.f32 %v2952_v3, %v2767_v44  ;;  %v1577_v1 = vmul.f32 1.442695, %v1521_v57  ;;  %v3040_v3 = vadd.f32 %v2958_v19, %v2767_v44 }
 0x160   : > { %1918 = vst [vmem:[%s2898_s30 + $0x28] sm:$0xff] %v2138_v35  ;;  %2288 = vrcp.f32 %v1675_v39  ;;  %v1491_v4 = vand.u32 2147483647, %v3026_v60  ;;  %v3062_v21 = vadd.f32 %v2999_v59, %v2767_v44  ;;  %v1641_v26 = vsel %vm1609_vm3, 1.0, %v2986_v51 }
 0x161   : > { %v2275_v41 = vpop.eup %2274  ;;  %v2139_v45 = vpack.c.bf16 %v1766_v50, %v1765_v43  ;;  %2290 = vpow2.f32 %v1575_v40  ;;  %v1490_v58 = vand.u32 2147483647, %v3031_v17  ;;  %v1492_v53 = vand.u32 2147483647, %v3040_v3 }
 0x162   : > { %v2277_v24 = vpop.eup %2276  ;;  %v1720_v54 = vmul.f32 %v2275_v41, %v1640_v47  ;;  %v1523_v0 = vsub.f32 0.0, %v1491_v4  ;;  %v1643_v56 = vsel %vm1611_vm4, 1.0, %v3015_v31  ;;  %v1493_v59 = vand.u32 2147483647, %v3058_v20 }
 0x163   : > { %v2279_v30 = vpop.eup %2278  ;;  %1919 = vst [vmem:[%s2898_s30 + $0x30] sm:$0xff] %v2139_v45  ;;  %v1674_v15 = vadd.f32 1.0, %v2277_v24  ;;  %v1522_v34 = vsub.f32 0.0, %v1490_v58  ;;  %v1524_v23 = vsub.f32 0.0, %v1492_v53  ;;  %vm1615_vm8 = vcmp.ge.f32.partialorder %v2976_v36, 0.0 }
 0x164   : > { %v1768_v63 = vmul.f32 %v1720_v54, %v2875_v42  ;;  %v1676_v18 = vadd.f32 1.0, %v2279_v30  ;;  %v3042_v2 = vpop.eup %2280  ;;  %v1581_v6 = vmul.f32 1.442695, %v1523_v0  ;;  %v1525_v62 = vsub.f32 0.0, %v1493_v59 }
 0x165   : > { %2292 = vrcp.f32 %v1674_v15  ;;  %v3044_v46 = vpop.eup %2282  ;;  %v1677_v42 = vadd.f32 1.0, %v3042_v2  ;;  %v1579_v11 = vmul.f32 1.442695, %v1522_v34  ;;  %v1583_v33 = vmul.f32 1.442695, %v1524_v23 }
 0x166   : > { %v2140_v29 = vpack.c.bf16 %v1768_v63, %v1767_v28  ;;  %2294 = vrcp.f32 %v1676_v18  ;;  %v1679_v19 = vadd.f32 1.0, %v3044_v46  ;;  %v2285_v12 = vpop.eup %2284  ;;  %v1495_v9 = vand.u32 2147483647, %v3062_v21 }
 0x167   : > { %2296 = vpow2.f32 %v1577_v1  ;;  %v3053_v16 = vpop.eup %2286  ;;  %v1722_v5 = vmul.f32 %v2285_v12, %v1641_v26  ;;  %v1642_v51 = vsel %vm1610_vm5, 1.0, %v2277_v24  ;;  %v3082_v31 = vadd.f32 %v3001_v61, %v2767_v44 }
 0x168   : > { %1920 = vst [vmem:[%s2898_s30 + $0x38] sm:$0xff] %v2140_v29  ;;  %2298 = vrcp.f32 %v1677_v42  ;;  %v1678_v22 = vadd.f32 1.0, %v3053_v16  ;;  %v3086_v35 = vadd.f32 %v3005_v10, %v2767_v44  ;;  %v1644_v39 = vsel %vm1612_vm6, 1.0, %v2279_v30 }
 0x169   : > { %2300 = vrcp.f32 %v1679_v19  ;;  %v1585_v50 = vmul.f32 1.442695, %v1525_v62  ;;  %v1527_v40 = vsub.f32 0.0, %v1495_v9  ;;  %v1769_v41 = vmul.f32 %v1722_v5, %v2880_v52 }
 0x16a   : > { %v2289_v37 = vpop.eup %2288  ;;  %2302 = vpow2.f32 %v1581_v6  ;;  %v1494_v47 = vand.u32 2147483647, %v3082_v31  ;;  %v1496_v61 = vand.u32 2147483647, %v3086_v35  ;;  %v1645_v4 = vsel %vm1613_vm7, 1.0, %v3042_v2 }
 0x16b   : > { %v3066_v25 = vpop.eup %2290  ;;  %2304 = vpow2.f32 %v1579_v11  ;;  %v1726_v43 = vmul.f32 %v2289_v37, %v1643_v56  ;;  %v1589_v10 = vmul.f32 1.442695, %v1527_v40  ;;  %vm1614_vm9 = vcmp.ge.f32.partialorder %v2984_v49, 0.0 }
 0x16c   : > { %2306 = vrcp.f32 %v1678_v22  ;;  %v1680_v32 = vadd.f32 1.0, %v3066_v25  ;;  %v1526_v52 = vsub.f32 0.0, %v1494_v47  ;;  %v1528_v18 = vsub.f32 0.0, %v1496_v61 }
 0x16d   : > { %v1771_v28 = vmul.f32 %v1726_v43, %v2914_v27  ;;  %vm1616_vm10 = vcmp.ge.f32.partialorder %v2992_v55, 0.0  ;;  %vm1617_vm11 = vcmp.ge.f32.partialorder %v3013_v14, 0.0  ;;  %vm1619_vm12 = vcmp.ge.f32.partialorder %v3026_v60, 0.0 }
 0x16e   : > { %2308 = vrcp.f32 %v1680_v32  ;;  %v1587_v0 = vmul.f32 1.442695, %v1526_v52  ;;  %v1591_v11 = vmul.f32 1.442695, %v1528_v18  ;;  %v1648_v37 = vsel %vm1616_vm10, 1.0, %v3066_v25 }
 0x16f   : > { %v2293_v38 = vpop.eup %2292  ;;  %2310 = vpow2.f32 %v1583_v33  ;;  %vm1618_vm13 = vcmp.ge.f32.partialorder %v3031_v17, 0.0  ;;  %vm1620_vm14 = vcmp.ge.f32.partialorder %v3040_v3, 0.0  ;;  %vm1621_vm15 = vcmp.ge.f32.partialorder %v3058_v20, 0.0 }
 0x170   : > { %v2295_v48 = vpop.eup %2294  ;;  %v1724_v45 = vmul.f32 %v2293_v38, %v1642_v51  ;;  %2312 = vpow2.f32 %v1585_v50  ;;  %vm1623_vm0 = vcmp.ge.f32.partialorder %v3062_v21, 0.0  ;;  %vm1622_vm1 = vcmp.ge.f32.partialorder %v3082_v31, 0.0 }
 0x171   : > { %v2297_v24 = vpop.eup %2296  ;;  %v1728_v44 = vmul.f32 %v2295_v48, %v1644_v39  ;;  %2314 = vpow2.f32 %v1589_v10  ;;  %vm1624_vm2 = vcmp.ge.f32.partialorder %v3086_v35, 0.0 }
 0x172   : > { %v2299_v54 = vpop.eup %2298  ;;  %v1770_v57 = vmul.f32 %v1724_v45, %v2937_v7  ;;  %v1681_v30 = vadd.f32 1.0, %v2297_v24  ;;  %v1647_v7 = vsel %vm1615_vm8, 1.0, %v3044_v46  ;;  %v1649_v62 = vsel %vm1617_vm11, 1.0, %v2297_v24 }
 0x173   : > { %v2301_v15 = vpop.eup %2300  ;;  %v1772_v58 = vmul.f32 %v1728_v44, %v2941_v8  ;;  %v1730_v63 = vmul.f32 %v2299_v54, %v1645_v4  ;;  %v1646_v8 = vsel %vm1614_vm9, 1.0, %v3053_v16 }
 0x174   : > { %v2303_v27 = vpop.eup %2302  ;;  %v2141_v1 = vpack.c.bf16 %v1770_v57, %v1769_v41  ;;  %2316 = vrcp.f32 %v1681_v30  ;;  %v1734_v29 = vmul.f32 %v2301_v15, %v1647_v7 }
 0x175   : > { %v2305_v34 = vpop.eup %2304  ;;  %v2142_v2 = vpack.c.bf16 %v1772_v58, %v1771_v28  ;;  %v1683_v42 = vadd.f32 1.0, %v2303_v27  ;;  %2318 = vpow2.f32 %v1587_v0  ;;  %v1773_v6 = vmul.f32 %v1730_v63, %v2944_v13 }
 0x176   : > { %v2307_v19 = vpop.eup %2306  ;;  %1921 = vst [vmem:[%s2898_s30 + $0x40] sm:$0xff] %v2141_v1  ;;  %v1682_v12 = vadd.f32 1.0, %v2305_v34  ;;  %v1775_v23 = vmul.f32 %v1734_v29, %v2976_v36  ;;  %v1651_v39 = vsel %vm1619_vm12, 1.0, %v2303_v27  ;;  %v1650_v50 = vsel %vm1618_vm13, 1.0, %v2305_v34 }
 0x177   : > { %1922 = vst [vmem:[%s2898_s30 + $0x48] sm:$0xff] %v2142_v2  ;;  %v1732_v46 = vmul.f32 %v2307_v19, %v1646_v8  ;;  %2320 = vrcp.f32 %v1683_v42 }
 0x178   : > { %v2309_v53 = vpop.eup %2308  ;;  %2322 = vrcp.f32 %v1682_v12 }
 0x179   : > { %v2311_v22 = vpop.eup %2310  ;;  %v1774_v16 = vmul.f32 %v1732_v46, %v2984_v49  ;;  %v1736_v26 = vmul.f32 %v2309_v53, %v1648_v37  ;;  %2324 = vpow2.f32 %v1591_v11 }
 0x17a   : > { %v1684_v56 = vadd.f32 1.0, %v2311_v22  ;;  %v2313_v59 = vpop.eup %2312  ;;  %v1652_v28 = vsel %vm1620_vm14, 1.0, %v2311_v22 }
 0x17b   : > { %v2143_v5 = vpack.c.bf16 %v1774_v16, %v1773_v6  ;;  %v1776_v13 = vmul.f32 %v1736_v26, %v2992_v55  ;;  %v1685_v32 = vadd.f32 1.0, %v2313_v59  ;;  %v2315_v33 = vpop.eup %2314  ;;  %v1653_v4 = vsel %vm1621_vm15, 1.0, %v2313_v59 }
 0x17c   : > { %2326 = vrcp.f32 %v1684_v56  ;;  %v1687_v36 = vadd.f32 1.0, %v2315_v33  ;;  %v1655_v15 = vsel %vm1623_vm0, 1.0, %v2315_v33 }
 0x17d   : > { %1923 = vst [vmem:[%s2898_s30 + $0x50] sm:$0xff] %v2143_v5  ;;  %v2144_v43 = vpack.c.bf16 %v1776_v13, %v1775_v23  ;;  %2328 = vrcp.f32 %v1685_v32 }
 0x17e   : > { %v2317_v25 = vpop.eup %2316  ;;  %2330 = vrcp.f32 %v1687_v36 }
 0x17f   : > { %1924 = vst [vmem:[%s2898_s30 + $0x58] sm:$0xff] %v2144_v43  ;;  %v1738_v49 = vmul.f32 %v2317_v25, %v1649_v62  ;;  %v2319_v9 = vpop.eup %2318 }
 0x180   : > { %v1686_v55 = vadd.f32 1.0, %v2319_v9  ;;  %v1654_v63 = vsel %vm1622_vm1, 1.0, %v2319_v9 }
 0x181   : > { %v2321_v51 = vpop.eup %2320  ;;  %v1777_v48 = vmul.f32 %v1738_v49, %v3013_v14 }
 0x182   : > { %v2323_v38 = vpop.eup %2322  ;;  %v1742_v41 = vmul.f32 %v2321_v51, %v1651_v39  ;;  %2332 = vrcp.f32 %v1686_v55 }
 0x183   : > { %v2325_v40 = vpop.eup %2324  ;;  %v1740_v45 = vmul.f32 %v2323_v38, %v1650_v50 }
 0x184   : > { %v1688_v47 = vadd.f32 1.0, %v2325_v40  ;;  %v1779_v44 = vmul.f32 %v1742_v41, %v3026_v60  ;;  %v1656_v7 = vsel %vm1624_vm2, 1.0, %v2325_v40 }
 0x185   : > { %v1778_v61 = vmul.f32 %v1740_v45, %v3031_v17 }
 0x186   : > { %v2327_v24 = vpop.eup %2326  ;;  %2334 = vrcp.f32 %v1688_v47 }
 0x187   : > { %v2145_v10 = vpack.c.bf16 %v1778_v61, %v1777_v48  ;;  %v1744_v54 = vmul.f32 %v2327_v24, %v1652_v28  ;;  %v2329_v57 = vpop.eup %2328 }
 0x188   : > { %v2331_v30 = vpop.eup %2330  ;;  %v1746_v52 = vmul.f32 %v2329_v57, %v1653_v4 }
 0x189   : > { %1925 = vst [vmem:[%s2898_s30 + $0x60] sm:$0xff] %v2145_v10  ;;  %v1780_v14 = vmul.f32 %v1744_v54, %v3040_v3  ;;  %v1750_v60 = vmul.f32 %v2331_v30, %v1655_v15 }
 0x18a   : > { %v1781_v18 = vmul.f32 %v1746_v52, %v3058_v20 }
 0x18b   : > { %v2146_v17 = vpack.c.bf16 %v1780_v14, %v1779_v44  ;;  %v1783_v0 = vmul.f32 %v1750_v60, %v3062_v21 }
 0x18c   : > { %v2333_v58 = vpop.eup %2332 }
 0x18d   : > { %1926 = vst [vmem:[%s2898_s30 + $0x68] sm:$0xff] %v2146_v17  ;;  %v1748_v27 = vmul.f32 %v2333_v58, %v1654_v63 }
 0x18f   : > { %v1782_v1 = vmul.f32 %v1748_v27, %v3082_v31 }
 0x190   : > { %v2335_v3 = vpop.eup %2334 }
 0x191   : > { %v1752_v34 = vmul.f32 %v2335_v3, %v1656_v7  ;;  %v2147_v2 = vpack.c.bf16 %v1782_v1, %v1781_v18 }
 0x193   : > { %v1784_v29 = vmul.f32 %v1752_v34, %v3086_v35  ;;  %1927 = vst [vmem:[%s2898_s30 + $0x70] sm:$0xff] %v2147_v2 }
 0x195   : > { %v2148_v42 = vpack.c.bf16 %v1784_v29, %v1783_v0 }
 0x197   : > { %1928 = vst [vmem:[%s2898_s30 + $0x78] sm:$0xff] %v2148_v42 }
 0x198 PF: > { %s13_s18 = sadd.s32 1, %s2390_s18   ;;  %s3160_s12 = smov %s2370_s13 }
 0x199   : > { %p10_p12 = scmp.ge.s32.totalorder %s13_s18, 10   ;;  %s3161_s13 = smov %s2465_s25 }
 0x19a   : > { %s3162_s14 = smov %s2382_s16  ;;  %s3163_s15 = smov %s2386_s17 }
 0x19b   : > { %s3164_s16 = smov %s3167_s19  ;;  %s3165_s17 = smov %s3171_s20 }
 0x19c   :  { %12 = sbr.rel (!%p10_p12) target bundleno = 4 (0x4), region = 90 }

// kernel: adaptive_1dlut_net_forward.7
= control target key start
LH: loop header
LB: loop body
LE: loop exit
PB: predicated region body
PF: predicated region fallthrough
CT: control target
= control target key end

     0   :  { %s3463_s12 = smov 0   ;;  %s3465_s13 = smov 0   ;;  %s4454_s0 = inlined_call_operand.vmem [shape: bf16[2,72,4096], index: 0, kind: input, shape index: {}]   ;;  %s4455_s1 = inlined_call_operand.vmem [shape: bf16[16,72], index: 1, kind: input, shape index: {}]   ;;  %s4456_s2 = inlined_call_operand.vmem [shape: f32[16,1], index: 2, kind: input, shape index: {}]   ;;  %s4457_s3 = inlined_call_operand.vmem [shape: bf16[2,16,4096], index: 3, kind: output, shape index: {}]  }
   0x1   :  { %s3467_s14 = smov 0  }
   0x2 LB: > { %s25_s15 = sadd.s32 1, %s3436_s13  ;;  %p2838_p0 = scmp.ge.s32.totalorder %s3440_s14, 1  ;;  %s3440_s14 = sphi %s3467_s14, %s13_s14   ;;  %s3436_s13 = sphi %s3465_s13, %s4459_s13   ;;  %s3432_s12 = sphi %s3463_s12, %s4458_s12  }
   0x3   : > { %p27_p1 = scmp.ge.s32.totalorder %s25_s15, 2  ;;  %p158_p2 = scmp.lt.s32.totalorder %s3440_s14, 3 }
   0x5   : > { %s4461_s15 = smov (%p27_p1, %s25_s15), 0  ;;  %p159_p3 = pnand %p2838_p0, %p158_p2 }
   0x6   : > { %p191_p4 = scmp.lt.s32.totalorder (!%p159_p3), %s3432_s12, 1  ;;  %v3442_v0 = vmov (!%p159_p3), 0   ;;  %v357_v1 = vld [vmem:[%s4456_s2] sm:$0xff] (!%p159_p3)  ;;  %v358_v2 = vld [vmem:[%s4456_s2 + $0x8] sm:$0xff] (!%p159_p3)  ;;  %vm1098_vm0 = vcmask (!%p159_p3), 1043456   ;;  %vm1094_vm1 = vcmask (!%p159_p3), 588800  }
   0x7   : > { %162 = sbr.rel (%p159_p3) target bundleno = 471 (0x1d7), region = 32  ;;  %1227 = vmatprep.mubr.bf16.mxu0 (!%p159_p3), %v3442_v0  ;;  %1270 = vmatprep.mubr.bf16.mxu1 (!%p159_p3), %v3442_v0  ;;  %v3529_v51 = vld [vmem:[%s4455_s1] sm:$0xff] (!%p159_p3)  }
   0x8   : > { %3128 = vset.pattern.permute.xlu0 (!%p159_p3), %v3442_v0 }
   0x9   : > { %361 = vperm.xlu0 (!%p159_p3), %3128, %v357_v1  }
   0xd   : > { %366 = vperm.xlu0 (!%p159_p3), %3128, %v358_v2  }
   0xe   : > { %s4463_s12 = smov (!%p191_p4, %s3432_s12), 1 }
   0xf   : > { %s3102_s18 = smul.u32 1152, %s4463_s12  ;;  %s3069_s26 = sshll.u32 %s4463_s12, 8 }
  0x10   : > { %s3820_s29 = scalar_lea.vmem %s4457_s3, %s3069_s26 }
  0x11   : > { %s3496_s23 = scalar_lea.vmem %s4454_s0, %s3102_s18 }
  0x12   : > { %v213_v3 = vld [vmem:[%s3496_s23] sm:$0xff]  ;;  %v214_v5 = vld [vmem:[%s3496_s23 + $0x8] sm:$0xff]  ;;  %v215_v41 = vld [vmem:[%s3496_s23 + $0x10] sm:$0xff] }
  0x13   : > { %v229_v4 = vld [vmem:[%s3496_s23 + $0x80] sm:$0xff]  ;;  %v230_v7 = vld [vmem:[%s3496_s23 + $0x88] sm:$0xff]  ;;  %v231_v42 = vld [vmem:[%s3496_s23 + $0x90] sm:$0xff] }
  0x14   : > { %v2844_v6 = vcombine.high %v213_v3, %v229_v4  ;;  %v2843_v8 = vcombine.low %v213_v3, %v229_v4  ;;  %v245_v9 = vld [vmem:[%s3496_s23 + $0x100] sm:$0xff]  ;;  %v2846_v11 = vcombine.high %v214_v5, %v230_v7  ;;  %v2845_v12 = vcombine.low %v214_v5, %v230_v7  ;;  %v246_v14 = vld [vmem:[%s3496_s23 + $0x108] sm:$0xff]  ;;  %v216_v43 = vld [vmem:[%s3496_s23 + $0x18] sm:$0xff] }
  0x15   : > { %v261_v10 = vld [vmem:[%s3496_s23 + $0x180] sm:$0xff]  ;;  %v262_v15 = vld [vmem:[%s3496_s23 + $0x188] sm:$0xff]  ;;  %v232_v44 = vld [vmem:[%s3496_s23 + $0x98] sm:$0xff]  ;;  %v2848_v46 = vcombine.high %v215_v41, %v231_v42  ;;  %v2847_v54 = vcombine.low %v215_v41, %v231_v42 }
  0x16   : > { %v2876_v13 = vcombine.high %v245_v9, %v261_v10  ;;  %v277_v16 = vld [vmem:[%s3496_s23 + $0x200] sm:$0xff]  ;;  %1195 = vmatprep.subr.bf16.mxu0 %v2844_v6  ;;  %v2878_v17 = vcombine.high %v246_v14, %v262_v15  ;;  %v278_v19 = vld [vmem:[%s3496_s23 + $0x208] sm:$0xff]  ;;  %1238 = vmatprep.subr.bf16.mxu1 %v2846_v11  ;;  %v2875_v21 = vcombine.low %v245_v9, %v261_v10  ;;  %v247_v49 = vld [vmem:[%s3496_s23 + $0x110] sm:$0xff] }
  0x17   : > { %v293_v18 = vld [vmem:[%s3496_s23 + $0x280] sm:$0xff]  ;;  %v294_v20 = vld [vmem:[%s3496_s23 + $0x288] sm:$0xff]  ;;  %1196 = vmatpush1.bf16.msra.mxu0 %v2843_v8  ;;  %1239 = vmatpush1.bf16.msra.mxu1 %v2845_v12  ;;  %v2877_v22 = vcombine.low %v246_v14, %v262_v15  ;;  %v2850_v48 = vcombine.high %v216_v43, %v232_v44  ;;  %v263_v50 = vld [vmem:[%s3496_s23 + $0x190] sm:$0xff]  ;;  %v2849_v55 = vcombine.low %v216_v43, %v232_v44 }
  0x18   : > { %1197 = vmatprep.subr.bf16.mxu0 %v2876_v13  ;;  %v2908_v23 = vcombine.high %v277_v16, %v293_v18  ;;  %1240 = vmatprep.subr.bf16.mxu1 %v2878_v17  ;;  %v2910_v24 = vcombine.high %v278_v19, %v294_v20  ;;  %v309_v25 = vld [vmem:[%s3496_s23 + $0x300] sm:$0xff]  ;;  %v310_v27 = vld [vmem:[%s3496_s23 + $0x308] sm:$0xff]  ;;  %v2907_v29 = vcombine.low %v277_v16, %v293_v18  ;;  %v248_v52 = vld [vmem:[%s3496_s23 + $0x118] sm:$0xff] }
  0x19   : > { %v325_v26 = vld [vmem:[%s3496_s23 + $0x380] sm:$0xff]  ;;  %v326_v28 = vld [vmem:[%s3496_s23 + $0x388] sm:$0xff]  ;;  %v2909_v30 = vcombine.low %v278_v19, %v294_v20  ;;  %v264_v53 = vld [vmem:[%s3496_s23 + $0x198] sm:$0xff]  ;;  %v2880_v56 = vcombine.high %v247_v49, %v263_v50  ;;  %v2879_v62 = vcombine.low %v247_v49, %v263_v50 }
  0x1a   : > { %v2940_v31 = vcombine.high %v309_v25, %v325_v26  ;;  %v2942_v32 = vcombine.high %v310_v27, %v326_v28  ;;  %v341_v33 = vld [vmem:[%s3496_s23 + $0x400] sm:$0xff]  ;;  %v342_v34 = vld [vmem:[%s3496_s23 + $0x408] sm:$0xff]  ;;  %v2939_v35 = vcombine.low %v309_v25, %v325_v26  ;;  %v2941_v36 = vcombine.low %v310_v27, %v326_v28  ;;  %v279_v58 = vld [vmem:[%s3496_s23 + $0x210] sm:$0xff] }
  0x1b   : > { %1198 = vmatpush1.bf16.msra.mxu0 %v2875_v21  ;;  %1241 = vmatpush1.bf16.msra.mxu1 %v2877_v22  ;;  %v2972_v37 = vcombine.high %v341_v33, %v341_v33  ;;  %v2971_v38 = vcombine.low %v341_v33, %v341_v33  ;;  %v2974_v39 = vcombine.high %v342_v34, %v342_v34  ;;  %v295_v59 = vld [vmem:[%s3496_s23 + $0x290] sm:$0xff]  ;;  %v280_v60 = vld [vmem:[%s3496_s23 + $0x218] sm:$0xff]  ;;  %v217_v19 = vld [vmem:[%s3496_s23 + $0x20] sm:$0xff] }
  0x1c   : > { %1199 = vmatprep.subr.bf16.mxu0 %v2908_v23  ;;  %1242 = vmatprep.subr.bf16.mxu1 %v2910_v24  ;;  %v2973_v40 = vcombine.low %v342_v34, %v342_v34  ;;  %v2882_v57 = vcombine.high %v248_v52, %v264_v53  ;;  %v296_v61 = vld [vmem:[%s3496_s23 + $0x298] sm:$0xff]  ;;  %v2881_v63 = vcombine.low %v248_v52, %v264_v53  ;;  %v311_v3 = vld [vmem:[%s3496_s23 + $0x310] sm:$0xff]  ;;  %v233_v20 = vld [vmem:[%s3496_s23 + $0xa0] sm:$0xff] }
  0x1d   : > { %v1100_v45 = vsel %vm1098_vm0, %v2971_v38, 0  ;;  %v2912_v1 = vcombine.high %v279_v58, %v295_v59  ;;  %v2914_v2 = vcombine.high %v280_v60, %v296_v61  ;;  %v327_v4 = vld [vmem:[%s3496_s23 + $0x390] sm:$0xff]  ;;  %v312_v5 = vld [vmem:[%s3496_s23 + $0x318] sm:$0xff]  ;;  %v2911_v7 = vcombine.low %v279_v58, %v295_v59  ;;  %v218_v21 = vld [vmem:[%s3496_s23 + $0x28] sm:$0xff] }
  0x1e   : > { %v1106_v47 = vsel %vm1098_vm0, %v2973_v40, 0  ;;  %v328_v6 = vld [vmem:[%s3496_s23 + $0x398] sm:$0xff]  ;;  %v2913_v8 = vcombine.low %v280_v60, %v296_v61  ;;  %v2944_v9 = vcombine.high %v311_v3, %v327_v4  ;;  %v343_v11 = vld [vmem:[%s3496_s23 + $0x410] sm:$0xff]  ;;  %v2943_v13 = vcombine.low %v311_v3, %v327_v4  ;;  %v234_v22 = vld [vmem:[%s3496_s23 + $0xa8] sm:$0xff] }
  0x1f   : > { %1200 = vmatpush1.bf16.msra.mxu0 %v2907_v29  ;;  %1243 = vmatpush1.bf16.msra.mxu1 %v2909_v30  ;;  %v2946_v10 = vcombine.high %v312_v5, %v328_v6  ;;  %v344_v12 = vld [vmem:[%s3496_s23 + $0x418] sm:$0xff]  ;;  %v2945_v14 = vcombine.low %v312_v5, %v328_v6  ;;  %v2976_v15 = vcombine.high %v343_v11, %v343_v11  ;;  %v249_v27 = vld [vmem:[%s3496_s23 + $0x120] sm:$0xff]  ;;  %v250_v29 = vld [vmem:[%s3496_s23 + $0x128] sm:$0xff] }
  0x20   : > { %1201 = vmatprep.subr.bf16.mxu0 %v2940_v31  ;;  %1244 = vmatprep.subr.bf16.mxu1 %v2942_v32  ;;  %v2975_v16 = vcombine.low %v343_v11, %v343_v11  ;;  %v2978_v17 = vcombine.high %v344_v12, %v344_v12  ;;  %v2977_v18 = vcombine.low %v344_v12, %v344_v12  ;;  %v265_v28 = vld [vmem:[%s3496_s23 + $0x1a0] sm:$0xff]  ;;  %v266_v30 = vld [vmem:[%s3496_s23 + $0x1a8] sm:$0xff]  ;;  %v219_v60 = vld [vmem:[%s3496_s23 + $0x30] sm:$0xff] }
  0x21   : > { %v2852_v24 = vcombine.high %v217_v19, %v233_v20  ;;  %v2854_v26 = vcombine.high %v218_v21, %v234_v22  ;;  %v2851_v31 = vcombine.low %v217_v19, %v233_v20  ;;  %v2853_v32 = vcombine.low %v218_v21, %v234_v22  ;;  %v298_v38 = vld [vmem:[%s3496_s23 + $0x2a8] sm:$0xff]  ;;  %v313_v43 = vld [vmem:[%s3496_s23 + $0x320] sm:$0xff]  ;;  %v235_v61 = vld [vmem:[%s3496_s23 + $0xb0] sm:$0xff] }
  0x22   : > { %v1112_v23 = vsel %vm1098_vm0, %v2975_v16, 0  ;;  %v1118_v25 = vsel %vm1098_vm0, %v2977_v18, 0  ;;  %v2884_v33 = vcombine.high %v249_v27, %v265_v28  ;;  %v2886_v34 = vcombine.high %v250_v29, %v266_v30  ;;  %v329_v44 = vld [vmem:[%s3496_s23 + $0x3a0] sm:$0xff]  ;;  %v346_v53 = vld [vmem:[%s3496_s23 + $0x428] sm:$0xff]  ;;  %v251_v5 = vld [vmem:[%s3496_s23 + $0x130] sm:$0xff] }
  0x23   : > { %1202 = vmatpush1.bf16.msra.mxu0 %v2939_v35  ;;  %1245 = vmatpush1.bf16.msra.mxu1 %v2941_v36  ;;  %v281_v35 = vld [vmem:[%s3496_s23 + $0x220] sm:$0xff]  ;;  %v2885_v40 = vcombine.low %v250_v29, %v266_v30  ;;  %v2948_v49 = vcombine.high %v313_v43, %v329_v44  ;;  %v2982_v58 = vcombine.high %v346_v53, %v346_v53  ;;  %v267_v6 = vld [vmem:[%s3496_s23 + $0x1b0] sm:$0xff]  ;;  %v300_v16 = vld [vmem:[%s3496_s23 + $0x2b8] sm:$0xff] }
  0x24   : > { %3003 = vmatprep.subr.msk.bf16.mxu0 %vm1098_vm0, %v2972_v37  ;;  %3005 = vmatprep.subr.msk.bf16.mxu1 %vm1098_vm0, %v2974_v39  ;;  %v297_v36 = vld [vmem:[%s3496_s23 + $0x2a0] sm:$0xff]  ;;  %v282_v37 = vld [vmem:[%s3496_s23 + $0x228] sm:$0xff]  ;;  %v2883_v39 = vcombine.low %v249_v27, %v265_v28  ;;  %v2981_v59 = vcombine.low %v346_v53, %v346_v53  ;;  %v2888_v11 = vcombine.high %v251_v5, %v267_v6  ;;  %v315_v21 = vld [vmem:[%s3496_s23 + $0x330] sm:$0xff] }
  0x25   : > { %v2916_v41 = vcombine.high %v281_v35, %v297_v36  ;;  %v2918_v42 = vcombine.high %v282_v37, %v298_v38  ;;  %v345_v52 = vld [vmem:[%s3496_s23 + $0x420] sm:$0xff]  ;;  %v331_v22 = vld [vmem:[%s3496_s23 + $0x3b0] sm:$0xff]  ;;  %v348_v30 = vld [vmem:[%s3496_s23 + $0x438] sm:$0xff] }
  0x26   : > { %v1130_v3 = vsel %vm1098_vm0, %v2981_v59, 0  ;;  %v2952_v27 = vcombine.high %v315_v21, %v331_v22  ;;  %v347_v29 = vld [vmem:[%s3496_s23 + $0x430] sm:$0xff] }
  0x27   : > { %1204 = vmatpush1.bf16.msra.mxu0 %v1100_v45  ;;  %1247 = vmatpush1.bf16.msra.mxu1 %v1106_v47  ;;  %v314_v45 = vld [vmem:[%s3496_s23 + $0x328] sm:$0xff]  ;;  %v2915_v47 = vcombine.low %v281_v35, %v297_v36  ;;  %v2986_v35 = vcombine.high %v348_v30, %v348_v30  ;;  %v2985_v36 = vcombine.low %v348_v30, %v348_v30 }
  0x28   : > { %1281 = vmatprep.subr.bf16.mxu0 %v2848_v46  ;;  %1324 = vmatprep.subr.bf16.mxu1 %v2850_v48  ;;  %v330_v46 = vld [vmem:[%s3496_s23 + $0x3a8] sm:$0xff]  ;;  %v2917_v48 = vcombine.low %v282_v37, %v298_v38  ;;  %v221_v37 = vld [vmem:[%s3496_s23 + $0x40] sm:$0xff] }
  0x29   : > { %v2950_v50 = vcombine.high %v314_v45, %v330_v46  ;;  %v237_v38 = vld [vmem:[%s3496_s23 + $0xc0] sm:$0xff] }
  0x2a   : > { %3004 = vmatmul.mubr.msk.bf16.vlgmr.msra.gmra.mrb[0].mxu0 %vm1094_vm1, %v3529_v51  ;;  %3006 = vmatmul.mubr.msk.bf16.vlgmr.msra.gmra.mrb[0].mxu1 %vm1094_vm1, %v3529_v51 }
  0x2b   : > { %1282 = vmatpush1.bf16.msra.mxu0 %v2847_v54  ;;  %1325 = vmatpush1.bf16.msra.mxu1 %v2849_v55  ;;  %v2947_v54 = vcombine.low %v313_v43, %v329_v44  ;;  %v2949_v55 = vcombine.low %v314_v45, %v330_v46  ;;  %v1142_v43 = vsel %vm1098_vm0, %v2985_v36, 0  ;;  %v253_v45 = vld [vmem:[%s3496_s23 + $0x140] sm:$0xff] }
  0x2c   : > { %1283 = vmatprep.subr.bf16.mxu0 %v2880_v56  ;;  %1326 = vmatprep.subr.bf16.mxu1 %v2882_v57  ;;  %v2980_v56 = vcombine.high %v345_v52, %v345_v52  ;;  %v2979_v57 = vcombine.low %v345_v52, %v345_v52  ;;  %v269_v46 = vld [vmem:[%s3496_s23 + $0x1c0] sm:$0xff] }
  0x2d   : > { %1313 = vmatprep.mubr.bf16.mxu0 %v3442_v0  ;;  %1356 = vmatprep.mubr.bf16.mxu1 %v3442_v0  ;;  %v2892_v52 = vcombine.high %v253_v45, %v269_v46 }
  0x2f   : > { %1284 = vmatpush1.bf16.msra.mxu0 %v2879_v62  ;;  %1327 = vmatpush1.bf16.msra.mxu1 %v2881_v63  ;;  %v220_v62 = vld [vmem:[%s3496_s23 + $0x38] sm:$0xff] }
  0x30   : > { %1285 = vmatprep.subr.bf16.mxu0 %v2912_v1  ;;  %1328 = vmatprep.subr.bf16.mxu1 %v2914_v2  ;;  %v236_v63 = vld [vmem:[%s3496_s23 + $0xb8] sm:$0xff]  ;;  %v1124_v1 = vsel %vm1098_vm0, %v2979_v57, 0  ;;  %v2856_v2 = vcombine.high %v219_v60, %v235_v61  ;;  %v302_v57 = vld [vmem:[%s3496_s23 + $0x2c8] sm:$0xff] }
  0x31   : > { %v2858_v4 = vcombine.high %v220_v62, %v236_v63 }
  0x33   : > { %1286 = vmatpush1.bf16.msra.mxu0 %v2911_v7  ;;  %1329 = vmatpush1.bf16.msra.mxu1 %v2913_v8  ;;  %v252_v7 = vld [vmem:[%s3496_s23 + $0x138] sm:$0xff] }
  0x34   : > { %1287 = vmatprep.subr.bf16.mxu0 %v2944_v9  ;;  %1330 = vmatprep.subr.bf16.mxu1 %v2946_v10  ;;  %v268_v8 = vld [vmem:[%s3496_s23 + $0x1b8] sm:$0xff]  ;;  %v2855_v9 = vcombine.low %v219_v60, %v235_v61  ;;  %v2857_v10 = vcombine.low %v220_v62, %v236_v63  ;;  %v317_v62 = vld [vmem:[%s3496_s23 + $0x340] sm:$0xff] }
  0x35   : > { %v2890_v12 = vcombine.high %v252_v7, %v268_v8  ;;  %v2889_v18 = vcombine.low %v252_v7, %v268_v8  ;;  %v333_v63 = vld [vmem:[%s3496_s23 + $0x3c0] sm:$0xff]  ;;  %v350_v8 = vld [vmem:[%s3496_s23 + $0x448] sm:$0xff] }
  0x36   : > { %v349_v7 = vld [vmem:[%s3496_s23 + $0x440] sm:$0xff] }
  0x37   : > { %1288 = vmatpush1.bf16.msra.mxu0 %v2943_v13  ;;  %1331 = vmatpush1.bf16.msra.mxu1 %v2945_v14  ;;  %v283_v13 = vld [vmem:[%s3496_s23 + $0x230] sm:$0xff] }
  0x38   : > { %3007 = vmatprep.subr.msk.bf16.mxu0 %vm1098_vm0, %v2976_v15  ;;  %3009 = vmatprep.subr.msk.bf16.mxu1 %vm1098_vm0, %v2978_v17  ;;  %v299_v14 = vld [vmem:[%s3496_s23 + $0x2b0] sm:$0xff]  ;;  %v284_v15 = vld [vmem:[%s3496_s23 + $0x238] sm:$0xff]  ;;  %v2887_v17 = vcombine.low %v251_v5, %v267_v6  ;;  %v2956_v5 = vcombine.high %v317_v62, %v333_v63 }
  0x39   : > { %v2920_v19 = vcombine.high %v283_v13, %v299_v14  ;;  %v2922_v20 = vcombine.high %v284_v15, %v300_v16 }
  0x3b   : > { %1290 = vmatpush1.bf16.msra.mxu0 %v1112_v23  ;;  %1333 = vmatpush1.bf16.msra.mxu1 %v1118_v25  ;;  %v316_v23 = vld [vmem:[%s3496_s23 + $0x338] sm:$0xff]  ;;  %v2919_v25 = vcombine.low %v283_v13, %v299_v14  ;;  %v2990_v13 = vcombine.high %v350_v8, %v350_v8  ;;  %v2989_v14 = vcombine.low %v350_v8, %v350_v8 }
  0x3c   : > { %1367 = vmatprep.subr.bf16.mxu0 %v2852_v24  ;;  %1410 = vmatprep.subr.bf16.mxu1 %v2854_v26  ;;  %v332_v24 = vld [vmem:[%s3496_s23 + $0x3b8] sm:$0xff]  ;;  %v2921_v26 = vcombine.low %v284_v15, %v300_v16  ;;  %v223_v15 = vld [vmem:[%s3496_s23 + $0x50] sm:$0xff] }
  0x3d   : > { %v2954_v28 = vcombine.high %v316_v23, %v332_v24  ;;  %v239_v16 = vld [vmem:[%s3496_s23 + $0xd0] sm:$0xff] }
  0x3e   : > { %3008 = vmatmul.mubr.msk.bf16.vlgmr.msra.gmra.mrb[4].mxu0 %vm1094_vm1, %v3529_v51  ;;  %3010 = vmatmul.mubr.msk.bf16.vlgmr.msra.gmra.mrb[4].mxu1 %vm1094_vm1, %v3529_v51 }
  0x3f   : > { %1368 = vmatpush1.bf16.msra.mxu0 %v2851_v31  ;;  %1411 = vmatpush1.bf16.msra.mxu1 %v2853_v32  ;;  %v2951_v31 = vcombine.low %v315_v21, %v331_v22  ;;  %v2953_v32 = vcombine.low %v316_v23, %v332_v24  ;;  %v1154_v21 = vsel %vm1098_vm0, %v2989_v14, 0  ;;  %v255_v23 = vld [vmem:[%s3496_s23 + $0x150] sm:$0xff] }
  0x40   : > { %1369 = vmatprep.subr.bf16.mxu0 %v2884_v33  ;;  %1412 = vmatprep.subr.bf16.mxu1 %v2886_v34  ;;  %v2984_v33 = vcombine.high %v347_v29, %v347_v29  ;;  %v2983_v34 = vcombine.low %v347_v29, %v347_v29  ;;  %v271_v24 = vld [vmem:[%s3496_s23 + $0x1d0] sm:$0xff] }
  0x41   : > { %1399 = vmatprep.mubr.bf16.mxu0 %v3442_v0  ;;  %1442 = vmatprep.mubr.bf16.mxu1 %v3442_v0  ;;  %v2896_v29 = vcombine.high %v255_v23, %v271_v24 }
  0x43   : > { %1370 = vmatpush1.bf16.msra.mxu0 %v2883_v39  ;;  %1413 = vmatpush1.bf16.msra.mxu1 %v2885_v40  ;;  %v222_v39 = vld [vmem:[%s3496_s23 + $0x48] sm:$0xff] }
  0x44   : > { %1371 = vmatprep.subr.bf16.mxu0 %v2916_v41  ;;  %1414 = vmatprep.subr.bf16.mxu1 %v2918_v42  ;;  %v238_v40 = vld [vmem:[%s3496_s23 + $0xc8] sm:$0xff]  ;;  %v1136_v41 = vsel %vm1098_vm0, %v2983_v34, 0  ;;  %v2860_v42 = vcombine.high %v221_v37, %v237_v38  ;;  %v304_v34 = vld [vmem:[%s3496_s23 + $0x2d8] sm:$0xff] }
  0x45   : > { %v2862_v44 = vcombine.high %v222_v39, %v238_v40 }
  0x47   : > { %1372 = vmatpush1.bf16.msra.mxu0 %v2915_v47  ;;  %1415 = vmatpush1.bf16.msra.mxu1 %v2917_v48  ;;  %v254_v47 = vld [vmem:[%s3496_s23 + $0x148] sm:$0xff] }
  0x48   : > { %1373 = vmatprep.subr.bf16.mxu0 %v2948_v49  ;;  %1416 = vmatprep.subr.bf16.mxu1 %v2950_v50  ;;  %v270_v48 = vld [vmem:[%s3496_s23 + $0x1c8] sm:$0xff]  ;;  %v2859_v49 = vcombine.low %v221_v37, %v237_v38  ;;  %v2861_v50 = vcombine.low %v222_v39, %v238_v40  ;;  %v319_v39 = vld [vmem:[%s3496_s23 + $0x350] sm:$0xff] }
  0x49   : > { %v2894_v53 = vcombine.high %v254_v47, %v270_v48  ;;  %v2893_v59 = vcombine.low %v254_v47, %v270_v48  ;;  %v335_v40 = vld [vmem:[%s3496_s23 + $0x3d0] sm:$0xff]  ;;  %v352_v48 = vld [vmem:[%s3496_s23 + $0x458] sm:$0xff] }
  0x4a   : > { %v351_v47 = vld [vmem:[%s3496_s23 + $0x450] sm:$0xff] }
  0x4b   : > { %1374 = vmatpush1.bf16.msra.mxu0 %v2947_v54  ;;  %1417 = vmatpush1.bf16.msra.mxu1 %v2949_v55  ;;  %v285_v54 = vld [vmem:[%s3496_s23 + $0x240] sm:$0xff] }
  0x4c   : > { %3011 = vmatprep.subr.msk.bf16.mxu0 %vm1098_vm0, %v2980_v56  ;;  %3013 = vmatprep.subr.msk.bf16.mxu1 %vm1098_vm0, %v2982_v58  ;;  %v301_v55 = vld [vmem:[%s3496_s23 + $0x2c0] sm:$0xff]  ;;  %v286_v56 = vld [vmem:[%s3496_s23 + $0x248] sm:$0xff]  ;;  %v2891_v58 = vcombine.low %v253_v45, %v269_v46  ;;  %v2960_v45 = vcombine.high %v319_v39, %v335_v40 }
  0x4d   : > { %v2924_v60 = vcombine.high %v285_v54, %v301_v55  ;;  %v2926_v61 = vcombine.high %v286_v56, %v302_v57 }
  0x4f   : > { %1376 = vmatpush1.bf16.msra.mxu0 %v1124_v1  ;;  %1419 = vmatpush1.bf16.msra.mxu1 %v1130_v3  ;;  %v318_v1 = vld [vmem:[%s3496_s23 + $0x348] sm:$0xff]  ;;  %v2923_v3 = vcombine.low %v285_v54, %v301_v55  ;;  %v2994_v54 = vcombine.high %v352_v48, %v352_v48  ;;  %v2993_v55 = vcombine.low %v352_v48, %v352_v48 }
  0x50   : > { %1453 = vmatprep.subr.bf16.mxu0 %v2856_v2  ;;  %1496 = vmatprep.subr.bf16.mxu1 %v2858_v4  ;;  %v334_v2 = vld [vmem:[%s3496_s23 + $0x3c8] sm:$0xff]  ;;  %v2925_v4 = vcombine.low %v286_v56, %v302_v57  ;;  %v225_v56 = vld [vmem:[%s3496_s23 + $0x60] sm:$0xff] }
  0x51   : > { %v2958_v6 = vcombine.high %v318_v1, %v334_v2  ;;  %v241_v57 = vld [vmem:[%s3496_s23 + $0xe0] sm:$0xff] }
  0x52   : > { %3012 = vmatmul.mubr.msk.bf16.vlgmr.msra.gmra.mrb[8].mxu0 %vm1094_vm1, %v3529_v51  ;;  %3014 = vmatmul.mubr.msk.bf16.vlgmr.msra.gmra.mrb[8].mxu1 %vm1094_vm1, %v3529_v51 }
  0x53   : > { %1454 = vmatpush1.bf16.msra.mxu0 %v2855_v9  ;;  %1497 = vmatpush1.bf16.msra.mxu1 %v2857_v10  ;;  %v2955_v9 = vcombine.low %v317_v62, %v333_v63  ;;  %v2957_v10 = vcombine.low %v318_v1, %v334_v2  ;;  %v1166_v62 = vsel %vm1098_vm0, %v2993_v55, 0  ;;  %v257_v1 = vld [vmem:[%s3496_s23 + $0x160] sm:$0xff] }
  0x54   : > { %1455 = vmatprep.subr.bf16.mxu0 %v2888_v11  ;;  %1498 = vmatprep.subr.bf16.mxu1 %v2890_v12  ;;  %v2988_v11 = vcombine.high %v349_v7, %v349_v7  ;;  %v2987_v12 = vcombine.low %v349_v7, %v349_v7  ;;  %v273_v2 = vld [vmem:[%s3496_s23 + $0x1e0] sm:$0xff] }
  0x55   : > { %1485 = vmatprep.mubr.bf16.mxu0 %v3442_v0  ;;  %1528 = vmatprep.mubr.bf16.mxu1 %v3442_v0  ;;  %v2900_v7 = vcombine.high %v257_v1, %v273_v2 }
  0x57   : > { %1456 = vmatpush1.bf16.msra.mxu0 %v2887_v17  ;;  %1499 = vmatpush1.bf16.msra.mxu1 %v2889_v18  ;;  %v224_v17 = vld [vmem:[%s3496_s23 + $0x58] sm:$0xff] }
  0x58   : > { %1457 = vmatprep.subr.bf16.mxu0 %v2920_v19  ;;  %1500 = vmatprep.subr.bf16.mxu1 %v2922_v20  ;;  %v240_v18 = vld [vmem:[%s3496_s23 + $0xd8] sm:$0xff]  ;;  %v1148_v19 = vsel %vm1098_vm0, %v2987_v12, 0  ;;  %v2864_v20 = vcombine.high %v223_v15, %v239_v16  ;;  %v306_v12 = vld [vmem:[%s3496_s23 + $0x2e8] sm:$0xff] }
  0x59   : > { %v2866_v22 = vcombine.high %v224_v17, %v240_v18 }
  0x5b   : > { %1458 = vmatpush1.bf16.msra.mxu0 %v2919_v25  ;;  %1501 = vmatpush1.bf16.msra.mxu1 %v2921_v26  ;;  %v256_v25 = vld [vmem:[%s3496_s23 + $0x158] sm:$0xff] }
  0x5c   : > { %1459 = vmatprep.subr.bf16.mxu0 %v2952_v27  ;;  %1502 = vmatprep.subr.bf16.mxu1 %v2954_v28  ;;  %v272_v26 = vld [vmem:[%s3496_s23 + $0x1d8] sm:$0xff]  ;;  %v2863_v27 = vcombine.low %v223_v15, %v239_v16  ;;  %v2865_v28 = vcombine.low %v224_v17, %v240_v18  ;;  %v321_v17 = vld [vmem:[%s3496_s23 + $0x360] sm:$0xff] }
  0x5d   : > { %v2898_v30 = vcombine.high %v256_v25, %v272_v26  ;;  %v2897_v36 = vcombine.low %v256_v25, %v272_v26  ;;  %v337_v18 = vld [vmem:[%s3496_s23 + $0x3e0] sm:$0xff]  ;;  %v354_v26 = vld [vmem:[%s3496_s23 + $0x468] sm:$0xff] }
  0x5e   : > { %v353_v25 = vld [vmem:[%s3496_s23 + $0x460] sm:$0xff] }
  0x5f   : > { %1460 = vmatpush1.bf16.msra.mxu0 %v2951_v31  ;;  %1503 = vmatpush1.bf16.msra.mxu1 %v2953_v32  ;;  %v287_v31 = vld [vmem:[%s3496_s23 + $0x250] sm:$0xff] }
  0x60   : > { %3015 = vmatprep.subr.msk.bf16.mxu0 %vm1098_vm0, %v2984_v33  ;;  %3017 = vmatprep.subr.msk.bf16.mxu1 %vm1098_vm0, %v2986_v35  ;;  %v303_v32 = vld [vmem:[%s3496_s23 + $0x2d0] sm:$0xff]  ;;  %v288_v33 = vld [vmem:[%s3496_s23 + $0x258] sm:$0xff]  ;;  %v2895_v35 = vcombine.low %v255_v23, %v271_v24  ;;  %v2964_v23 = vcombine.high %v321_v17, %v337_v18 }
  0x61   : > { %v2928_v37 = vcombine.high %v287_v31, %v303_v32  ;;  %v2930_v38 = vcombine.high %v288_v33, %v304_v34 }
  0x63   : > { %1462 = vmatpush1.bf16.msra.mxu0 %v1136_v41  ;;  %1505 = vmatpush1.bf16.msra.mxu1 %v1142_v43  ;;  %v320_v41 = vld [vmem:[%s3496_s23 + $0x358] sm:$0xff]  ;;  %v2927_v43 = vcombine.low %v287_v31, %v303_v32  ;;  %v2998_v31 = vcombine.high %v354_v26, %v354_v26  ;;  %v2997_v32 = vcombine.low %v354_v26, %v354_v26 }
  0x64   : > { %1539 = vmatprep.subr.bf16.mxu0 %v2860_v42  ;;  %1582 = vmatprep.subr.bf16.mxu1 %v2862_v44  ;;  %v336_v42 = vld [vmem:[%s3496_s23 + $0x3d8] sm:$0xff]  ;;  %v2929_v44 = vcombine.low %v288_v33, %v304_v34  ;;  %v227_v33 = vld [vmem:[%s3496_s23 + $0x70] sm:$0xff] }
  0x65   : > { %v2962_v46 = vcombine.high %v320_v41, %v336_v42  ;;  %v243_v34 = vld [vmem:[%s3496_s23 + $0xf0] sm:$0xff] }
  0x66   : > { %3016 = vmatmul.mubr.msk.bf16.vlgmr.msra.gmra.mrb[12].mxu0 %vm1094_vm1, %v3529_v51  ;;  %3018 = vmatmul.mubr.msk.bf16.vlgmr.msra.gmra.mrb[12].mxu1 %vm1094_vm1, %v3529_v51 }
  0x67   : > { %1540 = vmatpush1.bf16.msra.mxu0 %v2859_v49  ;;  %1583 = vmatpush1.bf16.msra.mxu1 %v2861_v50  ;;  %v2959_v49 = vcombine.low %v319_v39, %v335_v40  ;;  %v2961_v50 = vcombine.low %v320_v41, %v336_v42  ;;  %v1178_v39 = vsel %vm1098_vm0, %v2997_v32, 0  ;;  %v259_v41 = vld [vmem:[%s3496_s23 + $0x170] sm:$0xff] }
  0x68   : > { %1541 = vmatprep.subr.bf16.mxu0 %v2892_v52  ;;  %1584 = vmatprep.subr.bf16.mxu1 %v2894_v53  ;;  %v2992_v52 = vcombine.high %v351_v47, %v351_v47  ;;  %v2991_v53 = vcombine.low %v351_v47, %v351_v47  ;;  %v275_v42 = vld [vmem:[%s3496_s23 + $0x1f0] sm:$0xff] }
  0x69   : > { %1571 = vmatprep.mubr.bf16.mxu0 %v3442_v0  ;;  %1614 = vmatprep.mubr.bf16.mxu1 %v3442_v0  ;;  %v2904_v47 = vcombine.high %v259_v41, %v275_v42 }
  0x6b   : > { %1542 = vmatpush1.bf16.msra.mxu0 %v2891_v58  ;;  %1585 = vmatpush1.bf16.msra.mxu1 %v2893_v59  ;;  %v226_v58 = vld [vmem:[%s3496_s23 + $0x68] sm:$0xff] }
  0x6c   : > { %1543 = vmatprep.subr.bf16.mxu0 %v2924_v60  ;;  %1586 = vmatprep.subr.bf16.mxu1 %v2926_v61  ;;  %v242_v59 = vld [vmem:[%s3496_s23 + $0xe8] sm:$0xff]  ;;  %v1160_v60 = vsel %vm1098_vm0, %v2991_v53, 0  ;;  %v2868_v61 = vcombine.high %v225_v56, %v241_v57  ;;  %v308_v53 = vld [vmem:[%s3496_s23 + $0x2f8] sm:$0xff] }
  0x6d   : > { %v2870_v63 = vcombine.high %v226_v58, %v242_v59 }
  0x6f   : > { %1544 = vmatpush1.bf16.msra.mxu0 %v2923_v3  ;;  %1587 = vmatpush1.bf16.msra.mxu1 %v2925_v4  ;;  %v258_v3 = vld [vmem:[%s3496_s23 + $0x168] sm:$0xff] }
  0x70   : > { %1545 = vmatprep.subr.bf16.mxu0 %v2956_v5  ;;  %1588 = vmatprep.subr.bf16.mxu1 %v2958_v6  ;;  %v274_v4 = vld [vmem:[%s3496_s23 + $0x1e8] sm:$0xff]  ;;  %v2867_v5 = vcombine.low %v225_v56, %v241_v57  ;;  %v2869_v6 = vcombine.low %v226_v58, %v242_v59  ;;  %v323_v58 = vld [vmem:[%s3496_s23 + $0x370] sm:$0xff] }
  0x71   : > { %v2902_v8 = vcombine.high %v258_v3, %v274_v4  ;;  %v2901_v14 = vcombine.low %v258_v3, %v274_v4  ;;  %v339_v59 = vld [vmem:[%s3496_s23 + $0x3f0] sm:$0xff]  ;;  %v356_v4 = vld [vmem:[%s3496_s23 + $0x478] sm:$0xff] }
  0x72   : > { %v355_v3 = vld [vmem:[%s3496_s23 + $0x470] sm:$0xff] }
  0x73   : > { %1546 = vmatpush1.bf16.msra.mxu0 %v2955_v9  ;;  %1589 = vmatpush1.bf16.msra.mxu1 %v2957_v10  ;;  %v289_v9 = vld [vmem:[%s3496_s23 + $0x260] sm:$0xff] }
  0x74   : > { %3019 = vmatprep.subr.msk.bf16.mxu0 %vm1098_vm0, %v2988_v11  ;;  %3021 = vmatprep.subr.msk.bf16.mxu1 %vm1098_vm0, %v2990_v13  ;;  %v305_v10 = vld [vmem:[%s3496_s23 + $0x2e0] sm:$0xff]  ;;  %v290_v11 = vld [vmem:[%s3496_s23 + $0x268] sm:$0xff]  ;;  %v2899_v13 = vcombine.low %v257_v1, %v273_v2  ;;  %v2968_v1 = vcombine.high %v323_v58, %v339_v59 }
  0x75   : > { %v2932_v15 = vcombine.high %v289_v9, %v305_v10  ;;  %v2934_v16 = vcombine.high %v290_v11, %v306_v12 }
  0x77   : > { %1548 = vmatpush1.bf16.msra.mxu0 %v1148_v19  ;;  %1591 = vmatpush1.bf16.msra.mxu1 %v1154_v21  ;;  %v322_v19 = vld [vmem:[%s3496_s23 + $0x368] sm:$0xff]  ;;  %v2931_v21 = vcombine.low %v289_v9, %v305_v10  ;;  %v3002_v9 = vcombine.high %v356_v4, %v356_v4 }
  0x78   : > { %1625 = vmatprep.subr.bf16.mxu0 %v2864_v20  ;;  %1668 = vmatprep.subr.bf16.mxu1 %v2866_v22  ;;  %v338_v20 = vld [vmem:[%s3496_s23 + $0x3e8] sm:$0xff]  ;;  %v2933_v22 = vcombine.low %v290_v11, %v306_v12 }
  0x79   : > { %v2966_v24 = vcombine.high %v322_v19, %v338_v20 }
  0x7a   : > { %3020 = vmatmul.mubr.msk.bf16.vlgmr.msra.gmra.mrb[16].mxu0 %vm1094_vm1, %v3529_v51  ;;  %3022 = vmatmul.mubr.msk.bf16.vlgmr.msra.gmra.mrb[16].mxu1 %vm1094_vm1, %v3529_v51 }
  0x7b   : > { %1626 = vmatpush1.bf16.msra.mxu0 %v2863_v27  ;;  %1669 = vmatpush1.bf16.msra.mxu1 %v2865_v28  ;;  %v2963_v27 = vcombine.low %v321_v17, %v337_v18  ;;  %v2965_v28 = vcombine.low %v322_v19, %v338_v20 }
  0x7c   : > { %1627 = vmatprep.subr.bf16.mxu0 %v2896_v29  ;;  %1670 = vmatprep.subr.bf16.mxu1 %v2898_v30  ;;  %v2996_v29 = vcombine.high %v353_v25, %v353_v25  ;;  %v2995_v30 = vcombine.low %v353_v25, %v353_v25 }
  0x7d   : > { %1657 = vmatprep.mubr.bf16.mxu0 %v3442_v0  ;;  %1700 = vmatprep.mubr.bf16.mxu1 %v3442_v0 }
  0x7f   : > { %1628 = vmatpush1.bf16.msra.mxu0 %v2895_v35  ;;  %1671 = vmatpush1.bf16.msra.mxu1 %v2897_v36  ;;  %v228_v35 = vld [vmem:[%s3496_s23 + $0x78] sm:$0xff] }
  0x80   : > { %1629 = vmatprep.subr.bf16.mxu0 %v2928_v37  ;;  %1672 = vmatprep.subr.bf16.mxu1 %v2930_v38  ;;  %v244_v36 = vld [vmem:[%s3496_s23 + $0xf8] sm:$0xff]  ;;  %v1172_v37 = vsel %vm1098_vm0, %v2995_v30, 0  ;;  %v2872_v38 = vcombine.high %v227_v33, %v243_v34 }
  0x81   : > { %v2874_v40 = vcombine.high %v228_v35, %v244_v36 }
  0x83   : > { %1630 = vmatpush1.bf16.msra.mxu0 %v2927_v43  ;;  %1673 = vmatpush1.bf16.msra.mxu1 %v2929_v44  ;;  %v260_v43 = vld [vmem:[%s3496_s23 + $0x178] sm:$0xff] }
  0x84   : > { %1631 = vmatprep.subr.bf16.mxu0 %v2960_v45  ;;  %1674 = vmatprep.subr.bf16.mxu1 %v2962_v46  ;;  %v276_v44 = vld [vmem:[%s3496_s23 + $0x1f8] sm:$0xff]  ;;  %v2871_v45 = vcombine.low %v227_v33, %v243_v34  ;;  %v2873_v46 = vcombine.low %v228_v35, %v244_v36 }
  0x85   : > { %v2906_v48 = vcombine.high %v260_v43, %v276_v44  ;;  %v2905_v55 = vcombine.low %v260_v43, %v276_v44 }
  0x87   : > { %1632 = vmatpush1.bf16.msra.mxu0 %v2959_v49  ;;  %1675 = vmatpush1.bf16.msra.mxu1 %v2961_v50  ;;  %v291_v49 = vld [vmem:[%s3496_s23 + $0x270] sm:$0xff] }
  0x88   : > { %3023 = vmatprep.subr.msk.bf16.mxu0 %vm1098_vm0, %v2992_v52  ;;  %3025 = vmatprep.subr.msk.bf16.mxu1 %vm1098_vm0, %v2994_v54  ;;  %v307_v50 = vld [vmem:[%s3496_s23 + $0x2f0] sm:$0xff]  ;;  %v292_v52 = vld [vmem:[%s3496_s23 + $0x278] sm:$0xff]  ;;  %v2903_v54 = vcombine.low %v259_v41, %v275_v42  ;;  %v3725_v12 = vpop.permute.xlu0 %361 }
  0x89   : > { %v2936_v56 = vcombine.high %v291_v49, %v307_v50  ;;  %v2938_v57 = vcombine.high %v292_v52, %v308_v53 }
  0x8b   : > { %1634 = vmatpush1.bf16.msra.mxu0 %v1160_v60  ;;  %1677 = vmatpush1.bf16.msra.mxu1 %v1166_v62  ;;  %v324_v60 = vld [vmem:[%s3496_s23 + $0x378] sm:$0xff]  ;;  %v2935_v62 = vcombine.low %v291_v49, %v307_v50 }
  0x8c   : > { %1711 = vmatprep.subr.bf16.mxu0 %v2868_v61  ;;  %1754 = vmatprep.subr.bf16.mxu1 %v2870_v63  ;;  %v340_v61 = vld [vmem:[%s3496_s23 + $0x3f8] sm:$0xff]  ;;  %v2937_v63 = vcombine.low %v292_v52, %v308_v53 }
  0x8d   : > { %v2970_v2 = vcombine.high %v324_v60, %v340_v61 }
  0x8e   : > { %3024 = vmatmul.mubr.msk.bf16.vlgmr.msra.gmra.mrb[20].mxu0 %vm1094_vm1, %v3529_v51  ;;  %3026 = vmatmul.mubr.msk.bf16.vlgmr.msra.gmra.mrb[20].mxu1 %vm1094_vm1, %v3529_v51 }
  0x8f   : > { %1712 = vmatpush1.bf16.msra.mxu0 %v2867_v5  ;;  %1755 = vmatpush1.bf16.msra.mxu1 %v2869_v6  ;;  %v2967_v5 = vcombine.low %v323_v58, %v339_v59  ;;  %v2969_v6 = vcombine.low %v324_v60, %v340_v61 }
  0x90   : > { %1713 = vmatprep.subr.bf16.mxu0 %v2900_v7  ;;  %1756 = vmatprep.subr.bf16.mxu1 %v2902_v8  ;;  %v3000_v7 = vcombine.high %v355_v3, %v355_v3  ;;  %v2999_v8 = vcombine.low %v355_v3, %v355_v3 }
  0x91   : > { %1743 = vmatprep.mubr.bf16.mxu0 %v3442_v0  ;;  %1786 = vmatprep.mubr.bf16.mxu1 %v3442_v0 }
  0x92   : > { %v1184_v10 = vsel %vm1098_vm0, %v2999_v8, 0 }
  0x93   : > { %1714 = vmatpush1.bf16.msra.mxu0 %v2899_v13  ;;  %1757 = vmatpush1.bf16.msra.mxu1 %v2901_v14  ;;  %v3727_v14 = vpop.permute.xlu0 %366 }
  0x94   : > { %1715 = vmatprep.subr.bf16.mxu0 %v2932_v15  ;;  %1758 = vmatprep.subr.bf16.mxu1 %v2934_v16 }
  0x97   : > { %1716 = vmatpush1.bf16.msra.mxu0 %v2931_v21  ;;  %1759 = vmatpush1.bf16.msra.mxu1 %v2933_v22 }
  0x98   : > { %1717 = vmatprep.subr.bf16.mxu0 %v2964_v23  ;;  %1760 = vmatprep.subr.bf16.mxu1 %v2966_v24 }
  0x9b   : > { %1718 = vmatpush1.bf16.msra.mxu0 %v2963_v27  ;;  %1761 = vmatpush1.bf16.msra.mxu1 %v2965_v28 }
  0x9c   : > { %3027 = vmatprep.subr.msk.bf16.mxu0 %vm1098_vm0, %v2996_v29  ;;  %3029 = vmatprep.subr.msk.bf16.mxu1 %vm1098_vm0, %v2998_v31 }
  0x9f   : > { %1720 = vmatpush1.bf16.msra.mxu0 %v1172_v37  ;;  %1763 = vmatpush1.bf16.msra.mxu1 %v1178_v39 }
  0xa0   : > { %1797 = vmatprep.subr.bf16.mxu0 %v2872_v38  ;;  %1840 = vmatprep.subr.bf16.mxu1 %v2874_v40 }
  0xa2   : > { %3028 = vmatmul.mubr.msk.bf16.vlgmr.msra.gmra.mrb[24].mxu0 %vm1094_vm1, %v3529_v51  ;;  %3030 = vmatmul.mubr.msk.bf16.vlgmr.msra.gmra.mrb[24].mxu1 %vm1094_vm1, %v3529_v51 }
  0xa3   : > { %1798 = vmatpush1.bf16.msra.mxu0 %v2871_v45  ;;  %1841 = vmatpush1.bf16.msra.mxu1 %v2873_v46 }
  0xa4   : > { %1799 = vmatprep.subr.bf16.mxu0 %v2904_v47  ;;  %1842 = vmatprep.subr.bf16.mxu1 %v2906_v48 }
  0xa5   : > { %1829 = vmatprep.mubr.bf16.mxu0 %v3442_v0  ;;  %1872 = vmatprep.mubr.bf16.mxu1 %v3442_v0  ;;  %v3001_v0 = vcombine.low %v356_v4, %v356_v4 }
  0xa7   : > { %1800 = vmatpush1.bf16.msra.mxu0 %v2903_v54  ;;  %1843 = vmatpush1.bf16.msra.mxu1 %v2905_v55  ;;  %v1190_v11 = vsel %vm1098_vm0, %v3001_v0, 0 }
  0xa8   : > { %1801 = vmatprep.subr.bf16.mxu0 %v2936_v56  ;;  %1844 = vmatprep.subr.bf16.mxu1 %v2938_v57 }
  0xab   : > { %1802 = vmatpush1.bf16.msra.mxu0 %v2935_v62  ;;  %1845 = vmatpush1.bf16.msra.mxu1 %v2937_v63 }
  0xac   : > { %1803 = vmatprep.subr.bf16.mxu0 %v2968_v1  ;;  %1846 = vmatprep.subr.bf16.mxu1 %v2970_v2 }
  0xaf   : > { %1804 = vmatpush1.bf16.msra.mxu0 %v2967_v5  ;;  %1847 = vmatpush1.bf16.msra.mxu1 %v2969_v6 }
  0xb0   : > { %3031 = vmatprep.subr.msk.bf16.mxu0 %vm1098_vm0, %v3000_v7  ;;  %3033 = vmatprep.subr.msk.bf16.mxu1 %vm1098_vm0, %v3002_v9 }
  0xb3   : > { %1806 = vmatpush1.bf16.msra.mxu0 %v1184_v10  ;;  %1849 = vmatpush1.bf16.msra.mxu1 %v1190_v11 }
  0xb6   : > { %3032 = vmatmul.mubr.msk.bf16.vlgmr.msra.gmra.mrb[28].mxu0 %vm1094_vm1, %v3529_v51  ;;  %3034 = vmatmul.mubr.msk.bf16.vlgmr.msra.gmra.mrb[28].mxu1 %vm1094_vm1, %v3529_v51 }
  0xfd   : > { %v1229_v13 = vpop.f32.mrb[0].mxu0  ;;  %v1272_v16 = vpop.f32.mrb[0].mxu1 }
  0xfe   : > { %v3730_v15 = vadd.f32 %v1229_v13, %v3725_v12  ;;  %v1231_v17 = vpop.f32.mrb[1].mxu0  ;;  %v3733_v18 = vadd.f32 %v1272_v16, %v3725_v12  ;;  %v1274_v20 = vpop.f32.mrb[1].mxu1 }
  0xff   : > { %v3736_v19 = vadd.f32 %v1231_v17, %v3725_v12  ;;  %v1233_v21 = vpop.f32.mrb[2].mxu0  ;;  %v3740_v22 = vadd.f32 %v1274_v20, %v3725_v12  ;;  %v1276_v24 = vpop.f32.mrb[2].mxu1 }
 0x100   : > { %v1883_v51 = vand.u32 2147483647, %v3730_v15  ;;  %v3743_v23 = vadd.f32 %v1233_v21, %v3727_v14  ;;  %v1235_v25 = vpop.f32.mrb[3].mxu0  ;;  %v1885_v26 = vand.u32 2147483647, %v3733_v18  ;;  %v3750_v33 = vadd.f32 %v1276_v24, %v3727_v14  ;;  %v1278_v34 = vpop.f32.mrb[3].mxu1 }
 0x101   : > { %v1884_v27 = vand.u32 2147483647, %v3736_v19  ;;  %v1886_v29 = vand.u32 2147483647, %v3740_v22  ;;  %v3753_v38 = vadd.f32 %v1235_v25, %v3727_v14  ;;  %v3757_v42 = vadd.f32 %v1278_v34, %v3727_v14 }
 0x102   : > { %v1947_v28 = vsub.f32 0.0, %v1883_v51  ;;  %v1915_v30 = vand.u32 2147483647, %v3743_v23  ;;  %v1949_v31 = vsub.f32 0.0, %v1885_v26  ;;  %v1917_v41 = vand.u32 2147483647, %v3750_v33 }
 0x103   : > { %v1948_v32 = vsub.f32 0.0, %v1884_v27  ;;  %v1950_v36 = vsub.f32 0.0, %v1886_v29  ;;  %v1916_v46 = vand.u32 2147483647, %v3753_v38  ;;  %v1918_v47 = vand.u32 2147483647, %v3757_v42 }
 0x104   : > { %v2011_v35 = vmul.f32 1.442695, %v1947_v28  ;;  %v1979_v37 = vsub.f32 0.0, %v1915_v30  ;;  %v2015_v39 = vmul.f32 1.442695, %v1949_v31  ;;  %v1981_v45 = vsub.f32 0.0, %v1917_v41 }
 0x105   : > { %v2013_v40 = vmul.f32 1.442695, %v1948_v32  ;;  %v2017_v43 = vmul.f32 1.442695, %v1950_v36  ;;  %v1980_v49 = vsub.f32 0.0, %v1916_v46  ;;  %v1982_v50 = vsub.f32 0.0, %v1918_v47 }
 0x106   : > { %3162 = vpow2.f32 %v2011_v35  ;;  %v2075_v44 = vmul.f32 1.442695, %v1979_v37  ;;  %v2079_v48 = vmul.f32 1.442695, %v1981_v45  ;;  %vm2139_vm2 = vcmp.ge.f32.partialorder %v3730_v15, 0.0 }
 0x107   : > { %3164 = vpow2.f32 %v2015_v39  ;;  %v2077_v52 = vmul.f32 1.442695, %v1980_v49  ;;  %v2081_v53 = vmul.f32 1.442695, %v1982_v50  ;;  %vm2141_vm3 = vcmp.ge.f32.partialorder %v3733_v18, 0.0 }
 0x108   : > { %3166 = vpow2.f32 %v2013_v40  ;;  %vm2140_vm4 = vcmp.ge.f32.partialorder %v3736_v19, 0.0  ;;  %vm2142_vm5 = vcmp.ge.f32.partialorder %v3740_v22, 0.0  ;;  %vm2171_vm6 = vcmp.ge.f32.partialorder %v3743_v23, 0.0 }
 0x109   : > { %3168 = vpow2.f32 %v2017_v43  ;;  %vm2173_vm7 = vcmp.ge.f32.partialorder %v3750_v33, 0.0  ;;  %vm2172_vm8 = vcmp.ge.f32.partialorder %v3753_v38, 0.0  ;;  %vm2174_vm9 = vcmp.ge.f32.partialorder %v3757_v42, 0.0 }
 0x10a   : > { %3170 = vpow2.f32 %v2075_v44 }
 0x10b   : > { %3172 = vpow2.f32 %v2079_v48 }
 0x10c   : > { %3174 = vpow2.f32 %v2077_v52 }
 0x10d   : > { %3176 = vpow2.f32 %v2081_v53 }
 0x110   : > { %v3163_v54 = vpop.eup %3162 }
 0x111   : > { %v3165_v55 = vpop.eup %3164  ;;  %v2267_v56 = vadd.f32 1.0, %v3163_v54  ;;  %v1315_v57 = vpop.f32.mrb[4].mxu0  ;;  %v2203_v24 = vsel %vm2139_vm2, 1.0, %v3163_v54 }
 0x112   : > { %v3167_v58 = vpop.eup %3166  ;;  %v2269_v59 = vadd.f32 1.0, %v3165_v55  ;;  %v3762_v60 = vadd.f32 %v1315_v57, %v3725_v12  ;;  %v1358_v61 = vpop.f32.mrb[4].mxu1  ;;  %v2205_v27 = vsel %vm2141_vm3, 1.0, %v3165_v55 }
 0x113   : > { %v1317_v62 = vpop.f32.mrb[5].mxu0  ;;  %v3169_v63 = vpop.eup %3168  ;;  %3178 = vrcp.f32 %v2267_v56  ;;  %v2268_v1 = vadd.f32 1.0, %v3167_v58  ;;  %v3766_v2 = vadd.f32 %v1358_v61, %v3725_v12  ;;  %v2204_v31 = vsel %vm2140_vm4, 1.0, %v3167_v58 }
 0x114   : > { %v1360_v3 = vpop.f32.mrb[5].mxu1  ;;  %v1319_v4 = vpop.f32.mrb[6].mxu0  ;;  %3180 = vrcp.f32 %v2269_v59  ;;  %v2270_v6 = vadd.f32 1.0, %v3169_v63  ;;  %v1887_v7 = vand.u32 2147483647, %v3762_v60  ;;  %v3778_v21 = vadd.f32 %v1317_v62, %v3725_v12 }
 0x115   : > { %v3171_v5 = vpop.eup %3170  ;;  %v1362_v8 = vpop.f32.mrb[6].mxu1  ;;  %3182 = vrcp.f32 %v2268_v1  ;;  %v1889_v20 = vand.u32 2147483647, %v3766_v2  ;;  %v3789_v32 = vadd.f32 %v1360_v3, %v3725_v12  ;;  %v3792_v34 = vadd.f32 %v1319_v4, %v3727_v14 }
 0x116   : > { %v1321_v9 = vpop.f32.mrb[7].mxu0  ;;  %v3173_v0 = vpop.eup %3172  ;;  %v2299_v10 = vadd.f32 1.0, %v3171_v5  ;;  %3184 = vrcp.f32 %v2270_v6  ;;  %v1951_v16 = vsub.f32 0.0, %v1887_v7  ;;  %v1888_v30 = vand.u32 2147483647, %v3778_v21 }
 0x117   : > { %v3772_v11 = vpop.f32.mrb[7].mxu1  ;;  %v2301_v13 = vadd.f32 1.0, %v3173_v0  ;;  %v3175_v17 = vpop.eup %3174  ;;  %v1953_v29 = vsub.f32 0.0, %v1889_v20  ;;  %v3796_v37 = vadd.f32 %v1362_v8, %v3727_v14  ;;  %v2206_v39 = vsel %vm2142_vm5, 1.0, %v3169_v63 }
 0x118   : > { %3186 = vrcp.f32 %v2299_v10  ;;  %v3177_v51 = vpop.eup %3176  ;;  %v2300_v25 = vadd.f32 1.0, %v3175_v17  ;;  %v2019_v26 = vmul.f32 1.442695, %v1951_v16  ;;  %v1952_v36 = vsub.f32 0.0, %v1888_v30 }
 0x119   : > { %3188 = vrcp.f32 %v2301_v13  ;;  %v2302_v28 = vadd.f32 1.0, %v3177_v51  ;;  %v2023_v35 = vmul.f32 1.442695, %v1953_v29  ;;  %v1890_v40 = vand.u32 2147483647, %v3789_v32 }
 0x11a   : > { %3190 = vrcp.f32 %v2300_v25  ;;  %v1919_v41 = vand.u32 2147483647, %v3792_v34  ;;  %v2235_v44 = vsel %vm2171_vm6, 1.0, %v3171_v5  ;;  %v2021_v45 = vmul.f32 1.442695, %v1952_v36 }
 0x11b   : > { %3192 = vrcp.f32 %v2302_v28  ;;  %v1921_v46 = vand.u32 2147483647, %v3796_v37  ;;  %v2237_v49 = vsel %vm2173_vm7, 1.0, %v3173_v0  ;;  %v1954_v50 = vsub.f32 0.0, %v1890_v40 }
 0x11c   : > { %3194 = vpow2.f32 %v2019_v26  ;;  %v1983_v52 = vsub.f32 0.0, %v1919_v41  ;;  %v3808_v56 = vadd.f32 %v1321_v9, %v3727_v14  ;;  %v2236_v9 = vsel %vm2172_vm8, 1.0, %v3175_v17 }
 0x11d   : > { %v3179_v43 = vpop.eup %3178  ;;  %3196 = vpow2.f32 %v2023_v35  ;;  %v1985_v55 = vsub.f32 0.0, %v1921_v46  ;;  %v2025_v61 = vmul.f32 1.442695, %v1954_v50  ;;  %v3827_v16 = vadd.f32 %v3772_v11, %v3727_v14 }
 0x11e   : > { %v3181_v47 = vpop.eup %3180  ;;  %v2332_v48 = vmul.f32 %v3179_v43, %v2203_v24  ;;  %3198 = vpow2.f32 %v2021_v45  ;;  %v2083_v62 = vmul.f32 1.442695, %v1983_v52  ;;  %v1920_v5 = vand.u32 2147483647, %v3808_v56 }
 0x11f   : > { %v3183_v53 = vpop.eup %3182  ;;  %v2336_v54 = vmul.f32 %v3181_v47, %v2205_v27  ;;  %v2087_v4 = vmul.f32 1.442695, %v1985_v55  ;;  %3200 = vpow2.f32 %v2025_v61  ;;  %vm2143_vm10 = vcmp.ge.f32.partialorder %v3762_v60, 0.0 }
 0x120   : > { %v3185_v57 = vpop.eup %3184  ;;  %v2459_v58 = vmul.f32 %v2332_v48, %v3730_v15  ;;  %v2334_v59 = vmul.f32 %v3183_v53, %v2204_v31  ;;  %3202 = vpow2.f32 %v2083_v62  ;;  %v1984_v0 = vsub.f32 0.0, %v1920_v5 }
 0x121   : > { %v2461_v1 = vmul.f32 %v2336_v54, %v3733_v18  ;;  %v2338_v3 = vmul.f32 %v3185_v57, %v2206_v39  ;;  %3204 = vpow2.f32 %v2087_v4  ;;  %vm2145_vm11 = vcmp.ge.f32.partialorder %v3766_v2, 0.0 }
 0x122   : > { %v3187_v63 = vpop.eup %3186  ;;  %v2460_v7 = vmul.f32 %v2334_v59, %v3736_v19  ;;  %v2238_v19 = vsel %vm2174_vm9, 1.0, %v3177_v51  ;;  %v2085_v25 = vmul.f32 1.442695, %v1984_v0  ;;  %v1922_v51 = vand.u32 2147483647, %v3827_v16 }
 0x123   : > { %v3189_v6 = vpop.eup %3188  ;;  %v2396_v8 = vmul.f32 %v3187_v63, %v2235_v44  ;;  %v2462_v15 = vmul.f32 %v2338_v3, %v3740_v22  ;;  %vm2144_vm12 = vcmp.ge.f32.partialorder %v3778_v21, 0.0  ;;  %vm2146_vm13 = vcmp.ge.f32.partialorder %v3789_v32, 0.0 }
 0x124   : > { %v2400_v18 = vmul.f32 %v3189_v6, %v2237_v49  ;;  %v3191_v10 = vpop.eup %3190  ;;  %v3070_v13 = vpack.c.bf16 %v2460_v7, %v2459_v58  ;;  %3206 = vpow2.f32 %v2085_v25  ;;  %v1986_v43 = vsub.f32 0.0, %v1922_v51 }
 0x125   : > { %v3193_v17 = vpop.eup %3192  ;;  %v3071_v20 = vpack.c.bf16 %v2462_v15, %v2461_v1  ;;  %v2491_v24 = vmul.f32 %v2396_v8, %v3743_v23  ;;  %v2398_v22 = vmul.f32 %v3191_v10, %v2236_v9  ;;  %v1401_v26 = vpop.f32.mrb[8].mxu0  ;;  %vm2175_vm14 = vcmp.ge.f32.partialorder %v3792_v34, 0.0 }
 0x126   : > { %v3195_v27 = vpop.eup %3194  ;;  %2715 = vst [vmem:[%s3820_s29] sm:$0xff] %v3070_v13  ;;  %v2493_v28 = vmul.f32 %v2400_v18, %v3750_v33  ;;  %v2402_v29 = vmul.f32 %v3193_v17, %v2238_v19  ;;  %v3834_v30 = vadd.f32 %v1401_v26, %v3725_v12  ;;  %v1444_v11 = vpop.f32.mrb[8].mxu1  ;;  %v2089_v52 = vmul.f32 1.442695, %v1986_v43 }
 0x127   : > { %v1403_v31 = vpop.f32.mrb[9].mxu0  ;;  %v3836_v35 = vpop.eup %3196  ;;  %2716 = vst [vmem:[%s3820_s29 + $0x8] sm:$0xff] %v3071_v20  ;;  %v2492_v23 = vmul.f32 %v2398_v22, %v3753_v38  ;;  %v2271_v36 = vadd.f32 1.0, %v3195_v27  ;;  %v3849_v53 = vadd.f32 %v1444_v11, %v3725_v12  ;;  %v2207_v0 = vsel %vm2143_vm10, 1.0, %v3195_v27 }
 0x128   : > { %v1446_v39 = vpop.f32.mrb[9].mxu1  ;;  %v1405_v40 = vpop.f32.mrb[10].mxu0  ;;  %v2494_v33 = vmul.f32 %v2402_v29, %v3757_v42  ;;  %v2273_v41 = vadd.f32 1.0, %v3836_v35  ;;  %v1891_v48 = vand.u32 2147483647, %v3834_v30  ;;  %v3852_v54 = vadd.f32 %v1403_v31, %v3725_v12 }
 0x129   : > { %v1448_v44 = vpop.f32.mrb[10].mxu1  ;;  %v3842_v45 = vpop.f32.mrb[11].mxu0  ;;  %v3086_v47 = vpack.c.bf16 %v2492_v23, %v2491_v24  ;;  %3208 = vrcp.f32 %v2271_v36  ;;  %v3856_v57 = vadd.f32 %v1446_v39, %v3725_v12  ;;  %v3860_v61 = vadd.f32 %v1405_v40, %v3727_v14 }
 0x12a   : > { %v3199_v46 = vpop.eup %3198  ;;  %v3845_v38 = vpop.f32.mrb[11].mxu1  ;;  %v3087_v49 = vpack.c.bf16 %v2494_v33, %v2493_v28  ;;  %3210 = vrcp.f32 %v2273_v41  ;;  %v1955_v42 = vsub.f32 0.0, %v1891_v48  ;;  %v1893_v3 = vand.u32 2147483647, %v3849_v53 }
 0x12b   : > { %v2272_v50 = vadd.f32 1.0, %v3199_v46  ;;  %2731 = vst [vmem:[%s3820_s29 + $0x80] sm:$0xff] %v3086_v47  ;;  %v3201_v55 = vpop.eup %3200  ;;  %v1892_v5 = vand.u32 2147483647, %v3852_v54  ;;  %v1894_v7 = vand.u32 2147483647, %v3856_v57  ;;  %v3871_v8 = vadd.f32 %v1448_v44, %v3727_v14 }
 0x12c   : > { %2732 = vst [vmem:[%s3820_s29 + $0x88] sm:$0xff] %v3087_v49  ;;  %v3203_v58 = vpop.eup %3202  ;;  %v2274_v59 = vadd.f32 1.0, %v3201_v55  ;;  %v2027_v1 = vmul.f32 1.442695, %v1955_v42  ;;  %v1957_v6 = vsub.f32 0.0, %v1893_v3  ;;  %v2209_v26 = vsel %vm2145_vm11, 1.0, %v3836_v35 }
 0x12d   : > { %3212 = vrcp.f32 %v2272_v50  ;;  %v3862_v62 = vpop.eup %3204  ;;  %v2303_v63 = vadd.f32 1.0, %v3203_v58  ;;  %v1956_v15 = vsub.f32 0.0, %v1892_v5  ;;  %v1923_v18 = vand.u32 2147483647, %v3860_v61 }
 0x12e   : > { %3214 = vpow2.f32 %v2089_v52  ;;  %v2305_v4 = vadd.f32 1.0, %v3862_v62  ;;  %v3873_v9 = vpop.eup %3206  ;;  %v2031_v13 = vmul.f32 1.442695, %v1957_v6  ;;  %v1958_v20 = vsub.f32 0.0, %v1894_v7 }
 0x12f   : > { %3216 = vrcp.f32 %v2274_v59  ;;  %v2304_v10 = vadd.f32 1.0, %v3873_v9  ;;  %v2029_v17 = vmul.f32 1.442695, %v1956_v15  ;;  %v1987_v24 = vsub.f32 0.0, %v1923_v18 }
 0x130   : > { %3218 = vrcp.f32 %v2303_v63  ;;  %v1925_v28 = vand.u32 2147483647, %v3871_v8  ;;  %v2208_v27 = vsel %vm2144_vm12, 1.0, %v3199_v46  ;;  %v2033_v29 = vmul.f32 1.442695, %v1958_v20 }
 0x131   : > { %3220 = vpow2.f32 %v2027_v1  ;;  %v2091_v51 = vmul.f32 1.442695, %v1987_v24  ;;  %v3889_v36 = vadd.f32 %v3842_v45, %v3727_v14  ;;  %v3896_v33 = vadd.f32 %v3845_v38, %v3727_v14 }
 0x132   : > { %3222 = vrcp.f32 %v2305_v4  ;;  %v1989_v23 = vsub.f32 0.0, %v1925_v28  ;;  %v2210_v41 = vsel %vm2146_vm13, 1.0, %v3201_v55  ;;  %v2239_v47 = vsel %vm2175_vm14, 1.0, %v3203_v58 }
 0x133   : > { %v3209_v19 = vpop.eup %3208  ;;  %3224 = vrcp.f32 %v2304_v10  ;;  %v1926_v48 = vand.u32 2147483647, %v3896_v33  ;;  %vm2177_vm15 = vcmp.ge.f32.partialorder %v3796_v37, 0.0  ;;  %vm2176_vm0 = vcmp.ge.f32.partialorder %v3808_v56, 0.0 }
 0x134   : > { %v3211_v22 = vpop.eup %3210  ;;  %v2340_v25 = vmul.f32 %v3209_v19, %v2207_v0  ;;  %3226 = vpow2.f32 %v2031_v13  ;;  %v2095_v44 = vmul.f32 1.442695, %v1989_v23  ;;  %v2241_v0 = vsel %vm2177_vm15, 1.0, %v3862_v62 }
 0x135   : > { %v2344_v31 = vmul.f32 %v3211_v22, %v2209_v26  ;;  %3228 = vpow2.f32 %v2029_v17  ;;  %v2240_v20 = vsel %vm2176_vm0, 1.0, %v3873_v9  ;;  %vm2178_vm1 = vcmp.ge.f32.partialorder %v3827_v16, 0.0 }
 0x136   : > { %v2463_v35 = vmul.f32 %v2340_v25, %v3762_v60  ;;  %3230 = vpow2.f32 %v2033_v29  ;;  %v1924_v60 = vand.u32 2147483647, %v3889_v36  ;;  %vm2147_vm2 = vcmp.ge.f32.partialorder %v3834_v30, 0.0 }
 0x137   : > { %v3213_v11 = vpop.eup %3212  ;;  %3232 = vpow2.f32 %v2091_v51  ;;  %v2465_v50 = vmul.f32 %v2344_v31, %v3766_v2  ;;  %v1990_v2 = vsub.f32 0.0, %v1926_v48  ;;  %vm2149_vm3 = vcmp.ge.f32.partialorder %v3849_v53, 0.0 }
 0x138   : > { %v3891_v39 = vpop.eup %3214  ;;  %v2342_v40 = vmul.f32 %v3213_v11, %v2208_v27  ;;  %v1988_v58 = vsub.f32 0.0, %v1924_v60  ;;  %vm2148_vm4 = vcmp.ge.f32.partialorder %v3852_v54, 0.0  ;;  %vm2150_vm5 = vcmp.ge.f32.partialorder %v3856_v57, 0.0 }
 0x139   : > { %v2306_v43 = vadd.f32 1.0, %v3891_v39  ;;  %v3217_v46 = vpop.eup %3216  ;;  %v1487_v49 = vpop.f32.mrb[12].mxu0  ;;  %v2097_v24 = vmul.f32 1.442695, %v1990_v2  ;;  %vm2179_vm6 = vcmp.ge.f32.partialorder %v3860_v61, 0.0  ;;  %vm2181_vm7 = vcmp.ge.f32.partialorder %v3871_v8, 0.0 }
 0x13a   : > { %v2464_v45 = vmul.f32 %v2342_v40, %v3778_v21  ;;  %v3219_v38 = vpop.eup %3218  ;;  %v2346_v52 = vmul.f32 %v3217_v46, %v2210_v41  ;;  %v3908_v42 = vadd.f32 %v1487_v49, %v3725_v12  ;;  %v1530_v55 = vpop.f32.mrb[12].mxu1  ;;  %v2093_v13 = vmul.f32 1.442695, %v1988_v58 }
 0x13b   : > { %3234 = vrcp.f32 %v2306_v43  ;;  %v1489_v59 = vpop.f32.mrb[13].mxu0  ;;  %v2404_v63 = vmul.f32 %v3219_v38, %v2239_v47  ;;  %v1532_v1 = vpop.f32.mrb[13].mxu1  ;;  %v3928_v62 = vadd.f32 %v1530_v55, %v3725_v12  ;;  %v2242_v43 = vsel %vm2178_vm1, 1.0, %v3891_v39 }
 0x13c   : > { %v3072_v21 = vpack.c.bf16 %v2464_v45, %v2463_v35  ;;  %3236 = vpow2.f32 %v2095_v44  ;;  %v1491_v3 = vpop.f32.mrb[14].mxu0  ;;  %v3910_v4 = vpop.eup %3220  ;;  %v2466_v5 = vmul.f32 %v2346_v52, %v3789_v32  ;;  %v1895_v6 = vand.u32 2147483647, %v3908_v42 }
 0x13d   : > { %v3915_v7 = vpop.f32.mrb[14].mxu1  ;;  %v3917_v15 = vpop.f32.mrb[15].mxu0  ;;  %v2275_v10 = vadd.f32 1.0, %v3910_v4  ;;  %v2495_v26 = vmul.f32 %v2404_v63, %v3792_v34  ;;  %v1897_v40 = vand.u32 2147483647, %v3928_v62  ;;  %v3941_v47 = vadd.f32 %v1489_v59, %v3725_v12 }
 0x13e   : > { %v3223_v18 = vpop.eup %3222  ;;  %2717 = vst [vmem:[%s3820_s29 + $0x10] sm:$0xff] %v3072_v21  ;;  %v3923_v32 = vpop.f32.mrb[15].mxu1  ;;  %v3073_v17 = vpack.c.bf16 %v2466_v5, %v2465_v50  ;;  %v1959_v22 = vsub.f32 0.0, %v1895_v6  ;;  %v3947_v49 = vadd.f32 %v1532_v1, %v3725_v12  ;;  %v3950_v39 = vadd.f32 %v1491_v3, %v3727_v14 }
 0x13f   : > { %v3225_v19 = vpop.eup %3224  ;;  %3238 = vrcp.f32 %v2275_v10  ;;  %v2408_v29 = vmul.f32 %v3223_v18, %v2241_v0  ;;  %v1961_v45 = vsub.f32 0.0, %v1897_v40  ;;  %v1896_v52 = vand.u32 2147483647, %v3941_v47 }
 0x140   : > { %v3227_v25 = vpop.eup %3226  ;;  %v2406_v28 = vmul.f32 %v3225_v19, %v2240_v20  ;;  %2718 = vst [vmem:[%s3820_s29 + $0x18] sm:$0xff] %v3073_v17  ;;  %3240 = vpow2.f32 %v2093_v13  ;;  %v2035_v35 = vmul.f32 1.442695, %v1959_v22  ;;  %v1898_v55 = vand.u32 2147483647, %v3947_v49 }
 0x141   : > { %v3229_v27 = vpop.eup %3228  ;;  %v2277_v51 = vadd.f32 1.0, %v3227_v25  ;;  %3242 = vpow2.f32 %v2097_v24  ;;  %v2039_v38 = vmul.f32 1.442695, %v1961_v45  ;;  %v2211_v59 = vsel %vm2147_vm2, 1.0, %v3910_v4 }
 0x142   : > { %v3231_v11 = vpop.eup %3230  ;;  %v2496_v9 = vmul.f32 %v2406_v28, %v3808_v56  ;;  %v2276_v31 = vadd.f32 1.0, %v3229_v27  ;;  %v2497_v56 = vmul.f32 %v2408_v29, %v3796_v37  ;;  %v1927_v21 = vand.u32 2147483647, %v3950_v39 }
 0x143   : > { %v3934_v34 = vpop.eup %3232  ;;  %3244 = vrcp.f32 %v2277_v51  ;;  %v2278_v23 = vadd.f32 1.0, %v3231_v11  ;;  %v1962_v1 = vsub.f32 0.0, %v1898_v55  ;;  %v3967_v6 = vadd.f32 %v3915_v7, %v3727_v14 }
 0x144   : > { %v3088_v41 = vpack.c.bf16 %v2496_v9, %v2495_v26  ;;  %3246 = vrcp.f32 %v2276_v31  ;;  %v2307_v44 = vadd.f32 1.0, %v3934_v34  ;;  %v1991_v2 = vsub.f32 0.0, %v1927_v21 }
 0x145   : > { %v3235_v46 = vpop.eup %3234  ;;  %3248 = vrcp.f32 %v2278_v23  ;;  %v3971_v4 = vadd.f32 %v3917_v15, %v3727_v14  ;;  %v2213_v0 = vsel %vm2149_vm3, 1.0, %v3227_v25  ;;  %v2212_v7 = vsel %vm2148_vm4, 1.0, %v3229_v27 }
 0x146   : > { %v3943_v60 = vpop.eup %3236  ;;  %2733 = vst [vmem:[%s3820_s29 + $0x90] sm:$0xff] %v3088_v41  ;;  %v2410_v48 = vmul.f32 %v3235_v46, %v2242_v43  ;;  %3250 = vrcp.f32 %v2307_v44  ;;  %v2214_v17 = vsel %vm2150_vm5, 1.0, %v3231_v11  ;;  %v2041_v20 = vmul.f32 1.442695, %v1962_v1 }
 0x147   : > { %v2309_v37 = vadd.f32 1.0, %v3943_v60  ;;  %3252 = vpow2.f32 %v2035_v35  ;;  %v2099_v26 = vmul.f32 1.442695, %v1991_v2  ;;  %v1929_v25 = vand.u32 2147483647, %v3967_v6 }
 0x148   : > { %v2498_v50 = vmul.f32 %v2410_v48, %v3827_v16  ;;  %v1960_v16 = vsub.f32 0.0, %v1896_v52  ;;  %v1928_v27 = vand.u32 2147483647, %v3971_v4  ;;  %v2245_v55 = vsel %vm2181_vm7, 1.0, %v3943_v60 }
 0x149   : > { %3254 = vrcp.f32 %v2309_v37  ;;  %v3239_v63 = vpop.eup %3238  ;;  %v1993_v41 = vsub.f32 0.0, %v1929_v25  ;;  %v2243_v37 = vsel %vm2179_vm6, 1.0, %v3934_v34  ;;  %v4011_v34 = vadd.f32 %v3923_v32, %v3727_v14 }
 0x14a   : > { %v3089_v58 = vpack.c.bf16 %v2498_v50, %v2497_v56  ;;  %3256 = vpow2.f32 %v2039_v38  ;;  %v3963_v3 = vpop.eup %3240  ;;  %v2348_v5 = vmul.f32 %v3239_v63, %v2211_v59  ;;  %v2037_v13 = vmul.f32 1.442695, %v1960_v16 }
 0x14b   : > { %v3973_v18 = vpop.eup %3242  ;;  %v2308_v10 = vadd.f32 1.0, %v3963_v3  ;;  %v2103_v59 = vmul.f32 1.442695, %v1993_v41  ;;  %vm2180_vm8 = vcmp.ge.f32.partialorder %v3889_v36, 0.0  ;;  %v1930_v60 = vand.u32 2147483647, %v4011_v34 }
 0x14c   : > { %2734 = vst [vmem:[%s3820_s29 + $0x98] sm:$0xff] %v3089_v58  ;;  %v2310_v15 = vadd.f32 1.0, %v3973_v18  ;;  %v2467_v51 = vmul.f32 %v2348_v5, %v3834_v30  ;;  %v1992_v30 = vsub.f32 0.0, %v1928_v27  ;;  %vm2182_vm9 = vcmp.ge.f32.partialorder %v3896_v33, 0.0 }
 0x14d   : > { %v3245_v19 = vpop.eup %3244  ;;  %3258 = vrcp.f32 %v2308_v10  ;;  %v1573_v28 = vpop.f32.mrb[16].mxu0  ;;  %v2244_v10 = vsel %vm2180_vm8, 1.0, %v3963_v3  ;;  %vm2151_vm10 = vcmp.ge.f32.partialorder %v3908_v42, 0.0  ;;  %vm2153_vm11 = vcmp.ge.f32.partialorder %v3928_v62, 0.0 }
 0x14e   : > { %v3247_v24 = vpop.eup %3246  ;;  %v2352_v22 = vmul.f32 %v3245_v19, %v2213_v0  ;;  %3260 = vrcp.f32 %v2310_v15  ;;  %v1616_v31 = vpop.f32.mrb[16].mxu1  ;;  %v2101_v21 = vmul.f32 1.442695, %v1992_v30  ;;  %v4016_v5 = vadd.f32 %v1573_v28, %v3725_v12 }
 0x14f   : > { %v3249_v29 = vpop.eup %3248  ;;  %v2350_v9 = vmul.f32 %v3247_v24, %v2212_v7  ;;  %v1575_v23 = vpop.f32.mrb[17].mxu0  ;;  %3262 = vpow2.f32 %v2037_v13  ;;  %v4024_v2 = vadd.f32 %v1616_v31, %v3725_v12  ;;  %v2246_v13 = vsel %vm2182_vm9, 1.0, %v3973_v18 }
 0x150   : > { %v3251_v11 = vpop.eup %3250  ;;  %v2469_v35 = vmul.f32 %v2352_v22, %v3849_v53  ;;  %v2354_v40 = vmul.f32 %v3249_v29, %v2214_v17  ;;  %v1618_v43 = vpop.f32.mrb[17].mxu1  ;;  %3264 = vpow2.f32 %v2041_v20  ;;  %v1899_v32 = vand.u32 2147483647, %v4016_v5 }
 0x151   : > { %v3989_v44 = vpop.f32.mrb[18].mxu0  ;;  %v3991_v46 = vpop.eup %3252  ;;  %v2468_v56 = vmul.f32 %v2350_v9, %v3852_v54  ;;  %3266 = vpow2.f32 %v2099_v26  ;;  %v1994_v19 = vsub.f32 0.0, %v1930_v60  ;;  %v4030_v7 = vadd.f32 %v1575_v23, %v3725_v12 }
 0x152   : > { %v3995_v45 = vpop.f32.mrb[18].mxu1  ;;  %v3997_v48 = vpop.f32.mrb[19].mxu0  ;;  %v2470_v53 = vmul.f32 %v2354_v40, %v3856_v57  ;;  %v2279_v38 = vadd.f32 1.0, %v3991_v46  ;;  %v2412_v57 = vmul.f32 %v3251_v11, %v2243_v37  ;;  %v1963_v22 = vsub.f32 0.0, %v1899_v32 }
 0x153   : > { %v4004_v50 = vpop.f32.mrb[19].mxu1  ;;  %v3255_v54 = vpop.eup %3254  ;;  %v3074_v52 = vpack.c.bf16 %v2468_v56, %v2467_v51  ;;  %v2105_v28 = vmul.f32 1.442695, %v1994_v19  ;;  %v1901_v3 = vand.u32 2147483647, %v4024_v2  ;;  %v4039_v27 = vadd.f32 %v1618_v43, %v3725_v12 }
 0x154   : > { %v4007_v63 = vpop.eup %3256  ;;  %v3075_v58 = vpack.c.bf16 %v2470_v53, %v2469_v35  ;;  %3268 = vrcp.f32 %v2279_v38  ;;  %v2416_v16 = vmul.f32 %v3255_v54, %v2245_v55  ;;  %v2499_v15 = vmul.f32 %v2412_v57, %v3860_v61 }
 0x155   : > { %2719 = vst [vmem:[%s3820_s29 + $0x20] sm:$0xff] %v3074_v52  ;;  %v2281_v1 = vadd.f32 1.0, %v4007_v63  ;;  %3270 = vpow2.f32 %v2103_v59  ;;  %v1900_v18 = vand.u32 2147483647, %v4030_v7  ;;  %v2043_v23 = vmul.f32 1.442695, %v1963_v22 }
 0x156   : > { %2720 = vst [vmem:[%s3820_s29 + $0x28] sm:$0xff] %v3075_v58  ;;  %3272 = vpow2.f32 %v2101_v21  ;;  %v2501_v20 = vmul.f32 %v2416_v16, %v3871_v8  ;;  %v1965_v43 = vsub.f32 0.0, %v1901_v3  ;;  %vm2152_vm12 = vcmp.ge.f32.partialorder %v3941_v47, 0.0 }
 0x157   : > { %3274 = vrcp.f32 %v2281_v1  ;;  %v3259_v0 = vpop.eup %3258  ;;  %v1964_v56 = vsub.f32 0.0, %v1900_v18  ;;  %vm2154_vm13 = vcmp.ge.f32.partialorder %v3947_v49, 0.0  ;;  %vm2183_vm14 = vcmp.ge.f32.partialorder %v3950_v39, 0.0 }
 0x158   : > { %v3261_v17 = vpop.eup %3260  ;;  %v2414_v24 = vmul.f32 %v3259_v0, %v2244_v10  ;;  %3276 = vpow2.f32 %v2105_v28  ;;  %v2047_v37 = vmul.f32 1.442695, %v1965_v43  ;;  %v2215_v54 = vsel %vm2151_vm10, 1.0, %v3991_v46 }
 0x159   : > { %v3263_v26 = vpop.eup %3262  ;;  %v2418_v25 = vmul.f32 %v3261_v17, %v2246_v13  ;;  %v2217_v52 = vsel %vm2153_vm11, 1.0, %v4007_v63  ;;  %v2045_v59 = vmul.f32 1.442695, %v1964_v56  ;;  %vm2185_vm15 = vcmp.ge.f32.partialorder %v3967_v6, 0.0 }
 0x15a   : > { %v3265_v29 = vpop.eup %3264  ;;  %v2500_v51 = vmul.f32 %v2414_v24, %v3889_v36  ;;  %v2280_v9 = vadd.f32 1.0, %v3263_v26  ;;  %v4044_v36 = vadd.f32 %v3989_v44, %v3727_v14  ;;  %v2216_v21 = vsel %vm2152_vm12, 1.0, %v3263_v26 }
 0x15b   : > { %v3267_v61 = vpop.eup %3266  ;;  %v2502_v8 = vmul.f32 %v2418_v25, %v3896_v33  ;;  %v2282_v31 = vadd.f32 1.0, %v3265_v29  ;;  %v1902_v33 = vand.u32 2147483647, %v4039_v27  ;;  %v4068_v46 = vadd.f32 %v3995_v45, %v3727_v14 }
 0x15c   : > { %v3090_v11 = vpack.c.bf16 %v2500_v51, %v2499_v15  ;;  %3278 = vrcp.f32 %v2280_v9  ;;  %v2311_v35 = vadd.f32 1.0, %v3267_v61  ;;  %v1931_v57 = vand.u32 2147483647, %v4044_v36 }
 0x15d   : > { %v3091_v41 = vpack.c.bf16 %v2502_v8, %v2501_v20  ;;  %3280 = vrcp.f32 %v2282_v31  ;;  %v1966_v58 = vsub.f32 0.0, %v1902_v33  ;;  %v4072_v63 = vadd.f32 %v3997_v48, %v3727_v14 }
 0x15e   : > { %v3269_v40 = vpop.eup %3268  ;;  %2735 = vst [vmem:[%s3820_s29 + $0xa0] sm:$0xff] %v3090_v11  ;;  %3282 = vrcp.f32 %v2311_v35  ;;  %vm2184_vm0 = vcmp.ge.f32.partialorder %v3971_v4, 0.0  ;;  %v1995_v13 = vsub.f32 0.0, %v1931_v57  ;;  %v2218_v45 = vsel %vm2154_vm13, 1.0, %v3265_v29 }
 0x15f   : > { %v4046_v30 = vpop.eup %3270  ;;  %2736 = vst [vmem:[%s3820_s29 + $0xa8] sm:$0xff] %v3091_v41  ;;  %3284 = vpow2.f32 %v2043_v23  ;;  %v2356_v1 = vmul.f32 %v3269_v40, %v2215_v54  ;;  %v2049_v10 = vmul.f32 1.442695, %v1966_v58  ;;  %v1933_v48 = vand.u32 2147483647, %v4068_v46 }
 0x160   : > { %v4052_v53 = vpop.eup %3272  ;;  %v2313_v44 = vadd.f32 1.0, %v4046_v30  ;;  %v1932_v15 = vand.u32 2147483647, %v4072_v63  ;;  %v2247_v22 = vsel %vm2183_vm14, 1.0, %v3267_v61  ;;  %v2107_v26 = vmul.f32 1.442695, %v1995_v13 }
 0x161   : > { %v3275_v38 = vpop.eup %3274  ;;  %v2312_v55 = vadd.f32 1.0, %v4052_v53  ;;  %v1659_v16 = vpop.f32.mrb[20].mxu0  ;;  %v4093_v25 = vadd.f32 %v4004_v50, %v3727_v14  ;;  %v2471_v29 = vmul.f32 %v2356_v1, %v3908_v42  ;;  %v1997_v9 = vsub.f32 0.0, %v1933_v48 }
 0x162   : > { %3286 = vrcp.f32 %v2313_v44  ;;  %v1702_v60 = vpop.f32.mrb[20].mxu1  ;;  %v4074_v32 = vpop.f32.mrb[21].mxu0  ;;  %v2360_v0 = vmul.f32 %v3275_v38, %v2217_v52  ;;  %v1996_v8 = vsub.f32 0.0, %v1932_v15  ;;  %v4107_v44 = vadd.f32 %v1659_v16, %v3725_v12 }
 0x163   : > { %3288 = vrcp.f32 %v2312_v55  ;;  %v4077_v19 = vpop.f32.mrb[21].mxu1  ;;  %v4079_v17 = vpop.f32.mrb[22].mxu0  ;;  %v1934_v11 = vand.u32 2147483647, %v4093_v25  ;;  %v2111_v40 = vmul.f32 1.442695, %v1997_v9  ;;  %v4122_v1 = vadd.f32 %v1702_v60, %v3725_v12 }
 0x164   : > { %3290 = vpow2.f32 %v2047_v37  ;;  %v4085_v20 = vpop.f32.mrb[22].mxu1  ;;  %v4087_v24 = vpop.eup %3276  ;;  %v2473_v61 = vmul.f32 %v2360_v0, %v3928_v62  ;;  %v2109_v41 = vmul.f32 1.442695, %v1996_v8  ;;  %vm2186_vm1 = vcmp.ge.f32.partialorder %v4011_v34, 0.0 }
 0x165   : > { %3292 = vpow2.f32 %v2045_v59  ;;  %v4095_v28 = vpop.f32.mrb[23].mxu0  ;;  %v4097_v3 = vpop.f32.mrb[23].mxu1  ;;  %v2314_v51 = vadd.f32 1.0, %v4087_v24  ;;  %v1998_v33 = vsub.f32 0.0, %v1934_v11  ;;  %vm2155_vm2 = vcmp.ge.f32.partialorder %v4016_v5, 0.0 }
 0x166   : > { %3294 = vpow2.f32 %v2049_v10  ;;  %v3279_v18 = vpop.eup %3278  ;;  %vm2157_vm3 = vcmp.ge.f32.partialorder %v4024_v2, 0.0  ;;  %vm2156_vm4 = vcmp.ge.f32.partialorder %v4030_v7, 0.0  ;;  %v4136_v8 = vadd.f32 %v4074_v32, %v3725_v12 }
 0x167   : > { %v3281_v31 = vpop.eup %3280  ;;  %v2358_v23 = vmul.f32 %v3279_v18, %v2216_v21  ;;  %3296 = vpow2.f32 %v2107_v26  ;;  %v2113_v52 = vmul.f32 1.442695, %v1998_v33  ;;  %v1903_v21 = vand.u32 2147483647, %v4107_v44 }
 0x168   : > { %v3283_v50 = vpop.eup %3282  ;;  %v2362_v35 = vmul.f32 %v3281_v31, %v2218_v45  ;;  %3298 = vrcp.f32 %v2314_v51  ;;  %v2250_v18 = vsel %vm2186_vm1, 1.0, %v4087_v24  ;;  %vm2158_vm5 = vcmp.ge.f32.partialorder %v4039_v27, 0.0 }
 0x169   : > { %v4103_v43 = vpop.eup %3284  ;;  %v2472_v42 = vmul.f32 %v2358_v23, %v3941_v47  ;;  %v2420_v56 = vmul.f32 %v3283_v50, %v2247_v22  ;;  %3300 = vpow2.f32 %v2111_v40  ;;  %v2249_v47 = vsel %vm2185_vm15, 1.0, %v4046_v30 }
 0x16a   : > { %v2474_v62 = vmul.f32 %v2362_v35, %v3947_v49  ;;  %v2283_v37 = vadd.f32 1.0, %v4103_v43  ;;  %3302 = vpow2.f32 %v2109_v41  ;;  %v2248_v49 = vsel %vm2184_vm0, 1.0, %v4052_v53 }
 0x16b   : > { %v3076_v54 = vpack.c.bf16 %v2472_v42, %v2471_v29  ;;  %v2503_v57 = vmul.f32 %v2420_v56, %v3950_v39  ;;  %v1967_v13 = vsub.f32 0.0, %v1903_v21  ;;  %v1905_v39 = vand.u32 2147483647, %v4122_v1 }
 0x16c   : > { %v3287_v38 = vpop.eup %3286  ;;  %v3077_v59 = vpack.c.bf16 %v2474_v62, %v2473_v61  ;;  %3304 = vrcp.f32 %v2283_v37  ;;  %v4141_v23 = vadd.f32 %v4077_v19, %v3725_v12  ;;  %vm2187_vm6 = vcmp.ge.f32.partialorder %v4044_v36, 0.0 }
 0x16d   : > { %v3289_v55 = vpop.eup %3288  ;;  %2721 = vst [vmem:[%s3820_s29 + $0x30] sm:$0xff] %v3076_v54  ;;  %3306 = vpow2.f32 %v2113_v52  ;;  %v2424_v0 = vmul.f32 %v3287_v38, %v2249_v47  ;;  %v2051_v15 = vmul.f32 1.442695, %v1967_v13  ;;  %v1969_v29 = vsub.f32 0.0, %v1905_v39 }
 0x16e   : > { %v3291_v58 = vpop.eup %3290  ;;  %v2422_v16 = vmul.f32 %v3289_v55, %v2248_v49  ;;  %2722 = vst [vmem:[%s3820_s29 + $0x38] sm:$0xff] %v3077_v59  ;;  %v4154_v19 = vadd.f32 %v4079_v17, %v3727_v14  ;;  %v2219_v41 = vsel %vm2155_vm2, 1.0, %v4103_v43  ;;  %v1906_v33 = vand.u32 2147483647, %v4141_v23 }
 0x16f   : > { %v3293_v30 = vpop.eup %3292  ;;  %v2285_v10 = vadd.f32 1.0, %v3291_v58  ;;  %v2505_v51 = vmul.f32 %v2424_v0, %v3967_v6  ;;  %v2055_v61 = vmul.f32 1.442695, %v1969_v29  ;;  %v1904_v6 = vand.u32 2147483647, %v4136_v8 }
 0x170   : > { %v3295_v53 = vpop.eup %3294  ;;  %v2504_v45 = vmul.f32 %v2422_v16, %v3971_v4  ;;  %v2284_v48 = vadd.f32 1.0, %v3293_v30  ;;  %v2221_v17 = vsel %vm2157_vm3, 1.0, %v3291_v58  ;;  %v2220_v38 = vsel %vm2156_vm4, 1.0, %v3293_v30 }
 0x171   : > { %3308 = vrcp.f32 %v2285_v10  ;;  %v2286_v60 = vadd.f32 1.0, %v3295_v53  ;;  %v3297_v22 = vpop.eup %3296  ;;  %v1968_v56 = vsub.f32 0.0, %v1904_v6  ;;  %vm2189_vm7 = vcmp.ge.f32.partialorder %v4068_v46, 0.0 }
 0x172   : > { %v3092_v26 = vpack.c.bf16 %v2504_v45, %v2503_v57  ;;  %3310 = vrcp.f32 %v2284_v48  ;;  %v3299_v4 = vpop.eup %3298  ;;  %v2315_v9 = vadd.f32 1.0, %v3297_v22  ;;  %v2222_v21 = vsel %vm2158_vm5, 1.0, %v3295_v53 }
 0x173   : > { %3312 = vrcp.f32 %v2286_v60  ;;  %v2426_v31 = vmul.f32 %v3299_v4, %v2250_v18  ;;  %v4143_v24 = vpop.eup %3300  ;;  %v2053_v55 = vmul.f32 1.442695, %v1968_v56  ;;  %vm2188_vm8 = vcmp.ge.f32.partialorder %v4072_v63, 0.0 }
 0x174   : > { %2737 = vst [vmem:[%s3820_s29 + $0xb0] sm:$0xff] %v3092_v26  ;;  %3314 = vpow2.f32 %v2051_v15  ;;  %v4148_v11 = vpop.eup %3302  ;;  %v2317_v50 = vadd.f32 1.0, %v4143_v24  ;;  %v1970_v58 = vsub.f32 0.0, %v1906_v33  ;;  %v1935_v57 = vand.u32 2147483647, %v4154_v19 }
 0x175   : > { %3316 = vrcp.f32 %v2315_v9  ;;  %v2506_v32 = vmul.f32 %v2426_v31, %v4011_v34  ;;  %v4156_v35 = vpop.f32.mrb[24].mxu0  ;;  %v2316_v42 = vadd.f32 1.0, %v4148_v11  ;;  %v4163_v34 = vpop.f32.mrb[24].mxu1  ;;  %v2251_v10 = vsel %vm2187_vm6, 1.0, %v3297_v22 }
 0x176   : > { %3318 = vpow2.f32 %v2055_v61  ;;  %v3305_v40 = vpop.eup %3304  ;;  %v4172_v43 = vpop.f32.mrb[25].mxu0  ;;  %v4194_v13 = vadd.f32 %v4085_v20, %v3727_v14  ;;  %v4198_v53 = vadd.f32 %v4095_v28, %v3727_v14  ;;  %v2057_v39 = vmul.f32 1.442695, %v1970_v58 }
 0x177   : > { %v4165_v62 = vpop.eup %3306  ;;  %v3093_v37 = vpack.c.bf16 %v2506_v32, %v2505_v51  ;;  %3320 = vrcp.f32 %v2317_v50  ;;  %v4174_v54 = vpop.f32.mrb[25].mxu1  ;;  %v2364_v47 = vmul.f32 %v3305_v40, %v2219_v41  ;;  %v1999_v60 = vsub.f32 0.0, %v1935_v57 }
 0x178   : > { %3322 = vrcp.f32 %v2316_v42  ;;  %v2318_v52 = vadd.f32 1.0, %v4165_v62  ;;  %v4177_v59 = vpop.f32.mrb[26].mxu0  ;;  %v4179_v49 = vpop.f32.mrb[26].mxu1  ;;  %v1937_v22 = vand.u32 2147483647, %v4194_v13  ;;  %vm2190_vm9 = vcmp.ge.f32.partialorder %v4093_v25, 0.0 }
 0x179   : > { %2738 = vst [vmem:[%s3820_s29 + $0xb8] sm:$0xff] %v3093_v37  ;;  %v4186_v16 = vpop.f32.mrb[27].mxu0  ;;  %v4188_v30 = vpop.f32.mrb[27].mxu1  ;;  %v2475_v26 = vmul.f32 %v2364_v47, %v4016_v5  ;;  %v1936_v29 = vand.u32 2147483647, %v4198_v53  ;;  %v4210_v5 = vadd.f32 %v4097_v3, %v3727_v14  ;;  %v2254_v58 = vsel %vm2190_vm9, 1.0, %v4165_v62 }
 0x17a   : > { %3324 = vrcp.f32 %v2318_v52  ;;  %v2115_v28 = vmul.f32 1.442695, %v1999_v60  ;;  %v2001_v6 = vsub.f32 0.0, %v1937_v22  ;;  %vm2159_vm10 = vcmp.ge.f32.partialorder %v4107_v44, 0.0 }
 0x17b   : > { %v3309_v0 = vpop.eup %3308  ;;  %3326 = vpow2.f32 %v2053_v55  ;;  %v1938_v47 = vand.u32 2147483647, %v4210_v5  ;;  %v4229_v55 = vadd.f32 %v4156_v35, %v3725_v12  ;;  %vm2161_vm11 = vcmp.ge.f32.partialorder %v4122_v1, 0.0 }
 0x17c   : > { %v3311_v45 = vpop.eup %3310  ;;  %v2368_v48 = vmul.f32 %v3309_v0, %v2221_v17  ;;  %3328 = vpow2.f32 %v2057_v39  ;;  %v2119_v33 = vmul.f32 1.442695, %v2001_v6  ;;  %vm2160_vm12 = vcmp.ge.f32.partialorder %v4136_v8, 0.0 }
 0x17d   : > { %v3313_v15 = vpop.eup %3312  ;;  %v2366_v18 = vmul.f32 %v3311_v45, %v2220_v38  ;;  %3330 = vpow2.f32 %v2115_v28  ;;  %v2252_v38 = vsel %vm2188_vm8, 1.0, %v4148_v11  ;;  %v2002_v57 = vsub.f32 0.0, %v1938_v47 }
 0x17e   : > { %v4203_v4 = vpop.eup %3314  ;;  %v2477_v20 = vmul.f32 %v2368_v48, %v4024_v2  ;;  %v2370_v51 = vmul.f32 %v3313_v15, %v2222_v21  ;;  %v2000_v2 = vsub.f32 0.0, %v1936_v29  ;;  %v4236_v11 = vadd.f32 %v4163_v34, %v3725_v12 }
 0x17f   : > { %v3317_v9 = vpop.eup %3316  ;;  %v2476_v31 = vmul.f32 %v2366_v18, %v4030_v7  ;;  %v2287_v61 = vadd.f32 1.0, %v4203_v4  ;;  %v2253_v7 = vsel %vm2189_vm7, 1.0, %v4143_v24  ;;  %v1907_v35 = vand.u32 2147483647, %v4229_v55 }
 0x180   : > { %v4212_v32 = vpop.eup %3318  ;;  %v2478_v50 = vmul.f32 %v2370_v51, %v4039_v27  ;;  %v2428_v40 = vmul.f32 %v3317_v9, %v2251_v10  ;;  %v2117_v37 = vmul.f32 1.442695, %v2000_v2  ;;  %v2121_v39 = vmul.f32 1.442695, %v2002_v57 }
 0x181   : > { %v3078_v41 = vpack.c.bf16 %v2476_v31, %v2475_v26  ;;  %v2289_v42 = vadd.f32 1.0, %v4212_v32  ;;  %v3321_v3 = vpop.eup %3320  ;;  %3332 = vrcp.f32 %v2287_v61  ;;  %v1909_v60 = vand.u32 2147483647, %v4236_v11 }
 0x182   : > { %v3079_v56 = vpack.c.bf16 %v2478_v50, %v2477_v20  ;;  %v3323_v17 = vpop.eup %3322  ;;  %v2432_v27 = vmul.f32 %v3321_v3, %v2253_v7  ;;  %v2507_v24 = vmul.f32 %v2428_v40, %v4044_v36  ;;  %v1971_v18 = vsub.f32 0.0, %v1907_v35 }
 0x183   : > { %2723 = vst [vmem:[%s3820_s29 + $0x40] sm:$0xff] %v3078_v41  ;;  %3334 = vrcp.f32 %v2289_v42  ;;  %v2430_v52 = vmul.f32 %v3323_v17, %v2252_v38  ;;  %v1973_v22 = vsub.f32 0.0, %v1909_v60  ;;  %v4248_v20 = vadd.f32 %v4172_v43, %v3725_v12 }
 0x184   : > { %2724 = vst [vmem:[%s3820_s29 + $0x48] sm:$0xff] %v3079_v56  ;;  %3336 = vpow2.f32 %v2119_v33  ;;  %v3325_v21 = vpop.eup %3324  ;;  %v2509_v36 = vmul.f32 %v2432_v27, %v4068_v46  ;;  %vm2162_vm13 = vcmp.ge.f32.partialorder %v4141_v23, 0.0  ;;  %v4269_v2 = vadd.f32 %v4174_v54, %v3725_v12 }
 0x185   : > { %3338 = vpow2.f32 %v2117_v37  ;;  %v3327_v0 = vpop.eup %3326  ;;  %v2508_v10 = vmul.f32 %v2430_v52, %v4072_v63  ;;  %v2434_v45 = vmul.f32 %v3325_v21, %v2254_v58  ;;  %v2059_v63 = vmul.f32 1.442695, %v1971_v18 }
 0x186   : > { %v2288_v48 = vadd.f32 1.0, %v3327_v0  ;;  %v3329_v62 = vpop.eup %3328  ;;  %v2063_v28 = vmul.f32 1.442695, %v1973_v22  ;;  %v1908_v43 = vand.u32 2147483647, %v4248_v20  ;;  %v4273_v41 = vadd.f32 %v4177_v59, %v3727_v14 }
 0x187   : > { %v3094_v15 = vpack.c.bf16 %v2508_v10, %v2507_v24  ;;  %v2510_v26 = vmul.f32 %v2434_v45, %v4093_v25  ;;  %v2290_v34 = vadd.f32 1.0, %v3329_v62  ;;  %v4243_v29 = vpop.eup %3330  ;;  %vm2191_vm14 = vcmp.ge.f32.partialorder %v4154_v19, 0.0 }
 0x188   : > { %3340 = vrcp.f32 %v2288_v48  ;;  %v2319_v25 = vadd.f32 1.0, %v4243_v29  ;;  %v1972_v56 = vsub.f32 0.0, %v1908_v43  ;;  %v4282_v33 = vadd.f32 %v4179_v49, %v3727_v14 }
 0x189   : > { %2739 = vst [vmem:[%s3820_s29 + $0xc0] sm:$0xff] %v3094_v15  ;;  %v3095_v46 = vpack.c.bf16 %v2510_v26, %v2509_v36  ;;  %3342 = vpow2.f32 %v2121_v39  ;;  %v4250_v51 = vpop.f32.mrb[28].mxu0  ;;  %v4254_v9 = vpop.f32.mrb[28].mxu1  ;;  %v2223_v59 = vsel %vm2159_vm10, 1.0, %v4203_v4  ;;  %v2225_v17 = vsel %vm2161_vm11, 1.0, %v4212_v32 }
 0x18a   : > { %3344 = vrcp.f32 %v2290_v34  ;;  %v4256_v31 = vpop.f32.mrb[29].mxu0  ;;  %v4262_v6 = vpop.f32.mrb[29].mxu1  ;;  %v1910_v38 = vand.u32 2147483647, %v4269_v2  ;;  %v2224_v24 = vsel %vm2160_vm12, 1.0, %v3327_v0  ;;  %vm2193_vm15 = vcmp.ge.f32.partialorder %v4194_v13, 0.0 }
 0x18b   : > { %v3333_v61 = vpop.eup %3332  ;;  %2740 = vst [vmem:[%s3820_s29 + $0xc8] sm:$0xff] %v3095_v46  ;;  %3346 = vpow2.f32 %v2059_v63  ;;  %v4264_v50 = vpop.f32.mrb[30].mxu0  ;;  %v2061_v52 = vmul.f32 1.442695, %v1972_v56  ;;  %v1939_v4 = vand.u32 2147483647, %v4273_v41  ;;  %v4302_v36 = vadd.f32 %v4186_v16, %v3727_v14 }
 0x18c   : > { %3348 = vrcp.f32 %v2319_v25  ;;  %v4275_v7 = vpop.f32.mrb[30].mxu1  ;;  %v4277_v42 = vpop.f32.mrb[31].mxu0  ;;  %v2372_v47 = vmul.f32 %v3333_v61, %v2223_v59  ;;  %v1974_v58 = vsub.f32 0.0, %v1910_v38  ;;  %v2226_v57 = vsel %vm2162_vm13, 1.0, %v3329_v62 }
 0x18d   : > { %v3335_v40 = vpop.eup %3334  ;;  %3350 = vpow2.f32 %v2063_v28  ;;  %v4284_v37 = vpop.f32.mrb[31].mxu1  ;;  %v1941_v32 = vand.u32 2147483647, %v4282_v33  ;;  %v2003_v45 = vsub.f32 0.0, %v1939_v4  ;;  %v4306_v35 = vadd.f32 %v4188_v30, %v3727_v14 }
 0x18e   : > { %v3337_v3 = vpop.eup %3336  ;;  %v2376_v21 = vmul.f32 %v3335_v40, %v2225_v17  ;;  %v2065_v10 = vmul.f32 1.442695, %v1974_v58  ;;  %v2479_v39 = vmul.f32 %v2372_v47, %v4107_v44  ;;  %v1940_v15 = vand.u32 2147483647, %v4302_v36 }
 0x18f   : > { %v3339_v54 = vpop.eup %3338  ;;  %v2321_v27 = vadd.f32 1.0, %v3337_v3  ;;  %v2005_v62 = vsub.f32 0.0, %v1941_v32  ;;  %v2123_v34 = vmul.f32 1.442695, %v2003_v45  ;;  %v2255_v44 = vsel %vm2191_vm14, 1.0, %v4243_v29 }
 0x190   : > { %v2320_v49 = vadd.f32 1.0, %v3339_v54  ;;  %v2481_v18 = vmul.f32 %v2376_v21, %v4122_v1  ;;  %v2004_v25 = vsub.f32 0.0, %v1940_v15  ;;  %v1942_v1 = vand.u32 2147483647, %v4306_v35 }
 0x191   : > { %3352 = vrcp.f32 %v2321_v27  ;;  %v2127_v30 = vmul.f32 1.442695, %v2005_v62  ;;  %vm2192_vm0 = vcmp.ge.f32.partialorder %v4198_v53, 0.0  ;;  %v2257_v27 = vsel %vm2193_vm15, 1.0, %v3337_v3 }
 0x192   : > { %3354 = vrcp.f32 %v2320_v49  ;;  %v3341_v0 = vpop.eup %3340  ;;  %v2125_v17 = vmul.f32 1.442695, %v2004_v25  ;;  %v2006_v38 = vsub.f32 0.0, %v1942_v1  ;;  %v4333_v49 = vadd.f32 %v4254_v9, %v3725_v12 }
 0x193   : > { %3356 = vpow2.f32 %v2061_v52  ;;  %v3343_v48 = vpop.eup %3342  ;;  %v2374_v60 = vmul.f32 %v3341_v0, %v2224_v24  ;;  %v2256_v24 = vsel %vm2192_vm0, 1.0, %v3339_v54  ;;  %v4339_v3 = vadd.f32 %v4256_v31, %v3725_v12 }
 0x194   : > { %v3345_v26 = vpop.eup %3344  ;;  %v2322_v16 = vadd.f32 1.0, %v3343_v48  ;;  %3358 = vpow2.f32 %v2065_v10  ;;  %v2129_v58 = vmul.f32 1.442695, %v2006_v38  ;;  %v1913_v32 = vand.u32 2147483647, %v4333_v49 }
 0x195   : > { %v4311_v22 = vpop.eup %3346  ;;  %v2480_v46 = vmul.f32 %v2374_v60, %v4136_v8  ;;  %v2378_v63 = vmul.f32 %v3345_v26, %v2226_v57  ;;  %vm2194_vm1 = vcmp.ge.f32.partialorder %v4210_v5, 0.0  ;;  %v1912_v60 = vand.u32 2147483647, %v4339_v3 }
 0x196   : > { %v3349_v28 = vpop.eup %3348  ;;  %3360 = vrcp.f32 %v2322_v16  ;;  %v2291_v61 = vadd.f32 1.0, %v4311_v22  ;;  %v1977_v45 = vsub.f32 0.0, %v1913_v32  ;;  %v2258_v31 = vsel %vm2194_vm1, 1.0, %v3343_v48 }
 0x197   : > { %v4319_v43 = vpop.eup %3350  ;;  %v3080_v40 = vpack.c.bf16 %v2480_v46, %v2479_v39  ;;  %v2482_v56 = vmul.f32 %v2378_v63, %v4141_v23  ;;  %v2436_v8 = vmul.f32 %v3349_v28, %v2255_v44  ;;  %3362 = vpow2.f32 %v2123_v34 }
 0x198   : > { %3364 = vrcp.f32 %v2291_v61  ;;  %v2293_v59 = vadd.f32 1.0, %v4319_v43  ;;  %v4329_v23 = vadd.f32 %v4250_v51, %v3725_v12  ;;  %v2071_v16 = vmul.f32 1.442695, %v1977_v45 }
 0x199   : > { %2725 = vst [vmem:[%s3820_s29 + $0x50] sm:$0xff] %v3080_v40  ;;  %v3081_v29 = vpack.c.bf16 %v2482_v56, %v2481_v18  ;;  %3366 = vpow2.f32 %v2127_v30  ;;  %v2511_v21 = vmul.f32 %v2436_v8, %v4154_v19  ;;  %v4352_v63 = vadd.f32 %v4262_v6, %v3725_v12 }
 0x19a   : > { %3368 = vrcp.f32 %v2293_v59  ;;  %v1911_v51 = vand.u32 2147483647, %v4329_v23  ;;  %vm2163_vm2 = vcmp.ge.f32.partialorder %v4229_v55, 0.0  ;;  %v4361_v44 = vadd.f32 %v4264_v50, %v3727_v14 }
 0x19b   : > { %v3353_v47 = vpop.eup %3352  ;;  %2726 = vst [vmem:[%s3820_s29 + $0x58] sm:$0xff] %v3081_v29  ;;  %3370 = vpow2.f32 %v2125_v17  ;;  %vm2165_vm3 = vcmp.ge.f32.partialorder %v4236_v11, 0.0  ;;  %v1914_v6 = vand.u32 2147483647, %v4352_v63  ;;  %vm2164_vm4 = vcmp.ge.f32.partialorder %v4248_v20, 0.0 }
 0x19c   : > { %v3355_v52 = vpop.eup %3354  ;;  %v2440_v4 = vmul.f32 %v3353_v47, %v2257_v27  ;;  %3372 = vpow2.f32 %v2129_v58  ;;  %v1975_v19 = vsub.f32 0.0, %v1911_v51  ;;  %v2229_v17 = vsel %vm2165_vm3, 1.0, %v4319_v43 }
 0x19d   : > { %v3357_v54 = vpop.eup %3356  ;;  %v2438_v57 = vmul.f32 %v3355_v52, %v2256_v24  ;;  %v1978_v8 = vsub.f32 0.0, %v1914_v6  ;;  %vm2166_vm5 = vcmp.ge.f32.partialorder %v4269_v2, 0.0  ;;  %vm2195_vm6 = vcmp.ge.f32.partialorder %v4273_v41, 0.0 }
 0x19e   : > { %v2292_v0 = vadd.f32 1.0, %v3357_v54  ;;  %v4343_v9 = vpop.eup %3358  ;;  %v2513_v15 = vmul.f32 %v2440_v4, %v4194_v13  ;;  %v2067_v18 = vmul.f32 1.442695, %v1975_v19  ;;  %v1943_v29 = vand.u32 2147483647, %v4361_v44 }
 0x19f   : > { %v2512_v10 = vmul.f32 %v2438_v57, %v4198_v53  ;;  %v2294_v39 = vadd.f32 1.0, %v4343_v9  ;;  %v1976_v53 = vsub.f32 0.0, %v1912_v60  ;;  %v2073_v38 = vmul.f32 1.442695, %v1978_v8 }
 0x1a0   : > { %3374 = vrcp.f32 %v2292_v0  ;;  %v3361_v62 = vpop.eup %3360  ;;  %v2228_v24 = vsel %vm2164_vm4, 1.0, %v3357_v54  ;;  %v2007_v52 = vsub.f32 0.0, %v1943_v29  ;;  %v4387_v43 = vadd.f32 %v4277_v42, %v3727_v14 }
 0x1a1   : > { %v3096_v26 = vpack.c.bf16 %v2512_v10, %v2511_v21  ;;  %v3363_v34 = vpop.eup %3362  ;;  %v2442_v46 = vmul.f32 %v3361_v62, %v2258_v31  ;;  %3376 = vrcp.f32 %v2294_v39  ;;  %v2069_v28 = vmul.f32 1.442695, %v1976_v53 }
 0x1a2   : > { %v3365_v48 = vpop.eup %3364  ;;  %v2323_v30 = vadd.f32 1.0, %v3363_v34  ;;  %3378 = vpow2.f32 %v2067_v18  ;;  %v4383_v21 = vadd.f32 %v4275_v7, %v3727_v14  ;;  %vm2197_vm7 = vcmp.ge.f32.partialorder %v4282_v33, 0.0 }
 0x1a3   : > { %2741 = vst [vmem:[%s3820_s29 + $0xd0] sm:$0xff] %v3096_v26  ;;  %v4356_v25 = vpop.eup %3366  ;;  %v2514_v13 = vmul.f32 %v2442_v46, %v4210_v5  ;;  %3380 = vpow2.f32 %v2071_v16  ;;  %v2227_v5 = vsel %vm2163_vm2, 1.0, %v4311_v22  ;;  %v2230_v54 = vsel %vm2166_vm5, 1.0, %v4343_v9 }
 0x1a4   : > { %v3369_v61 = vpop.eup %3368  ;;  %3382 = vrcp.f32 %v2323_v30  ;;  %v2325_v12 = vadd.f32 1.0, %v4356_v25  ;;  %v2380_v56 = vmul.f32 %v3365_v48, %v2227_v5  ;;  %v2131_v51 = vmul.f32 1.442695, %v2007_v52 }
 0x1a5   : > { %v4366_v1 = vpop.eup %3370  ;;  %v3097_v40 = vpack.c.bf16 %v2514_v13, %v2513_v15  ;;  %3384 = vpow2.f32 %v2069_v28  ;;  %v2384_v22 = vmul.f32 %v3369_v61, %v2229_v17  ;;  %v1945_v7 = vand.u32 2147483647, %v4383_v21 }
 0x1a6   : > { %3386 = vrcp.f32 %v2325_v12  ;;  %v2324_v50 = vadd.f32 1.0, %v4366_v1  ;;  %v4371_v59 = vpop.eup %3372  ;;  %v2483_v58 = vmul.f32 %v2380_v56, %v4229_v55  ;;  %v1944_v55 = vand.u32 2147483647, %v4387_v43 }
 0x1a7   : > { %2742 = vst [vmem:[%s3820_s29 + $0xd8] sm:$0xff] %v3097_v40  ;;  %v2326_v27 = vadd.f32 1.0, %v4371_v59  ;;  %v2485_v0 = vmul.f32 %v2384_v22, %v4236_v11  ;;  %v2259_v45 = vsel %vm2195_vm6, 1.0, %v3363_v34  ;;  %v2009_v9 = vsub.f32 0.0, %v1945_v7 }
 0x1a8   : > { %3388 = vrcp.f32 %v2324_v50  ;;  %v2008_v16 = vsub.f32 0.0, %v1944_v55  ;;  %v2261_v53 = vsel %vm2197_vm7, 1.0, %v4356_v25  ;;  %vm2196_vm8 = vcmp.ge.f32.partialorder %v4302_v36, 0.0 }
 0x1a9   : > { %3390 = vrcp.f32 %v2326_v27  ;;  %v2135_v18 = vmul.f32 1.442695, %v2009_v9  ;;  %v2260_v30 = vsel %vm2196_vm8, 1.0, %v4366_v1  ;;  %vm2198_vm9 = vcmp.ge.f32.partialorder %v4306_v35, 0.0 }
 0x1aa   : > { %v3375_v47 = vpop.eup %3374  ;;  %3392 = vpow2.f32 %v2073_v38  ;;  %v2262_v12 = vsel %vm2198_vm9, 1.0, %v4371_v59  ;;  %vm2167_vm10 = vcmp.ge.f32.partialorder %v4329_v23, 0.0  ;;  %vm2168_vm11 = vcmp.ge.f32.partialorder %v4339_v3, 0.0 }
 0x1ab   : > { %v2382_v4 = vmul.f32 %v3375_v47, %v2228_v24  ;;  %v3377_v57 = vpop.eup %3376  ;;  %3394 = vpow2.f32 %v2131_v51  ;;  %vm2169_vm12 = vcmp.ge.f32.partialorder %v4333_v49, 0.0  ;;  %vm2170_vm13 = vcmp.ge.f32.partialorder %v4352_v63, 0.0 }
 0x1ac   : > { %v3379_v32 = vpop.eup %3378  ;;  %v2386_v10 = vmul.f32 %v3377_v57, %v2230_v54  ;;  %vm2199_vm14 = vcmp.ge.f32.partialorder %v4361_v44, 0.0  ;;  %vm2200_vm15 = vcmp.ge.f32.partialorder %v4387_v43, 0.0  ;;  %vm2201_vm0 = vcmp.ge.f32.partialorder %v4383_v21, 0.0 }
 0x1ad   : > { %v2484_v42 = vmul.f32 %v2382_v4, %v4248_v20  ;;  %v4398_v19 = vpop.eup %3380  ;;  %v2295_v31 = vadd.f32 1.0, %v3379_v32  ;;  %v4406_v20 = vadd.f32 %v4284_v37, %v3727_v14  ;;  %v2133_v14 = vmul.f32 1.442695, %v2008_v16 }
 0x1ae   : > { %v3383_v39 = vpop.eup %3382  ;;  %v2486_v62 = vmul.f32 %v2386_v10, %v4269_v2  ;;  %v2297_v11 = vadd.f32 1.0, %v4398_v19  ;;  %v2231_v38 = vsel %vm2167_vm10, 1.0, %v3379_v32  ;;  %v2233_v54 = vsel %vm2169_vm12, 1.0, %v4398_v19 }
 0x1af   : > { %v3082_v60 = vpack.c.bf16 %v2484_v42, %v2483_v58  ;;  %v3385_v15 = vpop.eup %3384  ;;  %v2444_v26 = vmul.f32 %v3383_v39, %v2259_v45  ;;  %3396 = vrcp.f32 %v2295_v31  ;;  %v1946_v13 = vand.u32 2147483647, %v4406_v20 }
 0x1b0   : > { %v3387_v34 = vpop.eup %3386  ;;  %v3083_v46 = vpack.c.bf16 %v2486_v62, %v2485_v0  ;;  %3398 = vrcp.f32 %v2297_v11  ;;  %v2296_v2 = vadd.f32 1.0, %v3385_v15  ;;  %v2232_v52 = vsel %vm2168_vm11, 1.0, %v3385_v15 }
 0x1b1   : > { %2727 = vst [vmem:[%s3820_s29 + $0x60] sm:$0xff] %v3082_v60  ;;  %v2448_v48 = vmul.f32 %v3387_v34, %v2261_v53  ;;  %3400 = vpow2.f32 %v2135_v18  ;;  %v2515_v28 = vmul.f32 %v2444_v26, %v4273_v41  ;;  %v2010_v6 = vsub.f32 0.0, %v1946_v13 }
 0x1b2   : > { %v3389_v37 = vpop.eup %3388  ;;  %2728 = vst [vmem:[%s3820_s29 + $0x68] sm:$0xff] %v3083_v46  ;;  %3402 = vrcp.f32 %v2296_v2  ;;  %vm2202_vm1 = vcmp.ge.f32.partialorder %v4406_v20, 0.0 }
 0x1b3   : > { %v2446_v61 = vmul.f32 %v3389_v37, %v2260_v30  ;;  %3404 = vpow2.f32 %v2133_v14  ;;  %v3391_v25 = vpop.eup %3390  ;;  %v2517_v5 = vmul.f32 %v2448_v48, %v4282_v33  ;;  %v2137_v8 = vmul.f32 1.442695, %v2010_v6 }
 0x1b4   : > { %v3393_v40 = vpop.eup %3392  ;;  %v2450_v1 = vmul.f32 %v3391_v25, %v2262_v12 }
 0x1b5   : > { %v2516_v56 = vmul.f32 %v2446_v61, %v4302_v36  ;;  %v2298_v50 = vadd.f32 1.0, %v3393_v40  ;;  %v3395_v17 = vpop.eup %3394  ;;  %v2234_v10 = vsel %vm2170_vm13, 1.0, %v3393_v40 }
 0x1b6   : > { %v2518_v29 = vmul.f32 %v2450_v1, %v4306_v35  ;;  %v2327_v22 = vadd.f32 1.0, %v3395_v17 }
 0x1b7   : > { %v3098_v41 = vpack.c.bf16 %v2516_v56, %v2515_v28  ;;  %3406 = vrcp.f32 %v2298_v50 }
 0x1b8   : > { %v3099_v59 = vpack.c.bf16 %v2518_v29, %v2517_v5  ;;  %3408 = vpow2.f32 %v2137_v8 }
 0x1b9   : > { %v3397_v27 = vpop.eup %3396  ;;  %2743 = vst [vmem:[%s3820_s29 + $0xe0] sm:$0xff] %v3098_v41  ;;  %3410 = vrcp.f32 %v2327_v22 }
 0x1ba   : > { %v3399_v33 = vpop.eup %3398  ;;  %v2388_v47 = vmul.f32 %v3397_v27, %v2231_v38  ;;  %2744 = vst [vmem:[%s3820_s29 + $0xe8] sm:$0xff] %v3099_v59 }
 0x1bb   : > { %v3401_v36 = vpop.eup %3400  ;;  %v2392_v7 = vmul.f32 %v3399_v33, %v2233_v54 }
 0x1bc   : > { %v3403_v24 = vpop.eup %3402  ;;  %v2329_v58 = vadd.f32 1.0, %v3401_v36  ;;  %v2487_v4 = vmul.f32 %v2388_v47, %v4329_v23 }
 0x1bd   : > { %v3405_v35 = vpop.eup %3404  ;;  %v2390_v57 = vmul.f32 %v3403_v24, %v2232_v52  ;;  %v2489_v23 = vmul.f32 %v2392_v7, %v4333_v49 }
 0x1be   : > { %v2328_v51 = vadd.f32 1.0, %v3405_v35  ;;  %3412 = vrcp.f32 %v2329_v58  ;;  %v2264_v15 = vsel %vm2200_vm15, 1.0, %v3405_v35 }
 0x1bf   : > { %v2488_v32 = vmul.f32 %v2390_v57, %v4339_v3  ;;  %v2263_v3 = vsel %vm2199_vm14, 1.0, %v3395_v17 }
 0x1c0   : > { %3414 = vrcp.f32 %v2328_v51 }
 0x1c1   : > { %v3084_v0 = vpack.c.bf16 %v2488_v32, %v2487_v4  ;;  %v3407_v42 = vpop.eup %3406 }
 0x1c2   : > { %v3409_v55 = vpop.eup %3408  ;;  %v2394_v45 = vmul.f32 %v3407_v42, %v2234_v10 }
 0x1c3   : > { %2729 = vst [vmem:[%s3820_s29 + $0x70] sm:$0xff] %v3084_v0  ;;  %v3411_v31 = vpop.eup %3410  ;;  %v2330_v9 = vadd.f32 1.0, %v3409_v55  ;;  %v2266_v53 = vsel %vm2202_vm1, 1.0, %v3409_v55 }
 0x1c4   : > { %v2490_v19 = vmul.f32 %v2394_v45, %v4352_v63  ;;  %v2452_v60 = vmul.f32 %v3411_v31, %v2263_v3  ;;  %v2265_v63 = vsel %vm2201_vm0, 1.0, %v3401_v36 }
 0x1c5   : > { %3416 = vrcp.f32 %v2330_v9 }
 0x1c6   : > { %v3085_v39 = vpack.c.bf16 %v2490_v19, %v2489_v23  ;;  %v2519_v49 = vmul.f32 %v2452_v60, %v4361_v44 }
 0x1c8   : > { %v3413_v62 = vpop.eup %3412  ;;  %2730 = vst [vmem:[%s3820_s29 + $0x78] sm:$0xff] %v3085_v39 }
 0x1c9   : > { %v2456_v18 = vmul.f32 %v3413_v62, %v2265_v63 }
 0x1ca   : > { %v3415_v11 = vpop.eup %3414 }
 0x1cb   : > { %v2454_v26 = vmul.f32 %v3415_v11, %v2264_v15  ;;  %v2521_v2 = vmul.f32 %v2456_v18, %v4383_v21 }
 0x1cd   : > { %v2520_v16 = vmul.f32 %v2454_v26, %v4387_v43 }
 0x1cf   : > { %v3100_v34 = vpack.c.bf16 %v2520_v16, %v2519_v49  ;;  %v3417_v46 = vpop.eup %3416 }
 0x1d0   : > { %v2458_v48 = vmul.f32 %v3417_v46, %v2266_v53 }
 0x1d1   : > { %2745 = vst [vmem:[%s3820_s29 + $0xf0] sm:$0xff] %v3100_v34 }
 0x1d2   : > { %v2522_v14 = vmul.f32 %v2458_v48, %v4406_v20 }
 0x1d4   : > { %v3101_v37 = vpack.c.bf16 %v2522_v14, %v2521_v2 }
 0x1d6   : > { %2746 = vst [vmem:[%s3820_s29 + $0xf8] sm:$0xff] %v3101_v37 }
 0x1d7 PF: > { %s13_s14 = sadd.s32 1, %s3440_s14   ;;  %s4458_s12 = smov %s3436_s13 }
 0x1d8   : > { %p10_p5 = scmp.ge.s32.totalorder %s13_s14, 4   ;;  %s4459_s13 = smov %s4461_s15 }
 0x1da   :  { %12 = sbr.rel (!%p10_p5) target bundleno = 2 (0x2), region = 62 }

// kernel: adaptive_1dlut_net_forward.8
= control target key start
LH: loop header
LB: loop body
LE: loop exit
PB: predicated region body
PF: predicated region fallthrough
CT: control target
= control target key end

     0   :  { %s1761_s12 = smov 0   ;;  %s1763_s13 = smov 0   ;;  %s2273_s0 = inlined_call_operand.vmem [shape: bf16[2,144,1024], index: 0, kind: input, shape index: {}]   ;;  %s2274_s1 = inlined_call_operand.vmem [shape: bf16[32,144], index: 1, kind: input, shape index: {}]   ;;  %s2275_s2 = inlined_call_operand.vmem [shape: f32[32,1], index: 2, kind: input, shape index: {}]   ;;  %s2276_s3 = inlined_call_operand.vmem [shape: bf16[2,32,1024], index: 3, kind: output, shape index: {}]  }
   0x1   :  { %s1765_s14 = smov 0  }
   0x2 LB: > { %s25_s15 = sadd.s32 1, %s1734_s13  ;;  %p1431_p0 = scmp.ge.s32.totalorder %s1738_s14, 1  ;;  %s1738_s14 = sphi %s1765_s14, %s13_s14   ;;  %s1734_s13 = sphi %s1763_s13, %s2278_s13   ;;  %s1730_s12 = sphi %s1761_s12, %s2277_s12  }
   0x3   : > { %p27_p1 = scmp.ge.s32.totalorder %s25_s15, 2  ;;  %p158_p2 = scmp.lt.s32.totalorder %s1738_s14, 3 }
   0x5   : > { %s2280_s15 = smov (%p27_p1, %s25_s15), 0  ;;  %p159_p3 = pnand %p1431_p0, %p158_p2 }
   0x6   : > { %p191_p4 = scmp.lt.s32.totalorder (!%p159_p3), %s1730_s12, 1  ;;  %v1782_v0 = vld [vmem:[%s2274_s1 + $0x4] ss:$8 sps:$4 sm:$0xff] (!%p159_p3)   ;;  %vm689_vm0 = vcmask (!%p159_p3), 130048   ;;  %v1740_v2 = vmov (!%p159_p3), 0   ;;  %v289_v3 = vld [vmem:[%s2275_s2 + $0x10] sm:$0xff] (!%p159_p3) }
   0x7   : > { %162 = sbr.rel (%p159_p3) target bundleno = 385 (0x181), region = 32  ;;  %1511 = vmatprep.mubr.msk.bf16.mxu0 (!%p159_p3), %vm689_vm0, %v1782_v0  ;;  %1513 = vmatprep.mubr.msk.bf16.mxu1 (!%p159_p3), %vm689_vm0, %v1782_v0  ;;  %v287_v1 = vld [vmem:[%s2275_s2] sm:$0xff] (!%p159_p3)  ;;  %v288_v4 = vld [vmem:[%s2275_s2 + $0x8] sm:$0xff] (!%p159_p3)  ;;  %v290_v5 = vld [vmem:[%s2275_s2 + $0x18] sm:$0xff] (!%p159_p3) }
   0x8   : > { %1580 = vset.pattern.permute.xlu0 (!%p159_p3), %v1740_v2  ;;  %1581 = vset.pattern.permute.xlu1 (!%p159_p3), %v1740_v2 }
   0x9   : > { %293 = vperm.xlu0 (!%p159_p3), %1580, %v287_v1   ;;  %303 = vperm.xlu1 (!%p159_p3), %1581, %v289_v3  }
   0xd   : > { %298 = vperm.xlu0 (!%p159_p3), %1580, %v288_v4   ;;  %308 = vperm.xlu1 (!%p159_p3), %1581, %v290_v5  }
   0xe   : > { %s2282_s12 = smov (!%p191_p4, %s1730_s12), 1 }
   0xf   : > { %s1554_s22 = smul.u32 576, %s2282_s12  ;;  %s1537_s9 = sshll.u32 %s2282_s12, 7 }
  0x10   : > { %s2039_s12 = scalar_lea.vmem %s2276_s3, %s1537_s9 }
  0x11   : > { %s1806_s29 = scalar_lea.vmem %s2273_s0, %s1554_s22 }
  0x12   : > { %v215_v6 = vld [vmem:[%s1806_s29] sm:$0xff]  ;;  %v216_v8 = vld [vmem:[%s1806_s29 + $0x8] sm:$0xff] }
  0x13   : > { %v219_v7 = vld [vmem:[%s1806_s29 + $0x20] sm:$0xff]  ;;  %v220_v10 = vld [vmem:[%s1806_s29 + $0x28] sm:$0xff] }
  0x14   : > { %v1440_v9 = vcombine.high %v215_v6, %v219_v7  ;;  %v1439_v11 = vcombine.low %v215_v6, %v219_v7  ;;  %v223_v12 = vld [vmem:[%s1806_s29 + $0x40] sm:$0xff]  ;;  %v1442_v14 = vcombine.high %v216_v8, %v220_v10  ;;  %v1441_v15 = vcombine.low %v216_v8, %v220_v10  ;;  %v224_v17 = vld [vmem:[%s1806_s29 + $0x48] sm:$0xff] }
  0x15   : > { %v227_v13 = vld [vmem:[%s1806_s29 + $0x60] sm:$0xff]  ;;  %v228_v18 = vld [vmem:[%s1806_s29 + $0x68] sm:$0xff] }
  0x16   : > { %v1448_v16 = vcombine.high %v223_v12, %v227_v13  ;;  %v231_v19 = vld [vmem:[%s1806_s29 + $0x80] sm:$0xff]  ;;  %696 = vmatprep.subr.bf16.mxu0 %v1440_v9  ;;  %v1450_v20 = vcombine.high %v224_v17, %v228_v18  ;;  %v232_v22 = vld [vmem:[%s1806_s29 + $0x88] sm:$0xff]  ;;  %749 = vmatprep.subr.bf16.mxu1 %v1442_v14  ;;  %v1447_v24 = vcombine.low %v223_v12, %v227_v13  ;;  %v217_v13 = vld [vmem:[%s1806_s29 + $0x10] sm:$0xff] }
  0x17   : > { %v235_v21 = vld [vmem:[%s1806_s29 + $0xa0] sm:$0xff]  ;;  %v236_v23 = vld [vmem:[%s1806_s29 + $0xa8] sm:$0xff]  ;;  %697 = vmatpush1.bf16.msra.mxu0 %v1439_v11  ;;  %750 = vmatpush1.bf16.msra.mxu1 %v1441_v15  ;;  %v1449_v25 = vcombine.low %v224_v17, %v228_v18  ;;  %v221_v14 = vld [vmem:[%s1806_s29 + $0x30] sm:$0xff] }
  0x18   : > { %698 = vmatprep.subr.bf16.mxu0 %v1448_v16  ;;  %v1456_v26 = vcombine.high %v231_v19, %v235_v21  ;;  %751 = vmatprep.subr.bf16.mxu1 %v1450_v20  ;;  %v1458_v27 = vcombine.high %v232_v22, %v236_v23  ;;  %v239_v28 = vld [vmem:[%s1806_s29 + $0xc0] sm:$0xff]  ;;  %v240_v30 = vld [vmem:[%s1806_s29 + $0xc8] sm:$0xff]  ;;  %v1455_v32 = vcombine.low %v231_v19, %v235_v21  ;;  %v218_v15 = vld [vmem:[%s1806_s29 + $0x18] sm:$0xff] }
  0x19   : > { %v243_v29 = vld [vmem:[%s1806_s29 + $0xe0] sm:$0xff]  ;;  %v244_v31 = vld [vmem:[%s1806_s29 + $0xe8] sm:$0xff]  ;;  %v1457_v33 = vcombine.low %v232_v22, %v236_v23  ;;  %v222_v16 = vld [vmem:[%s1806_s29 + $0x38] sm:$0xff]  ;;  %v1444_v19 = vcombine.high %v217_v13, %v221_v14 }
  0x1a   : > { %v1464_v34 = vcombine.high %v239_v28, %v243_v29  ;;  %v1466_v35 = vcombine.high %v240_v30, %v244_v31  ;;  %v247_v36 = vld [vmem:[%s1806_s29 + $0x100] sm:$0xff]  ;;  %v248_v38 = vld [vmem:[%s1806_s29 + $0x108] sm:$0xff]  ;;  %v1463_v40 = vcombine.low %v239_v28, %v243_v29  ;;  %v1465_v41 = vcombine.low %v240_v30, %v244_v31  ;;  %v225_v21 = vld [vmem:[%s1806_s29 + $0x50] sm:$0xff] }
  0x1b   : > { %699 = vmatpush1.bf16.msra.mxu0 %v1447_v24  ;;  %752 = vmatpush1.bf16.msra.mxu1 %v1449_v25  ;;  %v251_v37 = vld [vmem:[%s1806_s29 + $0x120] sm:$0xff]  ;;  %v252_v39 = vld [vmem:[%s1806_s29 + $0x128] sm:$0xff]  ;;  %v1446_v20 = vcombine.high %v218_v15, %v222_v16  ;;  %v229_v22 = vld [vmem:[%s1806_s29 + $0x70] sm:$0xff] }
  0x1c   : > { %700 = vmatprep.subr.bf16.mxu0 %v1456_v26  ;;  %753 = vmatprep.subr.bf16.mxu1 %v1458_v27  ;;  %v1472_v42 = vcombine.high %v247_v36, %v251_v37  ;;  %v1474_v43 = vcombine.high %v248_v38, %v252_v39  ;;  %v255_v44 = vld [vmem:[%s1806_s29 + $0x140] sm:$0xff]  ;;  %v256_v46 = vld [vmem:[%s1806_s29 + $0x148] sm:$0xff]  ;;  %v1471_v48 = vcombine.low %v247_v36, %v251_v37  ;;  %v226_v24 = vld [vmem:[%s1806_s29 + $0x58] sm:$0xff] }
  0x1d   : > { %v259_v45 = vld [vmem:[%s1806_s29 + $0x160] sm:$0xff]  ;;  %v260_v47 = vld [vmem:[%s1806_s29 + $0x168] sm:$0xff]  ;;  %v1473_v49 = vcombine.low %v248_v38, %v252_v39  ;;  %v230_v25 = vld [vmem:[%s1806_s29 + $0x78] sm:$0xff]  ;;  %v1443_v26 = vcombine.low %v217_v13, %v221_v14  ;;  %v1445_v27 = vcombine.low %v218_v15, %v222_v16  ;;  %v1452_v28 = vcombine.high %v225_v21, %v229_v22 }
  0x1e   : > { %v1480_v50 = vcombine.high %v255_v44, %v259_v45  ;;  %v1482_v51 = vcombine.high %v256_v46, %v260_v47  ;;  %v263_v52 = vld [vmem:[%s1806_s29 + $0x180] sm:$0xff]  ;;  %v264_v54 = vld [vmem:[%s1806_s29 + $0x188] sm:$0xff]  ;;  %v1479_v56 = vcombine.low %v255_v44, %v259_v45  ;;  %v1481_v57 = vcombine.low %v256_v46, %v260_v47  ;;  %v1860_v30 = vld [vmem:[%s2274_s1 + $0x14] ss:$8 sps:$4 sm:$0xff]  }
  0x1f   : > { %701 = vmatpush1.bf16.msra.mxu0 %v1455_v32  ;;  %754 = vmatpush1.bf16.msra.mxu1 %v1457_v33  ;;  %v267_v53 = vld [vmem:[%s1806_s29 + $0x1a0] sm:$0xff]  ;;  %v268_v55 = vld [vmem:[%s1806_s29 + $0x1a8] sm:$0xff]  ;;  %v1454_v29 = vcombine.high %v226_v24, %v230_v25  ;;  %v233_v31 = vld [vmem:[%s1806_s29 + $0x90] sm:$0xff]  ;;  %v1453_v36 = vcombine.low %v226_v24, %v230_v25 }
  0x20   : > { %702 = vmatprep.subr.bf16.mxu0 %v1464_v34  ;;  %755 = vmatprep.subr.bf16.mxu1 %v1466_v35  ;;  %v1488_v58 = vcombine.high %v263_v52, %v267_v53  ;;  %v1490_v59 = vcombine.high %v264_v54, %v268_v55  ;;  %v271_v60 = vld [vmem:[%s1806_s29 + $0x1c0] sm:$0xff]  ;;  %v272_v62 = vld [vmem:[%s1806_s29 + $0x1c8] sm:$0xff]  ;;  %v1487_v1 = vcombine.low %v263_v52, %v267_v53  ;;  %v237_v32 = vld [vmem:[%s1806_s29 + $0xb0] sm:$0xff] }
  0x21   : > { %v275_v61 = vld [vmem:[%s1806_s29 + $0x1e0] sm:$0xff]  ;;  %v276_v63 = vld [vmem:[%s1806_s29 + $0x1e8] sm:$0xff]  ;;  %v1489_v2 = vcombine.low %v264_v54, %v268_v55  ;;  %v234_v33 = vld [vmem:[%s1806_s29 + $0x98] sm:$0xff]  ;;  %v1451_v35 = vcombine.low %v225_v21, %v229_v22  ;;  %v1460_v37 = vcombine.high %v233_v31, %v237_v32  ;;  %v1459_v44 = vcombine.low %v233_v31, %v237_v32 }
  0x22   : > { %v1496_v3 = vcombine.high %v271_v60, %v275_v61  ;;  %v1498_v4 = vcombine.high %v272_v62, %v276_v63  ;;  %v279_v5 = vld [vmem:[%s1806_s29 + $0x200] sm:$0xff]  ;;  %v280_v7 = vld [vmem:[%s1806_s29 + $0x208] sm:$0xff]  ;;  %v1495_v9 = vcombine.low %v271_v60, %v275_v61  ;;  %v1497_v10 = vcombine.low %v272_v62, %v276_v63  ;;  %v238_v34 = vld [vmem:[%s1806_s29 + $0xb8] sm:$0xff] }
  0x23   : > { %703 = vmatpush1.bf16.msra.mxu0 %v1463_v40  ;;  %756 = vmatpush1.bf16.msra.mxu1 %v1465_v41  ;;  %v283_v6 = vld [vmem:[%s1806_s29 + $0x220] sm:$0xff]  ;;  %v284_v8 = vld [vmem:[%s1806_s29 + $0x228] sm:$0xff]  ;;  %v1462_v38 = vcombine.high %v234_v33, %v238_v34  ;;  %v241_v39 = vld [vmem:[%s1806_s29 + $0xd0] sm:$0xff]  ;;  %v1461_v45 = vcombine.low %v234_v33, %v238_v34 }
  0x24   : > { %704 = vmatprep.subr.bf16.mxu0 %v1472_v42  ;;  %757 = vmatprep.subr.bf16.mxu1 %v1474_v43  ;;  %v1504_v11 = vcombine.high %v279_v5, %v283_v6  ;;  %v1506_v12 = vcombine.high %v280_v7, %v284_v8  ;;  %v1503_v17 = vcombine.low %v279_v5, %v283_v6  ;;  %v1853_v23 = vld [vmem:[%s2274_s1] ss:$8 sps:$4 sm:$0xff]   ;;  %v245_v40 = vld [vmem:[%s1806_s29 + $0xf0] sm:$0xff]  ;;  %v242_v42 = vld [vmem:[%s1806_s29 + $0xd8] sm:$0xff] }
  0x25   : > { %v1505_v18 = vcombine.low %v280_v7, %v284_v8  ;;  %v1877_v41 = vld [vmem:[%s2274_s1 + $0x10] ss:$8 sps:$4 sm:$0xff]   ;;  %v1468_v46 = vcombine.high %v241_v39, %v245_v40  ;;  %v1467_v52 = vcombine.low %v241_v39, %v245_v40 }
  0x26   : > { %v246_v43 = vld [vmem:[%s1806_s29 + $0xf8] sm:$0xff]  ;;  %v273_v8 = vld [vmem:[%s1806_s29 + $0x1d0] sm:$0xff] }
  0x27   : > { %705 = vmatpush1.bf16.msra.mxu0 %v1471_v48  ;;  %758 = vmatpush1.bf16.msra.mxu1 %v1473_v49  ;;  %v1470_v47 = vcombine.high %v242_v42, %v246_v43  ;;  %v249_v48 = vld [vmem:[%s1806_s29 + $0x110] sm:$0xff]  ;;  %v1469_v53 = vcombine.low %v242_v42, %v246_v43 }
  0x28   : > { %706 = vmatprep.subr.bf16.mxu0 %v1480_v50  ;;  %759 = vmatprep.subr.bf16.mxu1 %v1482_v51  ;;  %v253_v49 = vld [vmem:[%s1806_s29 + $0x130] sm:$0xff]  ;;  %v250_v50 = vld [vmem:[%s1806_s29 + $0x118] sm:$0xff] }
  0x29   : > { %v254_v51 = vld [vmem:[%s1806_s29 + $0x138] sm:$0xff]  ;;  %v1476_v54 = vcombine.high %v249_v48, %v253_v49  ;;  %v1475_v60 = vcombine.low %v249_v48, %v253_v49  ;;  %v281_v16 = vld [vmem:[%s1806_s29 + $0x210] sm:$0xff] }
  0x2a   : > { %v1478_v55 = vcombine.high %v250_v50, %v254_v51  ;;  %v1477_v61 = vcombine.low %v250_v50, %v254_v51 }
  0x2b   : > { %707 = vmatpush1.bf16.msra.mxu0 %v1479_v56  ;;  %760 = vmatpush1.bf16.msra.mxu1 %v1481_v57  ;;  %v257_v56 = vld [vmem:[%s1806_s29 + $0x150] sm:$0xff] }
  0x2c   : > { %708 = vmatprep.subr.bf16.mxu0 %v1488_v58  ;;  %761 = vmatprep.subr.bf16.mxu1 %v1490_v59  ;;  %v261_v57 = vld [vmem:[%s1806_s29 + $0x170] sm:$0xff]  ;;  %v258_v58 = vld [vmem:[%s1806_s29 + $0x158] sm:$0xff] }
  0x2d   : > { %v262_v59 = vld [vmem:[%s1806_s29 + $0x178] sm:$0xff]  ;;  %v1484_v62 = vcombine.high %v257_v56, %v261_v57  ;;  %v1483_v5 = vcombine.low %v257_v56, %v261_v57 }
  0x2e   : > { %v1486_v63 = vcombine.high %v258_v58, %v262_v59 }
  0x2f   : > { %709 = vmatpush1.bf16.msra.mxu0 %v1487_v1  ;;  %762 = vmatpush1.bf16.msra.mxu1 %v1489_v2  ;;  %v265_v1 = vld [vmem:[%s1806_s29 + $0x190] sm:$0xff] }
  0x30   : > { %710 = vmatprep.subr.bf16.mxu0 %v1496_v3  ;;  %763 = vmatprep.subr.bf16.mxu1 %v1498_v4  ;;  %v269_v2 = vld [vmem:[%s1806_s29 + $0x1b0] sm:$0xff]  ;;  %v266_v3 = vld [vmem:[%s1806_s29 + $0x198] sm:$0xff] }
  0x31   : > { %v270_v4 = vld [vmem:[%s1806_s29 + $0x1b8] sm:$0xff]  ;;  %v1492_v6 = vcombine.high %v265_v1, %v269_v2 }
  0x32   : > { %v1494_v7 = vcombine.high %v266_v3, %v270_v4  ;;  %v1493_v13 = vcombine.low %v266_v3, %v270_v4 }
  0x33   : > { %711 = vmatpush1.bf16.msra.mxu0 %v1495_v9  ;;  %764 = vmatpush1.bf16.msra.mxu1 %v1497_v10  ;;  %v277_v9 = vld [vmem:[%s1806_s29 + $0x1f0] sm:$0xff]  ;;  %v274_v10 = vld [vmem:[%s1806_s29 + $0x1d8] sm:$0xff] }
  0x34   : > { %712 = vmatprep.subr.bf16.mxu0 %v1504_v11  ;;  %765 = vmatprep.subr.bf16.mxu1 %v1506_v12  ;;  %v278_v11 = vld [vmem:[%s1806_s29 + $0x1f8] sm:$0xff]  ;;  %v1491_v12 = vcombine.low %v265_v1, %v269_v2  ;;  %v1500_v14 = vcombine.high %v273_v8, %v277_v9 }
  0x35   : > { %v1502_v15 = vcombine.high %v274_v10, %v278_v11  ;;  %v1501_v21 = vcombine.low %v274_v10, %v278_v11 }
  0x37   : > { %713 = vmatpush1.bf16.msra.mxu0 %v1503_v17  ;;  %766 = vmatpush1.bf16.msra.mxu1 %v1505_v18  ;;  %v285_v17 = vld [vmem:[%s1806_s29 + $0x230] sm:$0xff]  ;;  %v282_v18 = vld [vmem:[%s1806_s29 + $0x218] sm:$0xff] }
  0x38   : > { %802 = vmatprep.subr.bf16.mxu0 %v1444_v19  ;;  %855 = vmatprep.subr.bf16.mxu1 %v1446_v20  ;;  %v286_v19 = vld [vmem:[%s1806_s29 + $0x238] sm:$0xff]  ;;  %v1499_v20 = vcombine.low %v273_v8, %v277_v9  ;;  %v1508_v22 = vcombine.high %v281_v16, %v285_v17  ;;  %v1507_v25 = vcombine.low %v281_v16, %v285_v17 }
  0x39   : > { %v1510_v24 = vcombine.high %v282_v18, %v286_v19 }
  0x3a   : > { %729 = vmatmul.mubr.bf16.vlgmr.msra.gmra.mrb[0].mxu0 %v1853_v23  ;;  %782 = vmatmul.mubr.bf16.vlgmr.msra.gmra.mrb[0].mxu1 %v1853_v23 }
  0x3b   : > { %803 = vmatpush1.bf16.msra.mxu0 %v1443_v26  ;;  %856 = vmatpush1.bf16.msra.mxu1 %v1445_v27  ;;  %v1509_v26 = vcombine.low %v282_v18, %v286_v19 }
  0x3c   : > { %804 = vmatprep.subr.bf16.mxu0 %v1452_v28  ;;  %857 = vmatprep.subr.bf16.mxu1 %v1454_v29 }
  0x3d   : > { %1512 = vmatprep.mubr.msk.bf16.mxu0 %vm689_vm0, %v1860_v30  ;;  %1514 = vmatprep.mubr.msk.bf16.mxu1 %vm689_vm0, %v1860_v30 }
  0x3f   : > { %805 = vmatpush1.bf16.msra.mxu0 %v1451_v35  ;;  %858 = vmatpush1.bf16.msra.mxu1 %v1453_v36 }
  0x40   : > { %806 = vmatprep.subr.bf16.mxu0 %v1460_v37  ;;  %859 = vmatprep.subr.bf16.mxu1 %v1462_v38 }
  0x42   : > { %739 = vmatmul.mubr.bf16.gmra.mrb[4].mxu0 %v1877_v41  ;;  %792 = vmatmul.mubr.bf16.gmra.mrb[4].mxu1 %v1877_v41 }
  0x43   : > { %807 = vmatpush1.bf16.msra.mxu0 %v1459_v44  ;;  %860 = vmatpush1.bf16.msra.mxu1 %v1461_v45 }
  0x44   : > { %808 = vmatprep.subr.bf16.mxu0 %v1468_v46  ;;  %861 = vmatprep.subr.bf16.mxu1 %v1470_v47 }
  0x45   : > { %1515 = vmatprep.mubr.msk.bf16.mxu0 %vm689_vm0, %v1782_v0  ;;  %1517 = vmatprep.mubr.msk.bf16.mxu1 %vm689_vm0, %v1782_v0  ;;  %v1485_v0 = vcombine.low %v258_v58, %v262_v59 }
  0x47   : > { %809 = vmatpush1.bf16.msra.mxu0 %v1467_v52  ;;  %862 = vmatpush1.bf16.msra.mxu1 %v1469_v53 }
  0x48   : > { %810 = vmatprep.subr.bf16.mxu0 %v1476_v54  ;;  %863 = vmatprep.subr.bf16.mxu1 %v1478_v55 }
  0x4b   : > { %811 = vmatpush1.bf16.msra.mxu0 %v1475_v60  ;;  %864 = vmatpush1.bf16.msra.mxu1 %v1477_v61 }
  0x4c   : > { %812 = vmatprep.subr.bf16.mxu0 %v1484_v62  ;;  %865 = vmatprep.subr.bf16.mxu1 %v1486_v63 }
  0x4f   : > { %813 = vmatpush1.bf16.msra.mxu0 %v1483_v5  ;;  %866 = vmatpush1.bf16.msra.mxu1 %v1485_v0 }
  0x50   : > { %814 = vmatprep.subr.bf16.mxu0 %v1492_v6  ;;  %867 = vmatprep.subr.bf16.mxu1 %v1494_v7 }
  0x53   : > { %815 = vmatpush1.bf16.msra.mxu0 %v1491_v12  ;;  %868 = vmatpush1.bf16.msra.mxu1 %v1493_v13 }
  0x54   : > { %816 = vmatprep.subr.bf16.mxu0 %v1500_v14  ;;  %869 = vmatprep.subr.bf16.mxu1 %v1502_v15 }
  0x57   : > { %817 = vmatpush1.bf16.msra.mxu0 %v1499_v20  ;;  %870 = vmatpush1.bf16.msra.mxu1 %v1501_v21 }
  0x58   : > { %818 = vmatprep.subr.bf16.mxu0 %v1508_v22  ;;  %871 = vmatprep.subr.bf16.mxu1 %v1510_v24 }
  0x5b   : > { %819 = vmatpush1.bf16.msra.mxu0 %v1507_v25  ;;  %872 = vmatpush1.bf16.msra.mxu1 %v1509_v26 }
  0x5e   : > { %835 = vmatmul.mubr.bf16.vlgmr.msra.gmra.mrb[8].mxu0 %v1853_v23  ;;  %888 = vmatmul.mubr.bf16.vlgmr.msra.gmra.mrb[8].mxu1 %v1853_v23 }
  0x5f   : > { %1516 = vmatprep.mubr.msk.bf16.mxu0 %vm689_vm0, %v1860_v30  ;;  %1518 = vmatprep.mubr.msk.bf16.mxu1 %vm689_vm0, %v1860_v30 }
  0x66   : > { %845 = vmatmul.mubr.bf16.gmra.mrb[12].mxu0 %v1877_v41  ;;  %898 = vmatmul.mubr.bf16.gmra.mrb[12].mxu1 %v1877_v41 }
  0x88   : > { %v1915_v27 = vpop.permute.xlu0 %293  ;;  %v1949_v60 = vpop.permute.xlu1 %303 }
  0x8c   : > { %v1917_v29 = vpop.permute.xlu0 %298  ;;  %v1967_v20 = vpop.permute.xlu1 %308 }
 0x10d   : > { %v730_v28 = vpop.f32.mrb[0].mxu0  ;;  %v783_v32 = vpop.f32.mrb[0].mxu1 }
 0x10e   : > { %v1920_v31 = vadd.f32 %v730_v28, %v1915_v27  ;;  %v732_v23 = vpop.f32.mrb[1].mxu0  ;;  %v1923_v33 = vadd.f32 %v783_v32, %v1915_v27  ;;  %v785_v30 = vpop.f32.mrb[1].mxu1 }
 0x10f   : > { %v1926_v34 = vadd.f32 %v732_v23, %v1915_v27  ;;  %v734_v35 = vpop.f32.mrb[2].mxu0  ;;  %v1930_v37 = vadd.f32 %v785_v30, %v1915_v27  ;;  %v787_v39 = vpop.f32.mrb[2].mxu1 }
 0x110   : > { %v908_v36 = vand.u32 2147483647, %v1920_v31  ;;  %v1933_v38 = vadd.f32 %v734_v35, %v1917_v29  ;;  %v736_v40 = vpop.f32.mrb[3].mxu0  ;;  %v910_v41 = vand.u32 2147483647, %v1923_v33  ;;  %v1940_v48 = vadd.f32 %v787_v39, %v1917_v29  ;;  %v789_v49 = vpop.f32.mrb[3].mxu1 }
 0x111   : > { %v909_v42 = vand.u32 2147483647, %v1926_v34  ;;  %v911_v44 = vand.u32 2147483647, %v1930_v37  ;;  %v1943_v53 = vadd.f32 %v736_v40, %v1917_v29  ;;  %v1947_v57 = vadd.f32 %v789_v49, %v1917_v29 }
 0x112   : > { %v940_v43 = vsub.f32 0.0, %v908_v36  ;;  %v916_v45 = vand.u32 2147483647, %v1933_v38  ;;  %v942_v46 = vsub.f32 0.0, %v910_v41  ;;  %v918_v56 = vand.u32 2147483647, %v1940_v48 }
 0x113   : > { %v941_v47 = vsub.f32 0.0, %v909_v42  ;;  %v943_v51 = vsub.f32 0.0, %v911_v44  ;;  %v917_v63 = vand.u32 2147483647, %v1943_v53  ;;  %v919_v3 = vand.u32 2147483647, %v1947_v57 }
 0x114   : > { %v972_v50 = vmul.f32 1.442695, %v940_v43  ;;  %v948_v52 = vsub.f32 0.0, %v916_v45  ;;  %v976_v54 = vmul.f32 1.442695, %v942_v46  ;;  %v950_v62 = vsub.f32 0.0, %v918_v56 }
 0x115   : > { %v974_v55 = vmul.f32 1.442695, %v941_v47  ;;  %v978_v58 = vmul.f32 1.442695, %v943_v51  ;;  %v740_v61 = vpop.f32.mrb[4].mxu0  ;;  %v793_v1 = vpop.f32.mrb[4].mxu1 }
 0x116   : > { %1588 = vpow2.f32 %v972_v50  ;;  %v988_v59 = vmul.f32 1.442695, %v948_v52  ;;  %v742_v2 = vpop.f32.mrb[5].mxu0  ;;  %v1954_v4 = vadd.f32 %v740_v61, %v1949_v60  ;;  %v795_v5 = vpop.f32.mrb[5].mxu1  ;;  %v992_v6 = vmul.f32 1.442695, %v950_v62 }
 0x117   : > { %1590 = vpow2.f32 %v976_v54  ;;  %v744_v0 = vpop.f32.mrb[6].mxu0  ;;  %v949_v7 = vsub.f32 0.0, %v917_v63  ;;  %v1957_v8 = vadd.f32 %v793_v1, %v1949_v60  ;;  %v797_v9 = vpop.f32.mrb[6].mxu1  ;;  %v951_v11 = vsub.f32 0.0, %v919_v3 }
 0x118   : > { %1592 = vpow2.f32 %v974_v55  ;;  %v746_v10 = vpop.f32.mrb[7].mxu0  ;;  %v924_v12 = vand.u32 2147483647, %v1954_v4  ;;  %v799_v13 = vpop.f32.mrb[7].mxu1  ;;  %v1962_v18 = vadd.f32 %v742_v2, %v1949_v60  ;;  %v1965_v19 = vadd.f32 %v795_v5, %v1949_v60 }
 0x119   : > { %1594 = vpow2.f32 %v978_v58  ;;  %v990_v14 = vmul.f32 1.442695, %v949_v7  ;;  %v926_v15 = vand.u32 2147483647, %v1957_v8  ;;  %v994_v16 = vmul.f32 1.442695, %v951_v11 }
 0x11a   : > { %1596 = vpow2.f32 %v988_v59  ;;  %v956_v17 = vsub.f32 0.0, %v924_v12  ;;  %v925_v24 = vand.u32 2147483647, %v1962_v18  ;;  %v1971_v26 = vadd.f32 %v744_v0, %v1967_v20 }
 0x11b   : > { %1598 = vpow2.f32 %v992_v6  ;;  %v958_v21 = vsub.f32 0.0, %v926_v15  ;;  %v927_v32 = vand.u32 2147483647, %v1965_v19  ;;  %v1975_v23 = vadd.f32 %v797_v9, %v1967_v20 }
 0x11c   : > { %1600 = vpow2.f32 %v990_v14  ;;  %v1004_v22 = vmul.f32 1.442695, %v956_v17  ;;  %v957_v36 = vsub.f32 0.0, %v925_v24  ;;  %v932_v43 = vand.u32 2147483647, %v1971_v26 }
 0x11d   : > { %1602 = vpow2.f32 %v994_v16  ;;  %v1008_v25 = vmul.f32 1.442695, %v958_v21  ;;  %v959_v46 = vsub.f32 0.0, %v927_v32  ;;  %v934_v47 = vand.u32 2147483647, %v1975_v23 }
 0x11e   : > { %1604 = vpow2.f32 %v1004_v22  ;;  %vm1036_vm1 = vcmp.ge.f32.partialorder %v1920_v31, 0.0  ;;  %v1006_v51 = vmul.f32 1.442695, %v957_v36  ;;  %vm1038_vm2 = vcmp.ge.f32.partialorder %v1923_v33, 0.0 }
 0x11f   : > { %1606 = vpow2.f32 %v1008_v25  ;;  %vm1037_vm3 = vcmp.ge.f32.partialorder %v1926_v34, 0.0  ;;  %v964_v55 = vsub.f32 0.0, %v932_v43  ;;  %v1991_v56 = vadd.f32 %v746_v10, %v1967_v20 }
 0x120   : > { %v1589_v28 = vpop.eup %1588  ;;  %v1994_v58 = vadd.f32 %v799_v13, %v1967_v20  ;;  %v1010_v62 = vmul.f32 1.442695, %v959_v46  ;;  %v966_v63 = vsub.f32 0.0, %v934_v47  ;;  %vm1039_vm4 = vcmp.ge.f32.partialorder %v1930_v37, 0.0 }
 0x121   : > { %v1591_v30 = vpop.eup %1590  ;;  %v1100_v35 = vadd.f32 1.0, %v1589_v28  ;;  %v933_v2 = vand.u32 2147483647, %v1991_v56  ;;  %vm1044_vm5 = vcmp.ge.f32.partialorder %v1933_v38, 0.0  ;;  %vm1046_vm6 = vcmp.ge.f32.partialorder %v1940_v48, 0.0 }
 0x122   : > { %v1593_v39 = vpop.eup %1592  ;;  %v1102_v40 = vadd.f32 1.0, %v1591_v30  ;;  %v935_v5 = vand.u32 2147483647, %v1994_v58  ;;  %vm1045_vm7 = vcmp.ge.f32.partialorder %v1943_v53, 0.0  ;;  %v1020_v7 = vmul.f32 1.442695, %v964_v55 }
 0x123   : > { %v1595_v41 = vpop.eup %1594  ;;  %1608 = vrcp.f32 %v1100_v35  ;;  %v1101_v42 = vadd.f32 1.0, %v1593_v39  ;;  %v965_v9 = vsub.f32 0.0, %v933_v2  ;;  %v1024_v11 = vmul.f32 1.442695, %v966_v63 }
 0x124   : > { %v1978_v44 = vpop.eup %1596  ;;  %1610 = vrcp.f32 %v1102_v40  ;;  %v1103_v45 = vadd.f32 1.0, %v1595_v41  ;;  %v967_v12 = vsub.f32 0.0, %v935_v5  ;;  %v1068_v14 = vsel %vm1036_vm1, 1.0, %v1589_v28 }
 0x125   : > { %v1981_v49 = vpop.eup %1598  ;;  %1612 = vrcp.f32 %v1101_v42  ;;  %v1108_v50 = vadd.f32 1.0, %v1978_v44  ;;  %vm1047_vm8 = vcmp.ge.f32.partialorder %v1947_v57, 0.0  ;;  %v1022_v15 = vmul.f32 1.442695, %v965_v9 }
 0x126   : > { %1614 = vrcp.f32 %v1103_v45  ;;  %v1110_v52 = vadd.f32 1.0, %v1981_v49  ;;  %v1988_v54 = vpop.eup %1600  ;;  %v1070_v21 = vsel %vm1038_vm2, 1.0, %v1591_v30  ;;  %v1026_v22 = vmul.f32 1.442695, %v967_v12 }
 0x127   : > { %1616 = vrcp.f32 %v1108_v50  ;;  %v1996_v59 = vpop.eup %1602  ;;  %v1109_v61 = vadd.f32 1.0, %v1988_v54  ;;  %v1069_v32 = vsel %vm1037_vm3, 1.0, %v1593_v39  ;;  %v1071_v28 = vsel %vm1039_vm4, 1.0, %v1595_v41 }
 0x128   : > { %1618 = vrcp.f32 %v1110_v52  ;;  %v1111_v1 = vadd.f32 1.0, %v1996_v59  ;;  %v2002_v3 = vpop.eup %1604  ;;  %vm1052_vm9 = vcmp.ge.f32.partialorder %v1954_v4, 0.0  ;;  %v1076_v30 = vsel %vm1044_vm5, 1.0, %v1978_v44 }
 0x129   : > { %1620 = vpow2.f32 %v1006_v51  ;;  %v2007_v0 = vpop.eup %1606  ;;  %v1116_v6 = vadd.f32 1.0, %v2002_v3  ;;  %vm1054_vm10 = vcmp.ge.f32.partialorder %v1957_v8, 0.0  ;;  %v1078_v41 = vsel %vm1046_vm6, 1.0, %v1981_v49 }
 0x12a   : > { %1622 = vrcp.f32 %v1109_v61  ;;  %v1118_v10 = vadd.f32 1.0, %v2007_v0  ;;  %vm1053_vm11 = vcmp.ge.f32.partialorder %v1962_v18, 0.0  ;;  %vm1055_vm12 = vcmp.ge.f32.partialorder %v1965_v19, 0.0 }
 0x12b   : > { %1624 = vrcp.f32 %v1111_v1  ;;  %v1077_v1 = vsel %vm1045_vm7, 1.0, %v1988_v54  ;;  %vm1060_vm13 = vcmp.ge.f32.partialorder %v1971_v26, 0.0  ;;  %vm1062_vm14 = vcmp.ge.f32.partialorder %v1975_v23, 0.0 }
 0x12c   : > { %1626 = vpow2.f32 %v1010_v62  ;;  %vm1061_vm15 = vcmp.ge.f32.partialorder %v1991_v56, 0.0  ;;  %vm1063_vm0 = vcmp.ge.f32.partialorder %v1994_v58, 0.0 }
 0x12d   : > { %v1609_v13 = vpop.eup %1608  ;;  %1628 = vrcp.f32 %v1116_v6 }
 0x12e   : > { %v1611_v16 = vpop.eup %1610  ;;  %v1133_v17 = vmul.f32 %v1609_v13, %v1068_v14  ;;  %1630 = vrcp.f32 %v1118_v10 }
 0x12f   : > { %v1613_v24 = vpop.eup %1612  ;;  %v1137_v25 = vmul.f32 %v1611_v16, %v1070_v21  ;;  %1632 = vpow2.f32 %v1020_v7 }
 0x130   : > { %v1615_v35 = vpop.eup %1614  ;;  %v1196_v36 = vmul.f32 %v1133_v17, %v1920_v31  ;;  %v1135_v40 = vmul.f32 %v1613_v24, %v1069_v32  ;;  %1634 = vpow2.f32 %v1024_v11 }
 0x131   : > { %v1617_v42 = vpop.eup %1616  ;;  %v1198_v39 = vmul.f32 %v1137_v25, %v1923_v33  ;;  %v1139_v43 = vmul.f32 %v1615_v35, %v1071_v28  ;;  %1636 = vpow2.f32 %v1022_v15  ;;  %v836_v45 = vpop.f32.mrb[8].mxu0 }
 0x132   : > { %v1619_v31 = vpop.eup %1618  ;;  %v1197_v46 = vmul.f32 %v1135_v40, %v1926_v34  ;;  %v1149_v47 = vmul.f32 %v1617_v42, %v1076_v30  ;;  %1638 = vpow2.f32 %v1026_v22  ;;  %v2034_v44 = vadd.f32 %v836_v45, %v1915_v27  ;;  %v889_v50 = vpop.f32.mrb[8].mxu1 }
 0x133   : > { %v838_v51 = vpop.f32.mrb[9].mxu0  ;;  %v1621_v52 = vpop.eup %1620  ;;  %v1199_v33 = vmul.f32 %v1139_v43, %v1930_v37  ;;  %v1153_v49 = vmul.f32 %v1619_v31, %v1078_v41  ;;  %v2044_v34 = vadd.f32 %v889_v50, %v1915_v27  ;;  %v1079_v37 = vsel %vm1047_vm8, 1.0, %v1996_v59 }
 0x134   : > { %v2046_v55 = vpop.f32.mrb[9].mxu1  ;;  %v2048_v61 = vpop.f32.mrb[10].mxu0  ;;  %v1538_v63 = vpack.c.bf16 %v1197_v46, %v1196_v36  ;;  %v1117_v2 = vadd.f32 1.0, %v1621_v52  ;;  %v1204_v10 = vmul.f32 %v1149_v47, %v1933_v38  ;;  %v912_v12 = vand.u32 2147483647, %v2034_v44 }
 0x135   : > { %v1623_v62 = vpop.eup %1622  ;;  %v2056_v5 = vpop.f32.mrb[10].mxu1  ;;  %v1539_v9 = vpack.c.bf16 %v1199_v33, %v1198_v39  ;;  %v1206_v14 = vmul.f32 %v1153_v49, %v1940_v48  ;;  %v914_v15 = vand.u32 2147483647, %v2044_v34  ;;  %v2074_v35 = vadd.f32 %v838_v51, %v1915_v27 }
 0x136   : > { %v2058_v6 = vpop.f32.mrb[11].mxu0  ;;  %v1625_v7 = vpop.eup %1624  ;;  %v1151_v11 = vmul.f32 %v1623_v62, %v1077_v1  ;;  %1324 = vst [vmem:[%s2039_s12] sm:$0xff] %v1538_v63  ;;  %1640 = vrcp.f32 %v1117_v2  ;;  %v944_v21 = vsub.f32 0.0, %v912_v12  ;;  %v1086_v41 = vsel %vm1054_vm10, 1.0, %v2007_v0 }
 0x137   : > { %v2062_v13 = vpop.f32.mrb[11].mxu1  ;;  %v1627_v54 = vpop.eup %1626  ;;  %v1155_v59 = vmul.f32 %v1625_v7, %v1079_v37  ;;  %1325 = vst [vmem:[%s2039_s12 + $0x8] sm:$0xff] %v1539_v9  ;;  %v946_v48 = vsub.f32 0.0, %v914_v15  ;;  %v1085_v45 = vsel %vm1053_vm11, 1.0, %v1621_v52  ;;  %v913_v63 = vand.u32 2147483647, %v2074_v35 }
 0x138   : > { %v1629_v16 = vpop.eup %1628  ;;  %v1205_v17 = vmul.f32 %v1151_v11, %v1943_v53  ;;  %v1119_v38 = vadd.f32 1.0, %v1627_v54  ;;  %v980_v28 = vmul.f32 1.442695, %v944_v21  ;;  %v1087_v0 = vsel %vm1055_vm12, 1.0, %v1627_v54 }
 0x139   : > { %v1631_v22 = vpop.eup %1630  ;;  %v1207_v24 = vmul.f32 %v1155_v59, %v1947_v57  ;;  %v2076_v53 = vpop.f32.mrb[12].mxu0  ;;  %v1084_v57 = vsel %vm1052_vm9, 1.0, %v2002_v3  ;;  %v984_v33 = vmul.f32 1.442695, %v946_v48  ;;  %v2112_v2 = vadd.f32 %v2046_v55, %v1915_v27 }
 0x13a   : > { %v1633_v25 = vpop.eup %1632  ;;  %v1542_v32 = vpack.c.bf16 %v1205_v17, %v1204_v10  ;;  %1642 = vrcp.f32 %v1119_v38  ;;  %v2082_v42 = vpop.f32.mrb[12].mxu1  ;;  %v1165_v50 = vmul.f32 %v1629_v16, %v1084_v57  ;;  %v1169_v37 = vmul.f32 %v1631_v22, %v1086_v41 }
 0x13b   : > { %v1635_v36 = vpop.eup %1634  ;;  %v1543_v40 = vpack.c.bf16 %v1207_v24, %v1206_v14  ;;  %v1124_v30 = vadd.f32 1.0, %v1633_v25  ;;  %v2084_v39 = vpop.f32.mrb[13].mxu0  ;;  %1644 = vpow2.f32 %v980_v28  ;;  %v2116_v7 = vadd.f32 %v2048_v61, %v1917_v29 }
 0x13c   : > { %v1637_v43 = vpop.eup %1636  ;;  %1328 = vst [vmem:[%s2039_s12 + $0x20] sm:$0xff] %v1542_v32  ;;  %v1126_v31 = vadd.f32 1.0, %v1635_v36  ;;  %v2092_v46 = vpop.f32.mrb[13].mxu1  ;;  %v945_v9 = vsub.f32 0.0, %v913_v63  ;;  %v2120_v10 = vadd.f32 %v2056_v5, %v1917_v29  ;;  %v2124_v11 = vadd.f32 %v2058_v6, %v1917_v29 }
 0x13d   : > { %v2094_v3 = vpop.f32.mrb[14].mxu0  ;;  %v2096_v47 = vpop.eup %1638  ;;  %1329 = vst [vmem:[%s2039_s12 + $0x28] sm:$0xff] %v1543_v40  ;;  %1646 = vrcp.f32 %v1124_v30  ;;  %v1125_v51 = vadd.f32 1.0, %v1637_v43  ;;  %v1212_v54 = vmul.f32 %v1165_v50, %v1954_v4  ;;  %v915_v27 = vand.u32 2147483647, %v2112_v2 }
 0x13e   : > { %v2099_v49 = vpop.f32.mrb[14].mxu1  ;;  %v2101_v62 = vpop.f32.mrb[15].mxu0  ;;  %1648 = vrcp.f32 %v1126_v31  ;;  %v1127_v52 = vadd.f32 1.0, %v2096_v47  ;;  %v920_v55 = vand.u32 2147483647, %v2116_v7  ;;  %v1092_v14 = vsel %vm1060_vm13, 1.0, %v1633_v25 }
 0x13f   : > { %v2108_v1 = vpop.f32.mrb[15].mxu1  ;;  %1650 = vrcp.f32 %v1125_v51  ;;  %v982_v59 = vmul.f32 1.442695, %v945_v9  ;;  %v922_v5 = vand.u32 2147483647, %v2120_v10  ;;  %v1214_v15 = vmul.f32 %v1169_v37, %v1957_v8 }
 0x140   : > { %1652 = vrcp.f32 %v1127_v52  ;;  %v1641_v12 = vpop.eup %1640  ;;  %v947_v16 = vsub.f32 0.0, %v915_v27  ;;  %v952_v6 = vsub.f32 0.0, %v920_v55  ;;  %v921_v17 = vand.u32 2147483647, %v2124_v11 }
 0x141   : > { %1654 = vpow2.f32 %v984_v33  ;;  %v1167_v61 = vmul.f32 %v1641_v12, %v1085_v45  ;;  %v1094_v21 = vsel %vm1062_vm14, 1.0, %v1635_v36  ;;  %v954_v22 = vsub.f32 0.0, %v922_v5 }
 0x142   : > { %1656 = vpow2.f32 %v982_v59  ;;  %v986_v48 = vmul.f32 1.442695, %v947_v16  ;;  %v996_v25 = vmul.f32 1.442695, %v952_v6  ;;  %v953_v32 = vsub.f32 0.0, %v921_v17 }
 0x143   : > { %v1213_v4 = vmul.f32 %v1167_v61, %v1962_v18  ;;  %v1093_v40 = vsel %vm1061_vm15, 1.0, %v1637_v43  ;;  %v1000_v57 = vmul.f32 1.442695, %v954_v22  ;;  %v2143_v18 = vadd.f32 %v2062_v13, %v1917_v29 }
 0x144   : > { %v1643_v38 = vpop.eup %1642  ;;  %1658 = vpow2.f32 %v986_v48  ;;  %v2149_v45 = vadd.f32 %v2076_v53, %v1949_v60  ;;  %v998_v43 = vmul.f32 1.442695, %v953_v32  ;;  %vm1040_vm1 = vcmp.ge.f32.partialorder %v2034_v44, 0.0 }
 0x145   : > { %v1171_v24 = vmul.f32 %v1643_v38, %v1087_v0  ;;  %v2137_v28 = vpop.eup %1644  ;;  %v1546_v8 = vpack.c.bf16 %v1213_v4, %v1212_v54  ;;  %1660 = vpow2.f32 %v996_v25  ;;  %v923_v51 = vand.u32 2147483647, %v2143_v18 }
 0x146   : > { %v1104_v41 = vadd.f32 1.0, %v2137_v28  ;;  %v928_v54 = vand.u32 2147483647, %v2149_v45  ;;  %vm1042_vm2 = vcmp.ge.f32.partialorder %v2044_v34, 0.0  ;;  %v2185_v32 = vadd.f32 %v2094_v3, %v1967_v20 }
 0x147   : > { %v1647_v30 = vpop.eup %1646  ;;  %v1215_v36 = vmul.f32 %v1171_v24, %v1965_v19  ;;  %1332 = vst [vmem:[%s2039_s12 + $0x40] sm:$0xff] %v1546_v8  ;;  %v1095_v19 = vsel %vm1063_vm0, 1.0, %v2096_v47  ;;  %v955_v63 = vsub.f32 0.0, %v923_v51  ;;  %vm1041_vm3 = vcmp.ge.f32.partialorder %v2074_v35, 0.0 }
 0x148   : > { %v1649_v31 = vpop.eup %1648  ;;  %v1181_v50 = vmul.f32 %v1647_v30, %v1092_v14  ;;  %1662 = vrcp.f32 %v1104_v41  ;;  %v2164_v14 = vadd.f32 %v2082_v42, %v1949_v60  ;;  %vm1043_vm4 = vcmp.ge.f32.partialorder %v2112_v2, 0.0 }
 0x149   : > { %v1651_v29 = vpop.eup %1650  ;;  %v1547_v13 = vpack.c.bf16 %v1215_v36, %v1214_v15  ;;  %v1185_v33 = vmul.f32 %v1649_v31, %v1094_v21  ;;  %1664 = vpow2.f32 %v1000_v57  ;;  %v1002_v47 = vmul.f32 1.442695, %v955_v63 }
 0x14a   : > { %v1653_v0 = vpop.eup %1652  ;;  %v1220_v53 = vmul.f32 %v1181_v50, %v1971_v26  ;;  %v1183_v52 = vmul.f32 %v1651_v29, %v1093_v40  ;;  %1666 = vpow2.f32 %v998_v43  ;;  %v960_v26 = vsub.f32 0.0, %v928_v54 }
 0x14b   : > { %v1655_v37 = vpop.eup %1654  ;;  %1333 = vst [vmem:[%s2039_s12 + $0x48] sm:$0xff] %v1547_v13  ;;  %v1222_v9 = vmul.f32 %v1185_v33, %v1975_v23  ;;  %v1187_v12 = vmul.f32 %v1653_v0, %v1095_v19  ;;  %v2168_v23 = vadd.f32 %v2084_v39, %v1949_v60  ;;  %v930_v6 = vand.u32 2147483647, %v2164_v14 }
 0x14c   : > { %v1221_v27 = vmul.f32 %v1183_v52, %v1991_v56  ;;  %v1106_v55 = vadd.f32 1.0, %v1655_v37  ;;  %v1657_v59 = vpop.eup %1656  ;;  %v2172_v56 = vadd.f32 %v2092_v46, %v1949_v60  ;;  %vm1048_vm5 = vcmp.ge.f32.partialorder %v2116_v7, 0.0 }
 0x14d   : > { %v1223_v61 = vmul.f32 %v1187_v12, %v1994_v58  ;;  %v1105_v16 = vadd.f32 1.0, %v1657_v59  ;;  %v1012_v58 = vmul.f32 1.442695, %v960_v26  ;;  %v929_v17 = vand.u32 2147483647, %v2168_v23 }
 0x14e   : > { %v1550_v5 = vpack.c.bf16 %v1221_v27, %v1220_v53  ;;  %1668 = vrcp.f32 %v1106_v55  ;;  %v1659_v42 = vpop.eup %1658  ;;  %v931_v38 = vand.u32 2147483647, %v2172_v56  ;;  %v962_v21 = vsub.f32 0.0, %v930_v6 }
 0x14f   : > { %v1551_v15 = vpack.c.bf16 %v1223_v61, %v1222_v9  ;;  %1670 = vpow2.f32 %v1002_v47  ;;  %v1661_v39 = vpop.eup %1660  ;;  %v1107_v4 = vadd.f32 1.0, %v1659_v42  ;;  %v961_v22 = vsub.f32 0.0, %v929_v17 }
 0x150   : > { %1336 = vst [vmem:[%s2039_s12 + $0x60] sm:$0xff] %v1550_v5  ;;  %1672 = vrcp.f32 %v1105_v16  ;;  %v1112_v46 = vadd.f32 1.0, %v1661_v39  ;;  %v963_v24 = vsub.f32 0.0, %v931_v38  ;;  %v1016_v25 = vmul.f32 1.442695, %v962_v21 }
 0x151   : > { %1337 = vst [vmem:[%s2039_s12 + $0x68] sm:$0xff] %v1551_v15  ;;  %1674 = vpow2.f32 %v1012_v58  ;;  %v1014_v57 = vmul.f32 1.442695, %v961_v22  ;;  %v1072_v3 = vsel %vm1040_vm1, 1.0, %v2137_v28  ;;  %v936_v41 = vand.u32 2147483647, %v2185_v32 }
 0x152   : > { %v1663_v60 = vpop.eup %1662  ;;  %1676 = vrcp.f32 %v1107_v4  ;;  %v1018_v36 = vmul.f32 1.442695, %v963_v24  ;;  %v2200_v43 = vadd.f32 %v2099_v49, %v1967_v20  ;;  %v2204_v51 = vadd.f32 %v2101_v62, %v1967_v20 }
 0x153   : > { %v2180_v48 = vpop.eup %1664  ;;  %1678 = vrcp.f32 %v1112_v46  ;;  %v1141_v50 = vmul.f32 %v1663_v60, %v1072_v3  ;;  %v1074_v13 = vsel %vm1042_vm2, 1.0, %v1655_v37  ;;  %vm1050_vm6 = vcmp.ge.f32.partialorder %v2120_v10, 0.0 }
 0x154   : > { %v2187_v8 = vpop.eup %1666  ;;  %v1114_v40 = vadd.f32 1.0, %v2180_v48  ;;  %1680 = vpow2.f32 %v1016_v25  ;;  %v968_v28 = vsub.f32 0.0, %v936_v41  ;;  %v938_v19 = vand.u32 2147483647, %v2200_v43 }
 0x155   : > { %v1113_v30 = vadd.f32 1.0, %v2187_v8  ;;  %v2212_v49 = vadd.f32 %v2108_v1, %v1967_v20  ;;  %v1073_v62 = vsel %vm1041_vm3, 1.0, %v1657_v59  ;;  %v937_v63 = vand.u32 2147483647, %v2204_v51 }
 0x156   : > { %1682 = vrcp.f32 %v1114_v40  ;;  %v1028_v52 = vmul.f32 1.442695, %v968_v28  ;;  %v1200_v9 = vmul.f32 %v1141_v50, %v2034_v44  ;;  %v970_v54 = vsub.f32 0.0, %v938_v19 }
 0x157   : > { %1684 = vrcp.f32 %v1113_v30  ;;  %v1075_v27 = vsel %vm1043_vm4, 1.0, %v1659_v42  ;;  %v969_v1 = vsub.f32 0.0, %v937_v63  ;;  %v1080_v61 = vsel %vm1048_vm5, 1.0, %v1661_v39 }
 0x158   : > { %v1669_v31 = vpop.eup %1668  ;;  %1686 = vpow2.f32 %v1014_v57  ;;  %v1032_v26 = vmul.f32 1.442695, %v970_v54  ;;  %v939_v59 = vand.u32 2147483647, %v2212_v49  ;;  %vm1049_vm7 = vcmp.ge.f32.partialorder %v2124_v11, 0.0 }
 0x159   : > { %v1671_v29 = vpop.eup %1670  ;;  %1688 = vpow2.f32 %v1018_v36  ;;  %v1145_v53 = vmul.f32 %v1669_v31, %v1074_v13  ;;  %v1030_v16 = vmul.f32 1.442695, %v969_v1  ;;  %v1082_v21 = vsel %vm1050_vm6, 1.0, %v2180_v48 }
 0x15a   : > { %v1115_v33 = vadd.f32 1.0, %v1671_v29  ;;  %v1673_v0 = vpop.eup %1672  ;;  %v971_v17 = vsub.f32 0.0, %v939_v59  ;;  %v1081_v60 = vsel %vm1049_vm7, 1.0, %v2187_v8  ;;  %vm1051_vm8 = vcmp.ge.f32.partialorder %v2143_v18, 0.0 }
 0x15b   : > { %v2217_v37 = vpop.eup %1674  ;;  %v1143_v12 = vmul.f32 %v1673_v0, %v1073_v62  ;;  %v1202_v5 = vmul.f32 %v1145_v53, %v2044_v34  ;;  %v1083_v48 = vsel %vm1051_vm8, 1.0, %v1671_v29  ;;  %vm1056_vm9 = vcmp.ge.f32.partialorder %v2149_v45, 0.0 }
 0x15c   : > { %1690 = vrcp.f32 %v1115_v33  ;;  %v1120_v20 = vadd.f32 1.0, %v2217_v37  ;;  %v1677_v55 = vpop.eup %1676  ;;  %v1034_v46 = vmul.f32 1.442695, %v971_v17  ;;  %v1088_v0 = vsel %vm1056_vm9, 1.0, %v2217_v37 }
 0x15d   : > { %1692 = vpow2.f32 %v1028_v52  ;;  %v1201_v47 = vmul.f32 %v1143_v12, %v2074_v35  ;;  %v1679_v44 = vpop.eup %1678  ;;  %v1147_v15 = vmul.f32 %v1677_v55, %v1075_v27  ;;  %vm1058_vm10 = vcmp.ge.f32.partialorder %v2164_v14, 0.0 }
 0x15e   : > { %1694 = vrcp.f32 %v1120_v20  ;;  %v1681_v58 = vpop.eup %1680  ;;  %v1157_v42 = vmul.f32 %v1679_v44, %v1080_v61  ;;  %vm1057_vm11 = vcmp.ge.f32.partialorder %v2168_v23, 0.0  ;;  %vm1059_vm12 = vcmp.ge.f32.partialorder %v2172_v56, 0.0 }
 0x15f   : > { %v1540_v6 = vpack.c.bf16 %v1201_v47, %v1200_v9  ;;  %1696 = vpow2.f32 %v1032_v26  ;;  %v1203_v35 = vmul.f32 %v1147_v15, %v2112_v2  ;;  %v1122_v39 = vadd.f32 1.0, %v1681_v58 }
 0x160   : > { %v1683_v38 = vpop.eup %1682  ;;  %1698 = vpow2.f32 %v1030_v16  ;;  %v1208_v34 = vmul.f32 %v1157_v42, %v2116_v7  ;;  %v1090_v52 = vsel %vm1058_vm10, 1.0, %v1681_v58  ;;  %vm1064_vm13 = vcmp.ge.f32.partialorder %v2185_v32, 0.0 }
 0x161   : > { %v1685_v4 = vpop.eup %1684  ;;  %1326 = vst [vmem:[%s2039_s12 + $0x10] sm:$0xff] %v1540_v6  ;;  %v1541_v24 = vpack.c.bf16 %v1203_v35, %v1202_v5  ;;  %v1161_v25 = vmul.f32 %v1683_v38, %v1082_v21  ;;  %1700 = vrcp.f32 %v1122_v39  ;;  %vm1066_vm14 = vcmp.ge.f32.partialorder %v2200_v43, 0.0 }
 0x162   : > { %v1687_v22 = vpop.eup %1686  ;;  %v1159_v2 = vmul.f32 %v1685_v4, %v1081_v60  ;;  %1702 = vpow2.f32 %v1034_v46  ;;  %vm1065_vm15 = vcmp.ge.f32.partialorder %v2204_v51, 0.0  ;;  %vm1067_vm0 = vcmp.ge.f32.partialorder %v2212_v49, 0.0 }
 0x163   : > { %v1689_v40 = vpop.eup %1688  ;;  %v1121_v57 = vadd.f32 1.0, %v1687_v22  ;;  %1327 = vst [vmem:[%s2039_s12 + $0x18] sm:$0xff] %v1541_v24  ;;  %v1210_v36 = vmul.f32 %v1161_v25, %v2120_v10  ;;  %v1089_v54 = vsel %vm1057_vm11, 1.0, %v1687_v22 }
 0x164   : > { %v1209_v30 = vmul.f32 %v1159_v2, %v2124_v11  ;;  %v1123_v7 = vadd.f32 1.0, %v1689_v40  ;;  %v1091_v1 = vsel %vm1059_vm12, 1.0, %v1689_v40 }
 0x165   : > { %1704 = vrcp.f32 %v1121_v57 }
 0x166   : > { %v1691_v3 = vpop.eup %1690  ;;  %v1544_v41 = vpack.c.bf16 %v1209_v30, %v1208_v34  ;;  %1706 = vrcp.f32 %v1123_v7 }
 0x167   : > { %v1693_v8 = vpop.eup %1692  ;;  %v1163_v31 = vmul.f32 %v1691_v3, %v1083_v48 }
 0x168   : > { %v1128_v50 = vadd.f32 1.0, %v1693_v8  ;;  %v1695_v13 = vpop.eup %1694  ;;  %1330 = vst [vmem:[%s2039_s12 + $0x30] sm:$0xff] %v1544_v41  ;;  %v1096_v44 = vsel %vm1064_vm13, 1.0, %v1693_v8 }
 0x169   : > { %v1211_v28 = vmul.f32 %v1163_v31, %v2143_v18  ;;  %v1697_v33 = vpop.eup %1696  ;;  %v1173_v62 = vmul.f32 %v1695_v13, %v1088_v0 }
 0x16a   : > { %1708 = vrcp.f32 %v1128_v50  ;;  %v1699_v11 = vpop.eup %1698  ;;  %v1130_v29 = vadd.f32 1.0, %v1697_v33  ;;  %v1098_v58 = vsel %vm1066_vm14, 1.0, %v1697_v33 }
 0x16b   : > { %v1545_v19 = vpack.c.bf16 %v1211_v28, %v1210_v36  ;;  %v1129_v10 = vadd.f32 1.0, %v1699_v11  ;;  %v1701_v53 = vpop.eup %1700  ;;  %v1216_v37 = vmul.f32 %v1173_v62, %v2149_v45  ;;  %v1097_v6 = vsel %vm1065_vm15, 1.0, %v1699_v11 }
 0x16c   : > { %1710 = vrcp.f32 %v1130_v29  ;;  %v1703_v63 = vpop.eup %1702  ;;  %v1177_v9 = vmul.f32 %v1701_v53, %v1090_v52 }
 0x16d   : > { %1331 = vst [vmem:[%s2039_s12 + $0x38] sm:$0xff] %v1545_v19  ;;  %1712 = vrcp.f32 %v1129_v10  ;;  %v1131_v18 = vadd.f32 1.0, %v1703_v63  ;;  %v1099_v35 = vsel %vm1067_vm0, 1.0, %v1703_v63 }
 0x16e   : > { %v1218_v55 = vmul.f32 %v1177_v9, %v2164_v14 }
 0x16f   : > { %v1705_v12 = vpop.eup %1704  ;;  %1714 = vrcp.f32 %v1131_v18 }
 0x170   : > { %v1707_v27 = vpop.eup %1706  ;;  %v1175_v20 = vmul.f32 %v1705_v12, %v1089_v54 }
 0x171   : > { %v1179_v47 = vmul.f32 %v1707_v27, %v1091_v1 }
 0x172   : > { %v1217_v61 = vmul.f32 %v1175_v20, %v2168_v23 }
 0x173   : > { %v1219_v59 = vmul.f32 %v1179_v47, %v2172_v56 }
 0x174   : > { %v1709_v26 = vpop.eup %1708  ;;  %v1548_v5 = vpack.c.bf16 %v1217_v61, %v1216_v37 }
 0x175   : > { %v1189_v15 = vmul.f32 %v1709_v26, %v1096_v44  ;;  %v1549_v16 = vpack.c.bf16 %v1219_v59, %v1218_v55 }
 0x176   : > { %v1711_v45 = vpop.eup %1710  ;;  %1334 = vst [vmem:[%s2039_s12 + $0x50] sm:$0xff] %v1548_v5 }
 0x177   : > { %v1713_v14 = vpop.eup %1712  ;;  %1335 = vst [vmem:[%s2039_s12 + $0x58] sm:$0xff] %v1549_v16  ;;  %v1193_v23 = vmul.f32 %v1711_v45, %v1098_v58  ;;  %v1224_v42 = vmul.f32 %v1189_v15, %v2185_v32 }
 0x178   : > { %v1191_v56 = vmul.f32 %v1713_v14, %v1097_v6 }
 0x179   : > { %v1715_v17 = vpop.eup %1714  ;;  %v1226_v39 = vmul.f32 %v1193_v23, %v2200_v43 }
 0x17a   : > { %v1225_v38 = vmul.f32 %v1191_v56, %v2204_v51  ;;  %v1195_v4 = vmul.f32 %v1715_v17, %v1099_v35 }
 0x17c   : > { %v1552_v34 = vpack.c.bf16 %v1225_v38, %v1224_v42  ;;  %v1227_v21 = vmul.f32 %v1195_v4, %v2212_v49 }
 0x17e   : > { %1338 = vst [vmem:[%s2039_s12 + $0x70] sm:$0xff] %v1552_v34  ;;  %v1553_v60 = vpack.c.bf16 %v1227_v21, %v1226_v39 }
 0x180   : > { %1339 = vst [vmem:[%s2039_s12 + $0x78] sm:$0xff] %v1553_v60 }
 0x181 PF: > { %s13_s14 = sadd.s32 1, %s1738_s14   ;;  %s2277_s12 = smov %s1734_s13 }
 0x182   : > { %p10_p5 = scmp.ge.s32.totalorder %s13_s14, 4   ;;  %s2278_s13 = smov %s2280_s15 }
 0x184   :  { %12 = sbr.rel (!%p10_p5) target bundleno = 2 (0x2), region = 62 }

// kernel: adaptive_1dlut_net_forward.9
= control target key start
LH: loop header
LB: loop body
LE: loop exit
PB: predicated region body
PF: predicated region fallthrough
CT: control target
= control target key end

     0   :  { %s1331_s12 = smov 0   ;;  %s1333_s13 = smov 0   ;;  %s1614_s0 = inlined_call_operand.vmem [shape: bf16[2,288,256], index: 0, kind: input, shape index: {}]   ;;  %s1615_s1 = inlined_call_operand.vmem [shape: bf16[64,288], index: 1, kind: input, shape index: {}]   ;;  %s1616_s2 = inlined_call_operand.vmem [shape: f32[64,1], index: 2, kind: input, shape index: {}]   ;;  %s1617_s3 = inlined_call_operand.vmem [shape: bf16[2,64,256], index: 3, kind: output, shape index: {}]  }
   0x1   :  { %s1335_s14 = smov 0  }
   0x2 LB: > { %s25_s15 = sadd.s32 1, %s1304_s13  ;;  %p1017_p0 = scmp.ge.s32.totalorder %s1308_s14, 1  ;;  %s1308_s14 = sphi %s1335_s14, %s13_s14   ;;  %s1304_s13 = sphi %s1333_s13, %s1619_s13   ;;  %s1300_s12 = sphi %s1331_s12, %s1618_s12  }
   0x3   : > { %p27_p1 = scmp.ge.s32.totalorder %s25_s15, 2  ;;  %p158_p2 = scmp.lt.s32.totalorder %s1308_s14, 3 }
   0x5   : > { %s1621_s15 = smov (%p27_p1, %s25_s15), 0  ;;  %p159_p3 = pnand %p1017_p0, %p158_p2 }
   0x6   : > { %p191_p4 = scmp.lt.s32.totalorder (!%p159_p3), %s1300_s12, 1  ;;  %v1310_v0 = vmov (!%p159_p3), 0   ;;  %v1208_v1 = vld [vmem:[%s1615_s1 + $0x4] ss:$12 sps:$4 sm:$0xff] (!%p159_p3)   ;;  %v1209_v21 = vld [vmem:[%s1615_s1 + $0x8] ss:$12 sps:$4 sm:$0xff] (!%p159_p3)  }
   0x7   : > { %162 = sbr.rel (%p159_p3) target bundleno = 370 (0x172), region = 32  ;;  %669 = vmatprep.mubr.bf16.mxu0 (!%p159_p3), %v1310_v0  ;;  %1150 = vset.pattern.permute.xlu0 (!%p159_p3), %v1310_v0  ;;  %vm551_vm0 = vcmask (!%p159_p3), 261120   ;;  %v263_v22 = vld [vmem:[%s1616_s2] sm:$0xff] (!%p159_p3)  ;;  %v265_v24 = vld [vmem:[%s1616_s2 + $0x10] sm:$0xff] (!%p159_p3)  ;;  %v264_v26 = vld [vmem:[%s1616_s2 + $0x8] sm:$0xff] (!%p159_p3) }
   0x8   : > { %1151 = vset.pattern.permute.xlu1 (!%p159_p3), %v1310_v0  ;;  %596 = vmatprep.mubr.bf16.mxu1 (!%p159_p3), %v1208_v1  ;;  %v266_v27 = vld [vmem:[%s1616_s2 + $0x18] sm:$0xff] (!%p159_p3)  ;;  %v267_v30 = vld [vmem:[%s1616_s2 + $0x20] sm:$0xff] (!%p159_p3)  ;;  %v268_v32 = vld [vmem:[%s1616_s2 + $0x28] sm:$0xff] (!%p159_p3) }
   0x9   : > { %273 = vperm.xlu0 (!%p159_p3), %1150, %v263_v22   ;;  %283 = vperm.xlu1 (!%p159_p3), %1151, %v265_v24   ;;  %v1212_v31 = vld [vmem:[%s1615_s1 + $0x20] ss:$12 sps:$4 sm:$0xff] (!%p159_p3)   ;;  %v269_v35 = vld [vmem:[%s1616_s2 + $0x30] sm:$0xff] (!%p159_p3)  ;;  %v270_v36 = vld [vmem:[%s1616_s2 + $0x38] sm:$0xff] (!%p159_p3) }
   0xa   : > { %v1216_v39 = vld [vmem:[%s1615_s1 + $0x38] ss:$12 sps:$4 sm:$0xff] (!%p159_p3)   ;;  %v1220_v44 = vld [vmem:[%s1615_s1 + $0x50] ss:$12 sps:$4 sm:$0xff] (!%p159_p3)   ;;  %v1206_v50 = vld [vmem:[%s1615_s1] ss:$12 sps:$4 sm:$0xff] (!%p159_p3)  }
   0xb   : > { %v1210_v51 = vld [vmem:[%s1615_s1 + $0x1c] ss:$12 sps:$4 sm:$0xff] (!%p159_p3)   ;;  %v1213_v52 = vld [vmem:[%s1615_s1 + $0x18] ss:$12 sps:$4 sm:$0xff] (!%p159_p3)   ;;  %v1214_v53 = vld [vmem:[%s1615_s1 + $0x34] ss:$12 sps:$4 sm:$0xff] (!%p159_p3)  }
   0xc   : > { %v1217_v54 = vld [vmem:[%s1615_s1 + $0x30] ss:$12 sps:$4 sm:$0xff] (!%p159_p3)   ;;  %v1218_v55 = vld [vmem:[%s1615_s1 + $0x4c] ss:$12 sps:$4 sm:$0xff] (!%p159_p3)   ;;  %v1221_v56 = vld [vmem:[%s1615_s1 + $0x48] ss:$12 sps:$4 sm:$0xff] (!%p159_p3)  }
   0xd   : > { %278 = vperm.xlu0 (!%p159_p3), %1150, %v264_v26   ;;  %288 = vperm.xlu1 (!%p159_p3), %1151, %v266_v27  }
   0xe   : > { %s1623_s12 = smov (!%p191_p4, %s1300_s12), 1 }
   0xf   : > { %s1124_s18 = smul.u32 288, %s1623_s12  ;;  %s1083_s10 = sshll.u32 %s1623_s12, 6 }
  0x10   : > { %s1564_s12 = scalar_lea.vmem %s1617_s3, %s1083_s10 }
  0x11   : > { %s1361_s21 = scalar_lea.vmem %s1614_s0, %s1124_s18  ;;  %293 = vperm.xlu0 %1150, %v267_v30   ;;  %298 = vperm.xlu1 %1151, %v268_v32  }
  0x12   : > { %v1152_v2 = vld [vmem:[%s1361_s21 + $0x4] ss:$8 sps:$4 sm:$0xff]   ;;  %v1154_v3 = vld [vmem:[%s1361_s21] ss:$8 sps:$4 sm:$0xff]   ;;  %v1155_v4 = vld [vmem:[%s1361_s21 + $0x14] ss:$8 sps:$4 sm:$0xff]  }
  0x13   : > { %564 = vmatprep.subr.bf16.mxu1 %v1152_v2  ;;  %v1157_v5 = vld [vmem:[%s1361_s21 + $0x10] ss:$8 sps:$4 sm:$0xff]   ;;  %v1158_v6 = vld [vmem:[%s1361_s21 + $0x24] ss:$8 sps:$4 sm:$0xff]   ;;  %v1160_v7 = vld [vmem:[%s1361_s21 + $0x20] ss:$8 sps:$4 sm:$0xff]  }
  0x14   : > { %565 = vmatpush1.bf16.msra.mxu1 %v1154_v3  ;;  %v1161_v8 = vld [vmem:[%s1361_s21 + $0x34] ss:$8 sps:$4 sm:$0xff]   ;;  %v1163_v9 = vld [vmem:[%s1361_s21 + $0x30] ss:$8 sps:$4 sm:$0xff]   ;;  %v1164_v10 = vld [vmem:[%s1361_s21 + $0x44] ss:$8 sps:$4 sm:$0xff]  }
  0x15   : > { %566 = vmatprep.subr.bf16.mxu1 %v1155_v4  ;;  %v1166_v11 = vld [vmem:[%s1361_s21 + $0x40] ss:$8 sps:$4 sm:$0xff]   ;;  %v1167_v12 = vld [vmem:[%s1361_s21 + $0x54] ss:$8 sps:$4 sm:$0xff]   ;;  %v1169_v13 = vld [vmem:[%s1361_s21 + $0x50] ss:$8 sps:$4 sm:$0xff]   ;;  %303 = vperm.xlu0 %1150, %v269_v35  }
  0x16   : > { %v1194_v14 = vld [vmem:[%s1361_s21 + $0x104] ss:$8 sps:$4 sm:$0xff]   ;;  %v1198_v16 = vld [vmem:[%s1361_s21 + $0x100] ss:$8 sps:$4 sm:$0xff]   ;;  %v1200_v17 = vld [vmem:[%s1361_s21 + $0x114] ss:$8 sps:$4 sm:$0xff]   ;;  %308 = vperm.xlu1 %1151, %v270_v36  }
  0x17   : > { %v1170_v15 = vld [vmem:[%s1361_s21 + $0x64] ss:$8 sps:$4 sm:$0xff]   ;;  %637 = vmatprep.subr.bf16.mxu0 %v1194_v14  ;;  %v1172_v18 = vld [vmem:[%s1361_s21 + $0x60] ss:$8 sps:$4 sm:$0xff]   ;;  %v1204_v19 = vld [vmem:[%s1361_s21 + $0x110] ss:$8 sps:$4 sm:$0xff]  }
  0x18   : > { %567 = vmatpush1.bf16.msra.mxu1 %v1157_v5  ;;  %638 = vmatpush1.bf16.msra.mxu0 %v1198_v16  ;;  %v1173_v20 = vld [vmem:[%s1361_s21 + $0x74] ss:$8 sps:$4 sm:$0xff]   ;;  %v1175_v23 = vld [vmem:[%s1361_s21 + $0x70] ss:$8 sps:$4 sm:$0xff]   ;;  %v1176_v25 = vld [vmem:[%s1361_s21 + $0x84] ss:$8 sps:$4 sm:$0xff]  }
  0x19   : > { %568 = vmatprep.subr.bf16.mxu1 %v1158_v6  ;;  %639 = vmatprep.subr.bf16.mxu0 %v1200_v17  ;;  %v1178_v28 = vld [vmem:[%s1361_s21 + $0x80] ss:$8 sps:$4 sm:$0xff]   ;;  %v1179_v29 = vld [vmem:[%s1361_s21 + $0x94] ss:$8 sps:$4 sm:$0xff]   ;;  %v1181_v33 = vld [vmem:[%s1361_s21 + $0x90] ss:$8 sps:$4 sm:$0xff]  }
  0x1a   : > { %v1182_v34 = vld [vmem:[%s1361_s21 + $0xa4] ss:$8 sps:$4 sm:$0xff]   ;;  %v1184_v37 = vld [vmem:[%s1361_s21 + $0xa0] ss:$8 sps:$4 sm:$0xff]   ;;  %v1185_v38 = vld [vmem:[%s1361_s21 + $0xb4] ss:$8 sps:$4 sm:$0xff]  }
  0x1b   : > { %v1187_v40 = vld [vmem:[%s1361_s21 + $0xb0] ss:$8 sps:$4 sm:$0xff]   ;;  %v1188_v41 = vld [vmem:[%s1361_s21 + $0xc4] ss:$8 sps:$4 sm:$0xff]   ;;  %v1190_v42 = vld [vmem:[%s1361_s21 + $0xc0] ss:$8 sps:$4 sm:$0xff]  }
  0x1c   : > { %569 = vmatpush1.bf16.msra.mxu1 %v1160_v7  ;;  %640 = vmatpush1.bf16.msra.mxu0 %v1204_v19  ;;  %v1191_v43 = vld [vmem:[%s1361_s21 + $0xd4] ss:$8 sps:$4 sm:$0xff]   ;;  %v1193_v45 = vld [vmem:[%s1361_s21 + $0xd0] ss:$8 sps:$4 sm:$0xff]   ;;  %v1196_v46 = vld [vmem:[%s1361_s21 + $0xe4] ss:$8 sps:$4 sm:$0xff]  }
  0x1d   : > { %570 = vmatprep.subr.bf16.mxu1 %v1161_v8  ;;  %v1199_v47 = vld [vmem:[%s1361_s21 + $0xe0] ss:$8 sps:$4 sm:$0xff]   ;;  %v1202_v48 = vld [vmem:[%s1361_s21 + $0xf4] ss:$8 sps:$4 sm:$0xff]   ;;  %v1205_v49 = vld [vmem:[%s1361_s21 + $0xf0] ss:$8 sps:$4 sm:$0xff]  }
  0x1f   : > { %1069 = vmatmul.mubr.msk.bf16.vlgmr.msra.gmra.mrb[0].mxu0 %vm551_vm0, %v1209_v21 }
  0x20   : > { %571 = vmatpush1.bf16.msra.mxu1 %v1163_v9  ;;  %679 = vmatprep.mubr.bf16.mxu0 %v1310_v0 }
  0x21   : > { %572 = vmatprep.subr.bf16.mxu1 %v1164_v10 }
  0x24   : > { %573 = vmatpush1.bf16.msra.mxu1 %v1166_v11 }
  0x25   : > { %574 = vmatprep.subr.bf16.mxu1 %v1167_v12 }
  0x27   : > { %1070 = vmatmul.mubr.msk.bf16.gmra.mrb[4].mxu0 %vm551_vm0, %v1212_v31 }
  0x28   : > { %575 = vmatpush1.bf16.msra.mxu1 %v1169_v13  ;;  %689 = vmatprep.mubr.bf16.mxu0 %v1310_v0 }
  0x29   : > { %576 = vmatprep.subr.bf16.mxu1 %v1170_v15 }
  0x2c   : > { %577 = vmatpush1.bf16.msra.mxu1 %v1172_v18 }
  0x2d   : > { %578 = vmatprep.subr.bf16.mxu1 %v1173_v20 }
  0x2f   : > { %1071 = vmatmul.mubr.msk.bf16.gmra.mrb[8].mxu0 %vm551_vm0, %v1216_v39 }
  0x30   : > { %579 = vmatpush1.bf16.msra.mxu1 %v1175_v23  ;;  %699 = vmatprep.mubr.bf16.mxu0 %v1310_v0 }
  0x31   : > { %580 = vmatprep.subr.bf16.mxu1 %v1176_v25 }
  0x34   : > { %581 = vmatpush1.bf16.msra.mxu1 %v1178_v28 }
  0x35   : > { %582 = vmatprep.subr.bf16.mxu1 %v1179_v29 }
  0x37   : > { %1072 = vmatmul.mubr.msk.bf16.gmra.mrb[12].mxu0 %vm551_vm0, %v1220_v44 }
  0x38   : > { %583 = vmatpush1.bf16.msra.mxu1 %v1181_v33 }
  0x39   : > { %584 = vmatprep.subr.bf16.mxu1 %v1182_v34 }
  0x3c   : > { %585 = vmatpush1.bf16.msra.mxu1 %v1184_v37 }
  0x3d   : > { %586 = vmatprep.subr.bf16.mxu1 %v1185_v38 }
  0x40   : > { %587 = vmatpush1.bf16.msra.mxu1 %v1187_v40 }
  0x41   : > { %588 = vmatprep.subr.bf16.mxu1 %v1188_v41 }
  0x44   : > { %589 = vmatpush1.bf16.msra.mxu1 %v1190_v42 }
  0x45   : > { %590 = vmatprep.subr.bf16.mxu1 %v1191_v43 }
  0x48   : > { %591 = vmatpush1.bf16.msra.mxu1 %v1193_v45 }
  0x49   : > { %592 = vmatprep.subr.bf16.mxu1 %v1196_v46 }
  0x4c   : > { %593 = vmatpush1.bf16.msra.mxu1 %v1199_v47 }
  0x4d   : > { %594 = vmatprep.subr.bf16.mxu1 %v1202_v48 }
  0x50   : > { %595 = vmatpush1.bf16.msra.mxu1 %v1205_v49 }
  0x53   : > { %597 = vmatmul.mubr.bf16.vlgmr.msra.gmra.mrb[0].mxu1 %v1206_v50 }
  0x54   : > { %606 = vmatprep.mubr.bf16.mxu1 %v1210_v51 }
  0x5b   : > { %607 = vmatmul.mubr.bf16.gmra.mrb[4].mxu1 %v1213_v52 }
  0x5c   : > { %616 = vmatprep.mubr.bf16.mxu1 %v1214_v53 }
  0x63   : > { %617 = vmatmul.mubr.bf16.gmra.mrb[8].mxu1 %v1217_v54 }
  0x64   : > { %626 = vmatprep.mubr.bf16.mxu1 %v1218_v55 }
  0x6b   : > { %627 = vmatmul.mubr.bf16.gmra.mrb[12].mxu1 %v1221_v56 }
  0x88   : > { %v274_v9 = vpop.permute.xlu0 %273  ;;  %v284_v20 = vpop.permute.xlu1 %283 }
  0x8c   : > { %v279_v11 = vpop.permute.xlu0 %278  ;;  %v289_v37 = vpop.permute.xlu1 %288 }
  0x90   : > { %v294_v54 = vpop.permute.xlu0 %293 }
  0xf2   : > { %v671_v57 = vpop.f32.mrb[0].mxu0 }
  0xf3   : > { %v673_v58 = vpop.f32.mrb[1].mxu0 }
  0xf4   : > { %v675_v59 = vpop.f32.mrb[2].mxu0 }
  0xf5   : > { %v677_v60 = vpop.f32.mrb[3].mxu0 }
  0xfa   : > { %v681_v61 = vpop.f32.mrb[4].mxu0 }
  0xfb   : > { %v683_v62 = vpop.f32.mrb[5].mxu0 }
  0xfc   : > { %v685_v63 = vpop.f32.mrb[6].mxu0 }
  0xfd   : > { %v687_v0 = vpop.f32.mrb[7].mxu0 }
 0x102   : > { %v1463_v1 = vpop.f32.mrb[8].mxu0 }
 0x103   : > { %v1465_v2 = vpop.f32.mrb[9].mxu0 }
 0x104   : > { %v1467_v3 = vpop.f32.mrb[10].mxu0 }
 0x105   : > { %v1469_v4 = vpop.f32.mrb[11].mxu0 }
 0x10a   : > { %v1471_v5 = vpop.f32.mrb[12].mxu0 }
 0x10b   : > { %v1473_v6 = vpop.f32.mrb[13].mxu0 }
 0x10c   : > { %v1475_v7 = vpop.f32.mrb[14].mxu0 }
 0x10d   : > { %v1477_v8 = vpop.f32.mrb[15].mxu0 }
 0x126   : > { %v598_v10 = vpop.f32.mrb[0].mxu1 }
 0x127   : > { %v599_v12 = vadd.f32 %v598_v10, %v274_v9  ;;  %v600_v13 = vpop.f32.mrb[1].mxu1 }
 0x128   : > { %v601_v14 = vadd.f32 %v600_v13, %v274_v9  ;;  %v602_v15 = vpop.f32.mrb[2].mxu1 }
 0x129   : > { %v1479_v16 = vadd.f32 %v671_v57, %v599_v12  ;;  %v603_v17 = vadd.f32 %v602_v15, %v279_v11  ;;  %v604_v18 = vpop.f32.mrb[3].mxu1 }
 0x12a   : > { %v1481_v19 = vadd.f32 %v673_v58, %v601_v14  ;;  %v605_v21 = vadd.f32 %v604_v18, %v279_v11 }
 0x12b   : > { %v710_v22 = vand.u32 2147483647, %v1479_v16  ;;  %v1484_v23 = vadd.f32 %v675_v59, %v603_v17  ;;  %vm774_vm1 = vcmp.ge.f32.partialorder %v1479_v16, 0.0 }
 0x12c   : > { %v711_v24 = vand.u32 2147483647, %v1481_v19  ;;  %v1487_v25 = vadd.f32 %v677_v60, %v605_v21  ;;  %vm775_vm2 = vcmp.ge.f32.partialorder %v1481_v19, 0.0 }
 0x12d   : > { %v726_v26 = vsub.f32 0.0, %v710_v22  ;;  %v712_v27 = vand.u32 2147483647, %v1484_v23  ;;  %vm776_vm3 = vcmp.ge.f32.partialorder %v1484_v23, 0.0 }
 0x12e   : > { %v727_v28 = vsub.f32 0.0, %v711_v24  ;;  %v713_v29 = vand.u32 2147483647, %v1487_v25  ;;  %v608_v30 = vpop.f32.mrb[4].mxu1  ;;  %vm777_vm4 = vcmp.ge.f32.partialorder %v1487_v25, 0.0 }
 0x12f   : > { %v742_v31 = vmul.f32 1.442695, %v726_v26  ;;  %v728_v32 = vsub.f32 0.0, %v712_v27  ;;  %v609_v33 = vadd.f32 %v608_v30, %v284_v20  ;;  %v610_v34 = vpop.f32.mrb[5].mxu1 }
 0x130   : > { %v744_v35 = vmul.f32 1.442695, %v727_v28  ;;  %v729_v36 = vsub.f32 0.0, %v713_v29  ;;  %v611_v38 = vadd.f32 %v610_v34, %v284_v20  ;;  %v612_v39 = vpop.f32.mrb[6].mxu1 }
 0x131   : > { %1222 = vpow2.f32 %v742_v31  ;;  %v746_v40 = vmul.f32 1.442695, %v728_v32  ;;  %v1491_v41 = vadd.f32 %v681_v61, %v609_v33  ;;  %v613_v42 = vadd.f32 %v612_v39, %v289_v37  ;;  %v614_v43 = vpop.f32.mrb[7].mxu1 }
 0x132   : > { %1224 = vpow2.f32 %v744_v35  ;;  %v748_v44 = vmul.f32 1.442695, %v729_v36  ;;  %v1493_v45 = vadd.f32 %v683_v62, %v611_v38  ;;  %v615_v46 = vadd.f32 %v614_v43, %v289_v37  ;;  %v299_v62 = vpop.permute.xlu1 %298 }
 0x133   : > { %1226 = vpow2.f32 %v746_v40  ;;  %v714_v47 = vand.u32 2147483647, %v1491_v41  ;;  %v1496_v48 = vadd.f32 %v685_v63, %v613_v42  ;;  %vm778_vm5 = vcmp.ge.f32.partialorder %v1491_v41, 0.0 }
 0x134   : > { %1228 = vpow2.f32 %v748_v44  ;;  %v715_v49 = vand.u32 2147483647, %v1493_v45  ;;  %v1499_v50 = vadd.f32 %v687_v0, %v615_v46  ;;  %vm779_vm6 = vcmp.ge.f32.partialorder %v1493_v45, 0.0 }
 0x135   : > { %v730_v51 = vsub.f32 0.0, %v714_v47  ;;  %v716_v52 = vand.u32 2147483647, %v1496_v48  ;;  %vm780_vm7 = vcmp.ge.f32.partialorder %v1496_v48, 0.0 }
 0x136   : > { %v731_v53 = vsub.f32 0.0, %v715_v49  ;;  %v717_v55 = vand.u32 2147483647, %v1499_v50  ;;  %v618_v56 = vpop.f32.mrb[8].mxu1  ;;  %v309_v46 = vpop.permute.xlu1 %308  ;;  %vm781_vm8 = vcmp.ge.f32.partialorder %v1499_v50, 0.0 }
 0x137   : > { %v750_v57 = vmul.f32 1.442695, %v730_v51  ;;  %v732_v58 = vsub.f32 0.0, %v716_v52  ;;  %v619_v59 = vadd.f32 %v618_v56, %v294_v54  ;;  %v620_v60 = vpop.f32.mrb[9].mxu1 }
 0x138   : > { %v752_v61 = vmul.f32 1.442695, %v731_v53  ;;  %v733_v63 = vsub.f32 0.0, %v717_v55  ;;  %v621_v9 = vadd.f32 %v620_v60, %v294_v54  ;;  %v622_v10 = vpop.f32.mrb[10].mxu1 }
 0x139   : > { %1230 = vpow2.f32 %v750_v57  ;;  %v754_v0 = vmul.f32 1.442695, %v732_v58  ;;  %v1504_v11 = vadd.f32 %v1463_v1, %v619_v59  ;;  %v623_v12 = vadd.f32 %v622_v10, %v299_v62  ;;  %v624_v13 = vpop.f32.mrb[11].mxu1 }
 0x13a   : > { %1232 = vpow2.f32 %v752_v61  ;;  %v756_v14 = vmul.f32 1.442695, %v733_v63  ;;  %v1507_v15 = vadd.f32 %v1465_v2, %v621_v9  ;;  %v625_v28 = vadd.f32 %v624_v13, %v299_v62 }
 0x13b   : > { %v1223_v17 = vpop.eup %1222  ;;  %1234 = vpow2.f32 %v754_v0  ;;  %v718_v18 = vand.u32 2147483647, %v1504_v11  ;;  %v1511_v20 = vadd.f32 %v1467_v3, %v623_v12  ;;  %v304_v3 = vpop.permute.xlu0 %303  ;;  %vm782_vm9 = vcmp.ge.f32.partialorder %v1504_v11, 0.0 }
 0x13c   : > { %v1225_v21 = vpop.eup %1224  ;;  %v806_v22 = vadd.f32 1.0, %v1223_v17  ;;  %1236 = vpow2.f32 %v756_v14  ;;  %v719_v1 = vand.u32 2147483647, %v1507_v15  ;;  %v1517_v38 = vadd.f32 %v1469_v4, %v625_v28 }
 0x13d   : > { %v1227_v24 = vpop.eup %1226  ;;  %v807_v26 = vadd.f32 1.0, %v1225_v21  ;;  %v734_v27 = vsub.f32 0.0, %v718_v18  ;;  %v720_v36 = vand.u32 2147483647, %v1511_v20  ;;  %v790_v51 = vsel %vm774_vm1, 1.0, %v1223_v17 }
 0x13e   : > { %v1229_v29 = vpop.eup %1228  ;;  %1238 = vrcp.f32 %v806_v22  ;;  %v808_v2 = vadd.f32 1.0, %v1227_v24  ;;  %v735_v30 = vsub.f32 0.0, %v719_v1  ;;  %v628_v31 = vpop.f32.mrb[12].mxu1  ;;  %v721_v47 = vand.u32 2147483647, %v1517_v38 }
 0x13f   : > { %1240 = vrcp.f32 %v807_v26  ;;  %v809_v32 = vadd.f32 1.0, %v1229_v29  ;;  %v758_v33 = vmul.f32 1.442695, %v734_v27  ;;  %v630_v34 = vpop.f32.mrb[13].mxu1  ;;  %v629_v39 = vadd.f32 %v628_v31, %v304_v3 }
 0x140   : > { %1242 = vrcp.f32 %v808_v2  ;;  %v760_v35 = vmul.f32 1.442695, %v735_v30  ;;  %v632_v37 = vpop.f32.mrb[14].mxu1  ;;  %v631_v40 = vadd.f32 %v630_v34, %v304_v3  ;;  %v736_v43 = vsub.f32 0.0, %v720_v36 }
 0x141   : > { %1244 = vrcp.f32 %v809_v32  ;;  %v634_v42 = vpop.f32.mrb[15].mxu1  ;;  %v1526_v4 = vadd.f32 %v1471_v5, %v629_v39  ;;  %v633_v54 = vadd.f32 %v632_v37, %v309_v46  ;;  %v737_v57 = vsub.f32 0.0, %v721_v47 }
 0x142   : > { %1246 = vpow2.f32 %v758_v33  ;;  %v1534_v53 = vadd.f32 %v1473_v6, %v631_v40  ;;  %v635_v5 = vadd.f32 %v634_v42, %v309_v46  ;;  %v791_v60 = vsel %vm775_vm2, 1.0, %v1225_v21 }
 0x143   : > { %v1521_v44 = vpop.eup %1230  ;;  %1248 = vpow2.f32 %v760_v35  ;;  %v722_v58 = vand.u32 2147483647, %v1526_v4  ;;  %v762_v62 = vmul.f32 1.442695, %v736_v43  ;;  %v792_v6 = vsel %vm776_vm3, 1.0, %v1227_v24 }
 0x144   : > { %v1528_v49 = vpop.eup %1232  ;;  %v810_v52 = vadd.f32 1.0, %v1521_v44  ;;  %v764_v9 = vmul.f32 1.442695, %v737_v57  ;;  %v793_v0 = vsel %vm777_vm4, 1.0, %v1229_v29  ;;  %v723_v13 = vand.u32 2147483647, %v1534_v53 }
 0x145   : > { %v1536_v55 = vpop.eup %1234  ;;  %v811_v56 = vadd.f32 1.0, %v1528_v49  ;;  %v738_v12 = vsub.f32 0.0, %v722_v58  ;;  %v1552_v18 = vadd.f32 %v1475_v7, %v633_v54  ;;  %v1555_v21 = vadd.f32 %v1477_v8, %v635_v5 }
 0x146   : > { %v1540_v59 = vpop.eup %1236  ;;  %1250 = vrcp.f32 %v810_v52  ;;  %v812_v61 = vadd.f32 1.0, %v1536_v55  ;;  %v739_v26 = vsub.f32 0.0, %v723_v13  ;;  %v795_v43 = vsel %vm779_vm6, 1.0, %v1528_v49 }
 0x147   : > { %1252 = vrcp.f32 %v811_v56  ;;  %v813_v63 = vadd.f32 1.0, %v1540_v59  ;;  %v766_v24 = vmul.f32 1.442695, %v738_v12  ;;  %v724_v2 = vand.u32 2147483647, %v1552_v18 }
 0x148   : > { %v1239_v10 = vpop.eup %1238  ;;  %1254 = vrcp.f32 %v812_v61  ;;  %v725_v37 = vand.u32 2147483647, %v1555_v21  ;;  %v796_v52 = vsel %vm780_vm7, 1.0, %v1536_v55  ;;  %v797_v57 = vsel %vm781_vm8, 1.0, %v1540_v59 }
 0x149   : > { %v1241_v14 = vpop.eup %1240  ;;  %v823_v17 = vmul.f32 %v1239_v10, %v790_v51  ;;  %1256 = vrcp.f32 %v813_v63  ;;  %v740_v34 = vsub.f32 0.0, %v724_v2  ;;  %vm783_vm10 = vcmp.ge.f32.partialorder %v1507_v15, 0.0 }
 0x14a   : > { %v1243_v22 = vpop.eup %1242  ;;  %v825_v1 = vmul.f32 %v1241_v14, %v791_v60  ;;  %1258 = vpow2.f32 %v762_v62  ;;  %v741_v46 = vsub.f32 0.0, %v725_v37  ;;  %vm784_vm11 = vcmp.ge.f32.partialorder %v1511_v20, 0.0 }
 0x14b   : > { %v1245_v27 = vpop.eup %1244  ;;  %v854_v28 = vmul.f32 %v823_v17, %v1479_v16  ;;  %v827_v29 = vmul.f32 %v1243_v22, %v792_v6  ;;  %1260 = vpow2.f32 %v764_v9  ;;  %v768_v16 = vmul.f32 1.442695, %v739_v26 }
 0x14c   : > { %v1247_v30 = vpop.eup %1246  ;;  %v855_v7 = vmul.f32 %v825_v1, %v1481_v19  ;;  %v829_v31 = vmul.f32 %v1245_v27, %v793_v0  ;;  %1262 = vpow2.f32 %v766_v24  ;;  %v770_v36 = vmul.f32 1.442695, %v740_v34 }
 0x14d   : > { %v1249_v8 = vpop.eup %1248  ;;  %v856_v32 = vmul.f32 %v827_v29, %v1484_v23  ;;  %v814_v33 = vadd.f32 1.0, %v1247_v30  ;;  %v794_v23 = vsel %vm778_vm5, 1.0, %v1521_v44  ;;  %v772_v58 = vmul.f32 1.442695, %v741_v46 }
 0x14e   : > { %v1084_v3 = vpack.c.bf16 %v855_v7, %v854_v28  ;;  %v857_v35 = vmul.f32 %v829_v31, %v1487_v25  ;;  %v815_v19 = vadd.f32 1.0, %v1249_v8  ;;  %v798_v0 = vsel %vm782_vm9, 1.0, %v1247_v30 }
 0x14f   : > { %1264 = vrcp.f32 %v814_v33  ;;  %v799_v13 = vsel %vm783_vm10, 1.0, %v1249_v8  ;;  %vm785_vm12 = vcmp.ge.f32.partialorder %v1517_v38, 0.0  ;;  %vm786_vm13 = vcmp.ge.f32.partialorder %v1526_v4, 0.0 }
 0x150   : > { %v1251_v39 = vpop.eup %1250  ;;  %918 = vst [vmem:[%s1564_s12] sm:$0xff] %v1084_v3  ;;  %v1085_v40 = vpack.c.bf16 %v857_v35, %v856_v32  ;;  %1266 = vrcp.f32 %v815_v19  ;;  %vm787_vm14 = vcmp.ge.f32.partialorder %v1534_v53, 0.0  ;;  %vm788_vm15 = vcmp.ge.f32.partialorder %v1552_v18, 0.0 }
 0x151   : > { %v1253_v42 = vpop.eup %1252  ;;  %v831_v25 = vmul.f32 %v1251_v39, %v794_v23  ;;  %1268 = vpow2.f32 %v768_v16  ;;  %vm789_vm0 = vcmp.ge.f32.partialorder %v1555_v21, 0.0 }
 0x152   : > { %v1255_v47 = vpop.eup %1254  ;;  %919 = vst [vmem:[%s1564_s12 + $0x8] sm:$0xff] %v1085_v40  ;;  %v833_v51 = vmul.f32 %v1253_v42, %v795_v43  ;;  %1270 = vpow2.f32 %v770_v36 }
 0x153   : > { %v1257_v54 = vpop.eup %1256  ;;  %v858_v44 = vmul.f32 %v831_v25, %v1491_v41  ;;  %v835_v56 = vmul.f32 %v1255_v47, %v796_v52  ;;  %1272 = vpow2.f32 %v772_v58 }
 0x154   : > { %v1259_v5 = vpop.eup %1258  ;;  %v859_v49 = vmul.f32 %v833_v51, %v1493_v45  ;;  %v837_v60 = vmul.f32 %v1257_v54, %v797_v57 }
 0x155   : > { %v1261_v61 = vpop.eup %1260  ;;  %v860_v62 = vmul.f32 %v835_v56, %v1496_v48  ;;  %v816_v6 = vadd.f32 1.0, %v1259_v5  ;;  %v800_v30 = vsel %vm784_vm11, 1.0, %v1259_v5 }
 0x156   : > { %v1263_v55 = vpop.eup %1262  ;;  %v1086_v63 = vpack.c.bf16 %v859_v49, %v858_v44  ;;  %v861_v9 = vmul.f32 %v837_v60, %v1499_v50  ;;  %v817_v41 = vadd.f32 1.0, %v1261_v61 }
 0x157   : > { %1274 = vrcp.f32 %v816_v6  ;;  %v818_v10 = vadd.f32 1.0, %v1263_v55  ;;  %v802_v33 = vsel %vm786_vm13, 1.0, %v1263_v55 }
 0x158   : > { %920 = vst [vmem:[%s1564_s12 + $0x10] sm:$0xff] %v1086_v63  ;;  %v1087_v59 = vpack.c.bf16 %v861_v9, %v860_v62  ;;  %1276 = vrcp.f32 %v817_v41 }
 0x159   : > { %v1265_v45 = vpop.eup %1264  ;;  %1278 = vrcp.f32 %v818_v10 }
 0x15a   : > { %v1267_v48 = vpop.eup %1266  ;;  %921 = vst [vmem:[%s1564_s12 + $0x18] sm:$0xff] %v1087_v59  ;;  %v839_v12 = vmul.f32 %v1265_v45, %v798_v0 }
 0x15b   : > { %v1269_v14 = vpop.eup %1268  ;;  %v841_v50 = vmul.f32 %v1267_v48, %v799_v13 }
 0x15c   : > { %v1271_v17 = vpop.eup %1270  ;;  %v862_v22 = vmul.f32 %v839_v12, %v1504_v11  ;;  %v819_v1 = vadd.f32 1.0, %v1269_v14  ;;  %v801_v11 = vsel %vm785_vm12, 1.0, %v1261_v61  ;;  %v803_v19 = vsel %vm787_vm14, 1.0, %v1269_v14 }
 0x15d   : > { %v863_v24 = vmul.f32 %v841_v50, %v1507_v15  ;;  %v820_v26 = vadd.f32 1.0, %v1271_v17  ;;  %v1273_v27 = vpop.eup %1272  ;;  %v804_v40 = vsel %vm788_vm15, 1.0, %v1271_v17 }
 0x15e   : > { %1280 = vrcp.f32 %v819_v1  ;;  %v821_v29 = vadd.f32 1.0, %v1273_v27  ;;  %v805_v42 = vsel %vm789_vm0, 1.0, %v1273_v27 }
 0x15f   : > { %v1088_v28 = vpack.c.bf16 %v863_v24, %v862_v22  ;;  %1282 = vrcp.f32 %v820_v26 }
 0x160   : > { %1284 = vrcp.f32 %v821_v29 }
 0x161   : > { %v1275_v2 = vpop.eup %1274  ;;  %922 = vst [vmem:[%s1564_s12 + $0x20] sm:$0xff] %v1088_v28 }
 0x162   : > { %v1277_v7 = vpop.eup %1276  ;;  %v843_v31 = vmul.f32 %v1275_v2, %v800_v30 }
 0x163   : > { %v1279_v8 = vpop.eup %1278  ;;  %v845_v15 = vmul.f32 %v1277_v7, %v801_v11 }
 0x164   : > { %v864_v32 = vmul.f32 %v843_v31, %v1511_v20  ;;  %v847_v34 = vmul.f32 %v1279_v8, %v802_v33 }
 0x165   : > { %v865_v16 = vmul.f32 %v845_v15, %v1517_v38 }
 0x166   : > { %v866_v37 = vmul.f32 %v847_v34, %v1526_v4 }
 0x167   : > { %v1089_v3 = vpack.c.bf16 %v865_v16, %v864_v32 }
 0x168   : > { %v1281_v35 = vpop.eup %1280 }
 0x169   : > { %v1283_v36 = vpop.eup %1282  ;;  %923 = vst [vmem:[%s1564_s12 + $0x28] sm:$0xff] %v1089_v3  ;;  %v849_v39 = vmul.f32 %v1281_v35, %v803_v19 }
 0x16a   : > { %v851_v20 = vmul.f32 %v1283_v36, %v804_v40  ;;  %v1285_v38 = vpop.eup %1284 }
 0x16b   : > { %v867_v23 = vmul.f32 %v849_v39, %v1534_v53  ;;  %v853_v46 = vmul.f32 %v1285_v38, %v805_v42 }
 0x16c   : > { %v868_v43 = vmul.f32 %v851_v20, %v1552_v18 }
 0x16d   : > { %v1090_v25 = vpack.c.bf16 %v867_v23, %v866_v37  ;;  %v869_v47 = vmul.f32 %v853_v46, %v1555_v21 }
 0x16f   : > { %924 = vst [vmem:[%s1564_s12 + $0x30] sm:$0xff] %v1090_v25  ;;  %v1091_v51 = vpack.c.bf16 %v869_v47, %v868_v43 }
 0x171   : > { %925 = vst [vmem:[%s1564_s12 + $0x38] sm:$0xff] %v1091_v51 }
 0x172 PF: > { %s13_s14 = sadd.s32 1, %s1308_s14   ;;  %s1618_s12 = smov %s1304_s13 }
 0x173   : > { %p10_p5 = scmp.ge.s32.totalorder %s13_s14, 4   ;;  %s1619_s13 = smov %s1621_s15 }
 0x175   :  { %12 = sbr.rel (!%p10_p5) target bundleno = 2 (0x2), region = 62 }

// kernel: adaptive_1dlut_net_forward.10
= control target key start
LH: loop header
LB: loop body
LE: loop exit
PB: predicated region body
PF: predicated region fallthrough
CT: control target
= control target key end

     0   :  { %s1565_s18 = smov 0   ;;  %s1698_s0 = inlined_call_operand.vmem [shape: bf16[2,1080,64], index: 0, kind: input, shape index: {}]   ;;  %s1699_s1 = inlined_call_operand.vmem [shape: bf16[16,1080], index: 1, kind: input, shape index: {}]   ;;  %s1700_s2 = inlined_call_operand.vmem [shape: f32[16,1], index: 2, kind: input, shape index: {}]   ;;  %s1701_s3 = inlined_call_operand.vmem [shape: bf16[12,16], index: 3, kind: input, shape index: {}]   ;;  %s1702_s4 = inlined_call_operand.vmem [shape: f32[12,1], index: 4, kind: input, shape index: {}]   ;;  %s1703_s5 = inlined_call_operand.vmem [shape: f32[2,12,64], index: 5, kind: output, shape index: {}]  }
   0x1 LB: > { %s1208_s19 = sadd.s32 4294967295, %s1530_s18   ;;  %p1212_p0 = scmp.ge.s32.totalorder %s1530_s18, 1  ;;  %s1530_s18 = sphi %s1565_s18, %s15_s18  }
   0x2   : > { %p187_p1 = scmp.lt.s32.totalorder %s1530_s18, 3 }
   0x4   : > { %p188_p2 = pnand %p1212_p0, %p187_p1 }
   0x5   : > { %p215_p3 = scmp.lt.s32.totalorder (!%p188_p2), %s1208_s19, 1  ;;  %v1459_v0 = vld [vmem:[%s1699_s1 + $0x4] ss:$36 sps:$4 sm:$0xff] (!%p188_p2)   ;;  %v1464_v1 = vld [vmem:[%s1699_s1 + $0xc] ss:$36 sps:$4 sm:$0xff] (!%p188_p2)   ;;  %v1532_v2 = vmov (!%p188_p2), 0  }
   0x6   : > { %191 = sbr.rel (%p188_p2) target bundleno = 602 (0x25a), region = 40  ;;  %873 = vmatprep.mubr.bf16.mxu0 (!%p188_p2), %v1459_v0  ;;  %914 = vmatprep.mubr.bf16.mxu1 (!%p188_p2), %v1464_v1  ;;  %v371_v3 = vld [vmem:[%s1700_s2] sm:$0xff] (!%p188_p2)  ;;  %v372_v4 = vld [vmem:[%s1700_s2 + $0x8] sm:$0xff] (!%p188_p2)  ;;  %v1497_v36 = vld [vmem:[%s1699_s1 + $0x14] ss:$36 sps:$4 sm:$0xff] (!%p188_p2)   ;;  %vm1534_vm0 = vmmov (!%p188_p2), 0  }
   0x7   : > { %1424 = vset.pattern.permute.xlu0 (!%p188_p2), %v1532_v2  ;;  %1425 = vset.pattern.permute.xlu1 (!%p188_p2), %v1532_v2  ;;  %v1457_v34 = vld [vmem:[%s1699_s1] ss:$36 sps:$4 sm:$0xff] (!%p188_p2)   ;;  %v1462_v38 = vld [vmem:[%s1699_s1 + $0x8] ss:$36 sps:$4 sm:$0xff] (!%p188_p2)   ;;  %vm837_vm1 = vcmask (!%p188_p2), 1043456   ;;  %vm833_vm2 = vcmask (!%p188_p2), 457728  }
   0x8   : > { %375 = vperm.xlu0 (!%p188_p2), %1424, %v371_v3   ;;  %v1501_v40 = vld [vmem:[%s1699_s1 + $0x1c] ss:$36 sps:$4 sm:$0xff] (!%p188_p2)   ;;  %vm1086_vm5 = vcmask (!%p188_p2), 130048   ;;  %vm1149_vm7 = vcmask (!%p188_p2), 523264   ;;  %vm1151_vm9 = vcmask (!%p188_p2), 519168  }
   0xc   : > { %380 = vperm.xlu0 (!%p188_p2), %1424, %v372_v4  }
   0xd   : > { %s1705_s19 = smov (!%p215_p3, %s1208_s19), 1 }
   0xe   : > { %s1412_s24 = smul.u32 540, %s1705_s19  ;;  %s1298_s29 = sshll.u32 %s1705_s19, 4 }
   0xf   : > { %s224_s7 = scalar_lea.vmem %s1703_s5, %s1298_s29 }
  0x10   : > { %s1585_s27 = scalar_lea.vmem %s1698_s0, %s1412_s24 }
  0x11   : > { %v1426_v5 = vld [vmem:[%s1585_s27 + $0x40] sm:$0xff]   ;;  %v1430_v9 = vld [vmem:[%s1585_s27 + $0x48] sm:$0xff]   ;;  %v1434_v13 = vld [vmem:[%s1585_s27 + $0x50] sm:$0xff]  }
  0x12   : > { %v1427_v6 = vld [vmem:[%s1585_s27] sm:$0xff]   ;;  %1299 = vmatprep.subr.bf16.mxu0 %v1426_v5  ;;  %v1431_v10 = vld [vmem:[%s1585_s27 + $0x8] sm:$0xff]   ;;  %v1435_v14 = vld [vmem:[%s1585_s27 + $0x10] sm:$0xff]  }
  0x13   : > { %v1428_v7 = vld [vmem:[%s1585_s27 + $0xc0] sm:$0xff]   ;;  %1300 = vmatpush3.bf16.msra.mxu0 %v1427_v6  ;;  %v1432_v11 = vld [vmem:[%s1585_s27 + $0xc8] sm:$0xff]   ;;  %v1436_v15 = vld [vmem:[%s1585_s27 + $0xd0] sm:$0xff]  }
  0x14   : > { %v1429_v8 = vld [vmem:[%s1585_s27 + $0x80] sm:$0xff]   ;;  %1321 = vmatprep.subr.bf16.mxu1 %v1428_v7  ;;  %1301 = vmatprep.subr.bf16.mxu0 %v1430_v9  ;;  %v1433_v12 = vld [vmem:[%s1585_s27 + $0x88] sm:$0xff]   ;;  %v1437_v16 = vld [vmem:[%s1585_s27 + $0x90] sm:$0xff]  }
  0x15   : > { %1322 = vmatpush3.bf16.msra.mxu1 %v1429_v8  ;;  %v1438_v17 = vld [vmem:[%s1585_s27 + $0x58] sm:$0xff]   ;;  %v1442_v21 = vld [vmem:[%s1585_s27 + $0x60] sm:$0xff]   ;;  %v1446_v25 = vld [vmem:[%s1585_s27 + $0x68] sm:$0xff]  }
  0x16   : > { %1323 = vmatprep.subr.bf16.mxu1 %v1432_v11  ;;  %v1439_v18 = vld [vmem:[%s1585_s27 + $0x18] sm:$0xff]   ;;  %v1443_v22 = vld [vmem:[%s1585_s27 + $0x20] sm:$0xff]   ;;  %v1447_v26 = vld [vmem:[%s1585_s27 + $0x28] sm:$0xff]   ;;  %v1533_v11 = vmov 0.0  }
  0x17   : > { %1302 = vmatpush3.bf16.msra.mxu0 %v1431_v10  ;;  %v1440_v19 = vld [vmem:[%s1585_s27 + $0xd8] sm:$0xff]   ;;  %v1444_v23 = vld [vmem:[%s1585_s27 + $0xe0] sm:$0xff]   ;;  %v1448_v27 = vld [vmem:[%s1585_s27 + $0xe8] sm:$0xff]  }
  0x18   : > { %1303 = vmatprep.subr.bf16.mxu0 %v1434_v13  ;;  %v1441_v20 = vld [vmem:[%s1585_s27 + $0x98] sm:$0xff]   ;;  %v1445_v24 = vld [vmem:[%s1585_s27 + $0xa0] sm:$0xff]   ;;  %v1449_v28 = vld [vmem:[%s1585_s27 + $0xa8] sm:$0xff]  }
  0x19   : > { %1324 = vmatpush3.bf16.msra.mxu1 %v1433_v12  ;;  %v1450_v29 = vld [vmem:[%s1585_s27 + $0x70] sm:$0xff]   ;;  %v1454_v33 = vld [vmem:[%s1585_s27 + $0x78] sm:$0xff]   ;;  %v1461_v41 = vld [vmem:[%s1585_s27 + $0x140] sm:$0xff]  }
  0x1a   : > { %1325 = vmatprep.subr.bf16.mxu1 %v1436_v15  ;;  %v1451_v30 = vld [vmem:[%s1585_s27 + $0x30] sm:$0xff]   ;;  %v1455_v35 = vld [vmem:[%s1585_s27 + $0x38] sm:$0xff]   ;;  %v1465_v42 = vld [vmem:[%s1585_s27 + $0x100] sm:$0xff]  }
  0x1b   : > { %1304 = vmatpush3.bf16.msra.mxu0 %v1435_v14  ;;  %v1452_v31 = vld [vmem:[%s1585_s27 + $0xf0] sm:$0xff]   ;;  %v1456_v37 = vld [vmem:[%s1585_s27 + $0xf8] sm:$0xff]   ;;  %v1466_v43 = vld [vmem:[%s1585_s27 + $0x1c0] sm:$0xff]  }
  0x1c   : > { %1305 = vmatprep.subr.bf16.mxu0 %v1438_v17  ;;  %v1453_v32 = vld [vmem:[%s1585_s27 + $0xb0] sm:$0xff]   ;;  %v1460_v39 = vld [vmem:[%s1585_s27 + $0xb8] sm:$0xff]   ;;  %v1467_v44 = vld [vmem:[%s1585_s27 + $0x180] sm:$0xff]  }
  0x1d   : > { %1326 = vmatpush3.bf16.msra.mxu1 %v1437_v16  ;;  %v1468_v45 = vld [vmem:[%s1585_s27 + $0x148] sm:$0xff]   ;;  %v1472_v49 = vld [vmem:[%s1585_s27 + $0x150] sm:$0xff]   ;;  %v1476_v53 = vld [vmem:[%s1585_s27 + $0x158] sm:$0xff]  }
  0x1e   : > { %1327 = vmatprep.subr.bf16.mxu1 %v1440_v19  ;;  %v1469_v46 = vld [vmem:[%s1585_s27 + $0x108] sm:$0xff]   ;;  %v1473_v50 = vld [vmem:[%s1585_s27 + $0x110] sm:$0xff]   ;;  %v1477_v54 = vld [vmem:[%s1585_s27 + $0x118] sm:$0xff]  }
  0x1f   : > { %1306 = vmatpush3.bf16.msra.mxu0 %v1439_v18  ;;  %v1470_v47 = vld [vmem:[%s1585_s27 + $0x1c8] sm:$0xff]   ;;  %v1474_v51 = vld [vmem:[%s1585_s27 + $0x1d0] sm:$0xff]   ;;  %v1478_v55 = vld [vmem:[%s1585_s27 + $0x1d8] sm:$0xff]  }
  0x20   : > { %1307 = vmatprep.subr.bf16.mxu0 %v1442_v21  ;;  %v1471_v48 = vld [vmem:[%s1585_s27 + $0x188] sm:$0xff]   ;;  %v1475_v52 = vld [vmem:[%s1585_s27 + $0x190] sm:$0xff]   ;;  %v1479_v56 = vld [vmem:[%s1585_s27 + $0x198] sm:$0xff]  }
  0x21   : > { %1328 = vmatpush3.bf16.msra.mxu1 %v1441_v20  ;;  %v1480_v57 = vld [vmem:[%s1585_s27 + $0x160] sm:$0xff]   ;;  %v1484_v61 = vld [vmem:[%s1585_s27 + $0x168] sm:$0xff]   ;;  %v1488_v1 = vld [vmem:[%s1585_s27 + $0x170] sm:$0xff]  }
  0x22   : > { %1329 = vmatprep.subr.bf16.mxu1 %v1444_v23  ;;  %v1481_v58 = vld [vmem:[%s1585_s27 + $0x120] sm:$0xff]   ;;  %v1485_v62 = vld [vmem:[%s1585_s27 + $0x128] sm:$0xff]   ;;  %v1489_v2 = vld [vmem:[%s1585_s27 + $0x130] sm:$0xff]  }
  0x23   : > { %1308 = vmatpush3.bf16.msra.mxu0 %v1443_v22  ;;  %v1482_v59 = vld [vmem:[%s1585_s27 + $0x1e0] sm:$0xff]   ;;  %v1486_v63 = vld [vmem:[%s1585_s27 + $0x1e8] sm:$0xff]   ;;  %v1490_v3 = vld [vmem:[%s1585_s27 + $0x1f0] sm:$0xff]  }
  0x24   : > { %1309 = vmatprep.subr.bf16.mxu0 %v1446_v25  ;;  %v1483_v60 = vld [vmem:[%s1585_s27 + $0x1a0] sm:$0xff]   ;;  %v1487_v0 = vld [vmem:[%s1585_s27 + $0x1a8] sm:$0xff]   ;;  %v1491_v4 = vld [vmem:[%s1585_s27 + $0x1b0] sm:$0xff]  }
  0x25   : > { %1330 = vmatpush3.bf16.msra.mxu1 %v1445_v24  ;;  %v1492_v5 = vld [vmem:[%s1585_s27 + $0x178] sm:$0xff]   ;;  %v1495_v6 = vld [vmem:[%s1699_s1 + $0x10] ss:$36 sps:$4 sm:$0xff]   ;;  %v1502_v12 = vld [vmem:[%s1585_s27 + $0x200] sm:$0xff]  }
  0x26   : > { %1331 = vmatprep.subr.bf16.mxu1 %v1448_v27  ;;  %v1493_v7 = vld [vmem:[%s1585_s27 + $0x138] sm:$0xff]   ;;  %v1503_v13 = vld [vmem:[%s1585_s27 + $0x208] sm:$0xff]   ;;  %v1504_v14 = vld [vmem:[%s1585_s27 + $0x210] sm:$0xff]  }
  0x27   : > { %1310 = vmatpush3.bf16.msra.mxu0 %v1447_v26  ;;  %v1494_v8 = vld [vmem:[%s1585_s27 + $0x1f8] sm:$0xff]   ;;  %v1506_v17 = vld [vmem:[%s1699_s1 + $0x20] ss:$36 sps:$4 sm:$0xff]   ;;  %v1070_v19 = vld [vmem:[%s1702_s4 + $0x8] sm:$0xf] }
  0x28   : > { %1311 = vmatprep.subr.bf16.mxu0 %v1450_v29  ;;  %v1499_v9 = vld [vmem:[%s1699_s1 + $0x18] ss:$36 sps:$4 sm:$0xff]   ;;  %v1069_v18 = vld [vmem:[%s1702_s4] sm:$0xff] }
  0x29   : > { %1332 = vmatpush3.bf16.msra.mxu1 %v1449_v28  ;;  %v1498_v10 = vld [vmem:[%s1585_s27 + $0x1b8] sm:$0xff]   ;;  %1073 = vperm.xlu1 %1425, %v1069_v18  }
  0x2a   : > { %1333 = vmatprep.subr.bf16.mxu1 %v1452_v31  ;;  %v1505_v15 = vld [vmem:[%s1585_s27 + $0x218] ss:$0 sps:$4 sm:$0xff]  }
  0x2b   : > { %1312 = vmatpush3.bf16.msra.mxu0 %v1451_v30  ;;  %v839_v16 = vsel %vm837_vm1, %v1505_v15, 0  ;;  %v1507_v15 = vld [vmem:[%s1701_s3] sm:$0x3f]  }
  0x2c   : > { %1313 = vmatprep.subr.bf16.mxu0 %v1454_v33 }
  0x2d   : > { %1334 = vmatpush3.bf16.msra.mxu1 %v1453_v32  ;;  %1078 = vperm.xlu1 %1425, %v1070_v19  }
  0x2e   : > { %1335 = vmatprep.subr.bf16.mxu1 %v1456_v37 }
  0x2f   : > { %1314 = vmatpush3.bf16.msra.mxu0 %v1455_v35 }
  0x30   : > { %1343 = vmatprep.subr.bf16.mxu0 %v1461_v41 }
  0x31   : > { %1336 = vmatpush3.bf16.msra.mxu1 %v1460_v39 }
  0x32   : > { %874 = vmatmul.mubr.bf16.vlgmr.msra.gmra.mrb[0].mxu0 %v1457_v34  ;;  %1365 = vmatprep.subr.bf16.mxu1 %v1466_v43 }
  0x33   : > { %1344 = vmatpush3.bf16.msra.mxu0 %v1465_v42  ;;  %955 = vmatprep.mubr.bf16.mxu0 %v1497_v36 }
  0x34   : > { %915 = vmatmul.mubr.bf16.vlgmr.msra.gmra.mrb[0].mxu1 %v1462_v38  ;;  %1345 = vmatprep.subr.bf16.mxu0 %v1468_v45 }
  0x35   : > { %1366 = vmatpush3.bf16.msra.mxu1 %v1467_v44  ;;  %996 = vmatprep.mubr.bf16.mxu1 %v1501_v40 }
  0x36   : > { %1367 = vmatprep.subr.bf16.mxu1 %v1470_v47 }
  0x37   : > { %1346 = vmatpush3.bf16.msra.mxu0 %v1469_v46 }
  0x38   : > { %1347 = vmatprep.subr.bf16.mxu0 %v1472_v49 }
  0x39   : > { %1368 = vmatpush3.bf16.msra.mxu1 %v1471_v48 }
  0x3a   : > { %1369 = vmatprep.subr.bf16.mxu1 %v1474_v51 }
  0x3b   : > { %1348 = vmatpush3.bf16.msra.mxu0 %v1473_v50 }
  0x3c   : > { %1349 = vmatprep.subr.bf16.mxu0 %v1476_v53 }
  0x3d   : > { %1370 = vmatpush3.bf16.msra.mxu1 %v1475_v52 }
  0x3e   : > { %1371 = vmatprep.subr.bf16.mxu1 %v1478_v55 }
  0x3f   : > { %1350 = vmatpush3.bf16.msra.mxu0 %v1477_v54 }
  0x40   : > { %1351 = vmatprep.subr.bf16.mxu0 %v1480_v57 }
  0x41   : > { %1372 = vmatpush3.bf16.msra.mxu1 %v1479_v56 }
  0x42   : > { %1373 = vmatprep.subr.bf16.mxu1 %v1482_v59 }
  0x43   : > { %1352 = vmatpush3.bf16.msra.mxu0 %v1481_v58 }
  0x44   : > { %1353 = vmatprep.subr.bf16.mxu0 %v1484_v61 }
  0x45   : > { %1374 = vmatpush3.bf16.msra.mxu1 %v1483_v60 }
  0x46   : > { %1375 = vmatprep.subr.bf16.mxu1 %v1486_v63 }
  0x47   : > { %1354 = vmatpush3.bf16.msra.mxu0 %v1485_v62 }
  0x48   : > { %1355 = vmatprep.subr.bf16.mxu0 %v1488_v1 }
  0x49   : > { %1376 = vmatpush3.bf16.msra.mxu1 %v1487_v0 }
  0x4a   : > { %1377 = vmatprep.subr.bf16.mxu1 %v1490_v3 }
  0x4b   : > { %1356 = vmatpush3.bf16.msra.mxu0 %v1489_v2 }
  0x4c   : > { %1357 = vmatprep.subr.bf16.mxu0 %v1492_v5 }
  0x4d   : > { %1378 = vmatpush3.bf16.msra.mxu1 %v1491_v4 }
  0x4e   : > { %1379 = vmatprep.subr.bf16.mxu1 %v1494_v8 }
  0x4f   : > { %1358 = vmatpush3.bf16.msra.mxu0 %v1493_v7 }
  0x50   : > { %1394 = vmatprep.subr.bf16.mxu0 %v1533_v11 }
  0x51   : > { %1380 = vmatpush3.bf16.msra.mxu1 %v1498_v10 }
  0x52   : > { %956 = vmatmul.mubr.bf16.vlgmr.msra.gmra.mrb[4].mxu0 %v1495_v6  ;;  %1406 = vmatprep.subr.bf16.mxu1 %v1533_v11 }
  0x53   : > { %1395 = vmatpush3.bf16.msra.mxu0 %v1502_v12  ;;  %1402 = vmatprep.mubr.msk.bf16.mxu0 %vm1534_vm0, %v1533_v11 }
  0x54   : > { %997 = vmatmul.mubr.bf16.vlgmr.msra.gmra.mrb[4].mxu1 %v1499_v9  ;;  %1396 = vmatprep.subr.bf16.mxu0 %v1533_v11 }
  0x55   : > { %1408 = vmatprep.mubr.msk.bf16.mxu1 %vm1534_vm0, %v1533_v11 }
  0x57   : > { %1397 = vmatpush3.bf16.msra.mxu0 %v1503_v13 }
  0x58   : > { %1398 = vmatprep.subr.bf16.mxu0 %v1533_v11 }
  0x5b   : > { %1399 = vmatpush3.bf16.msra.mxu0 %v1504_v14 }
  0x5c   : > { %1400 = vmatprep.subr.bf16.mxu0 %v1533_v11 }
  0x5f   : > { %1401 = vmatpush3.bf16.msra.mxu0 %v839_v16 }
  0x62   : > { %1403 = vmatmul.mubr.msk.bf16.vlgmr.msra.gmra.mrb[8].mxu0 %vm833_vm2, %v1506_v17 }
  0x87   : > { %v376_v20 = vpop.permute.xlu0 %375 }
  0x8b   : > { %v381_v23 = vpop.permute.xlu0 %380 }
  0xa8   : > { %v1074_v16 = vpop.permute.xlu1 %1073 }
 0x105   : > { %v1315_v21 = vpop.f32.mrb[0].mxu0 }
 0x106   : > { %v1316_v22 = vpop.f32.mrb[1].mxu0 }
 0x107   : > { %v1317_v24 = vadd.f32 %v1316_v22, %v1315_v21  ;;  %v1318_v25 = vpop.f32.mrb[2].mxu0  ;;  %v1337_v26 = vpop.f32.mrb[0].mxu1 }
 0x108   : > { %v1319_v27 = vpop.f32.mrb[3].mxu0  ;;  %v1338_v28 = vpop.f32.mrb[1].mxu1 }
 0x109   : > { %v876_v29 = vadd.f32 %v1317_v24, %v376_v20  ;;  %v1320_v30 = vadd.f32 %v1319_v27, %v1318_v25  ;;  %v1339_v31 = vadd.f32 %v1338_v28, %v1337_v26  ;;  %v1340_v32 = vpop.f32.mrb[2].mxu1  ;;  %v1079_v20 = vpop.permute.xlu1 %1078 }
 0x10a   : > { %v1341_v33 = vpop.f32.mrb[3].mxu1 }
 0x10b   : > { %v917_v34 = vadd.f32 %v1339_v31, %v876_v29  ;;  %v879_v35 = vadd.f32 %v1320_v30, %v381_v23  ;;  %v1342_v36 = vadd.f32 %v1341_v33, %v1340_v32 }
 0x10d   : > { %v920_v37 = vadd.f32 %v1342_v36, %v879_v35 }
 0x125   : > { %v1359_v38 = vpop.f32.mrb[4].mxu0 }
 0x126   : > { %v1360_v39 = vpop.f32.mrb[5].mxu0 }
 0x127   : > { %v1361_v40 = vadd.f32 %v1360_v39, %v1359_v38  ;;  %v1362_v41 = vpop.f32.mrb[6].mxu0  ;;  %v1381_v42 = vpop.f32.mrb[4].mxu1 }
 0x128   : > { %v1363_v43 = vpop.f32.mrb[7].mxu0  ;;  %v1382_v44 = vpop.f32.mrb[5].mxu1 }
 0x129   : > { %v958_v45 = vadd.f32 %v1361_v40, %v917_v34  ;;  %v1364_v46 = vadd.f32 %v1363_v43, %v1362_v41  ;;  %v1383_v47 = vadd.f32 %v1382_v44, %v1381_v42  ;;  %v1384_v48 = vpop.f32.mrb[6].mxu1 }
 0x12a   : > { %v1385_v49 = vpop.f32.mrb[7].mxu1 }
 0x12b   : > { %v961_v50 = vadd.f32 %v1364_v46, %v920_v37  ;;  %v1386_v51 = vadd.f32 %v1385_v49, %v1384_v48  ;;  %v999_v52 = vadd.f32 %v1383_v47, %v958_v45 }
 0x12d   : > { %v1002_v53 = vadd.f32 %v1386_v51, %v961_v50 }
 0x135   : > { %v1039_v54 = vpop.f32.mrb[8].mxu0 }
 0x136   : > { %v1040_v55 = vadd.f32 %v1039_v54, %v999_v52  ;;  %v1404_v56 = vpop.f32.mrb[9].mxu0 }
 0x137   : > { %v1042_v57 = vpop.f32.mrb[10].mxu0 }
 0x138   : > { %v1046_v58 = vand.u32 2147483647, %v1040_v55  ;;  %v1043_v59 = vadd.f32 %v1042_v57, %v1002_v53  ;;  %v1405_v60 = vpop.f32.mrb[11].mxu0  ;;  %vm1054_vm3 = vcmp.ge.f32.partialorder %v1040_v55, 0.0 }
 0x13a   : > { %v1048_v61 = vsub.f32 0.0, %v1046_v58  ;;  %v1047_v62 = vand.u32 2147483647, %v1043_v59  ;;  %vm1055_vm4 = vcmp.ge.f32.partialorder %v1043_v59, 0.0 }
 0x13c   : > { %v1050_v63 = vmul.f32 1.442695, %v1048_v61  ;;  %v1049_v0 = vsub.f32 0.0, %v1047_v62 }
 0x13e   : > { %1508 = vpow2.f32 %v1050_v63  ;;  %v1052_v1 = vmul.f32 1.442695, %v1049_v0 }
 0x140   : > { %1510 = vpow2.f32 %v1052_v1 }
 0x148   : > { %v1509_v2 = vpop.eup %1508 }
 0x149   : > { %v1058_v3 = vadd.f32 1.0, %v1509_v2  ;;  %v1056_v7 = vsel %vm1054_vm3, 1.0, %v1509_v2 }
 0x14a   : > { %v1511_v4 = vpop.eup %1510 }
 0x14b   : > { %1512 = vrcp.f32 %v1058_v3  ;;  %v1059_v5 = vadd.f32 1.0, %v1511_v4  ;;  %v1057_v10 = vsel %vm1055_vm4, 1.0, %v1511_v4 }
 0x14d   : > { %1514 = vrcp.f32 %v1059_v5 }
 0x155   : > { %v1513_v6 = vpop.eup %1512 }
 0x156   : > { %v1061_v8 = vmul.f32 %v1513_v6, %v1056_v7 }
 0x157   : > { %v1515_v9 = vpop.eup %1514 }
 0x158   : > { %v1063_v11 = vmul.f32 %v1515_v9, %v1057_v10  ;;  %v1064_v12 = vmul.f32 %v1061_v8, %v1040_v55 }
 0x15a   : > { %v1065_v13 = vmul.f32 %v1063_v11, %v1043_v59 }
 0x15c   : > { %v1068_v14 = vpack.c.bf16 %v1065_v13, %v1064_v12 }
 0x15e   : > { %1407 = vmatpush3.bf16.msra.mxu1 %v1068_v14 }
 0x161   : > { %1409 = vmatmul.mubr.msk.bf16.vlgmr.msra.gmra.mrb[8].mxu1 %vm1086_vm5, %v1507_v15 }
 0x234   : > { %v1124_v17 = vpop.f32.mrb[8].mxu1 }
 0x235   : > { %v1125_v18 = vadd.f32 %v1124_v17, %v1074_v16  ;;  %v1410_v19 = vpop.f32.mrb[9].mxu1 }
 0x236   : > { %v1127_v21 = vpop.f32.mrb[10].mxu1 }
 0x237   : > { %v1131_v22 = vand.u32 2147483647, %v1125_v18  ;;  %v1128_v23 = vadd.f32 %v1127_v21, %v1079_v20  ;;  %v1411_v24 = vpop.f32.mrb[11].mxu1  ;;  %vm1139_vm6 = vcmp.ge.f32.partialorder %v1125_v18, 0.0 }
 0x239   : > { %v1133_v25 = vsub.f32 0.0, %v1131_v22  ;;  %v1132_v26 = vand.u32 2147483647, %v1128_v23  ;;  %vm1140_vm8 = vcmp.ge.f32.partialorder %v1128_v23, 0.0 }
 0x23b   : > { %v1135_v27 = vmul.f32 1.442695, %v1133_v25  ;;  %v1134_v28 = vsub.f32 0.0, %v1132_v26 }
 0x23d   : > { %1516 = vpow2.f32 %v1135_v27  ;;  %v1137_v29 = vmul.f32 1.442695, %v1134_v28 }
 0x23f   : > { %1518 = vpow2.f32 %v1137_v29 }
 0x247   : > { %v1517_v30 = vpop.eup %1516 }
 0x248   : > { %v1143_v31 = vadd.f32 1.0, %v1517_v30  ;;  %v1141_v35 = vsel %vm1139_vm6, 1.0, %v1517_v30 }
 0x249   : > { %v1519_v32 = vpop.eup %1518 }
 0x24a   : > { %1520 = vrcp.f32 %v1143_v31  ;;  %v1144_v33 = vadd.f32 1.0, %v1519_v32  ;;  %v1142_v38 = vsel %vm1140_vm8, 1.0, %v1519_v32 }
 0x24c   : > { %1522 = vrcp.f32 %v1144_v33 }
 0x254   : > { %v1521_v34 = vpop.eup %1520 }
 0x255   : > { %v1146_v36 = vmul.f32 %v1521_v34, %v1141_v35 }
 0x256   : > { %v1523_v37 = vpop.eup %1522 }
 0x257   : > { %1150 = vst.msk [vmem:[%s224_s7] sm:$0xff] %vm1149_vm7, %v1146_v36  ;;  %v1148_v39 = vmul.f32 %v1523_v37, %v1142_v38 }
 0x259   : > { %1152 = vst.msk [vmem:[%s224_s7 + $0x8] sm:$0xf] %vm1151_vm9, %v1148_v39 }
 0x25a PF: > { %s15_s18 = sadd.s32 1, %s1530_s18  }
 0x25b   : > { %p12_p4 = scmp.ge.s32.totalorder %s15_s18, 4  }
 0x25d   :  { %14 = sbr.rel (!%p12_p4) target bundleno = 1 (0x1), region = 70 }

// kernel: adaptive_1dlut_net_forward.11
= control target key start
LH: loop header
LB: loop body
LE: loop exit
PB: predicated region body
PF: predicated region fallthrough
CT: control target
= control target key end

     0   :  { %s2367_s12 = smov 0   ;;  %s2369_s13 = smov 0   ;;  %s3059_s0 = inlined_call_operand.vmem [shape: f32[2,3,1024], index: 0, kind: input, shape index: {}]   ;;  %s3060_s1 = inlined_call_operand.vmem [shape: bf16[2,12,64], index: 1, kind: input, shape index: {}]   ;;  %s3061_s2 = inlined_call_operand.vmem [shape: bf16[12,48], index: 2, kind: input, shape index: {}]   ;;  %s3062_s3 = inlined_call_operand.vmem [shape: f32[2,3,1024], index: 3, kind: output, shape index: {}]  }
   0x1   :  { %s2371_s14 = smov 0  }
   0x2 LB: > { %s25_s15 = sadd.s32 1, %s2338_s13  ;;  %p2257_p0 = scmp.ge.s32.totalorder %s2342_s14, 1  ;;  %s2342_s14 = sphi %s2371_s14, %s13_s14   ;;  %s2338_s13 = sphi %s2369_s13, %s3064_s13   ;;  %s2334_s12 = sphi %s2367_s12, %s3063_s12  }
   0x3   : > { %p27_p1 = scmp.ge.s32.totalorder %s25_s15, 2  ;;  %p168_p2 = scmp.lt.s32.totalorder %s2342_s14, 3 }
   0x5   : > { %s3066_s15 = smov (%p27_p1, %s25_s15), 0  ;;  %p169_p3 = pnand %p2257_p0, %p168_p2 }
   0x6   : > { %v237_v0 = vlaneseq (!%p169_p3)  ;;  %p206_p4 = scmp.lt.s32.totalorder (!%p169_p3), %s2334_s12, 1  ;;  %v2344_v1 = vmov (!%p169_p3), 0   ;;  %v2345_v4 = vmov (!%p169_p3), 1966171168   ;;  %v2346_v53 = vmov (!%p169_p3), 0.0  }
   0x7   : > { %172 = sbr.rel (%p169_p3) target bundleno = 454 (0x1c6), region = 32  ;;  %1045 = vmatprep.mubr.bf16.mxu0 (!%p169_p3), %v2344_v1  ;;  %1088 = vmatprep.mubr.bf16.mxu1 (!%p169_p3), %v2344_v1  ;;  %v2391_v5 = vunpack.c.l.s4 (!%p169_p3), %v2345_v4 }
   0x8   : > { %v238_v2 = vand.u32 (!%p169_p3), 127, %v237_v0  ;;  %v2389_v3 = vshrl.u32 (!%p169_p3), %v237_v0, 7 }
   0xa   : > { %v239_v6 = vadd.s32 (!%p169_p3), 128, %v238_v2  ;;  %v240_v7 = vadd.s32 (!%p169_p3), 256, %v238_v2  ;;  %v241_v8 = vadd.s32 (!%p169_p3), 384, %v238_v2  ;;  %v242_v9 = vadd.s32 (!%p169_p3), 512, %v238_v2 }
   0xb   : > { %v243_v10 = vadd.s32 (!%p169_p3), 640, %v238_v2  ;;  %v244_v11 = vadd.s32 (!%p169_p3), 768, %v238_v2  ;;  %v245_v12 = vadd.s32 (!%p169_p3), 896, %v238_v2  ;;  %v2394_v13 = vcvt.s32.f32 (!%p169_p3), %v238_v2 }
   0xc   : > { %v2396_v14 = vcvt.s32.f32 (!%p169_p3), %v239_v6  ;;  %v2398_v15 = vcvt.s32.f32 (!%p169_p3), %v240_v7  ;;  %v2400_v16 = vcvt.s32.f32 (!%p169_p3), %v241_v8  ;;  %v2402_v17 = vcvt.s32.f32 (!%p169_p3), %v242_v9 }
   0xd   : > { %v2409_v18 = vcvt.s32.f32 (!%p169_p3), %v243_v10  ;;  %v2411_v19 = vcvt.s32.f32 (!%p169_p3), %v244_v11  ;;  %v2413_v20 = vcvt.s32.f32 (!%p169_p3), %v245_v12  ;;  %v263_v21 = vmul.f32 (!%p169_p3), 0.03125, %v2394_v13 }
   0xe   : > { %s3068_s12 = smov (!%p206_p4, %s2334_s12), 1  ;;  %v264_v22 = vmul.f32 0.03125, %v2396_v14  ;;  %v265_v23 = vmul.f32 0.03125, %v2398_v15  ;;  %v266_v24 = vmul.f32 0.03125, %v2400_v16  ;;  %v267_v25 = vmul.f32 0.03125, %v2402_v17 }
   0xf   : > { %s2289_s16 = sshll.u32 %s3068_s12, 3  ;;  %v268_v26 = vmul.f32 0.03125, %v2409_v18  ;;  %v269_v27 = vmul.f32 0.03125, %v2411_v19  ;;  %v270_v28 = vmul.f32 0.03125, %v2413_v20  ;;  %v271_v29 = vfloor.f32 %v263_v21  ;;  %s2288_s20 = sshll.u32 %s3068_s12, 5 }
  0x10   : > { %s2407_s19 = scalar_lea.vmem %s3060_s1, %s2289_s16  ;;  %v272_v30 = vfloor.f32 %v264_v22  ;;  %v273_v31 = vfloor.f32 %v265_v23  ;;  %v274_v32 = vfloor.f32 %v266_v24  ;;  %v275_v33 = vfloor.f32 %v267_v25  ;;  %s213_s23 = scalar_lea.vmem %s3059_s0, %s2288_s20 }
  0x11   : > { %v276_v34 = vfloor.f32 %v268_v26  ;;  %v277_v35 = vfloor.f32 %v269_v27  ;;  %v278_v36 = vfloor.f32 %v270_v28  ;;  %v279_v37 = vmul.f32 32.0, %v271_v29  ;;  %s3013_s28 = scalar_lea.vmem %s3062_s3, %s2288_s20 }
  0x12   : > { %v280_v38 = vmul.f32 32.0, %v272_v30  ;;  %v281_v39 = vmul.f32 32.0, %v273_v31  ;;  %v282_v40 = vmul.f32 32.0, %v274_v32  ;;  %v283_v41 = vmul.f32 32.0, %v275_v33 }
  0x13   : > { %v284_v42 = vmul.f32 32.0, %v276_v34  ;;  %v285_v43 = vmul.f32 32.0, %v277_v35  ;;  %v286_v44 = vmul.f32 32.0, %v278_v36  ;;  %v287_v45 = vsub.f32 %v2394_v13, %v279_v37 }
  0x14   : > { %v288_v46 = vsub.f32 %v2396_v14, %v280_v38  ;;  %v289_v47 = vsub.f32 %v2398_v15, %v281_v39  ;;  %v290_v48 = vsub.f32 %v2400_v16, %v282_v40  ;;  %v291_v49 = vsub.f32 %v2402_v17, %v283_v41 }
  0x15   : > { %v292_v50 = vsub.f32 %v2409_v18, %v284_v42  ;;  %v293_v51 = vsub.f32 %v2411_v19, %v285_v43  ;;  %v294_v52 = vsub.f32 %v2413_v20, %v286_v44  ;;  %vm295_vm0 = vcmp.ge.f32.partialorder %v287_v45, 32.0 }
  0x16   : > { %vm296_vm1 = vcmp.ge.f32.partialorder %v288_v46, 32.0  ;;  %vm297_vm2 = vcmp.ge.f32.partialorder %v289_v47, 32.0  ;;  %vm298_vm3 = vcmp.ge.f32.partialorder %v290_v48, 32.0  ;;  %vm299_vm4 = vcmp.ge.f32.partialorder %v291_v49, 32.0 }
  0x17   : > { %vm300_vm5 = vcmp.ge.f32.partialorder %v292_v50, 32.0  ;;  %vm301_vm6 = vcmp.ge.f32.partialorder %v293_v51, 32.0  ;;  %vm302_vm7 = vcmp.ge.f32.partialorder %v294_v52, 32.0  ;;  %v303_v54 = vsel %vm295_vm0, 1.0, %v2346_v53 }
  0x18   : > { %v304_v55 = vsel %vm296_vm1, 1.0, %v2346_v53  ;;  %v305_v56 = vsel %vm297_vm2, 1.0, %v2346_v53  ;;  %v306_v57 = vsel %vm298_vm3, 1.0, %v2346_v53  ;;  %v307_v58 = vsel %vm299_vm4, 1.0, %v2346_v53 }
  0x19   : > { %v308_v59 = vsel %vm300_vm5, 1.0, %v2346_v53  ;;  %v309_v60 = vsel %vm301_vm6, 1.0, %v2346_v53  ;;  %v310_v61 = vsel %vm302_vm7, 1.0, %v2346_v53  ;;  %v311_v62 = vadd.f32 %v303_v54, %v271_v29 }
  0x1a   : > { %v312_v63 = vadd.f32 %v304_v55, %v272_v30  ;;  %v313_v0 = vadd.f32 %v305_v56, %v273_v31  ;;  %v314_v2 = vadd.f32 %v306_v57, %v274_v32  ;;  %v315_v4 = vadd.f32 %v307_v58, %v275_v33 }
  0x1b   : > { %v316_v6 = vadd.f32 %v308_v59, %v276_v34  ;;  %v317_v7 = vadd.f32 %v309_v60, %v277_v35  ;;  %v318_v8 = vadd.f32 %v310_v61, %v278_v36  ;;  %vm319_vm8 = vcmp.lt.f32.partialorder %v287_v45, 0.0 }
  0x1c   : > { %vm320_vm9 = vcmp.lt.f32.partialorder %v288_v46, 0.0  ;;  %vm321_vm10 = vcmp.lt.f32.partialorder %v289_v47, 0.0  ;;  %vm322_vm11 = vcmp.lt.f32.partialorder %v290_v48, 0.0  ;;  %vm323_vm12 = vcmp.lt.f32.partialorder %v291_v49, 0.0 }
  0x1d   : > { %vm324_vm13 = vcmp.lt.f32.partialorder %v292_v50, 0.0  ;;  %vm325_vm14 = vcmp.lt.f32.partialorder %v293_v51, 0.0  ;;  %vm326_vm15 = vcmp.lt.f32.partialorder %v294_v52, 0.0  ;;  %v327_v9 = vsel %vm319_vm8, 1.0, %v2346_v53 }
  0x1e   : > { %v328_v10 = vsel %vm320_vm9, 1.0, %v2346_v53  ;;  %v329_v11 = vsel %vm321_vm10, 1.0, %v2346_v53  ;;  %v330_v12 = vsel %vm322_vm11, 1.0, %v2346_v53  ;;  %v331_v21 = vsel %vm323_vm12, 1.0, %v2346_v53 }
  0x1f   : > { %v332_v22 = vsel %vm324_vm13, 1.0, %v2346_v53  ;;  %v333_v23 = vsel %vm325_vm14, 1.0, %v2346_v53  ;;  %v334_v24 = vsel %vm326_vm15, 1.0, %v2346_v53  ;;  %v2431_v25 = vsub.f32 %v311_v62, %v327_v9 }
  0x20   : > { %v336_v26 = vsub.f32 %v312_v63, %v328_v10  ;;  %v2433_v27 = vsub.f32 %v313_v0, %v329_v11  ;;  %v338_v28 = vsub.f32 %v314_v2, %v330_v12  ;;  %v2435_v29 = vsub.f32 %v315_v4, %v331_v21 }
  0x21   : > { %v2437_v30 = vsub.f32 %v316_v6, %v332_v22  ;;  %v2439_v31 = vsub.f32 %v317_v7, %v333_v23  ;;  %v2441_v32 = vsub.f32 %v318_v8, %v334_v24  ;;  %v359_v33 = vmul.f32 0.22580644, %v2431_v25 }
  0x22   : > { %v344_v34 = vmul.f32 32.0, %v336_v26  ;;  %v360_v35 = vmul.f32 0.22580644, %v336_v26  ;;  %v361_v36 = vmul.f32 0.22580644, %v2433_v27  ;;  %v2446_v37 = vcvt.s32.f32 %v2389_v3 }
  0x23   : > { %v362_v38 = vmul.f32 0.22580644, %v338_v28  ;;  %v363_v39 = vmul.f32 0.22580644, %v2435_v29  ;;  %v364_v40 = vmul.f32 0.22580644, %v2437_v30  ;;  %v460_v41 = vunpack.c.0.s8 %v2391_v5 }
  0x24   : > { %v352_v42 = vsub.f32 %v2396_v14, %v344_v34  ;;  %v365_v43 = vmul.f32 0.22580644, %v2439_v31  ;;  %v366_v44 = vmul.f32 0.22580644, %v2441_v32  ;;  %v378_v45 = vsub.f32 %v359_v33, %v2446_v37 }
  0x25   : > { %v379_v46 = vsub.f32 %v360_v35, %v2446_v37  ;;  %v380_v47 = vsub.f32 %v361_v36, %v2446_v37  ;;  %v381_v48 = vsub.f32 %v362_v38, %v2446_v37  ;;  %v382_v49 = vsub.f32 %v363_v39, %v2446_v37 }
  0x26   : > { %v368_v50 = vmul.f32 0.22580644, %v352_v42  ;;  %v383_v51 = vsub.f32 %v364_v40, %v2446_v37  ;;  %v384_v5 = vsub.f32 %v365_v43, %v2446_v37  ;;  %v385_v14 = vsub.f32 %v366_v44, %v2446_v37 }
  0x27   : > { %v386_v52 = vand.u32 2147483647, %v378_v45  ;;  %v387_v53 = vand.u32 2147483647, %v379_v46  ;;  %v388_v54 = vand.u32 2147483647, %v380_v47  ;;  %v2463_v55 = vsub.s32 %v460_v41, %v2389_v3 }
  0x28   : > { %v389_v56 = vand.u32 2147483647, %v381_v48  ;;  %v390_v57 = vand.u32 2147483647, %v382_v49  ;;  %v391_v58 = vand.u32 2147483647, %v383_v51  ;;  %v411_v59 = vsub.f32 %v368_v50, %v2446_v37 }
  0x29   : > { %v392_v60 = vand.u32 2147483647, %v384_v5  ;;  %v393_v61 = vand.u32 2147483647, %v385_v14  ;;  %v394_v62 = vsub.f32 1.0, %v386_v52  ;;  %v395_v63 = vsub.f32 1.0, %v387_v53 }
  0x2a   : > { %v396_v0 = vsub.f32 1.0, %v388_v54  ;;  %v397_v2 = vsub.f32 1.0, %v389_v56  ;;  %v398_v4 = vsub.f32 1.0, %v390_v57  ;;  %v399_v6 = vsub.f32 1.0, %v391_v58 }
  0x2b   : > { %v400_v7 = vsub.f32 1.0, %v392_v60  ;;  %v401_v8 = vsub.f32 1.0, %v393_v61  ;;  %v2466_v9 = vmax.f32 %v394_v62, 0.0  ;;  %v2468_v10 = vmax.f32 %v395_v63, 0.0 }
  0x2c   : > { %v2470_v11 = vmax.f32 %v396_v0, 0.0  ;;  %v2472_v12 = vmax.f32 %v397_v2, 0.0  ;;  %v2474_v21 = vmax.f32 %v398_v4, 0.0  ;;  %v2476_v22 = vmax.f32 %v399_v6, 0.0 }
  0x2d   : > { %v2478_v23 = vmax.f32 %v400_v7, 0.0  ;;  %v2480_v24 = vmax.f32 %v401_v8, 0.0  ;;  %v419_v26 = vand.u32 2147483647, %v411_v59  ;;  %v450_v33 = vcombine.low %v2466_v9, %v2468_v10 }
  0x2e   : > { %v452_v34 = vcombine.low %v2470_v11, %v2472_v12  ;;  %v454_v35 = vcombine.low %v2474_v21, %v2476_v22  ;;  %v2489_v36 = vsub.s32 1, %v2389_v3  ;;  %v346_v41 = vmul.f32 32.0, %v338_v28 }
  0x2f   : > { %v427_v38 = vsub.f32 1.0, %v419_v26  ;;  %v456_v39 = vcombine.low %v2478_v23, %v2480_v24  ;;  %v464_v40 = vrot.slane %v450_v33, %v2463_v55  ;;  %v2497_v44 = vadd.s32 8, %v2389_v3 }
  0x30   : > { %v478_v42 = vrot.slane %v452_v34, %v2463_v55  ;;  %v492_v43 = vrot.slane %v454_v35, %v2463_v55  ;;  %v2500_v45 = vsub.s32 3, %v2389_v3  ;;  %v354_v48 = vsub.f32 %v2400_v16, %v346_v41 }
  0x31   : > { %v2502_v46 = vmax.f32 %v427_v38, 0.0  ;;  %v506_v47 = vrot.slane %v456_v39, %v2463_v55  ;;  %v343_v49 = vmul.f32 32.0, %v2431_v25  ;;  %v2508_v51 = vsub.s32 0, %v2389_v3 }
  0x32   : > { %v514_v50 = vcombine.low %v464_v40, %v478_v42  ;;  %v515_v28 = vcombine.high %v464_v40, %v478_v42  ;;  %v345_v5 = vmul.f32 32.0, %v2433_v27  ;;  %v370_v53 = vmul.f32 0.22580644, %v354_v48 }
  0x33   : > { %v518_v14 = vcombine.low %v492_v43, %v506_v47  ;;  %v519_v52 = vcombine.high %v492_v43, %v506_v47  ;;  %v351_v54 = vsub.f32 %v2394_v13, %v343_v49  ;;  %v2516_v25 = vsub.s32 2, %v2389_v3 }
  0x34   : > { %v528_v56 = vrot.slane %v514_v50, %v2463_v55  ;;  %v542_v57 = vrot.slane %v515_v28, %v2463_v55  ;;  %v353_v16 = vsub.f32 %v2398_v15, %v345_v5  ;;  %v413_v27 = vsub.f32 %v370_v53, %v2446_v37 }
  0x35   : > { %v556_v58 = vrot.slane %v518_v14, %v2463_v55  ;;  %v570_v59 = vrot.slane %v519_v52, %v2463_v55  ;;  %v367_v60 = vmul.f32 0.22580644, %v351_v54  ;;  %v451_v13 = vcombine.high %v2466_v9, %v2468_v10 }
  0x36   : > { %v369_v61 = vmul.f32 0.22580644, %v353_v16  ;;  %v453_v62 = vcombine.high %v2470_v11, %v2472_v12  ;;  %v455_v15 = vcombine.high %v2474_v21, %v2476_v22  ;;  %v421_v2 = vand.u32 2147483647, %v413_v27 }
  0x37   : > { %v2527_v63 = vcombine.low %v528_v56, %v556_v58  ;;  %v2529_v0 = vcombine.low %v542_v57, %v570_v59  ;;  %v410_v4 = vsub.f32 %v367_v60, %v2446_v37  ;;  %v2533_v7 = vcombine.high %v528_v56, %v556_v58 }
  0x38   : > { %v412_v6 = vsub.f32 %v369_v61, %v2446_v37  ;;  %v2535_v8 = vcombine.high %v542_v57, %v570_v59  ;;  %v457_v26 = vcombine.high %v2478_v23, %v2480_v24  ;;  %v429_v35 = vsub.f32 1.0, %v421_v2 }
  0x39   : > { %v593_v33 = vrot.slane %v2527_v63, %v2489_v36  ;;  %v625_v34 = vrot.slane %v2529_v0, %v2489_v36  ;;  %v601_v38 = vrot.slane %v2527_v63, %v2500_v45  ;;  %v633_v39 = vrot.slane %v2529_v0, %v2500_v45 }
  0x3a   : > { %v418_v40 = vand.u32 2147483647, %v410_v4  ;;  %v589_v41 = vrot.slane %v2527_v63, %v2508_v51  ;;  %v621_v23 = vrot.slane %v2529_v0, %v2508_v51  ;;  %v2553_v43 = vmax.f32 %v429_v35, 0.0 }
  0x3b   : > { %v907_v24 = vmul.f32 %v593_v33, %v2502_v46  ;;  %v915_v42 = vmul.f32 %v625_v34, %v2502_v46  ;;  %v420_v47 = vand.u32 2147483647, %v412_v6  ;;  %v597_v49 = vrot.slane %v2527_v63, %v2516_v25 }
  0x3c   : > { %v426_v48 = vsub.f32 1.0, %v418_v40  ;;  %v629_v50 = vrot.slane %v2529_v0, %v2516_v25  ;;  %v657_v28 = vrot.slane %v2533_v7, %v2489_v36  ;;  %v909_v14 = vmul.f32 %v601_v38, %v2553_v43 }
  0x3d   : > { %v973_v5 = vpack.c.bf16 %v915_v42, %v907_v24  ;;  %v917_v52 = vmul.f32 %v633_v39, %v2553_v43  ;;  %v428_v53 = vsub.f32 1.0, %v420_v47  ;;  %v689_v56 = vrot.slane %v2535_v8, %v2489_v36  ;;  %v231_v24 = vld [vmem:[%s213_s23] sm:$0x77] }
  0x3e   : > { %v2564_v54 = vmax.f32 %v426_v48, 0.0  ;;  %v923_v57 = vmul.f32 %v657_v28, %v2502_v46  ;;  %v665_v16 = vrot.slane %v2533_v7, %v2500_v45  ;;  %v697_v27 = vrot.slane %v2535_v8, %v2500_v45  ;;  %v233_v28 = vld [vmem:[%s213_s23 + $0x10] sm:$0x77] }
  0x3f   : > { %1013 = vmatprep.subr.bf16.mxu0 %v973_v5  ;;  %v975_v58 = vpack.c.bf16 %v917_v52, %v909_v14  ;;  %v2571_v59 = vmax.f32 %v428_v53, 0.0  ;;  %v653_v60 = vrot.slane %v2533_v7, %v2508_v51  ;;  %v931_v4 = vmul.f32 %v689_v56, %v2502_v46  ;;  %v234_v56 = vld [vmem:[%s213_s23 + $0x18] sm:$0x77] }
  0x40   : > { %v906_v61 = vmul.f32 %v589_v41, %v2564_v54  ;;  %v914_v2 = vmul.f32 %v621_v23, %v2564_v54  ;;  %v925_v6 = vmul.f32 %v665_v16, %v2553_v43  ;;  %v933_v35 = vmul.f32 %v697_v27, %v2553_v43 }
  0x41   : > { %1056 = vmatprep.subr.bf16.mxu1 %v975_v58  ;;  %v908_v33 = vmul.f32 %v597_v49, %v2571_v59  ;;  %v916_v34 = vmul.f32 %v629_v50, %v2571_v59  ;;  %v685_v38 = vrot.slane %v2535_v8, %v2508_v51  ;;  %v981_v40 = vpack.c.bf16 %v931_v4, %v923_v57  ;;  %v232_v50 = vld [vmem:[%s213_s23 + $0x8] sm:$0x77] }
  0x42   : > { %v972_v39 = vpack.c.bf16 %v914_v2, %v906_v61  ;;  %v922_v41 = vmul.f32 %v653_v60, %v2564_v54  ;;  %v661_v23 = vrot.slane %v2533_v7, %v2516_v25  ;;  %v983_v47 = vpack.c.bf16 %v933_v35, %v925_v6 }
  0x43   : > { %v974_v42 = vpack.c.bf16 %v916_v34, %v908_v33  ;;  %v930_v48 = vmul.f32 %v685_v38, %v2564_v54  ;;  %v693_v49 = vrot.slane %v2535_v8, %v2516_v25  ;;  %v471_v14 = vrot.slane %v451_v13, %v2463_v55 }
  0x44   : > { %1014 = vmatpush1.bf16.msra.mxu0 %v972_v39  ;;  %v924_v5 = vmul.f32 %v661_v23, %v2571_v59  ;;  %v485_v52 = vrot.slane %v453_v62, %v2463_v55  ;;  %v499_v53 = vrot.slane %v455_v15, %v2463_v55  ;;  %v513_v58 = vrot.slane %v457_v26, %v2463_v55 }
  0x45   : > { %1057 = vmatpush1.bf16.msra.mxu1 %v974_v42  ;;  %1015 = vmatprep.subr.bf16.mxu0 %v981_v40  ;;  %v980_v57 = vpack.c.bf16 %v930_v48, %v922_v41  ;;  %v932_v16 = vmul.f32 %v693_v49, %v2571_v59  ;;  %v1185_v9 = vmul.f32 15.0, %v231_v24  ;;  %v1186_v27 = vmul.f32 15.0, %v232_v50 }
  0x46   : > { %1058 = vmatprep.subr.bf16.mxu1 %v983_v47  ;;  %v516_v10 = vcombine.low %v471_v14, %v485_v52  ;;  %v517_v13 = vcombine.high %v471_v14, %v485_v52  ;;  %v1187_v11 = vmul.f32 15.0, %v233_v28  ;;  %v520_v62 = vcombine.low %v499_v53, %v513_v58 }
  0x47   : > { %v982_v12 = vpack.c.bf16 %v932_v16, %v924_v5  ;;  %v521_v60 = vcombine.high %v499_v53, %v513_v58  ;;  %v1188_v61 = vmul.f32 15.0, %v234_v56  ;;  %v1189_v15 = vmax.f32 %v1185_v9, 0.0 }
  0x48   : > { %1016 = vmatpush1.bf16.msra.mxu0 %v980_v57  ;;  %v535_v21 = vrot.slane %v516_v10, %v2463_v55  ;;  %v549_v22 = vrot.slane %v517_v13, %v2463_v55  ;;  %v1190_v2 = vmax.f32 %v1186_v27, 0.0  ;;  %v563_v26 = vrot.slane %v520_v62, %v2463_v55 }
  0x49   : > { %1059 = vmatpush1.bf16.msra.mxu1 %v982_v12  ;;  %v577_v4 = vrot.slane %v521_v60, %v2463_v55  ;;  %v1191_v6 = vmax.f32 %v1187_v11, 0.0  ;;  %v1192_v33 = vmax.f32 %v1188_v61, 0.0  ;;  %v1193_v34 = vmin.f32 %v1189_v15, 15.0 }
  0x4a   : > { %v1194_v35 = vmin.f32 %v1190_v2, 15.0  ;;  %v2617_v38 = vmul.f32 32.0, %v2437_v30  ;;  %v2620_v39 = vsub.s32 5, %v2389_v3  ;;  %v2622_v40 = vcombine.low %v535_v21, %v563_v26 }
  0x4b   : > { %v2624_v41 = vcombine.low %v549_v22, %v577_v4  ;;  %v2626_v23 = vcombine.high %v535_v21, %v563_v26  ;;  %v2628_v24 = vcombine.high %v549_v22, %v577_v4  ;;  %v1195_v42 = vmin.f32 %v1191_v6, 15.0 }
  0x4c   : > { %v1196_v47 = vmin.f32 %v1192_v33, 15.0  ;;  %v1209_v48 = vrot.slane %v1193_v34, %v2463_v55  ;;  %v1216_v49 = vrot.slane %v1194_v35, %v2463_v55  ;;  %v721_v30 = vrot.slane %v2622_v40, %v2489_v36 }
  0x4d   : > { %v753_v50 = vrot.slane %v2624_v41, %v2489_v36  ;;  %v729_v28 = vrot.slane %v2622_v40, %v2500_v45  ;;  %v761_v5 = vrot.slane %v2624_v41, %v2500_v45  ;;  %v717_v14 = vrot.slane %v2622_v40, %v2508_v51 }
  0x4e   : > { %v749_v52 = vrot.slane %v2624_v41, %v2508_v51  ;;  %v725_v53 = vrot.slane %v2622_v40, %v2516_v25  ;;  %v757_v56 = vrot.slane %v2624_v41, %v2516_v25  ;;  %v939_v57 = vmul.f32 %v721_v30, %v2502_v46 }
  0x4f   : > { %v947_v16 = vmul.f32 %v753_v50, %v2502_v46  ;;  %v941_v58 = vmul.f32 %v729_v28, %v2553_v43  ;;  %v949_v9 = vmul.f32 %v761_v5, %v2553_v43  ;;  %v938_v10 = vmul.f32 %v717_v14, %v2564_v54 }
  0x50   : > { %v946_v13 = vmul.f32 %v749_v52, %v2564_v54  ;;  %v940_v27 = vmul.f32 %v725_v53, %v2571_v59  ;;  %v948_v11 = vmul.f32 %v757_v56, %v2571_v59  ;;  %v785_v60 = vrot.slane %v2626_v23, %v2489_v36 }
  0x51   : > { %v989_v12 = vpack.c.bf16 %v947_v16, %v939_v57  ;;  %v991_v62 = vpack.c.bf16 %v949_v9, %v941_v58  ;;  %v817_v61 = vrot.slane %v2628_v24, %v2489_v36  ;;  %v793_v15 = vrot.slane %v2626_v23, %v2500_v45 }
  0x52   : > { %v988_v21 = vpack.c.bf16 %v946_v13, %v938_v10  ;;  %v990_v22 = vpack.c.bf16 %v948_v11, %v940_v27  ;;  %v825_v2 = vrot.slane %v2628_v24, %v2500_v45  ;;  %vm1009_vm0 = vcmask 523264  }
  0x53   : > { %1017 = vmatprep.subr.bf16.mxu0 %v989_v12  ;;  %1060 = vmatprep.subr.bf16.mxu1 %v991_v62  ;;  %v955_v26 = vmul.f32 %v785_v60, %v2502_v46  ;;  %v963_v4 = vmul.f32 %v817_v61, %v2502_v46  ;;  %v781_v6 = vrot.slane %v2626_v23, %v2508_v51  ;;  %v350_v33 = vmul.f32 32.0, %v2441_v32 }
  0x54   : > { %1018 = vmatpush1.bf16.msra.mxu0 %v988_v21  ;;  %1061 = vmatpush1.bf16.msra.mxu1 %v990_v22  ;;  %v957_v34 = vmul.f32 %v793_v15, %v2553_v43  ;;  %v965_v35 = vmul.f32 %v825_v2, %v2553_v43  ;;  %v813_v30 = vrot.slane %v2628_v24, %v2508_v51  ;;  %v2674_v50 = vsub.s32 7, %v2389_v3 }
  0x55   : > { %v997_v28 = vpack.c.bf16 %v963_v4, %v955_v26  ;;  %v954_v46 = vmul.f32 %v781_v6, %v2564_v54  ;;  %v789_v5 = vrot.slane %v2626_v23, %v2516_v25  ;;  %v821_v32 = vrot.slane %v2628_v24, %v2516_v25 }
  0x56   : > { %v999_v14 = vpack.c.bf16 %v965_v35, %v957_v34  ;;  %v962_v52 = vmul.f32 %v813_v30, %v2564_v54  ;;  %v1223_v43 = vrot.slane %v1195_v42, %v2463_v55  ;;  %v1230_v53 = vrot.slane %v1196_v47, %v2463_v55  ;;  %v2689_v54 = vld [vmem:[%s2407_s19] sm:$0x3f]  }
  0x57   : > { %1019 = vmatprep.subr.bf16.mxu0 %v997_v28  ;;  %v956_v56 = vmul.f32 %v789_v5, %v2571_v59  ;;  %v964_v57 = vmul.f32 %v821_v32, %v2571_v59  ;;  %v1231_v16 = vcombine.low %v1209_v48, %v1216_v49  ;;  %v1232_v58 = vcombine.high %v1209_v48, %v1216_v49 }
  0x58   : > { %1062 = vmatprep.subr.bf16.mxu1 %v999_v14  ;;  %v996_v9 = vpack.c.bf16 %v962_v52, %v954_v46  ;;  %v1233_v10 = vcombine.low %v1223_v43, %v1230_v53  ;;  %v1234_v13 = vcombine.high %v1223_v43, %v1230_v53  ;;  %v356_v27 = vsub.f32 %v2409_v18, %v2617_v38 }
  0x59   : > { %v998_v11 = vpack.c.bf16 %v964_v57, %v956_v56  ;;  %v1241_v42 = vrot.slane %v1231_v16, %v2463_v55  ;;  %v1248_v47 = vrot.slane %v1232_v58, %v2463_v55  ;;  %v609_v12 = vrot.slane %v2527_v63, %v2620_v39 }
  0x5a   : > { %1020 = vmatpush1.bf16.msra.mxu0 %v996_v9  ;;  %v1255_v59 = vrot.slane %v1233_v10, %v2463_v55  ;;  %v1262_v48 = vrot.slane %v1234_v13, %v2463_v55  ;;  %v372_v49 = vmul.f32 0.22580644, %v356_v27  ;;  %v641_v62 = vrot.slane %v2529_v0, %v2620_v39 }
  0x5b   : > { %1063 = vmatpush1.bf16.msra.mxu1 %v998_v11  ;;  %v358_v18 = vsub.f32 %v2413_v20, %v350_v33  ;;  %v617_v38 = vrot.slane %v2527_v63, %v2674_v50  ;;  %v649_v60 = vrot.slane %v2529_v0, %v2674_v50  ;;  %v347_v61 = vmul.f32 32.0, %v2435_v29 }
  0x5c   : > { %v2705_v21 = vcombine.low %v1241_v42, %v1255_v59  ;;  %v2707_v22 = vcombine.high %v1241_v42, %v1255_v59  ;;  %v2709_v55 = vcombine.low %v1248_v47, %v1262_v48  ;;  %v415_v15 = vsub.f32 %v372_v49, %v2446_v37 }
  0x5d   : > { %2265 = vmatmul.mubr.msk.bf16.vlgmr.msra.gmra.mrb[0].mxu0 %vm1009_vm0, %v2689_v54  ;;  %v374_v20 = vmul.f32 0.22580644, %v358_v18  ;;  %v355_v2 = vsub.f32 %v2402_v17, %v347_v61  ;;  %v2716_v26 = vsub.s32 4, %v2389_v3  ;;  %v349_v4 = vmul.f32 32.0, %v2439_v31 }
  0x5e   : > { %2266 = vmatmul.mubr.msk.bf16.vlgmr.msra.gmra.mrb[0].mxu1 %vm1009_vm0, %v2689_v54  ;;  %v423_v29 = vand.u32 2147483647, %v415_v15  ;;  %v2722_v6 = vsub.s32 6, %v2389_v3  ;;  %v673_v33 = vrot.slane %v2533_v7, %v2620_v39  ;;  %v705_v34 = vrot.slane %v2535_v8, %v2620_v39  ;;  %1131 = vmatprep.mubr.bf16.mxu0 %v2344_v1 }
  0x5f   : > { %v417_v17 = vsub.f32 %v374_v20, %v2446_v37  ;;  %v371_v35 = vmul.f32 0.22580644, %v355_v2  ;;  %v605_v31 = vrot.slane %v2527_v63, %v2716_v26  ;;  %v637_v30 = vrot.slane %v2529_v0, %v2716_v26  ;;  %1174 = vmatprep.mubr.bf16.mxu1 %v2344_v1 }
  0x60   : > { %v431_v3 = vsub.f32 1.0, %v423_v29  ;;  %v357_v28 = vsub.f32 %v2411_v19, %v349_v4  ;;  %v613_v46 = vrot.slane %v2527_v63, %v2722_v6  ;;  %v645_v5 = vrot.slane %v2529_v0, %v2722_v6 }
  0x61   : > { %v425_v32 = vand.u32 2147483647, %v417_v17  ;;  %v414_v14 = vsub.f32 %v371_v35, %v2446_v37  ;;  %v681_v52 = vrot.slane %v2533_v7, %v2674_v50  ;;  %v713_v43 = vrot.slane %v2535_v8, %v2674_v50 }
  0x62   : > { %v2745_v53 = vmax.f32 %v431_v3, 0.0  ;;  %v373_v56 = vmul.f32 0.22580644, %v357_v28  ;;  %v669_v19 = vrot.slane %v2533_v7, %v2716_v26  ;;  %v701_v63 = vrot.slane %v2535_v8, %v2716_v26 }
  0x63   : > { %v433_v57 = vsub.f32 1.0, %v425_v32  ;;  %v422_v0 = vand.u32 2147483647, %v414_v14  ;;  %v677_v16 = vrot.slane %v2533_v7, %v2722_v6  ;;  %v709_v58 = vrot.slane %v2535_v8, %v2722_v6 }
  0x64   : > { %v911_v9 = vmul.f32 %v609_v12, %v2745_v53  ;;  %v919_v10 = vmul.f32 %v641_v62, %v2745_v53  ;;  %v416_v13 = vsub.f32 %v373_v56, %v2446_v37  ;;  %v927_v27 = vmul.f32 %v673_v33, %v2745_v53 }
  0x65   : > { %v2759_v11 = vmax.f32 %v433_v57, 0.0  ;;  %v430_v42 = vsub.f32 1.0, %v422_v0  ;;  %v935_v47 = vmul.f32 %v705_v34, %v2745_v53  ;;  %v737_v59 = vrot.slane %v2622_v40, %v2620_v39 }
  0x66   : > { %v977_v7 = vpack.c.bf16 %v919_v10, %v911_v9  ;;  %v424_v48 = vand.u32 2147483647, %v416_v13  ;;  %v769_v8 = vrot.slane %v2624_v41, %v2620_v39  ;;  %v745_v12 = vrot.slane %v2622_v40, %v2674_v50 }
  0x67   : > { %v913_v49 = vmul.f32 %v617_v38, %v2759_v11  ;;  %v921_v62 = vmul.f32 %v649_v60, %v2759_v11  ;;  %v2770_v18 = vmax.f32 %v430_v42, 0.0  ;;  %v985_v61 = vpack.c.bf16 %v935_v47, %v927_v27 }
  0x68   : > { %1099 = vmatprep.subr.bf16.mxu0 %v977_v7  ;;  %v432_v15 = vsub.f32 1.0, %v424_v48  ;;  %v929_v20 = vmul.f32 %v681_v52, %v2759_v11  ;;  %v937_v2 = vmul.f32 %v713_v43, %v2759_v11  ;;  %v943_v4 = vmul.f32 %v737_v59, %v2745_v53 }
  0x69   : > { %v979_v29 = vpack.c.bf16 %v921_v62, %v913_v49  ;;  %v910_v33 = vmul.f32 %v605_v31, %v2770_v18  ;;  %v918_v34 = vmul.f32 %v637_v30, %v2770_v18  ;;  %v926_v38 = vmul.f32 %v669_v19, %v2770_v18 }
  0x6a   : > { %v440_v17 = vmax.f32 %v432_v15, 0.0  ;;  %v987_v60 = vpack.c.bf16 %v937_v2, %v929_v20  ;;  %v934_v35 = vmul.f32 %v701_v63, %v2770_v18  ;;  %v951_v3 = vmul.f32 %v769_v8, %v2745_v53 }
  0x6b   : > { %1142 = vmatprep.subr.bf16.mxu1 %v979_v29  ;;  %v976_v28 = vpack.c.bf16 %v918_v34, %v910_v33  ;;  %v777_v32 = vrot.slane %v2624_v41, %v2674_v50  ;;  %v945_v14 = vmul.f32 %v745_v12, %v2759_v11  ;;  %v733_v31 = vrot.slane %v2622_v40, %v2716_v26 }
  0x6c   : > { %v912_v52 = vmul.f32 %v613_v46, %v440_v17  ;;  %v920_v30 = vmul.f32 %v645_v5, %v440_v17  ;;  %v984_v43 = vpack.c.bf16 %v934_v35, %v926_v38  ;;  %v928_v56 = vmul.f32 %v677_v16, %v440_v17 }
  0x6d   : > { %1100 = vmatpush1.bf16.msra.mxu0 %v976_v28  ;;  %v936_v19 = vmul.f32 %v709_v58, %v440_v17  ;;  %v993_v57 = vpack.c.bf16 %v951_v3, %v943_v4  ;;  %v953_v63 = vmul.f32 %v777_v32, %v2759_v11  ;;  %v765_v0 = vrot.slane %v2624_v41, %v2716_v26 }
  0x6e   : > { %v978_v9 = vpack.c.bf16 %v920_v30, %v912_v52  ;;  %1101 = vmatprep.subr.bf16.mxu0 %v985_v61  ;;  %v942_v10 = vmul.f32 %v733_v31, %v2770_v18  ;;  %v741_v13 = vrot.slane %v2622_v40, %v2722_v6  ;;  %v773_v46 = vrot.slane %v2624_v41, %v2722_v6 }
  0x6f   : > { %v986_v5 = vpack.c.bf16 %v936_v19, %v928_v56  ;;  %v995_v16 = vpack.c.bf16 %v953_v63, %v945_v14  ;;  %v950_v58 = vmul.f32 %v765_v0, %v2770_v18  ;;  %v801_v27 = vrot.slane %v2626_v23, %v2620_v39 }
  0x70   : > { %1143 = vmatpush1.bf16.msra.mxu1 %v978_v9  ;;  %v944_v42 = vmul.f32 %v741_v13, %v440_v17  ;;  %v952_v47 = vmul.f32 %v773_v46, %v440_v17  ;;  %v833_v59 = vrot.slane %v2628_v24, %v2620_v39  ;;  %v809_v7 = vrot.slane %v2626_v23, %v2674_v50 }
  0x71   : > { %v2801_v40 = vcvt.s32.f32 %v2497_v44  ;;  %1144 = vmatprep.subr.bf16.mxu1 %v987_v60  ;;  %1102 = vmatpush1.bf16.msra.mxu0 %v984_v43  ;;  %v992_v41 = vpack.c.bf16 %v950_v58, %v942_v10  ;;  %v959_v48 = vmul.f32 %v801_v27, %v2745_v53  ;;  %v841_v8 = vrot.slane %v2628_v24, %v2674_v50 }
  0x72   : > { %1103 = vmatprep.subr.bf16.mxu0 %v993_v57  ;;  %v994_v12 = vpack.c.bf16 %v952_v47, %v944_v42  ;;  %v967_v49 = vmul.f32 %v833_v59, %v2745_v53  ;;  %v961_v62 = vmul.f32 %v809_v7, %v2759_v11  ;;  %v797_v61 = vrot.slane %v2626_v23, %v2716_v26 }
  0x73   : > { %v969_v44 = vmul.f32 %v841_v8, %v2759_v11  ;;  %v829_v15 = vrot.slane %v2628_v24, %v2716_v26  ;;  %v805_v20 = vrot.slane %v2626_v23, %v2722_v6  ;;  %v837_v2 = vrot.slane %v2628_v24, %v2722_v6 }
  0x74   : > { %1145 = vmatpush1.bf16.msra.mxu1 %v986_v5  ;;  %v1001_v4 = vpack.c.bf16 %v967_v49, %v959_v48  ;;  %v958_v53 = vmul.f32 %v797_v61, %v2770_v18  ;;  %v1273_v29 = vrot.slane %v2705_v21, %v2489_v36  ;;  %v1281_v33 = vrot.slane %v2705_v21, %v2500_v45 }
  0x75   : > { %1146 = vmatprep.subr.bf16.mxu1 %v995_v16  ;;  %1104 = vmatpush1.bf16.msra.mxu0 %v992_v41  ;;  %v1003_v11 = vpack.c.bf16 %v969_v44, %v961_v62  ;;  %v966_v34 = vmul.f32 %v829_v15, %v2770_v18  ;;  %v960_v38 = vmul.f32 %v805_v20, %v440_v17  ;;  %vm1609_vm1 = vcmask 392192  }
  0x76   : > { %1105 = vmatprep.subr.bf16.mxu0 %v1001_v4  ;;  %v968_v23 = vmul.f32 %v837_v2, %v440_v17  ;;  %v1387_v24 = vsub.f32 %v1273_v29, %v2446_v37  ;;  %v1395_v60 = vsub.f32 %v1273_v29, %v2801_v40  ;;  %v1389_v35 = vsub.f32 %v1281_v33, %v2446_v37 }
  0x77   : > { %v1000_v3 = vpack.c.bf16 %v966_v34, %v958_v53  ;;  %v1397_v28 = vsub.f32 %v1281_v33, %v2801_v40  ;;  %v1269_v32 = vrot.slane %v2705_v21, %v2508_v51  ;;  %v1277_v14 = vrot.slane %v2705_v21, %v2516_v25 }
  0x78   : > { %1147 = vmatpush1.bf16.msra.mxu1 %v994_v12  ;;  %v1002_v18 = vpack.c.bf16 %v968_v23, %v960_v38  ;;  %v1435_v31 = vand.u32 2147483647, %v1387_v24  ;;  %v1443_v52 = vand.u32 2147483647, %v1395_v60  ;;  %v1437_v17 = vand.u32 2147483647, %v1389_v35 }
  0x79   : > { %1148 = vmatprep.subr.bf16.mxu1 %v1003_v11  ;;  %1106 = vmatpush1.bf16.msra.mxu0 %v1000_v3  ;;  %v1445_v30 = vand.u32 2147483647, %v1397_v28  ;;  %v1386_v43 = vsub.f32 %v1269_v32, %v2446_v37  ;;  %v1394_v56 = vsub.f32 %v1269_v32, %v2801_v40  ;;  %v1388_v19 = vsub.f32 %v1277_v14, %v2446_v37 }
  0x7a   : > { %v1483_v57 = vsub.f32 1.0, %v1435_v31  ;;  %v1491_v63 = vsub.f32 1.0, %v1443_v52  ;;  %v1485_v0 = vsub.f32 1.0, %v1437_v17  ;;  %v1396_v9 = vsub.f32 %v1277_v14, %v2801_v40 }
  0x7b   : > { %v1493_v10 = vsub.f32 1.0, %v1445_v30  ;;  %v1434_v13 = vand.u32 2147483647, %v1386_v43  ;;  %v1442_v46 = vand.u32 2147483647, %v1394_v56  ;;  %v1305_v5 = vrot.slane %v2709_v55, %v2489_v36 }
  0x7c   : > { %1149 = vmatpush1.bf16.msra.mxu1 %v1002_v18  ;;  %2267 = vmatmul.mubr.msk.bf16.vlgmr.msra.gmra.mrb[4].mxu0 %vm1009_vm0, %v2689_v54  ;;  %v1531_v16 = vmax.f32 %v1483_v57, 0.0  ;;  %v1539_v58 = vmax.f32 %v1491_v63, 0.0  ;;  %v1533_v27 = vmax.f32 %v1485_v0, 0.0  ;;  %v1436_v42 = vand.u32 2147483647, %v1388_v19 }
  0x7d   : > { %v1541_v47 = vmax.f32 %v1493_v10, 0.0  ;;  %v1482_v59 = vsub.f32 1.0, %v1434_v13  ;;  %v1490_v7 = vsub.f32 1.0, %v1442_v46  ;;  %v1444_v41 = vand.u32 2147483647, %v1396_v9  ;;  %1645 = vmatprep.mubr.bf16.mxu0 %v2344_v1 }
  0x7e   : > { %v1581_v48 = vpack.c.bf16 %v1539_v58, %v1531_v16  ;;  %v1484_v8 = vsub.f32 1.0, %v1436_v42  ;;  %v1403_v12 = vsub.f32 %v1305_v5, %v2446_v37  ;;  %v1411_v49 = vsub.f32 %v1305_v5, %v2801_v40 }
  0x7f   : > { %2268 = vmatmul.mubr.msk.bf16.vlgmr.msra.gmra.mrb[4].mxu1 %vm1009_vm0, %v2689_v54  ;;  %v1583_v62 = vpack.c.bf16 %v1541_v47, %v1533_v27  ;;  %v1530_v61 = vmax.f32 %v1482_v59, 0.0  ;;  %v1538_v44 = vmax.f32 %v1490_v7, 0.0  ;;  %v1492_v15 = vsub.f32 1.0, %v1444_v41 }
  0x80   : > { %1613 = vmatprep.subr.bf16.mxu0 %v1581_v48  ;;  %v1532_v20 = vmax.f32 %v1484_v8, 0.0  ;;  %v1451_v2 = vand.u32 2147483647, %v1403_v12  ;;  %v1459_v4 = vand.u32 2147483647, %v1411_v49  ;;  %v1313_v53 = vrot.slane %v2709_v55, %v2500_v45  ;;  %1688 = vmatprep.mubr.bf16.mxu1 %v2344_v1 }
  0x81   : > { %1656 = vmatprep.subr.bf16.mxu1 %v1583_v62  ;;  %v1580_v29 = vpack.c.bf16 %v1538_v44, %v1530_v61  ;;  %v1540_v33 = vmax.f32 %v1492_v15, 0.0  ;;  %v1301_v11 = vrot.slane %v2709_v55, %v2508_v51  ;;  %v1309_v54 = vrot.slane %v2709_v55, %v2516_v25 }
  0x82   : > { %v1499_v34 = vsub.f32 1.0, %v1451_v2  ;;  %v1507_v38 = vsub.f32 1.0, %v1459_v4  ;;  %v1405_v23 = vsub.f32 %v1313_v53, %v2446_v37  ;;  %v1413_v24 = vsub.f32 %v1313_v53, %v2801_v40 }
  0x83   : > { %1614 = vmatpush1.bf16.msra.mxu0 %v1580_v29  ;;  %v1582_v60 = vpack.c.bf16 %v1540_v33, %v1532_v20  ;;  %v1402_v35 = vsub.f32 %v1301_v11, %v2446_v37  ;;  %v1410_v3 = vsub.f32 %v1301_v11, %v2801_v40  ;;  %v1404_v28 = vsub.f32 %v1309_v54, %v2446_v37 }
  0x84   : > { %v1547_v32 = vmax.f32 %v1499_v34, 0.0  ;;  %v1555_v14 = vmax.f32 %v1507_v38, 0.0  ;;  %v1453_v18 = vand.u32 2147483647, %v1405_v23  ;;  %v1461_v31 = vand.u32 2147483647, %v1413_v24 }
  0x85   : > { %1657 = vmatpush1.bf16.msra.mxu1 %v1582_v60  ;;  %v1450_v52 = vand.u32 2147483647, %v1402_v35  ;;  %v1458_v17 = vand.u32 2147483647, %v1410_v3  ;;  %v1412_v30 = vsub.f32 %v1309_v54, %v2801_v40  ;;  %v1452_v43 = vand.u32 2147483647, %v1404_v28 }
  0x86   : > { %v1589_v56 = vpack.c.bf16 %v1555_v14, %v1547_v32  ;;  %v1501_v19 = vsub.f32 1.0, %v1453_v18  ;;  %v1509_v57 = vsub.f32 1.0, %v1461_v31  ;;  %v1337_v63 = vrot.slane %v2707_v22, %v2489_v36 }
  0x87   : > { %v1498_v0 = vsub.f32 1.0, %v1450_v52  ;;  %v1506_v9 = vsub.f32 1.0, %v1458_v17  ;;  %v1460_v10 = vand.u32 2147483647, %v1412_v30  ;;  %v1500_v13 = vsub.f32 1.0, %v1452_v43 }
  0x88   : > { %1615 = vmatprep.subr.bf16.mxu0 %v1589_v56  ;;  %v1549_v46 = vmax.f32 %v1501_v19, 0.0  ;;  %v1557_v5 = vmax.f32 %v1509_v57, 0.0  ;;  %v1419_v16 = vsub.f32 %v1337_v63, %v2446_v37  ;;  %v1427_v58 = vsub.f32 %v1337_v63, %v2801_v40 }
  0x89   : > { %v1546_v27 = vmax.f32 %v1498_v0, 0.0  ;;  %v1554_v42 = vmax.f32 %v1506_v9, 0.0  ;;  %v1508_v47 = vsub.f32 1.0, %v1460_v10  ;;  %v1548_v59 = vmax.f32 %v1500_v13, 0.0 }
  0x8a   : > { %v1591_v7 = vpack.c.bf16 %v1557_v5, %v1549_v46  ;;  %v1467_v41 = vand.u32 2147483647, %v1419_v16  ;;  %v1475_v48 = vand.u32 2147483647, %v1427_v58  ;;  %v1345_v36 = vrot.slane %v2707_v22, %v2500_v45  ;;  %v2886_v16 = vld [vmem:[%s3061_s2] sm:$0x3f]  }
  0x8b   : > { %v1588_v8 = vpack.c.bf16 %v1554_v42, %v1546_v27  ;;  %v1556_v12 = vmax.f32 %v1508_v47, 0.0  ;;  %v1333_v49 = vrot.slane %v2707_v22, %v2508_v51  ;;  %v1341_v62 = vrot.slane %v2707_v22, %v2516_v25 }
  0x8c   : > { %1658 = vmatprep.subr.bf16.mxu1 %v1591_v7  ;;  %v1515_v61 = vsub.f32 1.0, %v1467_v41  ;;  %v1523_v44 = vsub.f32 1.0, %v1475_v48  ;;  %v1421_v15 = vsub.f32 %v1345_v36, %v2446_v37  ;;  %v1429_v20 = vsub.f32 %v1345_v36, %v2801_v40 }
  0x8d   : > { %1616 = vmatpush1.bf16.msra.mxu0 %v1588_v8  ;;  %v1590_v2 = vpack.c.bf16 %v1556_v12, %v1548_v59  ;;  %v1418_v4 = vsub.f32 %v1333_v49, %v2446_v37  ;;  %v1426_v45 = vsub.f32 %v1333_v49, %v2801_v40  ;;  %v1420_v53 = vsub.f32 %v1341_v62, %v2446_v37 }
  0x8e   : > { %v1563_v29 = vmax.f32 %v1515_v61, 0.0  ;;  %v1571_v51 = vmax.f32 %v1523_v44, 0.0  ;;  %v1469_v33 = vand.u32 2147483647, %v1421_v15  ;;  %v1477_v11 = vand.u32 2147483647, %v1429_v20 }
  0x8f   : > { %1659 = vmatpush1.bf16.msra.mxu1 %v1590_v2  ;;  %v1466_v25 = vand.u32 2147483647, %v1418_v4  ;;  %v1474_v54 = vand.u32 2147483647, %v1426_v45  ;;  %v1428_v34 = vsub.f32 %v1341_v62, %v2801_v40  ;;  %v1468_v38 = vand.u32 2147483647, %v1420_v53 }
  0x90   : > { %v1597_v23 = vpack.c.bf16 %v1571_v51, %v1563_v29  ;;  %v1517_v24 = vsub.f32 1.0, %v1469_v33  ;;  %v1525_v60 = vsub.f32 1.0, %v1477_v11  ;;  %v1289_v35 = vrot.slane %v2705_v21, %v2620_v39 }
  0x91   : > { %v1514_v3 = vsub.f32 1.0, %v1466_v25  ;;  %v1522_v28 = vsub.f32 1.0, %v1474_v54  ;;  %v1476_v32 = vand.u32 2147483647, %v1428_v34  ;;  %v1516_v14 = vsub.f32 1.0, %v1468_v38 }
  0x92   : > { %1617 = vmatprep.subr.bf16.mxu0 %v1597_v23  ;;  %v1565_v18 = vmax.f32 %v1517_v24, 0.0  ;;  %v1573_v31 = vmax.f32 %v1525_v60, 0.0  ;;  %v1391_v52 = vsub.f32 %v1289_v35, %v2446_v37  ;;  %v1399_v17 = vsub.f32 %v1289_v35, %v2801_v40 }
  0x93   : > { %v1562_v30 = vmax.f32 %v1514_v3, 0.0  ;;  %v1570_v43 = vmax.f32 %v1522_v28, 0.0  ;;  %v1524_v56 = vsub.f32 1.0, %v1476_v32  ;;  %v1564_v19 = vmax.f32 %v1516_v14, 0.0 }
  0x94   : > { %v1599_v57 = vpack.c.bf16 %v1573_v31, %v1565_v18  ;;  %v1439_v63 = vand.u32 2147483647, %v1391_v52  ;;  %v1447_v0 = vand.u32 2147483647, %v1399_v17  ;;  %v1297_v9 = vrot.slane %v2705_v21, %v2674_v50 }
  0x95   : > { %v1596_v10 = vpack.c.bf16 %v1570_v43, %v1562_v30  ;;  %v1572_v13 = vmax.f32 %v1524_v56, 0.0  ;;  %v1285_v46 = vrot.slane %v2705_v21, %v2716_v26  ;;  %v1293_v5 = vrot.slane %v2705_v21, %v2722_v6 }
  0x96   : > { %1660 = vmatprep.subr.bf16.mxu1 %v1599_v57  ;;  %v1487_v58 = vsub.f32 1.0, %v1439_v63  ;;  %v1495_v27 = vsub.f32 1.0, %v1447_v0  ;;  %v1393_v42 = vsub.f32 %v1297_v9, %v2446_v37  ;;  %v1401_v47 = vsub.f32 %v1297_v9, %v2801_v40 }
  0x97   : > { %1618 = vmatpush1.bf16.msra.mxu0 %v1596_v10  ;;  %v1598_v59 = vpack.c.bf16 %v1572_v13, %v1564_v19  ;;  %v1390_v7 = vsub.f32 %v1285_v46, %v2446_v37  ;;  %v1398_v41 = vsub.f32 %v1285_v46, %v2801_v40  ;;  %v1392_v21 = vsub.f32 %v1293_v5, %v2446_v37 }
  0x98   : > { %v1535_v48 = vmax.f32 %v1487_v58, 0.0  ;;  %v1543_v36 = vmax.f32 %v1495_v27, 0.0  ;;  %v1441_v8 = vand.u32 2147483647, %v1393_v42  ;;  %v1449_v12 = vand.u32 2147483647, %v1401_v47 }
  0x99   : > { %1661 = vmatpush1.bf16.msra.mxu1 %v1598_v59  ;;  %v1438_v49 = vand.u32 2147483647, %v1390_v7  ;;  %v1446_v62 = vand.u32 2147483647, %v1398_v41  ;;  %v1400_v61 = vsub.f32 %v1293_v5, %v2801_v40  ;;  %v1440_v44 = vand.u32 2147483647, %v1392_v21 }
  0x9a   : > { %2270 = vmatmul.mubr.msk.bf16.vlgmr.msra.gmra.mrb[8].mxu0 %vm1609_vm1, %v2886_v16  ;;  %v1585_v15 = vpack.c.bf16 %v1543_v36, %v1535_v48  ;;  %v1489_v20 = vsub.f32 1.0, %v1441_v8  ;;  %v1497_v2 = vsub.f32 1.0, %v1449_v12  ;;  %v1321_v4 = vrot.slane %v2709_v55, %v2620_v39 }
  0x9b   : > { %v1486_v45 = vsub.f32 1.0, %v1438_v49  ;;  %v1494_v53 = vsub.f32 1.0, %v1446_v62  ;;  %v1448_v29 = vand.u32 2147483647, %v1400_v61  ;;  %v1488_v51 = vsub.f32 1.0, %v1440_v44  ;;  %1731 = vmatprep.mubr.bf16.mxu0 %v2344_v1 }
  0x9c   : > { %2271 = vmatmul.mubr.msk.bf16.vlgmr.msra.gmra.mrb[8].mxu1 %vm1609_vm1, %v2886_v16  ;;  %1699 = vmatprep.subr.bf16.mxu0 %v1585_v15  ;;  %v1537_v33 = vmax.f32 %v1489_v20, 0.0  ;;  %v1545_v11 = vmax.f32 %v1497_v2, 0.0  ;;  %v1407_v25 = vsub.f32 %v1321_v4, %v2446_v37  ;;  %v1415_v54 = vsub.f32 %v1321_v4, %v2801_v40 }
  0x9d   : > { %v1534_v34 = vmax.f32 %v1486_v45, 0.0  ;;  %v1542_v38 = vmax.f32 %v1494_v53, 0.0  ;;  %v1496_v23 = vsub.f32 1.0, %v1448_v29  ;;  %v1536_v24 = vmax.f32 %v1488_v51, 0.0  ;;  %1774 = vmatprep.mubr.bf16.mxu1 %v2344_v1 }
  0x9e   : > { %v1587_v60 = vpack.c.bf16 %v1545_v11, %v1537_v33  ;;  %v1455_v35 = vand.u32 2147483647, %v1407_v25  ;;  %v1463_v3 = vand.u32 2147483647, %v1415_v54  ;;  %v1329_v28 = vrot.slane %v2709_v55, %v2674_v50 }
  0x9f   : > { %v1584_v32 = vpack.c.bf16 %v1542_v38, %v1534_v34  ;;  %v1544_v14 = vmax.f32 %v1496_v23, 0.0  ;;  %v1317_v18 = vrot.slane %v2709_v55, %v2716_v26  ;;  %v1325_v31 = vrot.slane %v2709_v55, %v2722_v6 }
  0xa0   : > { %1742 = vmatprep.subr.bf16.mxu1 %v1587_v60  ;;  %v1503_v52 = vsub.f32 1.0, %v1455_v35  ;;  %v1511_v17 = vsub.f32 1.0, %v1463_v3  ;;  %v1409_v30 = vsub.f32 %v1329_v28, %v2446_v37  ;;  %v1417_v1 = vsub.f32 %v1329_v28, %v2801_v40 }
  0xa1   : > { %1700 = vmatpush1.bf16.msra.mxu0 %v1584_v32  ;;  %v1586_v43 = vpack.c.bf16 %v1544_v14, %v1536_v24  ;;  %v1406_v56 = vsub.f32 %v1317_v18, %v2446_v37  ;;  %v1414_v19 = vsub.f32 %v1317_v18, %v2801_v40  ;;  %v1408_v57 = vsub.f32 %v1325_v31, %v2446_v37 }
  0xa2   : > { %v1551_v63 = vmax.f32 %v1503_v52, 0.0  ;;  %v1559_v0 = vmax.f32 %v1511_v17, 0.0  ;;  %v1457_v9 = vand.u32 2147483647, %v1409_v30  ;;  %v1465_v10 = vand.u32 2147483647, %v1417_v1 }
  0xa3   : > { %1743 = vmatpush1.bf16.msra.mxu1 %v1586_v43  ;;  %v1454_v55 = vand.u32 2147483647, %v1406_v56  ;;  %v1462_v13 = vand.u32 2147483647, %v1414_v19  ;;  %v1416_v46 = vsub.f32 %v1325_v31, %v2801_v40  ;;  %v1456_v5 = vand.u32 2147483647, %v1408_v57 }
  0xa4   : > { %v1593_v58 = vpack.c.bf16 %v1559_v0, %v1551_v63  ;;  %v1505_v27 = vsub.f32 1.0, %v1457_v9  ;;  %v1513_v42 = vsub.f32 1.0, %v1465_v10  ;;  %v1353_v47 = vrot.slane %v2707_v22, %v2620_v39 }
  0xa5   : > { %v1502_v59 = vsub.f32 1.0, %v1454_v55  ;;  %v1510_v7 = vsub.f32 1.0, %v1462_v13  ;;  %v1464_v41 = vand.u32 2147483647, %v1416_v46  ;;  %v1504_v21 = vsub.f32 1.0, %v1456_v5 }
  0xa6   : > { %1701 = vmatprep.subr.bf16.mxu0 %v1593_v58  ;;  %v1553_v48 = vmax.f32 %v1505_v27, 0.0  ;;  %v1561_v36 = vmax.f32 %v1513_v42, 0.0  ;;  %v1423_v8 = vsub.f32 %v1353_v47, %v2446_v37  ;;  %v1431_v12 = vsub.f32 %v1353_v47, %v2801_v40 }
  0xa7   : > { %v1550_v49 = vmax.f32 %v1502_v59, 0.0  ;;  %v1558_v62 = vmax.f32 %v1510_v7, 0.0  ;;  %v1512_v61 = vsub.f32 1.0, %v1464_v41  ;;  %v1552_v44 = vmax.f32 %v1504_v21, 0.0 }
  0xa8   : > { %v1595_v15 = vpack.c.bf16 %v1561_v36, %v1553_v48  ;;  %v1471_v20 = vand.u32 2147483647, %v1423_v8  ;;  %v1479_v2 = vand.u32 2147483647, %v1431_v12  ;;  %v1361_v39 = vrot.slane %v2707_v22, %v2674_v50 }
  0xa9   : > { %v1592_v4 = vpack.c.bf16 %v1558_v62, %v1550_v49  ;;  %v1560_v45 = vmax.f32 %v1512_v61, 0.0  ;;  %v1349_v53 = vrot.slane %v2707_v22, %v2716_v26  ;;  %v1357_v29 = vrot.slane %v2707_v22, %v2722_v6 }
  0xaa   : > { %1744 = vmatprep.subr.bf16.mxu1 %v1595_v15  ;;  %v1519_v51 = vsub.f32 1.0, %v1471_v20  ;;  %v1527_v33 = vsub.f32 1.0, %v1479_v2  ;;  %v1425_v11 = vsub.f32 %v1361_v39, %v2446_v37  ;;  %v1433_v25 = vsub.f32 %v1361_v39, %v2801_v40 }
  0xab   : > { %1702 = vmatpush1.bf16.msra.mxu0 %v1592_v4  ;;  %v1594_v54 = vpack.c.bf16 %v1560_v45, %v1552_v44  ;;  %v1422_v34 = vsub.f32 %v1349_v53, %v2446_v37  ;;  %v1430_v50 = vsub.f32 %v1349_v53, %v2801_v40  ;;  %v1424_v38 = vsub.f32 %v1357_v29, %v2446_v37 }
  0xac   : > { %v1567_v23 = vmax.f32 %v1519_v51, 0.0  ;;  %v1575_v26 = vmax.f32 %v1527_v33, 0.0  ;;  %v1473_v24 = vand.u32 2147483647, %v1425_v11  ;;  %v1481_v60 = vand.u32 2147483647, %v1433_v25 }
  0xad   : > { %1745 = vmatpush1.bf16.msra.mxu1 %v1594_v54  ;;  %v1470_v22 = vand.u32 2147483647, %v1422_v34  ;;  %v1478_v6 = vand.u32 2147483647, %v1430_v50  ;;  %v1432_v35 = vsub.f32 %v1357_v29, %v2801_v40  ;;  %v1472_v3 = vand.u32 2147483647, %v1424_v38 }
  0xae   : > { %v1601_v28 = vpack.c.bf16 %v1575_v26, %v1567_v23  ;;  %v1521_v32 = vsub.f32 1.0, %v1473_v24  ;;  %v1529_v14 = vsub.f32 1.0, %v1481_v60  ;;  %vm1865_vm2 = vcmask 1043456  }
  0xaf   : > { %v1518_v18 = vsub.f32 1.0, %v1470_v22  ;;  %v1526_v31 = vsub.f32 1.0, %v1478_v6  ;;  %v1480_v52 = vand.u32 2147483647, %v1432_v35  ;;  %v1520_v17 = vsub.f32 1.0, %v1472_v3 }
  0xb0   : > { %1703 = vmatprep.subr.bf16.mxu0 %v1601_v28  ;;  %v1569_v30 = vmax.f32 %v1521_v32, 0.0  ;;  %v1577_v37 = vmax.f32 %v1529_v14, 0.0  ;;  %vm2119_vm3 = vcmask 1041409   ;;  %vm2121_vm4 = vcmask 1045509  }
  0xb1   : > { %v1566_v1 = vmax.f32 %v1518_v18, 0.0  ;;  %v1574_v43 = vmax.f32 %v1526_v31, 0.0  ;;  %v1528_v56 = vsub.f32 1.0, %v1480_v52  ;;  %v1568_v19 = vmax.f32 %v1520_v17, 0.0 }
  0xb2   : > { %v1603_v57 = vpack.c.bf16 %v1577_v37, %v1569_v30  ;;  %vm2124_vm5 = vcmask 1042434   ;;  %vm2126_vm6 = vcmask 1046534  }
  0xb3   : > { %v1600_v63 = vpack.c.bf16 %v1574_v43, %v1566_v1  ;;  %v1576_v0 = vmax.f32 %v1528_v56, 0.0 }
  0xb4   : > { %1746 = vmatprep.subr.bf16.mxu1 %v1603_v57 }
  0xb5   : > { %1704 = vmatpush1.bf16.msra.mxu0 %v1600_v63  ;;  %v1602_v40 = vpack.c.bf16 %v1576_v0, %v1568_v19 }
  0xb7   : > { %1747 = vmatpush1.bf16.msra.mxu1 %v1602_v40 }
  0xb8   : > { %2272 = vmatmul.mubr.msk.bf16.vlgmr.msra.gmra.mrb[12].mxu0 %vm1609_vm1, %v2886_v16 }
  0xba   : > { %2273 = vmatmul.mubr.msk.bf16.vlgmr.msra.gmra.mrb[12].mxu1 %vm1609_vm1, %v2886_v16 }
 0x130   : > { %v1047_v9 = vpop.f32.mrb[0].mxu0 }
 0x131   : > { %v1090_v10 = vpop.f32.mrb[0].mxu1  ;;  %v1049_v55 = vpop.f32.mrb[1].mxu0 }
 0x132   : > { %v1092_v13 = vpop.f32.mrb[1].mxu1  ;;  %v1051_v46 = vpop.f32.mrb[2].mxu0 }
 0x133   : > { %v1094_v5 = vpop.f32.mrb[2].mxu1  ;;  %v1053_v58 = vpop.f32.mrb[3].mxu0 }
 0x134   : > { %v2936_v27 = vpop.f32.mrb[3].mxu1 }
 0x14f   : > { %v2938_v42 = vpop.f32.mrb[4].mxu0 }
 0x150   : > { %v2940_v47 = vpop.f32.mrb[5].mxu0 }
 0x151   : > { %v2942_v59 = vpop.f32.mrb[6].mxu0 }
 0x152   : > { %v2944_v7 = vpop.f32.mrb[4].mxu1  ;;  %v2946_v41 = vpop.f32.mrb[7].mxu0 }
 0x153   : > { %v2948_v16 = vpop.f32.mrb[5].mxu1 }
 0x154   : > { %v2950_v21 = vpop.f32.mrb[6].mxu1 }
 0x155   : > { %v2952_v48 = vpop.f32.mrb[7].mxu1 }
 0x16d   : > { %v1647_v36 = vpop.f32.mrb[8].mxu0 }
 0x16e   : > { %v1785_v8 = vmul.f32 %v1647_v36, %v1047_v9  ;;  %v1649_v12 = vpop.f32.mrb[9].mxu0 }
 0x16f   : > { %v1690_v49 = vpop.f32.mrb[8].mxu1  ;;  %v1786_v62 = vmul.f32 %v1649_v12, %v1049_v55  ;;  %v1651_v61 = vpop.f32.mrb[10].mxu0 }
 0x170   : > { %v1787_v44 = vmul.f32 %v1690_v49, %v1090_v10  ;;  %v1692_v15 = vpop.f32.mrb[9].mxu1  ;;  %v2954_v20 = vmul.f32 %v1651_v61, %v1051_v46  ;;  %v1653_v2 = vpop.f32.mrb[11].mxu0 }
 0x171   : > { %v1817_v39 = vcombine.low %v1785_v8, %v1786_v62  ;;  %v1818_v4 = vcombine.high %v1785_v8, %v1786_v62  ;;  %v2274_v45 = vcombine.low %v1786_v62, %v1786_v62  ;;  %v2278_v53 = vcombine.high %v1786_v62, %v1786_v62  ;;  %v1694_v29 = vpop.f32.mrb[10].mxu1 }
 0x172   : > { %v1788_v51 = vmul.f32 %v1692_v15, %v1092_v13  ;;  %v2956_v33 = vmul.f32 %v1694_v29, %v1094_v5  ;;  %v2958_v11 = vmul.f32 %v1653_v2, %v1053_v58  ;;  %v2960_v25 = vpop.f32.mrb[11].mxu1 }
 0x173   : > { %v1866_v54 = vsel %vm1865_vm2, %v1817_v39, 0.0  ;;  %v1873_v34 = vsel %vm1865_vm2, %v2274_v45, 0.0  ;;  %v1922_v50 = vsel %vm1865_vm2, %v1818_v4, 0.0  ;;  %v1929_v38 = vsel %vm1865_vm2, %v2278_v53, 0.0 }
 0x174   : > { %v1867_v23 = vrot.slane %v1866_v54, 4  ;;  %v1874_v26 = vrot.slane %v1873_v34, 4  ;;  %v1923_v24 = vrot.slane %v1922_v50, 4  ;;  %v1930_v60 = vrot.slane %v1929_v38, 4 }
 0x175   : > { %v1819_v22 = vcombine.low %v1787_v44, %v1788_v51  ;;  %v1820_v6 = vcombine.high %v1787_v44, %v1788_v51  ;;  %v2275_v35 = vcombine.low %v1788_v51, %v1788_v51  ;;  %v2279_v3 = vcombine.high %v1788_v51, %v1788_v51 }
 0x176   : > { %v1868_v28 = vadd.f32 %v1867_v23, %v1866_v54  ;;  %v1875_v32 = vadd.f32 %v1874_v26, %v1873_v34  ;;  %v1924_v14 = vadd.f32 %v1923_v24, %v1922_v50  ;;  %v1931_v18 = vadd.f32 %v1930_v60, %v1929_v38 }
 0x177   : > { %v1880_v31 = vsel %vm1865_vm2, %v1819_v22, 0.0  ;;  %v1887_v52 = vsel %vm1865_vm2, %v2275_v35, 0.0  ;;  %v1936_v17 = vsel %vm1865_vm2, %v1820_v6, 0.0  ;;  %v1943_v30 = vsel %vm1865_vm2, %v2279_v3, 0.0 }
 0x178   : > { %v1869_v37 = vrot.slane %v1868_v28, 2  ;;  %v1876_v1 = vrot.slane %v1875_v32, 2  ;;  %v1925_v43 = vrot.slane %v1924_v14, 2  ;;  %v1932_v56 = vrot.slane %v1931_v18, 2 }
 0x179   : > { %v1881_v19 = vrot.slane %v1880_v31, 4  ;;  %v1888_v57 = vrot.slane %v1887_v52, 4  ;;  %v1937_v63 = vrot.slane %v1936_v17, 4  ;;  %v1944_v0 = vrot.slane %v1943_v30, 4 }
 0x17a   : > { %v1870_v40 = vadd.f32 %v1869_v37, %v1868_v28  ;;  %v1877_v9 = vadd.f32 %v1876_v1, %v1875_v32  ;;  %v1926_v10 = vadd.f32 %v1925_v43, %v1924_v14  ;;  %v1933_v55 = vadd.f32 %v1932_v56, %v1931_v18 }
 0x17b   : > { %v1882_v13 = vadd.f32 %v1881_v19, %v1880_v31  ;;  %v1889_v46 = vadd.f32 %v1888_v57, %v1887_v52  ;;  %v1938_v5 = vadd.f32 %v1937_v63, %v1936_v17  ;;  %v1945_v58 = vadd.f32 %v1944_v0, %v1943_v30 }
 0x17c   : > { %v1871_v36 = vrot.slane %v1870_v40, 1  ;;  %v1878_v8 = vrot.slane %v1877_v9, 1  ;;  %v1927_v12 = vrot.slane %v1926_v10, 1  ;;  %v1934_v49 = vrot.slane %v1933_v55, 1 }
 0x17d   : > { %v1883_v62 = vrot.slane %v1882_v13, 2  ;;  %v1890_v61 = vrot.slane %v1889_v46, 2  ;;  %v1939_v44 = vrot.slane %v1938_v5, 2  ;;  %v1946_v15 = vrot.slane %v1945_v58, 2 }
 0x17e   : > { %v1872_v2 = vadd.f32 %v1871_v36, %v1870_v40  ;;  %v1879_v39 = vadd.f32 %v1878_v8, %v1877_v9  ;;  %v1928_v4 = vadd.f32 %v1927_v12, %v1926_v10  ;;  %v1935_v45 = vadd.f32 %v1934_v49, %v1933_v55 }
 0x17f   : > { %v1884_v53 = vadd.f32 %v1883_v62, %v1882_v13  ;;  %v1891_v29 = vadd.f32 %v1890_v61, %v1889_v46  ;;  %v1940_v51 = vadd.f32 %v1939_v44, %v1938_v5  ;;  %v1947_v54 = vadd.f32 %v1946_v15, %v1945_v58 }
 0x180   : > { %v2034_v34 = vmax.f32 %v1872_v2, 0.0  ;;  %v2035_v50 = vmax.f32 %v1879_v39, 0.0  ;;  %v2042_v38 = vmax.f32 %v1928_v4, 0.0  ;;  %v2043_v23 = vmax.f32 %v1935_v45, 0.0 }
 0x181   : > { %v1885_v26 = vrot.slane %v1884_v53, 1  ;;  %v1892_v24 = vrot.slane %v1891_v29, 1  ;;  %v1941_v60 = vrot.slane %v1940_v51, 1  ;;  %v1948_v22 = vrot.slane %v1947_v54, 1 }
 0x182   : > { %v2058_v6 = vmin.f32 %v2034_v34, 1.0  ;;  %v2059_v35 = vmin.f32 %v2035_v50, 1.0  ;;  %v2066_v3 = vmin.f32 %v2042_v38, 1.0  ;;  %v2067_v28 = vmin.f32 %v2043_v23, 1.0 }
 0x183   : > { %v1886_v32 = vadd.f32 %v1885_v26, %v1884_v53  ;;  %v1893_v14 = vadd.f32 %v1892_v24, %v1891_v29  ;;  %v1942_v18 = vadd.f32 %v1941_v60, %v1940_v51  ;;  %v1949_v31 = vadd.f32 %v1948_v22, %v1947_v54 }
 0x184   : > { %v2106_v52 = vcombine.low %v2058_v6, %v2059_v35  ;;  %v2110_v17 = vcombine.low %v2066_v3, %v2067_v28  ;;  %v1825_v30 = vcombine.low %v2954_v20, %v2958_v11  ;;  %v2282_v37 = vcombine.low %v2958_v11, %v2958_v11 }
 0x185   : > { %v2036_v1 = vmax.f32 %v1886_v32, 0.0  ;;  %v2037_v43 = vmax.f32 %v1893_v14, 0.0  ;;  %v2044_v56 = vmax.f32 %v1942_v18, 0.0  ;;  %v2045_v19 = vmax.f32 %v1949_v31, 0.0 }
 0x186   : > { %v2118_v57 = vrot.slane %v2110_v17, 7  ;;  %v1978_v63 = vsel %vm1865_vm2, %v1825_v30, 0.0  ;;  %v1985_v0 = vsel %vm1865_vm2, %v2282_v37, 0.0  ;;  %v1796_v40 = vmul.f32 %v2960_v25, %v2936_v27 }
 0x187   : > { %v2060_v9 = vmin.f32 %v2036_v1, 1.0  ;;  %v2061_v10 = vmin.f32 %v2037_v43, 1.0  ;;  %v2068_v55 = vmin.f32 %v2044_v56, 1.0  ;;  %v2069_v13 = vmin.f32 %v2045_v19, 1.0 }
 0x188   : > { %v1979_v20 = vrot.slane %v1978_v63, 4  ;;  %v1986_v46 = vrot.slane %v1985_v0, 4  ;;  %v2120_v11 = vsel %vm2119_vm3, %v2118_v57, %v2106_v52  ;;  %v1826_v5 = vcombine.low %v2956_v33, %v1796_v40 }
 0x189   : > { %v2107_v58 = vcombine.low %v2060_v9, %v2061_v10  ;;  %v2111_v36 = vcombine.low %v2068_v55, %v2069_v13  ;;  %v2981_v8 = vsel %vm2121_vm4, %v2118_v57, %v2120_v11  ;;  %v2283_v12 = vcombine.low %v1796_v40, %v1796_v40 }
 0x18a   : > { %v1980_v49 = vadd.f32 %v1979_v20, %v1978_v63  ;;  %v1987_v62 = vadd.f32 %v1986_v46, %v1985_v0  ;;  %v1992_v27 = vsel %vm1865_vm2, %v1826_v5, 0.0 }
 0x18b   : > { %v2128_v25 = vrot.slane %v2111_v36, 7  ;;  %v1993_v61 = vrot.slane %v1992_v27, 4  ;;  %v1999_v44 = vsel %vm1865_vm2, %v2283_v12, 0.0  ;;  %v1733_v15 = vpop.f32.mrb[12].mxu0 }
 0x18c   : > { %v1981_v2 = vrot.slane %v1980_v49, 2  ;;  %v1988_v39 = vrot.slane %v1987_v62, 2  ;;  %v2000_v4 = vrot.slane %v1999_v44, 4  ;;  %v1789_v33 = vmul.f32 %v1733_v15, %v2938_v42  ;;  %v1735_v45 = vpop.f32.mrb[13].mxu0 }
 0x18d   : > { %v1994_v53 = vadd.f32 %v1993_v61, %v1992_v27  ;;  %v2129_v29 = vsel %vm2119_vm3, %v2128_v25, %v2107_v58  ;;  %v1776_v51 = vpop.f32.mrb[12].mxu1  ;;  %v1790_v54 = vmul.f32 %v1735_v45, %v2940_v47  ;;  %v2988_v34 = vpop.f32.mrb[14].mxu0 }
 0x18e   : > { %v1982_v50 = vadd.f32 %v1981_v2, %v1980_v49  ;;  %v1989_v38 = vadd.f32 %v1988_v39, %v1987_v62  ;;  %v2001_v23 = vadd.f32 %v2000_v4, %v1999_v44  ;;  %v2991_v26 = vsel %vm2121_vm4, %v2128_v25, %v2129_v29  ;;  %v1778_v24 = vpop.f32.mrb[13].mxu1  ;;  %v2993_v60 = vpop.f32.mrb[15].mxu0 }
 0x18f   : > { %v1995_v22 = vrot.slane %v1994_v53, 2  ;;  %v2996_v42 = vmul.f32 %v1776_v51, %v2944_v7  ;;  %v1821_v6 = vcombine.low %v1789_v33, %v1790_v54  ;;  %v1822_v35 = vcombine.high %v1789_v33, %v1790_v54  ;;  %v2998_v3 = vpop.f32.mrb[14].mxu1 }
 0x190   : > { %v1983_v47 = vrot.slane %v1982_v50, 1  ;;  %v1990_v28 = vrot.slane %v1989_v38, 1  ;;  %v2002_v32 = vrot.slane %v2001_v23, 2  ;;  %v2276_v14 = vcombine.low %v1790_v54, %v1790_v54  ;;  %v3000_v18 = vpop.f32.mrb[15].mxu1 }
 0x191   : > { %v1996_v31 = vadd.f32 %v1995_v22, %v1994_v53  ;;  %v2280_v52 = vcombine.high %v1790_v54, %v1790_v54  ;;  %v1894_v17 = vsel %vm1865_vm2, %v1821_v6, 0.0  ;;  %v1950_v30 = vsel %vm1865_vm2, %v1822_v35, 0.0 }
 0x192   : > { %v1984_v37 = vadd.f32 %v1983_v47, %v1982_v50  ;;  %v1991_v7 = vadd.f32 %v1990_v28, %v1989_v38  ;;  %v2003_v1 = vadd.f32 %v2002_v32, %v2001_v23  ;;  %v1895_v43 = vrot.slane %v1894_v17, 4 }
 0x193   : > { %v1997_v56 = vrot.slane %v1996_v31, 1  ;;  %v1901_v19 = vsel %vm1865_vm2, %v2276_v14, 0.0  ;;  %v1951_v57 = vrot.slane %v1950_v30, 4  ;;  %v1957_v63 = vsel %vm1865_vm2, %v2280_v52, 0.0 }
 0x194   : > { %v2050_v0 = vmax.f32 %v1984_v37, 0.0  ;;  %v2051_v40 = vmax.f32 %v1991_v7, 0.0  ;;  %v2004_v9 = vrot.slane %v2003_v1, 1  ;;  %v1896_v10 = vadd.f32 %v1895_v43, %v1894_v17 }
 0x195   : > { %v1998_v55 = vadd.f32 %v1997_v56, %v1996_v31  ;;  %v1902_v13 = vrot.slane %v1901_v19, 4  ;;  %v1952_v20 = vadd.f32 %v1951_v57, %v1950_v30  ;;  %v1958_v46 = vrot.slane %v1957_v63, 4 }
 0x196   : > { %v2074_v11 = vmin.f32 %v2050_v0, 1.0  ;;  %v2075_v5 = vmin.f32 %v2051_v40, 1.0  ;;  %v2005_v58 = vadd.f32 %v2004_v9, %v2003_v1  ;;  %v1897_v36 = vrot.slane %v1896_v10, 2 }
 0x197   : > { %v2052_v12 = vmax.f32 %v1998_v55, 0.0  ;;  %v1903_v49 = vadd.f32 %v1902_v13, %v1901_v19  ;;  %v1953_v62 = vrot.slane %v1952_v20, 2  ;;  %v1959_v27 = vadd.f32 %v1958_v46, %v1957_v63 }
 0x198   : > { %v2114_v25 = vcombine.low %v2074_v11, %v2075_v5  ;;  %v2053_v61 = vmax.f32 %v2005_v58, 0.0  ;;  %v1898_v44 = vadd.f32 %v1897_v36, %v1896_v10  ;;  %v1792_v15 = vmul.f32 %v1778_v24, %v2948_v16 }
 0x199   : > { %v2076_v2 = vmin.f32 %v2052_v12, 1.0  ;;  %v1904_v39 = vrot.slane %v1903_v49, 2  ;;  %v1954_v4 = vadd.f32 %v1953_v62, %v1952_v20  ;;  %v1960_v33 = vrot.slane %v1959_v27, 2 }
 0x19a   : > { %v2123_v45 = vrot.slane %v2114_v25, 6  ;;  %v2077_v53 = vmin.f32 %v2053_v61, 1.0  ;;  %v1899_v29 = vrot.slane %v1898_v44, 1  ;;  %v1823_v51 = vcombine.low %v2996_v42, %v1792_v15 }
 0x19b   : > { %v1905_v54 = vadd.f32 %v1904_v39, %v1903_v49  ;;  %v1955_v50 = vrot.slane %v1954_v4, 1  ;;  %v1961_v38 = vadd.f32 %v1960_v33, %v1959_v27  ;;  %v1824_v16 = vcombine.high %v2996_v42, %v1792_v15 }
 0x19c   : > { %v2125_v23 = vsel %vm2124_vm5, %v2123_v45, %v2981_v8  ;;  %v2115_v24 = vcombine.low %v2076_v2, %v2077_v53  ;;  %v1900_v22 = vadd.f32 %v1899_v29, %v1898_v44  ;;  %v2277_v6 = vcombine.low %v1792_v15, %v1792_v15 }
 0x19d   : > { %v2127_v35 = vsel %vm2126_vm6, %v2123_v45, %v2125_v23  ;;  %v1906_v47 = vrot.slane %v1905_v54, 1  ;;  %v1956_v28 = vadd.f32 %v1955_v50, %v1954_v4  ;;  %v1962_v32 = vrot.slane %v1961_v38, 1 }
 0x19e   : > { %2150 = vst [vmem:[%s3013_s28] sm:$0x77] %v2127_v35  ;;  %v2131_v14 = vrot.slane %v2115_v24, 6  ;;  %v2038_v31 = vmax.f32 %v1900_v22, 0.0  ;;  %v2281_v52 = vcombine.high %v1792_v15, %v1792_v15  ;;  %v1908_v17 = vsel %vm1865_vm2, %v1823_v51, 0.0 }
 0x19f   : > { %v1907_v30 = vadd.f32 %v1906_v47, %v1905_v54  ;;  %v1963_v42 = vadd.f32 %v1962_v32, %v1961_v38  ;;  %v2046_v37 = vmax.f32 %v1956_v28, 0.0  ;;  %v1909_v7 = vrot.slane %v1908_v17, 4 }
 0x1a0   : > { %v2132_v8 = vsel %vm2124_vm5, %v2131_v14, %v2991_v26  ;;  %v2062_v1 = vmin.f32 %v2038_v31, 1.0  ;;  %v1915_v43 = vsel %vm1865_vm2, %v2277_v6, 0.0  ;;  %v1964_v56 = vsel %vm1865_vm2, %v1824_v16, 0.0 }
 0x1a1   : > { %v2133_v19 = vsel %vm2126_vm6, %v2131_v14, %v2132_v8  ;;  %v2039_v57 = vmax.f32 %v1907_v30, 0.0  ;;  %v2047_v63 = vmax.f32 %v1963_v42, 0.0  ;;  %v2070_v0 = vmin.f32 %v2046_v37, 1.0 }
 0x1a2   : > { %2151 = vst [vmem:[%s3013_s28 + $0x8] sm:$0x77] %v2133_v19  ;;  %v1910_v40 = vadd.f32 %v1909_v7, %v1908_v17  ;;  %v1916_v9 = vrot.slane %v1915_v43, 4  ;;  %v1965_v10 = vrot.slane %v1964_v56, 4  ;;  %v1971_v55 = vsel %vm1865_vm2, %v2281_v52, 0.0 }
 0x1a3   : > { %v2063_v13 = vmin.f32 %v2039_v57, 1.0  ;;  %v2071_v20 = vmin.f32 %v2047_v63, 1.0  ;;  %v1972_v46 = vrot.slane %v1971_v55, 4  ;;  %v1797_v26 = vmul.f32 %v2988_v34, %v2942_v59 }
 0x1a4   : > { %v1911_v11 = vrot.slane %v1910_v40, 2  ;;  %v1917_v5 = vadd.f32 %v1916_v9, %v1915_v43  ;;  %v1966_v58 = vadd.f32 %v1965_v10, %v1964_v56  ;;  %v1799_v36 = vmul.f32 %v2998_v3, %v2950_v21 }
 0x1a5   : > { %v2108_v12 = vcombine.low %v2062_v1, %v2063_v13  ;;  %v2112_v49 = vcombine.low %v2070_v0, %v2071_v20  ;;  %v1973_v62 = vadd.f32 %v1972_v46, %v1971_v55  ;;  %v1798_v27 = vmul.f32 %v2993_v60, %v2946_v41 }
 0x1a6   : > { %v1912_v25 = vadd.f32 %v1911_v11, %v1910_v40  ;;  %v1918_v61 = vrot.slane %v1917_v5, 2  ;;  %v1967_v44 = vrot.slane %v1966_v58, 2  ;;  %v1800_v15 = vmul.f32 %v3000_v18, %v2952_v48 }
 0x1a7   : > { %v2134_v2 = vrot.slane %v2112_v49, 7  ;;  %v1974_v59 = vrot.slane %v1973_v62, 2  ;;  %v1827_v34 = vcombine.low %v1797_v26, %v1798_v27  ;;  %v2284_v39 = vcombine.low %v1798_v27, %v1798_v27 }
 0x1a8   : > { %v1913_v4 = vrot.slane %v1912_v25, 1  ;;  %v1919_v33 = vadd.f32 %v1918_v61, %v1917_v5  ;;  %v1968_v45 = vadd.f32 %v1967_v44, %v1966_v58  ;;  %v1828_v21 = vcombine.low %v1799_v36, %v1800_v15 }
 0x1a9   : > { %v1975_v3 = vadd.f32 %v1974_v59, %v1973_v62  ;;  %v2006_v53 = vsel %vm1865_vm2, %v1827_v34, 0.0  ;;  %v2013_v29 = vsel %vm1865_vm2, %v2284_v39, 0.0  ;;  %v2135_v41 = vsel %vm2119_vm3, %v2134_v2, %v2108_v12 }
 0x1aa   : > { %v1914_v60 = vadd.f32 %v1913_v4, %v1912_v25  ;;  %v1920_v51 = vrot.slane %v1919_v33, 1  ;;  %v1969_v54 = vrot.slane %v1968_v45, 1  ;;  %v2007_v50 = vrot.slane %v2006_v53, 4 }
 0x1ab   : > { %v1976_v48 = vrot.slane %v1975_v3, 1  ;;  %v2014_v18 = vrot.slane %v2013_v29, 4  ;;  %v2136_v38 = vsel %vm2121_vm4, %v2134_v2, %v2135_v41  ;;  %v2285_v16 = vcombine.low %v1800_v15, %v1800_v15 }
 0x1ac   : > { %v1921_v23 = vadd.f32 %v1920_v51, %v1919_v33  ;;  %v1970_v24 = vadd.f32 %v1969_v54, %v1968_v45  ;;  %v2040_v22 = vmax.f32 %v1914_v60, 0.0  ;;  %v2008_v6 = vadd.f32 %v2007_v50, %v2006_v53 }
 0x1ad   : > { %v1977_v35 = vadd.f32 %v1976_v48, %v1975_v3  ;;  %v2015_v47 = vadd.f32 %v2014_v18, %v2013_v29  ;;  %v2020_v28 = vsel %vm1865_vm2, %v1828_v21, 0.0  ;;  %v2027_v32 = vsel %vm1865_vm2, %v2285_v16, 0.0 }
 0x1ae   : > { %v2041_v14 = vmax.f32 %v1921_v23, 0.0  ;;  %v2048_v31 = vmax.f32 %v1970_v24, 0.0  ;;  %v2064_v52 = vmin.f32 %v2040_v22, 1.0  ;;  %v2009_v17 = vrot.slane %v2008_v6, 2 }
 0x1af   : > { %v2049_v30 = vmax.f32 %v1977_v35, 0.0  ;;  %v2016_v42 = vrot.slane %v2015_v47, 2  ;;  %v2021_v37 = vrot.slane %v2020_v28, 4  ;;  %v2028_v7 = vrot.slane %v2027_v32, 4 }
 0x1b0   : > { %v2065_v8 = vmin.f32 %v2041_v14, 1.0  ;;  %v2072_v1 = vmin.f32 %v2048_v31, 1.0  ;;  %v2010_v43 = vadd.f32 %v2009_v17, %v2008_v6 }
 0x1b1   : > { %v2073_v56 = vmin.f32 %v2049_v30, 1.0  ;;  %v2017_v19 = vadd.f32 %v2016_v42, %v2015_v47  ;;  %v2022_v57 = vadd.f32 %v2021_v37, %v2020_v28  ;;  %v2029_v63 = vadd.f32 %v2028_v7, %v2027_v32 }
 0x1b2   : > { %v2109_v0 = vcombine.low %v2064_v52, %v2065_v8  ;;  %v2011_v40 = vrot.slane %v2010_v43, 1 }
 0x1b3   : > { %v2113_v9 = vcombine.low %v2072_v1, %v2073_v56  ;;  %v2018_v10 = vrot.slane %v2017_v19, 1  ;;  %v2023_v55 = vrot.slane %v2022_v57, 2  ;;  %v2030_v13 = vrot.slane %v2029_v63, 2 }
 0x1b4   : > { %v2012_v20 = vadd.f32 %v2011_v40, %v2010_v43 }
 0x1b5   : > { %v2140_v46 = vrot.slane %v2113_v9, 7  ;;  %v2019_v26 = vadd.f32 %v2018_v10, %v2017_v19  ;;  %v2024_v11 = vadd.f32 %v2023_v55, %v2022_v57  ;;  %v2031_v5 = vadd.f32 %v2030_v13, %v2029_v63 }
 0x1b6   : > { %v2054_v58 = vmax.f32 %v2012_v20, 0.0 }
 0x1b7   : > { %v2055_v36 = vmax.f32 %v2019_v26, 0.0  ;;  %v2025_v12 = vrot.slane %v2024_v11, 1  ;;  %v2032_v49 = vrot.slane %v2031_v5, 1  ;;  %v2141_v62 = vsel %vm2119_vm3, %v2140_v46, %v2109_v0 }
 0x1b8   : > { %v2078_v27 = vmin.f32 %v2054_v58, 1.0  ;;  %v2142_v25 = vsel %vm2121_vm4, %v2140_v46, %v2141_v62 }
 0x1b9   : > { %v2079_v61 = vmin.f32 %v2055_v36, 1.0  ;;  %v2026_v44 = vadd.f32 %v2025_v12, %v2024_v11  ;;  %v2033_v15 = vadd.f32 %v2032_v49, %v2031_v5 }
 0x1bb   : > { %v2116_v2 = vcombine.low %v2078_v27, %v2079_v61  ;;  %v2056_v59 = vmax.f32 %v2026_v44, 0.0  ;;  %v2057_v34 = vmax.f32 %v2033_v15, 0.0 }
 0x1bd   : > { %v2137_v39 = vrot.slane %v2116_v2, 6  ;;  %v2080_v4 = vmin.f32 %v2056_v59, 1.0  ;;  %v2081_v33 = vmin.f32 %v2057_v34, 1.0 }
 0x1bf   : > { %v2138_v45 = vsel %vm2124_vm5, %v2137_v39, %v2136_v38  ;;  %v2117_v21 = vcombine.low %v2080_v4, %v2081_v33 }
 0x1c0   : > { %v2139_v3 = vsel %vm2126_vm6, %v2137_v39, %v2138_v45 }
 0x1c1   : > { %2152 = vst [vmem:[%s3013_s28 + $0x10] sm:$0x77] %v2139_v3  ;;  %v2143_v53 = vrot.slane %v2117_v21, 6 }
 0x1c3   : > { %v2144_v29 = vsel %vm2124_vm5, %v2143_v53, %v2142_v25 }
 0x1c4   : > { %v2145_v41 = vsel %vm2126_vm6, %v2143_v53, %v2144_v29 }
 0x1c5   : > { %2153 = vst [vmem:[%s3013_s28 + $0x18] sm:$0x77] %v2145_v41 }
 0x1c6 PF: > { %s13_s14 = sadd.s32 1, %s2342_s14   ;;  %s3063_s12 = smov %s2338_s13 }
 0x1c7   : > { %p10_p5 = scmp.ge.s32.totalorder %s13_s14, 4   ;;  %s3064_s13 = smov %s3066_s15 }
 0x1c9   :  { %12 = sbr.rel (!%p10_p5) target bundleno = 2 (0x2), region = 65 }

</bundles_post_ra>
